<compile_context>
chip_gen: v6e
topology: v6e:2x2x1
jax: 0.10.0
libtpu: 0.0.40
codegen_flags: <defaults>
</compile_context>

<pallas_src>
import functools

import numpy as np
import jax
import jax.numpy as jnp
from jax import lax
from jax.experimental import pallas as pl
from jax.experimental.pallas import tpu as pltpu

_INV_SQRT2 = float(1.0 / np.sqrt(2.0))


def _erf_f32(x):
    # TODO(synk): lax.erf has no Mosaic lowering rule; use the Abramowitz &
    # Stegun 7.1.26 rational approximation (max abs err ~1.5e-7 ~= f32 eps).
    p = 0.3275911
    a1, a2, a3, a4, a5 = (0.254829592, -0.284496736, 1.421413741,
                          -1.453152027, 1.061405429)
    sgn = jnp.where(x < 0.0, -1.0, 1.0)
    z = jnp.abs(x)
    # Exact divide on purpose: this feeds the L-step cumulative matrix product,
    # which amplifies per-element error multiplicatively.
    t = 1.0 / (1.0 + p * z)
    poly = ((((a5 * t + a4) * t + a3) * t + a2) * t + a1) * t
    return sgn * (1.0 - poly * jnp.exp(-z * z))


def _gelu_exact(x):
    # Matches torch.nn.functional.gelu(x) (default, erf formulation).
    return 0.5 * x * (1.0 + _erf_f32(x * _INV_SQRT2))


def _ids4_kernel(x_ref, a2_ref, w2_ref, dwt_ref, bias_ref, o_ref, cum_ref,
                 *, nb, seq_len, d_state):
    """One grid step == one chunk of `nb` batch elements (nb*seq_len rows).

    Row layout inside the chunk is l-major: row = l*nb + b.
    """
    DS, L = d_state, seq_len

    xf = x_ref[...]                                        # (L*nb, DM)

    # ---- (1) Input-dependent transition matrices: ONE fused MXU matmul ----
    # axf[l*nb + b, i*DS + k] = gelu( sum_m x[b,l,m] * A[m,i,k] )
    axf = _gelu_exact(
        jnp.dot(xf, a2_ref[...], preferred_element_type=jnp.float32,
                precision=lax.Precision.HIGHEST))          # (L*nb, DS*DS)

    # ---- (2) Serial cumulative matrix product, on the VPU ------------------
    # state is kept flattened as a (nb, DS*DS) tile: all nb batch elements ride
    # together in sublanes; the DS x DS contraction is an unrolled
    # broadcast-multiply + add over j (static slices only, no MXU, f32).
    # Because rows are l-major, each step's operand and its cum-prod store are
    # single contiguous slices.
    state = axf[0:nb, :]                                   # cum_prod at l = 0
    cum_ref[0:nb, :] = state
    # L is small (8 here): static unroll is fine.
    # TODO(synk): if L grows beyond ~16, switch to lax.fori_loop(unroll=2-4)
    # so the scan's vreg live range stays bounded.
    for l in range(1, L):
        m = axf[l * nb:(l + 1) * nb, :]                    # (nb, DS*DS)
        mslices = [m[:, j * DS:(j + 1) * DS] for j in range(DS)]  # hoist RHS
        blocks = []
        for i in range(DS):
            # new[b, i*DS + k] = sum_j state[b, i*DS + j] * m[b, j*DS + k]
            acc = state[:, i * DS:i * DS + 1] * mslices[0]
            for j in range(1, DS):
                acc = acc + (state[:, i * DS + j:i * DS + j + 1] * mslices[j])
            blocks.append(acc)                             # (nb, DS)
        state = jnp.concatenate(blocks, axis=-1)           # (nb, DS*DS)
        cum_ref[l * nb:(l + 1) * nb, :] = state

    # ---- (3) Epilogue: (proj ∘ C) folded into one matmul, plus D skip ------
    # y = cum_flat @ W2 + x @ D^T + (C_b + proj_b*sum_i C_w[:,i] + D_b)
    y = (jnp.dot(cum_ref[...], w2_ref[...], preferred_element_type=jnp.float32,
                 precision=lax.Precision.HIGHEST)
         + jnp.dot(xf, dwt_ref[...], preferred_element_type=jnp.float32,
                   precision=lax.Precision.HIGHEST)
         + bias_ref[...])
    o_ref[...] = y.astype(o_ref.dtype)


def _pick_nb(batch, seq_len, max_rows=256):
    """Largest divisor of `batch` with nb*seq_len <= max_rows (amortizes the
    ~0.35us/step pipeline overhead while keeping blocks small vs VMEM)."""
    nb = max(1, min(batch, max_rows // max(seq_len, 1)))
    while batch % nb:
        nb -= 1
    return nb


def ids4_forward(x, A, proj_w, proj_b, C_w, C_b, D_w, D_b, *, nb=None):
    """Pallas forward for IDS4Block.  x: (B, L, d_model) float32."""
    B, L, DM = x.shape
    DS = A.shape[1]
    DS2 = DS * DS

    if nb is None:
        nb = _pick_nb(B, L)
    assert B % nb == 0
    rows = nb * L
    n_chunks = B // nb

    # ---- one-time plain-JAX parameter folding (outside the kernel) ----
    A2 = A.reshape(DM, DS2)                       # A[m,i,k] -> A2[m, i*DS + k]
    CwT = jnp.transpose(C_w)                      # (DS, DM), CwT[i,m] = C_w[m,i]
    # W2[i*DS + j, m] = proj_w[j] * C_w[m, i]   (proj folded into C)
    W2 = (proj_w[0][None, :, None] * CwT[:, None, :]).reshape(DS2, DM)
    # Fused bias: proj_b through C, plus C_b, plus D_b.
    bias = (C_b + proj_b[0] * jnp.sum(C_w, axis=1) + D_b).reshape(1, DM)
    DwT = jnp.transpose(D_w)                      # (DM, DM)

    # Per-chunk l-major row layout: row = chunk*rows + l*nb + b_in_chunk.
    x2 = (x.reshape(n_chunks, nb, L, DM)
           .transpose(0, 2, 1, 3)
           .reshape(n_chunks * rows, DM))

    kernel = functools.partial(_ids4_kernel, nb=nb, seq_len=L, d_state=DS)

    # NOTE: DM=32 < 128 lanes, so the output store is inherently lane-masked;
    # packing (L, DM) into a lane-dense last axis would need a cross-lane
    # relayout in-kernel and is not worth it at this size.
    out2 = pl.pallas_call(
        kernel,
        out_shape=jax.ShapeDtypeStruct((n_chunks * rows, DM), x.dtype),
        grid_spec=pltpu.PrefetchScalarGridSpec(
            num_scalar_prefetch=0,
            grid=(n_chunks,),                                  # batch chunks
            in_specs=[
                pl.BlockSpec((rows, DM), lambda c: (c, 0)),    # x chunk
                pl.BlockSpec((DM, DS2), lambda c: (0, 0)),     # A (flattened)
                pl.BlockSpec((DS2, DM), lambda c: (0, 0)),     # proj∘C weight
                pl.BlockSpec((DM, DM), lambda c: (0, 0)),      # D^T
                pl.BlockSpec((1, DM), lambda c: (0, 0)),       # fused bias
            ],
            out_specs=pl.BlockSpec((rows, DM), lambda c: (c, 0)),
            scratch_shapes=[
                pltpu.VMEM((rows, DS2), jnp.float32),          # cum-prod (flat)
            ],
        ),
        compiler_params=pltpu.CompilerParams(
            dimension_semantics=("parallel",)),                # v7x: 2 TCs
    )(x2, A2, W2, DwT, bias)

    # Undo the per-chunk l-major layout: back to (B, L, DM).
    return (out2.reshape(n_chunks, L, nb, DM)
                .transpose(0, 2, 1, 3)
                .reshape(B, L, DM))


def ids4_reference(x, A, proj_w, proj_b, C_w, C_b, D_w, D_b):
    """Pure-JAX mirror of the PyTorch IDS4Block.forward (for verification)."""
    hi = lax.Precision.HIGHEST
    Ax = jnp.einsum('blm,mij->blij', x, A, precision=hi)
    Ax = jax.nn.gelu(Ax, approximate=False)
    L = x.shape[1]
    state = Ax[:, 0]
    cps = [state]
    for l in range(1, L):
        state = jnp.einsum('bij,bjk->bik', state, Ax[:, l], precision=hi)
        cps.append(state)
    cum = jnp.stack(cps, axis=1)                                   # (B,L,DS,DS)
    p = jnp.einsum('blij,oj->blio', cum, proj_w, precision=hi) + proj_b
    p = p[..., 0]                                                  # .squeeze()
    yc = jnp.einsum('bli,oi->blo', p, C_w, precision=hi) + C_b
    yd = jnp.einsum('blm,om->blo', x, D_w, precision=hi) + D_b
    return yc + yd


if __name__ == "__main__":
    B, L, DM, DS = 2, 8, 32, 8
    key = jax.random.PRNGKey(0)
    ks = jax.random.split(key, 8)

    x = 0.2 * jax.random.normal(ks[0], (B, L, DM), dtype=jnp.float32)

    # Deterministic parameter init mirroring IDS4Block.__init__ shapes.
    A = (jnp.eye(DS, dtype=jnp.float32)[None, :, :]
         + jax.random.normal(ks[1], (DM, DS, DS), dtype=jnp.float32)
         / jnp.sqrt(jnp.float32(DS)))
    lim_s = 1.0 / np.sqrt(DS)
    lim_m = 1.0 / np.sqrt(DM)
    proj_w = jax.random.uniform(ks[2], (1, DS), jnp.float32, -lim_s, lim_s)
    proj_b = jax.random.uniform(ks[3], (1,), jnp.float32, -lim_s, lim_s)
    C_w = jax.random.uniform(ks[4], (DM, DS), jnp.float32, -lim_s, lim_s)
    C_b = jax.random.uniform(ks[5], (DM,), jnp.float32, -lim_s, lim_s)
    D_w = jax.random.uniform(ks[6], (DM, DM), jnp.float32, -lim_m, lim_m)
    D_b = jax.random.uniform(ks[7], (DM,), jnp.float32, -lim_m, lim_m)

    out = ids4_forward(x, A, proj_w, proj_b, C_w, C_b, D_w, D_b)
    out = jax.block_until_ready(out)

    ref = ids4_reference(x, A, proj_w, proj_b, C_w, C_b, D_w, D_b)
    np.testing.assert_allclose(np.asarray(out), np.asarray(ref),
                               rtol=1e-2, atol=1e-3)
    print("KERNEL_OK")
</pallas_src>

<mosaic_0001>
module attributes {stable_mosaic.version = 11 : i64} {
  func.func @_ids4_kernel(%arg0: i32, %arg1: memref<16x32xf32, #tpu.memory_space<vmem>>, %arg2: memref<32x64xf32, #tpu.memory_space<vmem>>, %arg3: memref<64x32xf32, #tpu.memory_space<vmem>>, %arg4: memref<32x32xf32, #tpu.memory_space<vmem>>, %arg5: memref<1x32xf32, #tpu.memory_space<vmem>>, %arg6: memref<16x32xf32, #tpu.memory_space<vmem>>, %arg7: memref<16x64xf32, #tpu.memory_space<vmem>>) attributes {dimension_semantics = [#tpu.dimension_semantics<parallel>], iteration_bounds = array<i64: 1>, scalar_prefetch = 0 : i64, scratch_operands = 1 : i64, tpu.core_type = #tpu.core_type<tc>, window_params = [{transform_indices = @transform_0, window_bounds = array<i64: 16, 32>}, {pipeline_mode = #tpu.pipeline_mode<synchronous>, transform_indices = @transform_1, window_bounds = array<i64: 32, 64>}, {pipeline_mode = #tpu.pipeline_mode<synchronous>, transform_indices = @transform_2, window_bounds = array<i64: 64, 32>}, {pipeline_mode = #tpu.pipeline_mode<synchronous>, transform_indices = @transform_3, window_bounds = array<i64: 32, 32>}, {pipeline_mode = #tpu.pipeline_mode<synchronous>, transform_indices = @transform_4, window_bounds = array<i64: 1, 32>}, {transform_indices = @transform_5, window_bounds = array<i64: 16, 32>}]} {
    %c0 = arith.constant 0 : index
    %c0_0 = arith.constant 0 : index
    %0 = vector.load %arg1[%c0, %c0_0] : memref<16x32xf32, #tpu.memory_space<vmem>>, vector<16x32xf32>
    %c0_1 = arith.constant 0 : index
    %c0_2 = arith.constant 0 : index
    %1 = vector.load %arg2[%c0_1, %c0_2] : memref<32x64xf32, #tpu.memory_space<vmem>>, vector<32x64xf32>
    %cst = arith.constant dense<0.000000e+00> : vector<16x64xf32>
    %2 = tpu.matmul %0, %1, %cst {dimension_numbers = #tpu.dot_dimension_numbers<[1], [0], [0], [1], [0, 0, 1, 1], [], []>, precision = #tpu.contract_precision<fp32>} : vector<16x32xf32>, vector<32x64xf32>, vector<16x64xf32> -> vector<16x64xf32>
    %cst_3 = arith.constant 5.000000e-01 : f32
    %3 = vector.broadcast %cst_3 : f32 to vector<16x64xf32>
    %4 = arith.mulf %3, %2 : vector<16x64xf32>
    %cst_4 = arith.constant 0.707106769 : f32
    %5 = vector.broadcast %cst_4 : f32 to vector<16x64xf32>
    %6 = arith.mulf %2, %5 : vector<16x64xf32>
    %cst_5 = arith.constant 0.000000e+00 : f32
    %7 = vector.broadcast %cst_5 : f32 to vector<16x64xf32>
    %8 = arith.cmpf olt, %6, %7 : vector<16x64xf32>
    %cst_6 = arith.constant -1.000000e+00 : f32
    %cst_7 = arith.constant 1.000000e+00 : f32
    %9 = vector.broadcast %cst_6 : f32 to vector<16x64xf32>
    %10 = vector.broadcast %cst_7 : f32 to vector<16x64xf32>
    %11 = arith.select %8, %9, %10 : vector<16x64xi1>, vector<16x64xf32>
    %12 = math.absf %6 : vector<16x64xf32>
    %cst_8 = arith.constant 0.327591091 : f32
    %13 = vector.broadcast %cst_8 : f32 to vector<16x64xf32>
    %14 = arith.mulf %13, %12 : vector<16x64xf32>
    %cst_9 = arith.constant 1.000000e+00 : f32
    %15 = vector.broadcast %cst_9 : f32 to vector<16x64xf32>
    %16 = arith.addf %15, %14 : vector<16x64xf32>
    %cst_10 = arith.constant 1.000000e+00 : f32
    %17 = vector.broadcast %cst_10 : f32 to vector<16x64xf32>
    %18 = arith.divf %17, %16 : vector<16x64xf32>
    %cst_11 = arith.constant 1.06140542 : f32
    %19 = vector.broadcast %cst_11 : f32 to vector<16x64xf32>
    %20 = arith.mulf %19, %18 : vector<16x64xf32>
    %cst_12 = arith.constant -1.45315206 : f32
    %21 = vector.broadcast %cst_12 : f32 to vector<16x64xf32>
    %22 = arith.addf %20, %21 : vector<16x64xf32>
    %23 = arith.mulf %22, %18 : vector<16x64xf32>
    %cst_13 = arith.constant 1.42141378 : f32
    %24 = vector.broadcast %cst_13 : f32 to vector<16x64xf32>
    %25 = arith.addf %23, %24 : vector<16x64xf32>
    %26 = arith.mulf %25, %18 : vector<16x64xf32>
    %cst_14 = arith.constant -0.284496725 : f32
    %27 = vector.broadcast %cst_14 : f32 to vector<16x64xf32>
    %28 = arith.addf %26, %27 : vector<16x64xf32>
    %29 = arith.mulf %28, %18 : vector<16x64xf32>
    %cst_15 = arith.constant 0.254829586 : f32
    %30 = vector.broadcast %cst_15 : f32 to vector<16x64xf32>
    %31 = arith.addf %29, %30 : vector<16x64xf32>
    %32 = arith.mulf %31, %18 : vector<16x64xf32>
    %cst_16 = arith.constant 0.000000e+00 : f32
    %33 = vector.broadcast %cst_16 : f32 to vector<16x64xf32>
    %34 = arith.subf %33, %12 : vector<16x64xf32>
    %35 = arith.mulf %34, %12 : vector<16x64xf32>
    %36 = math.exp %35 : vector<16x64xf32>
    %37 = arith.mulf %32, %36 : vector<16x64xf32>
    %cst_17 = arith.constant 1.000000e+00 : f32
    %38 = vector.broadcast %cst_17 : f32 to vector<16x64xf32>
    %39 = arith.subf %38, %37 : vector<16x64xf32>
    %40 = arith.mulf %11, %39 : vector<16x64xf32>
    %cst_18 = arith.constant 1.000000e+00 : f32
    %41 = vector.broadcast %cst_18 : f32 to vector<16x64xf32>
    %42 = arith.addf %41, %40 : vector<16x64xf32>
    %43 = arith.mulf %4, %42 : vector<16x64xf32>
    %44 = vector.extract_strided_slice %43 {offsets = [0, 0], sizes = [2, 64], strides = [1, 1]} : vector<16x64xf32> to vector<2x64xf32>
    %c0_19 = arith.constant 0 : index
    %c0_20 = arith.constant 0 : index
    %45 = vector.load %arg7[%c0_19, %c0_20] : memref<16x64xf32, #tpu.memory_space<vmem>>, vector<2x64xf32>
    tpu.vector_store %arg7[%c0_19, %c0_20], %44 {strides = array<i32>} : memref<16x64xf32, #tpu.memory_space<vmem>>, vector<2x64xf32>,
    %46 = vector.extract_strided_slice %43 {offsets = [2, 0], sizes = [2, 64], strides = [1, 1]} : vector<16x64xf32> to vector<2x64xf32>
    %47 = vector.extract_strided_slice %46 {offsets = [0, 0], sizes = [2, 8], strides = [1, 1]} : vector<2x64xf32> to vector<2x8xf32>
    %48 = vector.extract_strided_slice %46 {offsets = [0, 8], sizes = [2, 8], strides = [1, 1]} : vector<2x64xf32> to vector<2x8xf32>
    %49 = vector.extract_strided_slice %46 {offsets = [0, 16], sizes = [2, 8], strides = [1, 1]} : vector<2x64xf32> to vector<2x8xf32>
    %50 = vector.extract_strided_slice %46 {offsets = [0, 24], sizes = [2, 8], strides = [1, 1]} : vector<2x64xf32> to vector<2x8xf32>
    %51 = vector.extract_strided_slice %46 {offsets = [0, 32], sizes = [2, 8], strides = [1, 1]} : vector<2x64xf32> to vector<2x8xf32>
    %52 = vector.extract_strided_slice %46 {offsets = [0, 40], sizes = [2, 8], strides = [1, 1]} : vector<2x64xf32> to vector<2x8xf32>
    %53 = vector.extract_strided_slice %46 {offsets = [0, 48], sizes = [2, 8], strides = [1, 1]} : vector<2x64xf32> to vector<2x8xf32>
    %54 = vector.extract_strided_slice %46 {offsets = [0, 56], sizes = [2, 8], strides = [1, 1]} : vector<2x64xf32> to vector<2x8xf32>
    %55 = vector.extract_strided_slice %44 {offsets = [0, 0], sizes = [2, 1], strides = [1, 1]} : vector<2x64xf32> to vector<2x1xf32>
    %56 = vector.broadcast %55 : vector<2x1xf32> to vector<2x8xf32>
    %57 = arith.mulf %56, %47 : vector<2x8xf32>
    %58 = vector.extract_strided_slice %44 {offsets = [0, 1], sizes = [2, 1], strides = [1, 1]} : vector<2x64xf32> to vector<2x1xf32>
    %59 = vector.broadcast %58 : vector<2x1xf32> to vector<2x8xf32>
    %60 = arith.mulf %59, %48 : vector<2x8xf32>
    %61 = arith.addf %57, %60 : vector<2x8xf32>
    %62 = vector.extract_strided_slice %44 {offsets = [0, 2], sizes = [2, 1], strides = [1, 1]} : vector<2x64xf32> to vector<2x1xf32>
    %63 = vector.broadcast %62 : vector<2x1xf32> to vector<2x8xf32>
    %64 = arith.mulf %63, %49 : vector<2x8xf32>
    %65 = arith.addf %61, %64 : vector<2x8xf32>
    %66 = vector.extract_strided_slice %44 {offsets = [0, 3], sizes = [2, 1], strides = [1, 1]} : vector<2x64xf32> to vector<2x1xf32>
    %67 = vector.broadcast %66 : vector<2x1xf32> to vector<2x8xf32>
    %68 = arith.mulf %67, %50 : vector<2x8xf32>
    %69 = arith.addf %65, %68 : vector<2x8xf32>
    %70 = vector.extract_strided_slice %44 {offsets = [0, 4], sizes = [2, 1], strides = [1, 1]} : vector<2x64xf32> to vector<2x1xf32>
    %71 = vector.broadcast %70 : vector<2x1xf32> to vector<2x8xf32>
    %72 = arith.mulf %71, %51 : vector<2x8xf32>
    %73 = arith.addf %69, %72 : vector<2x8xf32>
    %74 = vector.extract_strided_slice %44 {offsets = [0, 5], sizes = [2, 1], strides = [1, 1]} : vector<2x64xf32> to vector<2x1xf32>
    %75 = vector.broadcast %74 : vector<2x1xf32> to vector<2x8xf32>
    %76 = arith.mulf %75, %52 : vector<2x8xf32>
    %77 = arith.addf %73, %76 : vector<2x8xf32>
    %78 = vector.extract_strided_slice %44 {offsets = [0, 6], sizes = [2, 1], strides = [1, 1]} : vector<2x64xf32> to vector<2x1xf32>
    %79 = vector.broadcast %78 : vector<2x1xf32> to vector<2x8xf32>
    %80 = arith.mulf %79, %53 : vector<2x8xf32>
    %81 = arith.addf %77, %80 : vector<2x8xf32>
    %82 = vector.extract_strided_slice %44 {offsets = [0, 7], sizes = [2, 1], strides = [1, 1]} : vector<2x64xf32> to vector<2x1xf32>
    %83 = vector.broadcast %82 : vector<2x1xf32> to vector<2x8xf32>
    %84 = arith.mulf %83, %54 : vector<2x8xf32>
    %85 = arith.addf %81, %84 : vector<2x8xf32>
    %86 = vector.extract_strided_slice %44 {offsets = [0, 8], sizes = [2, 1], strides = [1, 1]} : vector<2x64xf32> to vector<2x1xf32>
    %87 = vector.broadcast %86 : vector<2x1xf32> to vector<2x8xf32>
    %88 = arith.mulf %87, %47 : vector<2x8xf32>
    %89 = vector.extract_strided_slice %44 {offsets = [0, 9], sizes = [2, 1], strides = [1, 1]} : vector<2x64xf32> to vector<2x1xf32>
    %90 = vector.broadcast %89 : vector<2x1xf32> to vector<2x8xf32>
    %91 = arith.mulf %90, %48 : vector<2x8xf32>
    %92 = arith.addf %88, %91 : vector<2x8xf32>
    %93 = vector.extract_strided_slice %44 {offsets = [0, 10], sizes = [2, 1], strides = [1, 1]} : vector<2x64xf32> to vector<2x1xf32>
    %94 = vector.broadcast %93 : vector<2x1xf32> to vector<2x8xf32>
    %95 = arith.mulf %94, %49 : vector<2x8xf32>
    %96 = arith.addf %92, %95 : vector<2x8xf32>
    %97 = vector.extract_strided_slice %44 {offsets = [0, 11], sizes = [2, 1], strides = [1, 1]} : vector<2x64xf32> to vector<2x1xf32>
    %98 = vector.broadcast %97 : vector<2x1xf32> to vector<2x8xf32>
    %99 = arith.mulf %98, %50 : vector<2x8xf32>
    %100 = arith.addf %96, %99 : vector<2x8xf32>
    %101 = vector.extract_strided_slice %44 {offsets = [0, 12], sizes = [2, 1], strides = [1, 1]} : vector<2x64xf32> to vector<2x1xf32>
    %102 = vector.broadcast %101 : vector<2x1xf32> to vector<2x8xf32>
    %103 = arith.mulf %102, %51 : vector<2x8xf32>
    %104 = arith.addf %100, %103 : vector<2x8xf32>
    %105 = vector.extract_strided_slice %44 {offsets = [0, 13], sizes = [2, 1], strides = [1, 1]} : vector<2x64xf32> to vector<2x1xf32>
    %106 = vector.broadcast %105 : vector<2x1xf32> to vector<2x8xf32>
    %107 = arith.mulf %106, %52 : vector<2x8xf32>
    %108 = arith.addf %104, %107 : vector<2x8xf32>
    %109 = vector.extract_strided_slice %44 {offsets = [0, 14], sizes = [2, 1], strides = [1, 1]} : vector<2x64xf32> to vector<2x1xf32>
    %110 = vector.broadcast %109 : vector<2x1xf32> to vector<2x8xf32>
    %111 = arith.mulf %110, %53 : vector<2x8xf32>
    %112 = arith.addf %108, %111 : vector<2x8xf32>
    %113 = vector.extract_strided_slice %44 {offsets = [0, 15], sizes = [2, 1], strides = [1, 1]} : vector<2x64xf32> to vector<2x1xf32>
    %114 = vector.broadcast %113 : vector<2x1xf32> to vector<2x8xf32>
    %115 = arith.mulf %114, %54 : vector<2x8xf32>
    %116 = arith.addf %112, %115 : vector<2x8xf32>
    %117 = vector.extract_strided_slice %44 {offsets = [0, 16], sizes = [2, 1], strides = [1, 1]} : vector<2x64xf32> to vector<2x1xf32>
    %118 = vector.broadcast %117 : vector<2x1xf32> to vector<2x8xf32>
    %119 = arith.mulf %118, %47 : vector<2x8xf32>
    %120 = vector.extract_strided_slice %44 {offsets = [0, 17], sizes = [2, 1], strides = [1, 1]} : vector<2x64xf32> to vector<2x1xf32>
    %121 = vector.broadcast %120 : vector<2x1xf32> to vector<2x8xf32>
    %122 = arith.mulf %121, %48 : vector<2x8xf32>
    %123 = arith.addf %119, %122 : vector<2x8xf32>
    %124 = vector.extract_strided_slice %44 {offsets = [0, 18], sizes = [2, 1], strides = [1, 1]} : vector<2x64xf32> to vector<2x1xf32>
    %125 = vector.broadcast %124 : vector<2x1xf32> to vector<2x8xf32>
    %126 = arith.mulf %125, %49 : vector<2x8xf32>
    %127 = arith.addf %123, %126 : vector<2x8xf32>
    %128 = vector.extract_strided_slice %44 {offsets = [0, 19], sizes = [2, 1], strides = [1, 1]} : vector<2x64xf32> to vector<2x1xf32>
    %129 = vector.broadcast %128 : vector<2x1xf32> to vector<2x8xf32>
    %130 = arith.mulf %129, %50 : vector<2x8xf32>
    %131 = arith.addf %127, %130 : vector<2x8xf32>
    %132 = vector.extract_strided_slice %44 {offsets = [0, 20], sizes = [2, 1], strides = [1, 1]} : vector<2x64xf32> to vector<2x1xf32>
    %133 = vector.broadcast %132 : vector<2x1xf32> to vector<2x8xf32>
    %134 = arith.mulf %133, %51 : vector<2x8xf32>
    %135 = arith.addf %131, %134 : vector<2x8xf32>
    %136 = vector.extract_strided_slice %44 {offsets = [0, 21], sizes = [2, 1], strides = [1, 1]} : vector<2x64xf32> to vector<2x1xf32>
    %137 = vector.broadcast %136 : vector<2x1xf32> to vector<2x8xf32>
    %138 = arith.mulf %137, %52 : vector<2x8xf32>
    %139 = arith.addf %135, %138 : vector<2x8xf32>
    %140 = vector.extract_strided_slice %44 {offsets = [0, 22], sizes = [2, 1], strides = [1, 1]} : vector<2x64xf32> to vector<2x1xf32>
    %141 = vector.broadcast %140 : vector<2x1xf32> to vector<2x8xf32>
    %142 = arith.mulf %141, %53 : vector<2x8xf32>
    %143 = arith.addf %139, %142 : vector<2x8xf32>
    %144 = vector.extract_strided_slice %44 {offsets = [0, 23], sizes = [2, 1], strides = [1, 1]} : vector<2x64xf32> to vector<2x1xf32>
    %145 = vector.broadcast %144 : vector<2x1xf32> to vector<2x8xf32>
    %146 = arith.mulf %145, %54 : vector<2x8xf32>
    %147 = arith.addf %143, %146 : vector<2x8xf32>
    %148 = vector.extract_strided_slice %44 {offsets = [0, 24], sizes = [2, 1], strides = [1, 1]} : vector<2x64xf32> to vector<2x1xf32>
    %149 = vector.broadcast %148 : vector<2x1xf32> to vector<2x8xf32>
    %150 = arith.mulf %149, %47 : vector<2x8xf32>
    %151 = vector.extract_strided_slice %44 {offsets = [0, 25], sizes = [2, 1], strides = [1, 1]} : vector<2x64xf32> to vector<2x1xf32>
    %152 = vector.broadcast %151 : vector<2x1xf32> to vector<2x8xf32>
    %153 = arith.mulf %152, %48 : vector<2x8xf32>
    %154 = arith.addf %150, %153 : vector<2x8xf32>
    %155 = vector.extract_strided_slice %44 {offsets = [0, 26], sizes = [2, 1], strides = [1, 1]} : vector<2x64xf32> to vector<2x1xf32>
    %156 = vector.broadcast %155 : vector<2x1xf32> to vector<2x8xf32>
    %157 = arith.mulf %156, %49 : vector<2x8xf32>
    %158 = arith.addf %154, %157 : vector<2x8xf32>
    %159 = vector.extract_strided_slice %44 {offsets = [0, 27], sizes = [2, 1], strides = [1, 1]} : vector<2x64xf32> to vector<2x1xf32>
    %160 = vector.broadcast %159 : vector<2x1xf32> to vector<2x8xf32>
    %161 = arith.mulf %160, %50 : vector<2x8xf32>
    %162 = arith.addf %158, %161 : vector<2x8xf32>
    %163 = vector.extract_strided_slice %44 {offsets = [0, 28], sizes = [2, 1], strides = [1, 1]} : vector<2x64xf32> to vector<2x1xf32>
    %164 = vector.broadcast %163 : vector<2x1xf32> to vector<2x8xf32>
    %165 = arith.mulf %164, %51 : vector<2x8xf32>
    %166 = arith.addf %162, %165 : vector<2x8xf32>
    %167 = vector.extract_strided_slice %44 {offsets = [0, 29], sizes = [2, 1], strides = [1, 1]} : vector<2x64xf32> to vector<2x1xf32>
    %168 = vector.broadcast %167 : vector<2x1xf32> to vector<2x8xf32>
    %169 = arith.mulf %168, %52 : vector<2x8xf32>
    %170 = arith.addf %166, %169 : vector<2x8xf32>
    %171 = vector.extract_strided_slice %44 {offsets = [0, 30], sizes = [2, 1], strides = [1, 1]} : vector<2x64xf32> to vector<2x1xf32>
    %172 = vector.broadcast %171 : vector<2x1xf32> to vector<2x8xf32>
    %173 = arith.mulf %172, %53 : vector<2x8xf32>
    %174 = arith.addf %170, %173 : vector<2x8xf32>
    %175 = vector.extract_strided_slice %44 {offsets = [0, 31], sizes = [2, 1], strides = [1, 1]} : vector<2x64xf32> to vector<2x1xf32>
    %176 = vector.broadcast %175 : vector<2x1xf32> to vector<2x8xf32>
    %177 = arith.mulf %176, %54 : vector<2x8xf32>
    %178 = arith.addf %174, %177 : vector<2x8xf32>
    %179 = vector.extract_strided_slice %44 {offsets = [0, 32], sizes = [2, 1], strides = [1, 1]} : vector<2x64xf32> to vector<2x1xf32>
    %180 = vector.broadcast %179 : vector<2x1xf32> to vector<2x8xf32>
    %181 = arith.mulf %180, %47 : vector<2x8xf32>
    %182 = vector.extract_strided_slice %44 {offsets = [0, 33], sizes = [2, 1], strides = [1, 1]} : vector<2x64xf32> to vector<2x1xf32>
    %183 = vector.broadcast %182 : vector<2x1xf32> to vector<2x8xf32>
    %184 = arith.mulf %183, %48 : vector<2x8xf32>
    %185 = arith.addf %181, %184 : vector<2x8xf32>
    %186 = vector.extract_strided_slice %44 {offsets = [0, 34], sizes = [2, 1], strides = [1, 1]} : vector<2x64xf32> to vector<2x1xf32>
    %187 = vector.broadcast %186 : vector<2x1xf32> to vector<2x8xf32>
    %188 = arith.mulf %187, %49 : vector<2x8xf32>
    %189 = arith.addf %185, %188 : vector<2x8xf32>
    %190 = vector.extract_strided_slice %44 {offsets = [0, 35], sizes = [2, 1], strides = [1, 1]} : vector<2x64xf32> to vector<2x1xf32>
    %191 = vector.broadcast %190 : vector<2x1xf32> to vector<2x8xf32>
    %192 = arith.mulf %191, %50 : vector<2x8xf32>
    %193 = arith.addf %189, %192 : vector<2x8xf32>
    %194 = vector.extract_strided_slice %44 {offsets = [0, 36], sizes = [2, 1], strides = [1, 1]} : vector<2x64xf32> to vector<2x1xf32>
    %195 = vector.broadcast %194 : vector<2x1xf32> to vector<2x8xf32>
    %196 = arith.mulf %195, %51 : vector<2x8xf32>
    %197 = arith.addf %193, %196 : vector<2x8xf32>
    %198 = vector.extract_strided_slice %44 {offsets = [0, 37], sizes = [2, 1], strides = [1, 1]} : vector<2x64xf32> to vector<2x1xf32>
    %199 = vector.broadcast %198 : vector<2x1xf32> to vector<2x8xf32>
    %200 = arith.mulf %199, %52 : vector<2x8xf32>
    %201 = arith.addf %197, %200 : vector<2x8xf32>
    %202 = vector.extract_strided_slice %44 {offsets = [0, 38], sizes = [2, 1], strides = [1, 1]} : vector<2x64xf32> to vector<2x1xf32>
    %203 = vector.broadcast %202 : vector<2x1xf32> to vector<2x8xf32>
    %204 = arith.mulf %203, %53 : vector<2x8xf32>
    %205 = arith.addf %201, %204 : vector<2x8xf32>
    %206 = vector.extract_strided_slice %44 {offsets = [0, 39], sizes = [2, 1], strides = [1, 1]} : vector<2x64xf32> to vector<2x1xf32>
    %207 = vector.broadcast %206 : vector<2x1xf32> to vector<2x8xf32>
    %208 = arith.mulf %207, %54 : vector<2x8xf32>
    %209 = arith.addf %205, %208 : vector<2x8xf32>
    %210 = vector.extract_strided_slice %44 {offsets = [0, 40], sizes = [2, 1], strides = [1, 1]} : vector<2x64xf32> to vector<2x1xf32>
    %211 = vector.broadcast %210 : vector<2x1xf32> to vector<2x8xf32>
    %212 = arith.mulf %211, %47 : vector<2x8xf32>
    %213 = vector.extract_strided_slice %44 {offsets = [0, 41], sizes = [2, 1], strides = [1, 1]} : vector<2x64xf32> to vector<2x1xf32>
    %214 = vector.broadcast %213 : vector<2x1xf32> to vector<2x8xf32>
    %215 = arith.mulf %214, %48 : vector<2x8xf32>
    %216 = arith.addf %212, %215 : vector<2x8xf32>
    %217 = vector.extract_strided_slice %44 {offsets = [0, 42], sizes = [2, 1], strides = [1, 1]} : vector<2x64xf32> to vector<2x1xf32>
    %218 = vector.broadcast %217 : vector<2x1xf32> to vector<2x8xf32>
    %219 = arith.mulf %218, %49 : vector<2x8xf32>
    %220 = arith.addf %216, %219 : vector<2x8xf32>
    %221 = vector.extract_strided_slice %44 {offsets = [0, 43], sizes = [2, 1], strides = [1, 1]} : vector<2x64xf32> to vector<2x1xf32>
    %222 = vector.broadcast %221 : vector<2x1xf32> to vector<2x8xf32>
    %223 = arith.mulf %222, %50 : vector<2x8xf32>
    %224 = arith.addf %220, %223 : vector<2x8xf32>
    %225 = vector.extract_strided_slice %44 {offsets = [0, 44], sizes = [2, 1], strides = [1, 1]} : vector<2x64xf32> to vector<2x1xf32>
    %226 = vector.broadcast %225 : vector<2x1xf32> to vector<2x8xf32>
    %227 = arith.mulf %226, %51 : vector<2x8xf32>
    %228 = arith.addf %224, %227 : vector<2x8xf32>
    %229 = vector.extract_strided_slice %44 {offsets = [0, 45], sizes = [2, 1], strides = [1, 1]} : vector<2x64xf32> to vector<2x1xf32>
    %230 = vector.broadcast %229 : vector<2x1xf32> to vector<2x8xf32>
    %231 = arith.mulf %230, %52 : vector<2x8xf32>
    %232 = arith.addf %228, %231 : vector<2x8xf32>
    %233 = vector.extract_strided_slice %44 {offsets = [0, 46], sizes = [2, 1], strides = [1, 1]} : vector<2x64xf32> to vector<2x1xf32>
    %234 = vector.broadcast %233 : vector<2x1xf32> to vector<2x8xf32>
    %235 = arith.mulf %234, %53 : vector<2x8xf32>
    %236 = arith.addf %232, %235 : vector<2x8xf32>
    %237 = vector.extract_strided_slice %44 {offsets = [0, 47], sizes = [2, 1], strides = [1, 1]} : vector<2x64xf32> to vector<2x1xf32>
    %238 = vector.broadcast %237 : vector<2x1xf32> to vector<2x8xf32>
    %239 = arith.mulf %238, %54 : vector<2x8xf32>
    %240 = arith.addf %236, %239 : vector<2x8xf32>
    %241 = vector.extract_strided_slice %44 {offsets = [0, 48], sizes = [2, 1], strides = [1, 1]} : vector<2x64xf32> to vector<2x1xf32>
    %242 = vector.broadcast %241 : vector<2x1xf32> to vector<2x8xf32>
    %243 = arith.mulf %242, %47 : vector<2x8xf32>
    %244 = vector.extract_strided_slice %44 {offsets = [0, 49], sizes = [2, 1], strides = [1, 1]} : vector<2x64xf32> to vector<2x1xf32>
    %245 = vector.broadcast %244 : vector<2x1xf32> to vector<2x8xf32>
    %246 = arith.mulf %245, %48 : vector<2x8xf32>
    %247 = arith.addf %243, %246 : vector<2x8xf32>
    %248 = vector.extract_strided_slice %44 {offsets = [0, 50], sizes = [2, 1], strides = [1, 1]} : vector<2x64xf32> to vector<2x1xf32>
    %249 = vector.broadcast %248 : vector<2x1xf32> to vector<2x8xf32>
    %250 = arith.mulf %249, %49 : vector<2x8xf32>
    %251 = arith.addf %247, %250 : vector<2x8xf32>
    %252 = vector.extract_strided_slice %44 {offsets = [0, 51], sizes = [2, 1], strides = [1, 1]} : vector<2x64xf32> to vector<2x1xf32>
    %253 = vector.broadcast %252 : vector<2x1xf32> to vector<2x8xf32>
    %254 = arith.mulf %253, %50 : vector<2x8xf32>
    %255 = arith.addf %251, %254 : vector<2x8xf32>
    %256 = vector.extract_strided_slice %44 {offsets = [0, 52], sizes = [2, 1], strides = [1, 1]} : vector<2x64xf32> to vector<2x1xf32>
    %257 = vector.broadcast %256 : vector<2x1xf32> to vector<2x8xf32>
    %258 = arith.mulf %257, %51 : vector<2x8xf32>
    %259 = arith.addf %255, %258 : vector<2x8xf32>
    %260 = vector.extract_strided_slice %44 {offsets = [0, 53], sizes = [2, 1], strides = [1, 1]} : vector<2x64xf32> to vector<2x1xf32>
    %261 = vector.broadcast %260 : vector<2x1xf32> to vector<2x8xf32>
    %262 = arith.mulf %261, %52 : vector<2x8xf32>
    %263 = arith.addf %259, %262 : vector<2x8xf32>
    %264 = vector.extract_strided_slice %44 {offsets = [0, 54], sizes = [2, 1], strides = [1, 1]} : vector<2x64xf32> to vector<2x1xf32>
    %265 = vector.broadcast %264 : vector<2x1xf32> to vector<2x8xf32>
    %266 = arith.mulf %265, %53 : vector<2x8xf32>
    %267 = arith.addf %263, %266 : vector<2x8xf32>
    %268 = vector.extract_strided_slice %44 {offsets = [0, 55], sizes = [2, 1], strides = [1, 1]} : vector<2x64xf32> to vector<2x1xf32>
    %269 = vector.broadcast %268 : vector<2x1xf32> to vector<2x8xf32>
    %270 = arith.mulf %269, %54 : vector<2x8xf32>
    %271 = arith.addf %267, %270 : vector<2x8xf32>
    %272 = vector.extract_strided_slice %44 {offsets = [0, 56], sizes = [2, 1], strides = [1, 1]} : vector<2x64xf32> to vector<2x1xf32>
    %273 = vector.broadcast %272 : vector<2x1xf32> to vector<2x8xf32>
    %274 = arith.mulf %273, %47 : vector<2x8xf32>
    %275 = vector.extract_strided_slice %44 {offsets = [0, 57], sizes = [2, 1], strides = [1, 1]} : vector<2x64xf32> to vector<2x1xf32>
    %276 = vector.broadcast %275 : vector<2x1xf32> to vector<2x8xf32>
    %277 = arith.mulf %276, %48 : vector<2x8xf32>
    %278 = arith.addf %274, %277 : vector<2x8xf32>
    %279 = vector.extract_strided_slice %44 {offsets = [0, 58], sizes = [2, 1], strides = [1, 1]} : vector<2x64xf32> to vector<2x1xf32>
    %280 = vector.broadcast %279 : vector<2x1xf32> to vector<2x8xf32>
    %281 = arith.mulf %280, %49 : vector<2x8xf32>
    %282 = arith.addf %278, %281 : vector<2x8xf32>
    %283 = vector.extract_strided_slice %44 {offsets = [0, 59], sizes = [2, 1], strides = [1, 1]} : vector<2x64xf32> to vector<2x1xf32>
    %284 = vector.broadcast %283 : vector<2x1xf32> to vector<2x8xf32>
    %285 = arith.mulf %284, %50 : vector<2x8xf32>
    %286 = arith.addf %282, %285 : vector<2x8xf32>
    %287 = vector.extract_strided_slice %44 {offsets = [0, 60], sizes = [2, 1], strides = [1, 1]} : vector<2x64xf32> to vector<2x1xf32>
    %288 = vector.broadcast %287 : vector<2x1xf32> to vector<2x8xf32>
    %289 = arith.mulf %288, %51 : vector<2x8xf32>
    %290 = arith.addf %286, %289 : vector<2x8xf32>
    %291 = vector.extract_strided_slice %44 {offsets = [0, 61], sizes = [2, 1], strides = [1, 1]} : vector<2x64xf32> to vector<2x1xf32>
    %292 = vector.broadcast %291 : vector<2x1xf32> to vector<2x8xf32>
    %293 = arith.mulf %292, %52 : vector<2x8xf32>
    %294 = arith.addf %290, %293 : vector<2x8xf32>
    %295 = vector.extract_strided_slice %44 {offsets = [0, 62], sizes = [2, 1], strides = [1, 1]} : vector<2x64xf32> to vector<2x1xf32>
    %296 = vector.broadcast %295 : vector<2x1xf32> to vector<2x8xf32>
    %297 = arith.mulf %296, %53 : vector<2x8xf32>
    %298 = arith.addf %294, %297 : vector<2x8xf32>
    %299 = vector.extract_strided_slice %44 {offsets = [0, 63], sizes = [2, 1], strides = [1, 1]} : vector<2x64xf32> to vector<2x1xf32>
    %300 = vector.broadcast %299 : vector<2x1xf32> to vector<2x8xf32>
    %301 = arith.mulf %300, %54 : vector<2x8xf32>
    %302 = arith.addf %298, %301 : vector<2x8xf32>
    %303 = tpu.concatenate %85, %116, %147, %178, %209, %240, %271, %302 in 1 : vector<2x8xf32>, vector<2x8xf32>, vector<2x8xf32>, vector<2x8xf32>, vector<2x8xf32>, vector<2x8xf32>, vector<2x8xf32>, vector<2x8xf32> -> vector<2x64xf32>
    %c2 = arith.constant 2 : index
    %c0_21 = arith.constant 0 : index
    %304 = vector.load %arg7[%c2, %c0_21] : memref<16x64xf32, #tpu.memory_space<vmem>>, vector<2x64xf32>
    tpu.vector_store %arg7[%c2, %c0_21], %303 {strides = array<i32>} : memref<16x64xf32, #tpu.memory_space<vmem>>, vector<2x64xf32>,
    %305 = vector.extract_strided_slice %43 {offsets = [4, 0], sizes = [2, 64], strides = [1, 1]} : vector<16x64xf32> to vector<2x64xf32>
    %306 = vector.extract_strided_slice %305 {offsets = [0, 0], sizes = [2, 8], strides = [1, 1]} : vector<2x64xf32> to vector<2x8xf32>
    %307 = vector.extract_strided_slice %305 {offsets = [0, 8], sizes = [2, 8], strides = [1, 1]} : vector<2x64xf32> to vector<2x8xf32>
    %308 = vector.extract_strided_slice %305 {offsets = [0, 16], sizes = [2, 8], strides = [1, 1]} : vector<2x64xf32> to vector<2x8xf32>
    %309 = vector.extract_strided_slice %305 {offsets = [0, 24], sizes = [2, 8], strides = [1, 1]} : vector<2x64xf32> to vector<2x8xf32>
    %310 = vector.extract_strided_slice %305 {offsets = [0, 32], sizes = [2, 8], strides = [1, 1]} : vector<2x64xf32> to vector<2x8xf32>
    %311 = vector.extract_strided_slice %305 {offsets = [0, 40], sizes = [2, 8], strides = [1, 1]} : vector<2x64xf32> to vector<2x8xf32>
    %312 = vector.extract_strided_slice %305 {offsets = [0, 48], sizes = [2, 8], strides = [1, 1]} : vector<2x64xf32> to vector<2x8xf32>
    %313 = vector.extract_strided_slice %305 {offsets = [0, 56], sizes = [2, 8], strides = [1, 1]} : vector<2x64xf32> to vector<2x8xf32>
    %314 = vector.extract_strided_slice %303 {offsets = [0, 0], sizes = [2, 1], strides = [1, 1]} : vector<2x64xf32> to vector<2x1xf32>
    %315 = vector.broadcast %314 : vector<2x1xf32> to vector<2x8xf32>
    %316 = arith.mulf %315, %306 : vector<2x8xf32>
    %317 = vector.extract_strided_slice %303 {offsets = [0, 1], sizes = [2, 1], strides = [1, 1]} : vector<2x64xf32> to vector<2x1xf32>
    %318 = vector.broadcast %317 : vector<2x1xf32> to vector<2x8xf32>
    %319 = arith.mulf %318, %307 : vector<2x8xf32>
    %320 = arith.addf %316, %319 : vector<2x8xf32>
    %321 = vector.extract_strided_slice %303 {offsets = [0, 2], sizes = [2, 1], strides = [1, 1]} : vector<2x64xf32> to vector<2x1xf32>
    %322 = vector.broadcast %321 : vector<2x1xf32> to vector<2x8xf32>
    %323 = arith.mulf %322, %308 : vector<2x8xf32>
    %324 = arith.addf %320, %323 : vector<2x8xf32>
    %325 = vector.extract_strided_slice %303 {offsets = [0, 3], sizes = [2, 1], strides = [1, 1]} : vector<2x64xf32> to vector<2x1xf32>
    %326 = vector.broadcast %325 : vector<2x1xf32> to vector<2x8xf32>
    %327 = arith.mulf %326, %309 : vector<2x8xf32>
    %328 = arith.addf %324, %327 : vector<2x8xf32>
    %329 = vector.extract_strided_slice %303 {offsets = [0, 4], sizes = [2, 1], strides = [1, 1]} : vector<2x64xf32> to vector<2x1xf32>
    %330 = vector.broadcast %329 : vector<2x1xf32> to vector<2x8xf32>
    %331 = arith.mulf %330, %310 : vector<2x8xf32>
    %332 = arith.addf %328, %331 : vector<2x8xf32>
    %333 = vector.extract_strided_slice %303 {offsets = [0, 5], sizes = [2, 1], strides = [1, 1]} : vector<2x64xf32> to vector<2x1xf32>
    %334 = vector.broadcast %333 : vector<2x1xf32> to vector<2x8xf32>
    %335 = arith.mulf %334, %311 : vector<2x8xf32>
    %336 = arith.addf %332, %335 : vector<2x8xf32>
    %337 = vector.extract_strided_slice %303 {offsets = [0, 6], sizes = [2, 1], strides = [1, 1]} : vector<2x64xf32> to vector<2x1xf32>
    %338 = vector.broadcast %337 : vector<2x1xf32> to vector<2x8xf32>
    %339 = arith.mulf %338, %312 : vector<2x8xf32>
    %340 = arith.addf %336, %339 : vector<2x8xf32>
    %341 = vector.extract_strided_slice %303 {offsets = [0, 7], sizes = [2, 1], strides = [1, 1]} : vector<2x64xf32> to vector<2x1xf32>
    %342 = vector.broadcast %341 : vector<2x1xf32> to vector<2x8xf32>
    %343 = arith.mulf %342, %313 : vector<2x8xf32>
    %344 = arith.addf %340, %343 : vector<2x8xf32>
    %345 = vector.extract_strided_slice %303 {offsets = [0, 8], sizes = [2, 1], strides = [1, 1]} : vector<2x64xf32> to vector<2x1xf32>
    %346 = vector.broadcast %345 : vector<2x1xf32> to vector<2x8xf32>
    %347 = arith.mulf %346, %306 : vector<2x8xf32>
    %348 = vector.extract_strided_slice %303 {offsets = [0, 9], sizes = [2, 1], strides = [1, 1]} : vector<2x64xf32> to vector<2x1xf32>
    %349 = vector.broadcast %348 : vector<2x1xf32> to vector<2x8xf32>
    %350 = arith.mulf %349, %307 : vector<2x8xf32>
    %351 = arith.addf %347, %350 : vector<2x8xf32>
    %352 = vector.extract_strided_slice %303 {offsets = [0, 10], sizes = [2, 1], strides = [1, 1]} : vector<2x64xf32> to vector<2x1xf32>
    %353 = vector.broadcast %352 : vector<2x1xf32> to vector<2x8xf32>
    %354 = arith.mulf %353, %308 : vector<2x8xf32>
    %355 = arith.addf %351, %354 : vector<2x8xf32>
    %356 = vector.extract_strided_slice %303 {offsets = [0, 11], sizes = [2, 1], strides = [1, 1]} : vector<2x64xf32> to vector<2x1xf32>
    %357 = vector.broadcast %356 : vector<2x1xf32> to vector<2x8xf32>
    %358 = arith.mulf %357, %309 : vector<2x8xf32>
    %359 = arith.addf %355, %358 : vector<2x8xf32>
    %360 = vector.extract_strided_slice %303 {offsets = [0, 12], sizes = [2, 1], strides = [1, 1]} : vector<2x64xf32> to vector<2x1xf32>
    %361 = vector.broadcast %360 : vector<2x1xf32> to vector<2x8xf32>
    %362 = arith.mulf %361, %310 : vector<2x8xf32>
    %363 = arith.addf %359, %362 : vector<2x8xf32>
    %364 = vector.extract_strided_slice %303 {offsets = [0, 13], sizes = [2, 1], strides = [1, 1]} : vector<2x64xf32> to vector<2x1xf32>
    %365 = vector.broadcast %364 : vector<2x1xf32> to vector<2x8xf32>
    %366 = arith.mulf %365, %311 : vector<2x8xf32>
    %367 = arith.addf %363, %366 : vector<2x8xf32>
    %368 = vector.extract_strided_slice %303 {offsets = [0, 14], sizes = [2, 1], strides = [1, 1]} : vector<2x64xf32> to vector<2x1xf32>
    %369 = vector.broadcast %368 : vector<2x1xf32> to vector<2x8xf32>
    %370 = arith.mulf %369, %312 : vector<2x8xf32>
    %371 = arith.addf %367, %370 : vector<2x8xf32>
    %372 = vector.extract_strided_slice %303 {offsets = [0, 15], sizes = [2, 1], strides = [1, 1]} : vector<2x64xf32> to vector<2x1xf32>
    %373 = vector.broadcast %372 : vector<2x1xf32> to vector<2x8xf32>
    %374 = arith.mulf %373, %313 : vector<2x8xf32>
    %375 = arith.addf %371, %374 : vector<2x8xf32>
    %376 = vector.extract_strided_slice %303 {offsets = [0, 16], sizes = [2, 1], strides = [1, 1]} : vector<2x64xf32> to vector<2x1xf32>
    %377 = vector.broadcast %376 : vector<2x1xf32> to vector<2x8xf32>
    %378 = arith.mulf %377, %306 : vector<2x8xf32>
    %379 = vector.extract_strided_slice %303 {offsets = [0, 17], sizes = [2, 1], strides = [1, 1]} : vector<2x64xf32> to vector<2x1xf32>
    %380 = vector.broadcast %379 : vector<2x1xf32> to vector<2x8xf32>
    %381 = arith.mulf %380, %307 : vector<2x8xf32>
    %382 = arith.addf %378, %381 : vector<2x8xf32>
    %383 = vector.extract_strided_slice %303 {offsets = [0, 18], sizes = [2, 1], strides = [1, 1]} : vector<2x64xf32> to vector<2x1xf32>
    %384 = vector.broadcast %383 : vector<2x1xf32> to vector<2x8xf32>
    %385 = arith.mulf %384, %308 : vector<2x8xf32>
    %386 = arith.addf %382, %385 : vector<2x8xf32>
    %387 = vector.extract_strided_slice %303 {offsets = [0, 19], sizes = [2, 1], strides = [1, 1]} : vector<2x64xf32> to vector<2x1xf32>
    %388 = vector.broadcast %387 : vector<2x1xf32> to vector<2x8xf32>
    %389 = arith.mulf %388, %309 : vector<2x8xf32>
    %390 = arith.addf %386, %389 : vector<2x8xf32>
    %391 = vector.extract_strided_slice %303 {offsets = [0, 20], sizes = [2, 1], strides = [1, 1]} : vector<2x64xf32> to vector<2x1xf32>
    %392 = vector.broadcast %391 : vector<2x1xf32> to vector<2x8xf32>
    %393 = arith.mulf %392, %310 : vector<2x8xf32>
    %394 = arith.addf %390, %393 : vector<2x8xf32>
    %395 = vector.extract_strided_slice %303 {offsets = [0, 21], sizes = [2, 1], strides = [1, 1]} : vector<2x64xf32> to vector<2x1xf32>
    %396 = vector.broadcast %395 : vector<2x1xf32> to vector<2x8xf32>
    %397 = arith.mulf %396, %311 : vector<2x8xf32>
    %398 = arith.addf %394, %397 : vector<2x8xf32>
    %399 = vector.extract_strided_slice %303 {offsets = [0, 22], sizes = [2, 1], strides = [1, 1]} : vector<2x64xf32> to vector<2x1xf32>
    %400 = vector.broadcast %399 : vector<2x1xf32> to vector<2x8xf32>
    %401 = arith.mulf %400, %312 : vector<2x8xf32>
    %402 = arith.addf %398, %401 : vector<2x8xf32>
    %403 = vector.extract_strided_slice %303 {offsets = [0, 23], sizes = [2, 1], strides = [1, 1]} : vector<2x64xf32> to vector<2x1xf32>
    %404 = vector.broadcast %403 : vector<2x1xf32> to vector<2x8xf32>
    %405 = arith.mulf %404, %313 : vector<2x8xf32>
    %406 = arith.addf %402, %405 : vector<2x8xf32>
    %407 = vector.extract_strided_slice %303 {offsets = [0, 24], sizes = [2, 1], strides = [1, 1]} : vector<2x64xf32> to vector<2x1xf32>
    %408 = vector.broadcast %407 : vector<2x1xf32> to vector<2x8xf32>
    %409 = arith.mulf %408, %306 : vector<2x8xf32>
    %410 = vector.extract_strided_slice %303 {offsets = [0, 25], sizes = [2, 1], strides = [1, 1]} : vector<2x64xf32> to vector<2x1xf32>
    %411 = vector.broadcast %410 : vector<2x1xf32> to vector<2x8xf32>
    %412 = arith.mulf %411, %307 : vector<2x8xf32>
    %413 = arith.addf %409, %412 : vector<2x8xf32>
    %414 = vector.extract_strided_slice %303 {offsets = [0, 26], sizes = [2, 1], strides = [1, 1]} : vector<2x64xf32> to vector<2x1xf32>
    %415 = vector.broadcast %414 : vector<2x1xf32> to vector<2x8xf32>
    %416 = arith.mulf %415, %308 : vector<2x8xf32>
    %417 = arith.addf %413, %416 : vector<2x8xf32>
    %418 = vector.extract_strided_slice %303 {offsets = [0, 27], sizes = [2, 1], strides = [1, 1]} : vector<2x64xf32> to vector<2x1xf32>
    %419 = vector.broadcast %418 : vector<2x1xf32> to vector<2x8xf32>
    %420 = arith.mulf %419, %309 : vector<2x8xf32>
    %421 = arith.addf %417, %420 : vector<2x8xf32>
    %422 = vector.extract_strided_slice %303 {offsets = [0, 28], sizes = [2, 1], strides = [1, 1]} : vector<2x64xf32> to vector<2x1xf32>
    %423 = vector.broadcast %422 : vector<2x1xf32> to vector<2x8xf32>
    %424 = arith.mulf %423, %310 : vector<2x8xf32>
    %425 = arith.addf %421, %424 : vector<2x8xf32>
    %426 = vector.extract_strided_slice %303 {offsets = [0, 29], sizes = [2, 1], strides = [1, 1]} : vector<2x64xf32> to vector<2x1xf32>
    %427 = vector.broadcast %426 : vector<2x1xf32> to vector<2x8xf32>
    %428 = arith.mulf %427, %311 : vector<2x8xf32>
    %429 = arith.addf %425, %428 : vector<2x8xf32>
    %430 = vector.extract_strided_slice %303 {offsets = [0, 30], sizes = [2, 1], strides = [1, 1]} : vector<2x64xf32> to vector<2x1xf32>
    %431 = vector.broadcast %430 : vector<2x1xf32> to vector<2x8xf32>
    %432 = arith.mulf %431, %312 : vector<2x8xf32>
    %433 = arith.addf %429, %432 : vector<2x8xf32>
    %434 = vector.extract_strided_slice %303 {offsets = [0, 31], sizes = [2, 1], strides = [1, 1]} : vector<2x64xf32> to vector<2x1xf32>
    %435 = vector.broadcast %434 : vector<2x1xf32> to vector<2x8xf32>
    %436 = arith.mulf %435, %313 : vector<2x8xf32>
    %437 = arith.addf %433, %436 : vector<2x8xf32>
    %438 = vector.extract_strided_slice %303 {offsets = [0, 32], sizes = [2, 1], strides = [1, 1]} : vector<2x64xf32> to vector<2x1xf32>
    %439 = vector.broadcast %438 : vector<2x1xf32> to vector<2x8xf32>
    %440 = arith.mulf %439, %306 : vector<2x8xf32>
    %441 = vector.extract_strided_slice %303 {offsets = [0, 33], sizes = [2, 1], strides = [1, 1]} : vector<2x64xf32> to vector<2x1xf32>
    %442 = vector.broadcast %441 : vector<2x1xf32> to vector<2x8xf32>
    %443 = arith.mulf %442, %307 : vector<2x8xf32>
    %444 = arith.addf %440, %443 : vector<2x8xf32>
    %445 = vector.extract_strided_slice %303 {offsets = [0, 34], sizes = [2, 1], strides = [1, 1]} : vector<2x64xf32> to vector<2x1xf32>
    %446 = vector.broadcast %445 : vector<2x1xf32> to vector<2x8xf32>
    %447 = arith.mulf %446, %308 : vector<2x8xf32>
    %448 = arith.addf %444, %447 : vector<2x8xf32>
    %449 = vector.extract_strided_slice %303 {offsets = [0, 35], sizes = [2, 1], strides = [1, 1]} : vector<2x64xf32> to vector<2x1xf32>
    %450 = vector.broadcast %449 : vector<2x1xf32> to vector<2x8xf32>
    %451 = arith.mulf %450, %309 : vector<2x8xf32>
    %452 = arith.addf %448, %451 : vector<2x8xf32>
    %453 = vector.extract_strided_slice %303 {offsets = [0, 36], sizes = [2, 1], strides = [1, 1]} : vector<2x64xf32> to vector<2x1xf32>
    %454 = vector.broadcast %453 : vector<2x1xf32> to vector<2x8xf32>
    %455 = arith.mulf %454, %310 : vector<2x8xf32>
    %456 = arith.addf %452, %455 : vector<2x8xf32>
    %457 = vector.extract_strided_slice %303 {offsets = [0, 37], sizes = [2, 1], strides = [1, 1]} : vector<2x64xf32> to vector<2x1xf32>
    %458 = vector.broadcast %457 : vector<2x1xf32> to vector<2x8xf32>
    %459 = arith.mulf %458, %311 : vector<2x8xf32>
    %460 = arith.addf %456, %459 : vector<2x8xf32>
    %461 = vector.extract_strided_slice %303 {offsets = [0, 38], sizes = [2, 1], strides = [1, 1]} : vector<2x64xf32> to vector<2x1xf32>
    %462 = vector.broadcast %461 : vector<2x1xf32> to vector<2x8xf32>
    %463 = arith.mulf %462, %312 : vector<2x8xf32>
    %464 = arith.addf %460, %463 : vector<2x8xf32>
    %465 = vector.extract_strided_slice %303 {offsets = [0, 39], sizes = [2, 1], strides = [1, 1]} : vector<2x64xf32> to vector<2x1xf32>
    %466 = vector.broadcast %465 : vector<2x1xf32> to vector<2x8xf32>
    %467 = arith.mulf %466, %313 : vector<2x8xf32>
    %468 = arith.addf %464, %467 : vector<2x8xf32>
    %469 = vector.extract_strided_slice %303 {offsets = [0, 40], sizes = [2, 1], strides = [1, 1]} : vector<2x64xf32> to vector<2x1xf32>
    %470 = vector.broadcast %469 : vector<2x1xf32> to vector<2x8xf32>
    %471 = arith.mulf %470, %306 : vector<2x8xf32>
    %472 = vector.extract_strided_slice %303 {offsets = [0, 41], sizes = [2, 1], strides = [1, 1]} : vector<2x64xf32> to vector<2x1xf32>
    %473 = vector.broadcast %472 : vector<2x1xf32> to vector<2x8xf32>
    %474 = arith.mulf %473, %307 : vector<2x8xf32>
    %475 = arith.addf %471, %474 : vector<2x8xf32>
    %476 = vector.extract_strided_slice %303 {offsets = [0, 42], sizes = [2, 1], strides = [1, 1]} : vector<2x64xf32> to vector<2x1xf32>
    %477 = vector.broadcast %476 : vector<2x1xf32> to vector<2x8xf32>
    %478 = arith.mulf %477, %308 : vector<2x8xf32>
    %479 = arith.addf %475, %478 : vector<2x8xf32>
    %480 = vector.extract_strided_slice %303 {offsets = [0, 43], sizes = [2, 1], strides = [1, 1]} : vector<2x64xf32> to vector<2x1xf32>
    %481 = vector.broadcast %480 : vector<2x1xf32> to vector<2x8xf32>
    %482 = arith.mulf %481, %309 : vector<2x8xf32>
    %483 = arith.addf %479, %482 : vector<2x8xf32>
    %484 = vector.extract_strided_slice %303 {offsets = [0, 44], sizes = [2, 1], strides = [1, 1]} : vector<2x64xf32> to vector<2x1xf32>
    %485 = vector.broadcast %484 : vector<2x1xf32> to vector<2x8xf32>
    %486 = arith.mulf %485, %310 : vector<2x8xf32>
    %487 = arith.addf %483, %486 : vector<2x8xf32>
    %488 = vector.extract_strided_slice %303 {offsets = [0, 45], sizes = [2, 1], strides = [1, 1]} : vector<2x64xf32> to vector<2x1xf32>
    %489 = vector.broadcast %488 : vector<2x1xf32> to vector<2x8xf32>
    %490 = arith.mulf %489, %311 : vector<2x8xf32>
    %491 = arith.addf %487, %490 : vector<2x8xf32>
    %492 = vector.extract_strided_slice %303 {offsets = [0, 46], sizes = [2, 1], strides = [1, 1]} : vector<2x64xf32> to vector<2x1xf32>
    %493 = vector.broadcast %492 : vector<2x1xf32> to vector<2x8xf32>
    %494 = arith.mulf %493, %312 : vector<2x8xf32>
    %495 = arith.addf %491, %494 : vector<2x8xf32>
    %496 = vector.extract_strided_slice %303 {offsets = [0, 47], sizes = [2, 1], strides = [1, 1]} : vector<2x64xf32> to vector<2x1xf32>
    %497 = vector.broadcast %496 : vector<2x1xf32> to vector<2x8xf32>
    %498 = arith.mulf %497, %313 : vector<2x8xf32>
    %499 = arith.addf %495, %498 : vector<2x8xf32>
    %500 = vector.extract_strided_slice %303 {offsets = [0, 48], sizes = [2, 1], strides = [1, 1]} : vector<2x64xf32> to vector<2x1xf32>
    %501 = vector.broadcast %500 : vector<2x1xf32> to vector<2x8xf32>
    %502 = arith.mulf %501, %306 : vector<2x8xf32>
    %503 = vector.extract_strided_slice %303 {offsets = [0, 49], sizes = [2, 1], strides = [1, 1]} : vector<2x64xf32> to vector<2x1xf32>
    %504 = vector.broadcast %503 : vector<2x1xf32> to vector<2x8xf32>
    %505 = arith.mulf %504, %307 : vector<2x8xf32>
    %506 = arith.addf %502, %505 : vector<2x8xf32>
    %507 = vector.extract_strided_slice %303 {offsets = [0, 50], sizes = [2, 1], strides = [1, 1]} : vector<2x64xf32> to vector<2x1xf32>
    %508 = vector.broadcast %507 : vector<2x1xf32> to vector<2x8xf32>
    %509 = arith.mulf %508, %308 : vector<2x8xf32>
    %510 = arith.addf %506, %509 : vector<2x8xf32>
    %511 = vector.extract_strided_slice %303 {offsets = [0, 51], sizes = [2, 1], strides = [1, 1]} : vector<2x64xf32> to vector<2x1xf32>
    %512 = vector.broadcast %511 : vector<2x1xf32> to vector<2x8xf32>
    %513 = arith.mulf %512, %309 : vector<2x8xf32>
    %514 = arith.addf %510, %513 : vector<2x8xf32>
    %515 = vector.extract_strided_slice %303 {offsets = [0, 52], sizes = [2, 1], strides = [1, 1]} : vector<2x64xf32> to vector<2x1xf32>
    %516 = vector.broadcast %515 : vector<2x1xf32> to vector<2x8xf32>
    %517 = arith.mulf %516, %310 : vector<2x8xf32>
    %518 = arith.addf %514, %517 : vector<2x8xf32>
    %519 = vector.extract_strided_slice %303 {offsets = [0, 53], sizes = [2, 1], strides = [1, 1]} : vector<2x64xf32> to vector<2x1xf32>
    %520 = vector.broadcast %519 : vector<2x1xf32> to vector<2x8xf32>
    %521 = arith.mulf %520, %311 : vector<2x8xf32>
    %522 = arith.addf %518, %521 : vector<2x8xf32>
    %523 = vector.extract_strided_slice %303 {offsets = [0, 54], sizes = [2, 1], strides = [1, 1]} : vector<2x64xf32> to vector<2x1xf32>
    %524 = vector.broadcast %523 : vector<2x1xf32> to vector<2x8xf32>
    %525 = arith.mulf %524, %312 : vector<2x8xf32>
    %526 = arith.addf %522, %525 : vector<2x8xf32>
    %527 = vector.extract_strided_slice %303 {offsets = [0, 55], sizes = [2, 1], strides = [1, 1]} : vector<2x64xf32> to vector<2x1xf32>
    %528 = vector.broadcast %527 : vector<2x1xf32> to vector<2x8xf32>
    %529 = arith.mulf %528, %313 : vector<2x8xf32>
    %530 = arith.addf %526, %529 : vector<2x8xf32>
    %531 = vector.extract_strided_slice %303 {offsets = [0, 56], sizes = [2, 1], strides = [1, 1]} : vector<2x64xf32> to vector<2x1xf32>
    %532 = vector.broadcast %531 : vector<2x1xf32> to vector<2x8xf32>
    %533 = arith.mulf %532, %306 : vector<2x8xf32>
    %534 = vector.extract_strided_slice %303 {offsets = [0, 57], sizes = [2, 1], strides = [1, 1]} : vector<2x64xf32> to vector<2x1xf32>
    %535 = vector.broadcast %534 : vector<2x1xf32> to vector<2x8xf32>
    %536 = arith.mulf %535, %307 : vector<2x8xf32>
    %537 = arith.addf %533, %536 : vector<2x8xf32>
    %538 = vector.extract_strided_slice %303 {offsets = [0, 58], sizes = [2, 1], strides = [1, 1]} : vector<2x64xf32> to vector<2x1xf32>
    %539 = vector.broadcast %538 : vector<2x1xf32> to vector<2x8xf32>
    %540 = arith.mulf %539, %308 : vector<2x8xf32>
    %541 = arith.addf %537, %540 : vector<2x8xf32>
    %542 = vector.extract_strided_slice %303 {offsets = [0, 59], sizes = [2, 1], strides = [1, 1]} : vector<2x64xf32> to vector<2x1xf32>
    %543 = vector.broadcast %542 : vector<2x1xf32> to vector<2x8xf32>
    %544 = arith.mulf %543, %309 : vector<2x8xf32>
    %545 = arith.addf %541, %544 : vector<2x8xf32>
    %546 = vector.extract_strided_slice %303 {offsets = [0, 60], sizes = [2, 1], strides = [1, 1]} : vector<2x64xf32> to vector<2x1xf32>
    %547 = vector.broadcast %546 : vector<2x1xf32> to vector<2x8xf32>
    %548 = arith.mulf %547, %310 : vector<2x8xf32>
    %549 = arith.addf %545, %548 : vector<2x8xf32>
    %550 = vector.extract_strided_slice %303 {offsets = [0, 61], sizes = [2, 1], strides = [1, 1]} : vector<2x64xf32> to vector<2x1xf32>
    %551 = vector.broadcast %550 : vector<2x1xf32> to vector<2x8xf32>
    %552 = arith.mulf %551, %311 : vector<2x8xf32>
    %553 = arith.addf %549, %552 : vector<2x8xf32>
    %554 = vector.extract_strided_slice %303 {offsets = [0, 62], sizes = [2, 1], strides = [1, 1]} : vector<2x64xf32> to vector<2x1xf32>
    %555 = vector.broadcast %554 : vector<2x1xf32> to vector<2x8xf32>
    %556 = arith.mulf %555, %312 : vector<2x8xf32>
    %557 = arith.addf %553, %556 : vector<2x8xf32>
    %558 = vector.extract_strided_slice %303 {offsets = [0, 63], sizes = [2, 1], strides = [1, 1]} : vector<2x64xf32> to vector<2x1xf32>
    %559 = vector.broadcast %558 : vector<2x1xf32> to vector<2x8xf32>
    %560 = arith.mulf %559, %313 : vector<2x8xf32>
    %561 = arith.addf %557, %560 : vector<2x8xf32>
    %562 = tpu.concatenate %344, %375, %406, %437, %468, %499, %530, %561 in 1 : vector<2x8xf32>, vector<2x8xf32>, vector<2x8xf32>, vector<2x8xf32>, vector<2x8xf32>, vector<2x8xf32>, vector<2x8xf32>, vector<2x8xf32> -> vector<2x64xf32>
    %c4 = arith.constant 4 : index
    %c0_22 = arith.constant 0 : index
    %563 = vector.load %arg7[%c4, %c0_22] : memref<16x64xf32, #tpu.memory_space<vmem>>, vector<2x64xf32>
    tpu.vector_store %arg7[%c4, %c0_22], %562 {strides = array<i32>} : memref<16x64xf32, #tpu.memory_space<vmem>>, vector<2x64xf32>,
    %564 = vector.extract_strided_slice %43 {offsets = [6, 0], sizes = [2, 64], strides = [1, 1]} : vector<16x64xf32> to vector<2x64xf32>
    %565 = vector.extract_strided_slice %564 {offsets = [0, 0], sizes = [2, 8], strides = [1, 1]} : vector<2x64xf32> to vector<2x8xf32>
    %566 = vector.extract_strided_slice %564 {offsets = [0, 8], sizes = [2, 8], strides = [1, 1]} : vector<2x64xf32> to vector<2x8xf32>
    %567 = vector.extract_strided_slice %564 {offsets = [0, 16], sizes = [2, 8], strides = [1, 1]} : vector<2x64xf32> to vector<2x8xf32>
    %568 = vector.extract_strided_slice %564 {offsets = [0, 24], sizes = [2, 8], strides = [1, 1]} : vector<2x64xf32> to vector<2x8xf32>
    %569 = vector.extract_strided_slice %564 {offsets = [0, 32], sizes = [2, 8], strides = [1, 1]} : vector<2x64xf32> to vector<2x8xf32>
    %570 = vector.extract_strided_slice %564 {offsets = [0, 40], sizes = [2, 8], strides = [1, 1]} : vector<2x64xf32> to vector<2x8xf32>
    %571 = vector.extract_strided_slice %564 {offsets = [0, 48], sizes = [2, 8], strides = [1, 1]} : vector<2x64xf32> to vector<2x8xf32>
    %572 = vector.extract_strided_slice %564 {offsets = [0, 56], sizes = [2, 8], strides = [1, 1]} : vector<2x64xf32> to vector<2x8xf32>
    %573 = vector.extract_strided_slice %562 {offsets = [0, 0], sizes = [2, 1], strides = [1, 1]} : vector<2x64xf32> to vector<2x1xf32>
    %574 = vector.broadcast %573 : vector<2x1xf32> to vector<2x8xf32>
    %575 = arith.mulf %574, %565 : vector<2x8xf32>
    %576 = vector.extract_strided_slice %562 {offsets = [0, 1], sizes = [2, 1], strides = [1, 1]} : vector<2x64xf32> to vector<2x1xf32>
    %577 = vector.broadcast %576 : vector<2x1xf32> to vector<2x8xf32>
    %578 = arith.mulf %577, %566 : vector<2x8xf32>
    %579 = arith.addf %575, %578 : vector<2x8xf32>
    %580 = vector.extract_strided_slice %562 {offsets = [0, 2], sizes = [2, 1], strides = [1, 1]} : vector<2x64xf32> to vector<2x1xf32>
    %581 = vector.broadcast %580 : vector<2x1xf32> to vector<2x8xf32>
    %582 = arith.mulf %581, %567 : vector<2x8xf32>
    %583 = arith.addf %579, %582 : vector<2x8xf32>
    %584 = vector.extract_strided_slice %562 {offsets = [0, 3], sizes = [2, 1], strides = [1, 1]} : vector<2x64xf32> to vector<2x1xf32>
    %585 = vector.broadcast %584 : vector<2x1xf32> to vector<2x8xf32>
    %586 = arith.mulf %585, %568 : vector<2x8xf32>
    %587 = arith.addf %583, %586 : vector<2x8xf32>
    %588 = vector.extract_strided_slice %562 {offsets = [0, 4], sizes = [2, 1], strides = [1, 1]} : vector<2x64xf32> to vector<2x1xf32>
    %589 = vector.broadcast %588 : vector<2x1xf32> to vector<2x8xf32>
    %590 = arith.mulf %589, %569 : vector<2x8xf32>
    %591 = arith.addf %587, %590 : vector<2x8xf32>
    %592 = vector.extract_strided_slice %562 {offsets = [0, 5], sizes = [2, 1], strides = [1, 1]} : vector<2x64xf32> to vector<2x1xf32>
    %593 = vector.broadcast %592 : vector<2x1xf32> to vector<2x8xf32>
    %594 = arith.mulf %593, %570 : vector<2x8xf32>
    %595 = arith.addf %591, %594 : vector<2x8xf32>
    %596 = vector.extract_strided_slice %562 {offsets = [0, 6], sizes = [2, 1], strides = [1, 1]} : vector<2x64xf32> to vector<2x1xf32>
    %597 = vector.broadcast %596 : vector<2x1xf32> to vector<2x8xf32>
    %598 = arith.mulf %597, %571 : vector<2x8xf32>
    %599 = arith.addf %595, %598 : vector<2x8xf32>
    %600 = vector.extract_strided_slice %562 {offsets = [0, 7], sizes = [2, 1], strides = [1, 1]} : vector<2x64xf32> to vector<2x1xf32>
    %601 = vector.broadcast %600 : vector<2x1xf32> to vector<2x8xf32>
    %602 = arith.mulf %601, %572 : vector<2x8xf32>
    %603 = arith.addf %599, %602 : vector<2x8xf32>
    %604 = vector.extract_strided_slice %562 {offsets = [0, 8], sizes = [2, 1], strides = [1, 1]} : vector<2x64xf32> to vector<2x1xf32>
    %605 = vector.broadcast %604 : vector<2x1xf32> to vector<2x8xf32>
    %606 = arith.mulf %605, %565 : vector<2x8xf32>
    %607 = vector.extract_strided_slice %562 {offsets = [0, 9], sizes = [2, 1], strides = [1, 1]} : vector<2x64xf32> to vector<2x1xf32>
    %608 = vector.broadcast %607 : vector<2x1xf32> to vector<2x8xf32>
    %609 = arith.mulf %608, %566 : vector<2x8xf32>
    %610 = arith.addf %606, %609 : vector<2x8xf32>
    %611 = vector.extract_strided_slice %562 {offsets = [0, 10], sizes = [2, 1], strides = [1, 1]} : vector<2x64xf32> to vector<2x1xf32>
    %612 = vector.broadcast %611 : vector<2x1xf32> to vector<2x8xf32>
    %613 = arith.mulf %612, %567 : vector<2x8xf32>
    %614 = arith.addf %610, %613 : vector<2x8xf32>
    %615 = vector.extract_strided_slice %562 {offsets = [0, 11], sizes = [2, 1], strides = [1, 1]} : vector<2x64xf32> to vector<2x1xf32>
    %616 = vector.broadcast %615 : vector<2x1xf32> to vector<2x8xf32>
    %617 = arith.mulf %616, %568 : vector<2x8xf32>
    %618 = arith.addf %614, %617 : vector<2x8xf32>
    %619 = vector.extract_strided_slice %562 {offsets = [0, 12], sizes = [2, 1], strides = [1, 1]} : vector<2x64xf32> to vector<2x1xf32>
    %620 = vector.broadcast %619 : vector<2x1xf32> to vector<2x8xf32>
    %621 = arith.mulf %620, %569 : vector<2x8xf32>
    %622 = arith.addf %618, %621 : vector<2x8xf32>
    %623 = vector.extract_strided_slice %562 {offsets = [0, 13], sizes = [2, 1], strides = [1, 1]} : vector<2x64xf32> to vector<2x1xf32>
    %624 = vector.broadcast %623 : vector<2x1xf32> to vector<2x8xf32>
    %625 = arith.mulf %624, %570 : vector<2x8xf32>
    %626 = arith.addf %622, %625 : vector<2x8xf32>
    %627 = vector.extract_strided_slice %562 {offsets = [0, 14], sizes = [2, 1], strides = [1, 1]} : vector<2x64xf32> to vector<2x1xf32>
    %628 = vector.broadcast %627 : vector<2x1xf32> to vector<2x8xf32>
    %629 = arith.mulf %628, %571 : vector<2x8xf32>
    %630 = arith.addf %626, %629 : vector<2x8xf32>
    %631 = vector.extract_strided_slice %562 {offsets = [0, 15], sizes = [2, 1], strides = [1, 1]} : vector<2x64xf32> to vector<2x1xf32>
    %632 = vector.broadcast %631 : vector<2x1xf32> to vector<2x8xf32>
    %633 = arith.mulf %632, %572 : vector<2x8xf32>
    %634 = arith.addf %630, %633 : vector<2x8xf32>
    %635 = vector.extract_strided_slice %562 {offsets = [0, 16], sizes = [2, 1], strides = [1, 1]} : vector<2x64xf32> to vector<2x1xf32>
    %636 = vector.broadcast %635 : vector<2x1xf32> to vector<2x8xf32>
    %637 = arith.mulf %636, %565 : vector<2x8xf32>
    %638 = vector.extract_strided_slice %562 {offsets = [0, 17], sizes = [2, 1], strides = [1, 1]} : vector<2x64xf32> to vector<2x1xf32>
    %639 = vector.broadcast %638 : vector<2x1xf32> to vector<2x8xf32>
    %640 = arith.mulf %639, %566 : vector<2x8xf32>
    %641 = arith.addf %637, %640 : vector<2x8xf32>
    %642 = vector.extract_strided_slice %562 {offsets = [0, 18], sizes = [2, 1], strides = [1, 1]} : vector<2x64xf32> to vector<2x1xf32>
    %643 = vector.broadcast %642 : vector<2x1xf32> to vector<2x8xf32>
    %644 = arith.mulf %643, %567 : vector<2x8xf32>
    %645 = arith.addf %641, %644 : vector<2x8xf32>
    %646 = vector.extract_strided_slice %562 {offsets = [0, 19], sizes = [2, 1], strides = [1, 1]} : vector<2x64xf32> to vector<2x1xf32>
    %647 = vector.broadcast %646 : vector<2x1xf32> to vector<2x8xf32>
    %648 = arith.mulf %647, %568 : vector<2x8xf32>
    %649 = arith.addf %645, %648 : vector<2x8xf32>
    %650 = vector.extract_strided_slice %562 {offsets = [0, 20], sizes = [2, 1], strides = [1, 1]} : vector<2x64xf32> to vector<2x1xf32>
    %651 = vector.broadcast %650 : vector<2x1xf32> to vector<2x8xf32>
    %652 = arith.mulf %651, %569 : vector<2x8xf32>
    %653 = arith.addf %649, %652 : vector<2x8xf32>
    %654 = vector.extract_strided_slice %562 {offsets = [0, 21], sizes = [2, 1], strides = [1, 1]} : vector<2x64xf32> to vector<2x1xf32>
    %655 = vector.broadcast %654 : vector<2x1xf32> to vector<2x8xf32>
    %656 = arith.mulf %655, %570 : vector<2x8xf32>
    %657 = arith.addf %653, %656 : vector<2x8xf32>
    %658 = vector.extract_strided_slice %562 {offsets = [0, 22], sizes = [2, 1], strides = [1, 1]} : vector<2x64xf32> to vector<2x1xf32>
    %659 = vector.broadcast %658 : vector<2x1xf32> to vector<2x8xf32>
    %660 = arith.mulf %659, %571 : vector<2x8xf32>
    %661 = arith.addf %657, %660 : vector<2x8xf32>
    %662 = vector.extract_strided_slice %562 {offsets = [0, 23], sizes = [2, 1], strides = [1, 1]} : vector<2x64xf32> to vector<2x1xf32>
    %663 = vector.broadcast %662 : vector<2x1xf32> to vector<2x8xf32>
    %664 = arith.mulf %663, %572 : vector<2x8xf32>
    %665 = arith.addf %661, %664 : vector<2x8xf32>
    %666 = vector.extract_strided_slice %562 {offsets = [0, 24], sizes = [2, 1], strides = [1, 1]} : vector<2x64xf32> to vector<2x1xf32>
    %667 = vector.broadcast %666 : vector<2x1xf32> to vector<2x8xf32>
    %668 = arith.mulf %667, %565 : vector<2x8xf32>
    %669 = vector.extract_strided_slice %562 {offsets = [0, 25], sizes = [2, 1], strides = [1, 1]} : vector<2x64xf32> to vector<2x1xf32>
    %670 = vector.broadcast %669 : vector<2x1xf32> to vector<2x8xf32>
    %671 = arith.mulf %670, %566 : vector<2x8xf32>
    %672 = arith.addf %668, %671 : vector<2x8xf32>
    %673 = vector.extract_strided_slice %562 {offsets = [0, 26], sizes = [2, 1], strides = [1, 1]} : vector<2x64xf32> to vector<2x1xf32>
    %674 = vector.broadcast %673 : vector<2x1xf32> to vector<2x8xf32>
    %675 = arith.mulf %674, %567 : vector<2x8xf32>
    %676 = arith.addf %672, %675 : vector<2x8xf32>
    %677 = vector.extract_strided_slice %562 {offsets = [0, 27], sizes = [2, 1], strides = [1, 1]} : vector<2x64xf32> to vector<2x1xf32>
    %678 = vector.broadcast %677 : vector<2x1xf32> to vector<2x8xf32>
    %679 = arith.mulf %678, %568 : vector<2x8xf32>
    %680 = arith.addf %676, %679 : vector<2x8xf32>
    %681 = vector.extract_strided_slice %562 {offsets = [0, 28], sizes = [2, 1], strides = [1, 1]} : vector<2x64xf32> to vector<2x1xf32>
    %682 = vector.broadcast %681 : vector<2x1xf32> to vector<2x8xf32>
    %683 = arith.mulf %682, %569 : vector<2x8xf32>
    %684 = arith.addf %680, %683 : vector<2x8xf32>
    %685 = vector.extract_strided_slice %562 {offsets = [0, 29], sizes = [2, 1], strides = [1, 1]} : vector<2x64xf32> to vector<2x1xf32>
    %686 = vector.broadcast %685 : vector<2x1xf32> to vector<2x8xf32>
    %687 = arith.mulf %686, %570 : vector<2x8xf32>
    %688 = arith.addf %684, %687 : vector<2x8xf32>
    %689 = vector.extract_strided_slice %562 {offsets = [0, 30], sizes = [2, 1], strides = [1, 1]} : vector<2x64xf32> to vector<2x1xf32>
    %690 = vector.broadcast %689 : vector<2x1xf32> to vector<2x8xf32>
    %691 = arith.mulf %690, %571 : vector<2x8xf32>
    %692 = arith.addf %688, %691 : vector<2x8xf32>
    %693 = vector.extract_strided_slice %562 {offsets = [0, 31], sizes = [2, 1], strides = [1, 1]} : vector<2x64xf32> to vector<2x1xf32>
    %694 = vector.broadcast %693 : vector<2x1xf32> to vector<2x8xf32>
    %695 = arith.mulf %694, %572 : vector<2x8xf32>
    %696 = arith.addf %692, %695 : vector<2x8xf32>
    %697 = vector.extract_strided_slice %562 {offsets = [0, 32], sizes = [2, 1], strides = [1, 1]} : vector<2x64xf32> to vector<2x1xf32>
    %698 = vector.broadcast %697 : vector<2x1xf32> to vector<2x8xf32>
    %699 = arith.mulf %698, %565 : vector<2x8xf32>
    %700 = vector.extract_strided_slice %562 {offsets = [0, 33], sizes = [2, 1], strides = [1, 1]} : vector<2x64xf32> to vector<2x1xf32>
    %701 = vector.broadcast %700 : vector<2x1xf32> to vector<2x8xf32>
    %702 = arith.mulf %701, %566 : vector<2x8xf32>
    %703 = arith.addf %699, %702 : vector<2x8xf32>
    %704 = vector.extract_strided_slice %562 {offsets = [0, 34], sizes = [2, 1], strides = [1, 1]} : vector<2x64xf32> to vector<2x1xf32>
    %705 = vector.broadcast %704 : vector<2x1xf32> to vector<2x8xf32>
    %706 = arith.mulf %705, %567 : vector<2x8xf32>
    %707 = arith.addf %703, %706 : vector<2x8xf32>
    %708 = vector.extract_strided_slice %562 {offsets = [0, 35], sizes = [2, 1], strides = [1, 1]} : vector<2x64xf32> to vector<2x1xf32>
    %709 = vector.broadcast %708 : vector<2x1xf32> to vector<2x8xf32>
    %710 = arith.mulf %709, %568 : vector<2x8xf32>
    %711 = arith.addf %707, %710 : vector<2x8xf32>
    %712 = vector.extract_strided_slice %562 {offsets = [0, 36], sizes = [2, 1], strides = [1, 1]} : vector<2x64xf32> to vector<2x1xf32>
    %713 = vector.broadcast %712 : vector<2x1xf32> to vector<2x8xf32>
    %714 = arith.mulf %713, %569 : vector<2x8xf32>
    %715 = arith.addf %711, %714 : vector<2x8xf32>
    %716 = vector.extract_strided_slice %562 {offsets = [0, 37], sizes = [2, 1], strides = [1, 1]} : vector<2x64xf32> to vector<2x1xf32>
    %717 = vector.broadcast %716 : vector<2x1xf32> to vector<2x8xf32>
    %718 = arith.mulf %717, %570 : vector<2x8xf32>
    %719 = arith.addf %715, %718 : vector<2x8xf32>
    %720 = vector.extract_strided_slice %562 {offsets = [0, 38], sizes = [2, 1], strides = [1, 1]} : vector<2x64xf32> to vector<2x1xf32>
    %721 = vector.broadcast %720 : vector<2x1xf32> to vector<2x8xf32>
    %722 = arith.mulf %721, %571 : vector<2x8xf32>
    %723 = arith.addf %719, %722 : vector<2x8xf32>
    %724 = vector.extract_strided_slice %562 {offsets = [0, 39], sizes = [2, 1], strides = [1, 1]} : vector<2x64xf32> to vector<2x1xf32>
    %725 = vector.broadcast %724 : vector<2x1xf32> to vector<2x8xf32>
    %726 = arith.mulf %725, %572 : vector<2x8xf32>
    %727 = arith.addf %723, %726 : vector<2x8xf32>
    %728 = vector.extract_strided_slice %562 {offsets = [0, 40], sizes = [2, 1], strides = [1, 1]} : vector<2x64xf32> to vector<2x1xf32>
    %729 = vector.broadcast %728 : vector<2x1xf32> to vector<2x8xf32>
    %730 = arith.mulf %729, %565 : vector<2x8xf32>
    %731 = vector.extract_strided_slice %562 {offsets = [0, 41], sizes = [2, 1], strides = [1, 1]} : vector<2x64xf32> to vector<2x1xf32>
    %732 = vector.broadcast %731 : vector<2x1xf32> to vector<2x8xf32>
    %733 = arith.mulf %732, %566 : vector<2x8xf32>
    %734 = arith.addf %730, %733 : vector<2x8xf32>
    %735 = vector.extract_strided_slice %562 {offsets = [0, 42], sizes = [2, 1], strides = [1, 1]} : vector<2x64xf32> to vector<2x1xf32>
    %736 = vector.broadcast %735 : vector<2x1xf32> to vector<2x8xf32>
    %737 = arith.mulf %736, %567 : vector<2x8xf32>
    %738 = arith.addf %734, %737 : vector<2x8xf32>
    %739 = vector.extract_strided_slice %562 {offsets = [0, 43], sizes = [2, 1], strides = [1, 1]} : vector<2x64xf32> to vector<2x1xf32>
    %740 = vector.broadcast %739 : vector<2x1xf32> to vector<2x8xf32>
    %741 = arith.mulf %740, %568 : vector<2x8xf32>
    %742 = arith.addf %738, %741 : vector<2x8xf32>
    %743 = vector.extract_strided_slice %562 {offsets = [0, 44], sizes = [2, 1], strides = [1, 1]} : vector<2x64xf32> to vector<2x1xf32>
    %744 = vector.broadcast %743 : vector<2x1xf32> to vector<2x8xf32>
    %745 = arith.mulf %744, %569 : vector<2x8xf32>
    %746 = arith.addf %742, %745 : vector<2x8xf32>
    %747 = vector.extract_strided_slice %562 {offsets = [0, 45], sizes = [2, 1], strides = [1, 1]} : vector<2x64xf32> to vector<2x1xf32>
    %748 = vector.broadcast %747 : vector<2x1xf32> to vector<2x8xf32>
    %749 = arith.mulf %748, %570 : vector<2x8xf32>
    %750 = arith.addf %746, %749 : vector<2x8xf32>
    %751 = vector.extract_strided_slice %562 {offsets = [0, 46], sizes = [2, 1], strides = [1, 1]} : vector<2x64xf32> to vector<2x1xf32>
    %752 = vector.broadcast %751 : vector<2x1xf32> to vector<2x8xf32>
    %753 = arith.mulf %752, %571 : vector<2x8xf32>
    %754 = arith.addf %750, %753 : vector<2x8xf32>
    %755 = vector.extract_strided_slice %562 {offsets = [0, 47], sizes = [2, 1], strides = [1, 1]} : vector<2x64xf32> to vector<2x1xf32>
    %756 = vector.broadcast %755 : vector<2x1xf32> to vector<2x8xf32>
    %757 = arith.mulf %756, %572 : vector<2x8xf32>
    %758 = arith.addf %754, %757 : vector<2x8xf32>
    %759 = vector.extract_strided_slice %562 {offsets = [0, 48], sizes = [2, 1], strides = [1, 1]} : vector<2x64xf32> to vector<2x1xf32>
    %760 = vector.broadcast %759 : vector<2x1xf32> to vector<2x8xf32>
    %761 = arith.mulf %760, %565 : vector<2x8xf32>
    %762 = vector.extract_strided_slice %562 {offsets = [0, 49], sizes = [2, 1], strides = [1, 1]} : vector<2x64xf32> to vector<2x1xf32>
    %763 = vector.broadcast %762 : vector<2x1xf32> to vector<2x8xf32>
    %764 = arith.mulf %763, %566 : vector<2x8xf32>
    %765 = arith.addf %761, %764 : vector<2x8xf32>
    %766 = vector.extract_strided_slice %562 {offsets = [0, 50], sizes = [2, 1], strides = [1, 1]} : vector<2x64xf32> to vector<2x1xf32>
    %767 = vector.broadcast %766 : vector<2x1xf32> to vector<2x8xf32>
    %768 = arith.mulf %767, %567 : vector<2x8xf32>
    %769 = arith.addf %765, %768 : vector<2x8xf32>
    %770 = vector.extract_strided_slice %562 {offsets = [0, 51], sizes = [2, 1], strides = [1, 1]} : vector<2x64xf32> to vector<2x1xf32>
    %771 = vector.broadcast %770 : vector<2x1xf32> to vector<2x8xf32>
    %772 = arith.mulf %771, %568 : vector<2x8xf32>
    %773 = arith.addf %769, %772 : vector<2x8xf32>
    %774 = vector.extract_strided_slice %562 {offsets = [0, 52], sizes = [2, 1], strides = [1, 1]} : vector<2x64xf32> to vector<2x1xf32>
    %775 = vector.broadcast %774 : vector<2x1xf32> to vector<2x8xf32>
    %776 = arith.mulf %775, %569 : vector<2x8xf32>
    %777 = arith.addf %773, %776 : vector<2x8xf32>
    %778 = vector.extract_strided_slice %562 {offsets = [0, 53], sizes = [2, 1], strides = [1, 1]} : vector<2x64xf32> to vector<2x1xf32>
    %779 = vector.broadcast %778 : vector<2x1xf32> to vector<2x8xf32>
    %780 = arith.mulf %779, %570 : vector<2x8xf32>
    %781 = arith.addf %777, %780 : vector<2x8xf32>
    %782 = vector.extract_strided_slice %562 {offsets = [0, 54], sizes = [2, 1], strides = [1, 1]} : vector<2x64xf32> to vector<2x1xf32>
    %783 = vector.broadcast %782 : vector<2x1xf32> to vector<2x8xf32>
    %784 = arith.mulf %783, %571 : vector<2x8xf32>
    %785 = arith.addf %781, %784 : vector<2x8xf32>
    %786 = vector.extract_strided_slice %562 {offsets = [0, 55], sizes = [2, 1], strides = [1, 1]} : vector<2x64xf32> to vector<2x1xf32>
    %787 = vector.broadcast %786 : vector<2x1xf32> to vector<2x8xf32>
    %788 = arith.mulf %787, %572 : vector<2x8xf32>
    %789 = arith.addf %785, %788 : vector<2x8xf32>
    %790 = vector.extract_strided_slice %562 {offsets = [0, 56], sizes = [2, 1], strides = [1, 1]} : vector<2x64xf32> to vector<2x1xf32>
    %791 = vector.broadcast %790 : vector<2x1xf32> to vector<2x8xf32>
    %792 = arith.mulf %791, %565 : vector<2x8xf32>
    %793 = vector.extract_strided_slice %562 {offsets = [0, 57], sizes = [2, 1], strides = [1, 1]} : vector<2x64xf32> to vector<2x1xf32>
    %794 = vector.broadcast %793 : vector<2x1xf32> to vector<2x8xf32>
    %795 = arith.mulf %794, %566 : vector<2x8xf32>
    %796 = arith.addf %792, %795 : vector<2x8xf32>
    %797 = vector.extract_strided_slice %562 {offsets = [0, 58], sizes = [2, 1], strides = [1, 1]} : vector<2x64xf32> to vector<2x1xf32>
    %798 = vector.broadcast %797 : vector<2x1xf32> to vector<2x8xf32>
    %799 = arith.mulf %798, %567 : vector<2x8xf32>
    %800 = arith.addf %796, %799 : vector<2x8xf32>
    %801 = vector.extract_strided_slice %562 {offsets = [0, 59], sizes = [2, 1], strides = [1, 1]} : vector<2x64xf32> to vector<2x1xf32>
    %802 = vector.broadcast %801 : vector<2x1xf32> to vector<2x8xf32>
    %803 = arith.mulf %802, %568 : vector<2x8xf32>
    %804 = arith.addf %800, %803 : vector<2x8xf32>
    %805 = vector.extract_strided_slice %562 {offsets = [0, 60], sizes = [2, 1], strides = [1, 1]} : vector<2x64xf32> to vector<2x1xf32>
    %806 = vector.broadcast %805 : vector<2x1xf32> to vector<2x8xf32>
    %807 = arith.mulf %806, %569 : vector<2x8xf32>
    %808 = arith.addf %804, %807 : vector<2x8xf32>
    %809 = vector.extract_strided_slice %562 {offsets = [0, 61], sizes = [2, 1], strides = [1, 1]} : vector<2x64xf32> to vector<2x1xf32>
    %810 = vector.broadcast %809 : vector<2x1xf32> to vector<2x8xf32>
    %811 = arith.mulf %810, %570 : vector<2x8xf32>
    %812 = arith.addf %808, %811 : vector<2x8xf32>
    %813 = vector.extract_strided_slice %562 {offsets = [0, 62], sizes = [2, 1], strides = [1, 1]} : vector<2x64xf32> to vector<2x1xf32>
    %814 = vector.broadcast %813 : vector<2x1xf32> to vector<2x8xf32>
    %815 = arith.mulf %814, %571 : vector<2x8xf32>
    %816 = arith.addf %812, %815 : vector<2x8xf32>
    %817 = vector.extract_strided_slice %562 {offsets = [0, 63], sizes = [2, 1], strides = [1, 1]} : vector<2x64xf32> to vector<2x1xf32>
    %818 = vector.broadcast %817 : vector<2x1xf32> to vector<2x8xf32>
    %819 = arith.mulf %818, %572 : vector<2x8xf32>
    %820 = arith.addf %816, %819 : vector<2x8xf32>
    %821 = tpu.concatenate %603, %634, %665, %696, %727, %758, %789, %820 in 1 : vector<2x8xf32>, vector<2x8xf32>, vector<2x8xf32>, vector<2x8xf32>, vector<2x8xf32>, vector<2x8xf32>, vector<2x8xf32>, vector<2x8xf32> -> vector<2x64xf32>
    %c6 = arith.constant 6 : index
    %c0_23 = arith.constant 0 : index
    %822 = vector.load %arg7[%c6, %c0_23] : memref<16x64xf32, #tpu.memory_space<vmem>>, vector<2x64xf32>
    tpu.vector_store %arg7[%c6, %c0_23], %821 {strides = array<i32>} : memref<16x64xf32, #tpu.memory_space<vmem>>, vector<2x64xf32>,
    %823 = vector.extract_strided_slice %43 {offsets = [8, 0], sizes = [2, 64], strides = [1, 1]} : vector<16x64xf32> to vector<2x64xf32>
    %824 = vector.extract_strided_slice %823 {offsets = [0, 0], sizes = [2, 8], strides = [1, 1]} : vector<2x64xf32> to vector<2x8xf32>
    %825 = vector.extract_strided_slice %823 {offsets = [0, 8], sizes = [2, 8], strides = [1, 1]} : vector<2x64xf32> to vector<2x8xf32>
    %826 = vector.extract_strided_slice %823 {offsets = [0, 16], sizes = [2, 8], strides = [1, 1]} : vector<2x64xf32> to vector<2x8xf32>
    %827 = vector.extract_strided_slice %823 {offsets = [0, 24], sizes = [2, 8], strides = [1, 1]} : vector<2x64xf32> to vector<2x8xf32>
    %828 = vector.extract_strided_slice %823 {offsets = [0, 32], sizes = [2, 8], strides = [1, 1]} : vector<2x64xf32> to vector<2x8xf32>
    %829 = vector.extract_strided_slice %823 {offsets = [0, 40], sizes = [2, 8], strides = [1, 1]} : vector<2x64xf32> to vector<2x8xf32>
    %830 = vector.extract_strided_slice %823 {offsets = [0, 48], sizes = [2, 8], strides = [1, 1]} : vector<2x64xf32> to vector<2x8xf32>
    %831 = vector.extract_strided_slice %823 {offsets = [0, 56], sizes = [2, 8], strides = [1, 1]} : vector<2x64xf32> to vector<2x8xf32>
    %832 = vector.extract_strided_slice %821 {offsets = [0, 0], sizes = [2, 1], strides = [1, 1]} : vector<2x64xf32> to vector<2x1xf32>
    %833 = vector.broadcast %832 : vector<2x1xf32> to vector<2x8xf32>
    %834 = arith.mulf %833, %824 : vector<2x8xf32>
    %835 = vector.extract_strided_slice %821 {offsets = [0, 1], sizes = [2, 1], strides = [1, 1]} : vector<2x64xf32> to vector<2x1xf32>
    %836 = vector.broadcast %835 : vector<2x1xf32> to vector<2x8xf32>
    %837 = arith.mulf %836, %825 : vector<2x8xf32>
    %838 = arith.addf %834, %837 : vector<2x8xf32>
    %839 = vector.extract_strided_slice %821 {offsets = [0, 2], sizes = [2, 1], strides = [1, 1]} : vector<2x64xf32> to vector<2x1xf32>
    %840 = vector.broadcast %839 : vector<2x1xf32> to vector<2x8xf32>
    %841 = arith.mulf %840, %826 : vector<2x8xf32>
    %842 = arith.addf %838, %841 : vector<2x8xf32>
    %843 = vector.extract_strided_slice %821 {offsets = [0, 3], sizes = [2, 1], strides = [1, 1]} : vector<2x64xf32> to vector<2x1xf32>
    %844 = vector.broadcast %843 : vector<2x1xf32> to vector<2x8xf32>
    %845 = arith.mulf %844, %827 : vector<2x8xf32>
    %846 = arith.addf %842, %845 : vector<2x8xf32>
    %847 = vector.extract_strided_slice %821 {offsets = [0, 4], sizes = [2, 1], strides = [1, 1]} : vector<2x64xf32> to vector<2x1xf32>
    %848 = vector.broadcast %847 : vector<2x1xf32> to vector<2x8xf32>
    %849 = arith.mulf %848, %828 : vector<2x8xf32>
    %850 = arith.addf %846, %849 : vector<2x8xf32>
    %851 = vector.extract_strided_slice %821 {offsets = [0, 5], sizes = [2, 1], strides = [1, 1]} : vector<2x64xf32> to vector<2x1xf32>
    %852 = vector.broadcast %851 : vector<2x1xf32> to vector<2x8xf32>
    %853 = arith.mulf %852, %829 : vector<2x8xf32>
    %854 = arith.addf %850, %853 : vector<2x8xf32>
    %855 = vector.extract_strided_slice %821 {offsets = [0, 6], sizes = [2, 1], strides = [1, 1]} : vector<2x64xf32> to vector<2x1xf32>
    %856 = vector.broadcast %855 : vector<2x1xf32> to vector<2x8xf32>
    %857 = arith.mulf %856, %830 : vector<2x8xf32>
    %858 = arith.addf %854, %857 : vector<2x8xf32>
    %859 = vector.extract_strided_slice %821 {offsets = [0, 7], sizes = [2, 1], strides = [1, 1]} : vector<2x64xf32> to vector<2x1xf32>
    %860 = vector.broadcast %859 : vector<2x1xf32> to vector<2x8xf32>
    %861 = arith.mulf %860, %831 : vector<2x8xf32>
    %862 = arith.addf %858, %861 : vector<2x8xf32>
    %863 = vector.extract_strided_slice %821 {offsets = [0, 8], sizes = [2, 1], strides = [1, 1]} : vector<2x64xf32> to vector<2x1xf32>
    %864 = vector.broadcast %863 : vector<2x1xf32> to vector<2x8xf32>
    %865 = arith.mulf %864, %824 : vector<2x8xf32>
    %866 = vector.extract_strided_slice %821 {offsets = [0, 9], sizes = [2, 1], strides = [1, 1]} : vector<2x64xf32> to vector<2x1xf32>
    %867 = vector.broadcast %866 : vector<2x1xf32> to vector<2x8xf32>
    %868 = arith.mulf %867, %825 : vector<2x8xf32>
    %869 = arith.addf %865, %868 : vector<2x8xf32>
    %870 = vector.extract_strided_slice %821 {offsets = [0, 10], sizes = [2, 1], strides = [1, 1]} : vector<2x64xf32> to vector<2x1xf32>
    %871 = vector.broadcast %870 : vector<2x1xf32> to vector<2x8xf32>
    %872 = arith.mulf %871, %826 : vector<2x8xf32>
    %873 = arith.addf %869, %872 : vector<2x8xf32>
    %874 = vector.extract_strided_slice %821 {offsets = [0, 11], sizes = [2, 1], strides = [1, 1]} : vector<2x64xf32> to vector<2x1xf32>
    %875 = vector.broadcast %874 : vector<2x1xf32> to vector<2x8xf32>
    %876 = arith.mulf %875, %827 : vector<2x8xf32>
    %877 = arith.addf %873, %876 : vector<2x8xf32>
    %878 = vector.extract_strided_slice %821 {offsets = [0, 12], sizes = [2, 1], strides = [1, 1]} : vector<2x64xf32> to vector<2x1xf32>
    %879 = vector.broadcast %878 : vector<2x1xf32> to vector<2x8xf32>
    %880 = arith.mulf %879, %828 : vector<2x8xf32>
    %881 = arith.addf %877, %880 : vector<2x8xf32>
    %882 = vector.extract_strided_slice %821 {offsets = [0, 13], sizes = [2, 1], strides = [1, 1]} : vector<2x64xf32> to vector<2x1xf32>
    %883 = vector.broadcast %882 : vector<2x1xf32> to vector<2x8xf32>
    %884 = arith.mulf %883, %829 : vector<2x8xf32>
    %885 = arith.addf %881, %884 : vector<2x8xf32>
    %886 = vector.extract_strided_slice %821 {offsets = [0, 14], sizes = [2, 1], strides = [1, 1]} : vector<2x64xf32> to vector<2x1xf32>
    %887 = vector.broadcast %886 : vector<2x1xf32> to vector<2x8xf32>
    %888 = arith.mulf %887, %830 : vector<2x8xf32>
    %889 = arith.addf %885, %888 : vector<2x8xf32>
    %890 = vector.extract_strided_slice %821 {offsets = [0, 15], sizes = [2, 1], strides = [1, 1]} : vector<2x64xf32> to vector<2x1xf32>
    %891 = vector.broadcast %890 : vector<2x1xf32> to vector<2x8xf32>
    %892 = arith.mulf %891, %831 : vector<2x8xf32>
    %893 = arith.addf %889, %892 : vector<2x8xf32>
    %894 = vector.extract_strided_slice %821 {offsets = [0, 16], sizes = [2, 1], strides = [1, 1]} : vector<2x64xf32> to vector<2x1xf32>
    %895 = vector.broadcast %894 : vector<2x1xf32> to vector<2x8xf32>
    %896 = arith.mulf %895, %824 : vector<2x8xf32>
    %897 = vector.extract_strided_slice %821 {offsets = [0, 17], sizes = [2, 1], strides = [1, 1]} : vector<2x64xf32> to vector<2x1xf32>
    %898 = vector.broadcast %897 : vector<2x1xf32> to vector<2x8xf32>
    %899 = arith.mulf %898, %825 : vector<2x8xf32>
    %900 = arith.addf %896, %899 : vector<2x8xf32>
    %901 = vector.extract_strided_slice %821 {offsets = [0, 18], sizes = [2, 1], strides = [1, 1]} : vector<2x64xf32> to vector<2x1xf32>
    %902 = vector.broadcast %901 : vector<2x1xf32> to vector<2x8xf32>
    %903 = arith.mulf %902, %826 : vector<2x8xf32>
    %904 = arith.addf %900, %903 : vector<2x8xf32>
    %905 = vector.extract_strided_slice %821 {offsets = [0, 19], sizes = [2, 1], strides = [1, 1]} : vector<2x64xf32> to vector<2x1xf32>
    %906 = vector.broadcast %905 : vector<2x1xf32> to vector<2x8xf32>
    %907 = arith.mulf %906, %827 : vector<2x8xf32>
    %908 = arith.addf %904, %907 : vector<2x8xf32>
    %909 = vector.extract_strided_slice %821 {offsets = [0, 20], sizes = [2, 1], strides = [1, 1]} : vector<2x64xf32> to vector<2x1xf32>
    %910 = vector.broadcast %909 : vector<2x1xf32> to vector<2x8xf32>
    %911 = arith.mulf %910, %828 : vector<2x8xf32>
    %912 = arith.addf %908, %911 : vector<2x8xf32>
    %913 = vector.extract_strided_slice %821 {offsets = [0, 21], sizes = [2, 1], strides = [1, 1]} : vector<2x64xf32> to vector<2x1xf32>
    %914 = vector.broadcast %913 : vector<2x1xf32> to vector<2x8xf32>
    %915 = arith.mulf %914, %829 : vector<2x8xf32>
    %916 = arith.addf %912, %915 : vector<2x8xf32>
    %917 = vector.extract_strided_slice %821 {offsets = [0, 22], sizes = [2, 1], strides = [1, 1]} : vector<2x64xf32> to vector<2x1xf32>
    %918 = vector.broadcast %917 : vector<2x1xf32> to vector<2x8xf32>
    %919 = arith.mulf %918, %830 : vector<2x8xf32>
    %920 = arith.addf %916, %919 : vector<2x8xf32>
    %921 = vector.extract_strided_slice %821 {offsets = [0, 23], sizes = [2, 1], strides = [1, 1]} : vector<2x64xf32> to vector<2x1xf32>
    %922 = vector.broadcast %921 : vector<2x1xf32> to vector<2x8xf32>
    %923 = arith.mulf %922, %831 : vector<2x8xf32>
    %924 = arith.addf %920, %923 : vector<2x8xf32>
    %925 = vector.extract_strided_slice %821 {offsets = [0, 24], sizes = [2, 1], strides = [1, 1]} : vector<2x64xf32> to vector<2x1xf32>
    %926 = vector.broadcast %925 : vector<2x1xf32> to vector<2x8xf32>
    %927 = arith.mulf %926, %824 : vector<2x8xf32>
    %928 = vector.extract_strided_slice %821 {offsets = [0, 25], sizes = [2, 1], strides = [1, 1]} : vector<2x64xf32> to vector<2x1xf32>
    %929 = vector.broadcast %928 : vector<2x1xf32> to vector<2x8xf32>
    %930 = arith.mulf %929, %825 : vector<2x8xf32>
    %931 = arith.addf %927, %930 : vector<2x8xf32>
    %932 = vector.extract_strided_slice %821 {offsets = [0, 26], sizes = [2, 1], strides = [1, 1]} : vector<2x64xf32> to vector<2x1xf32>
    %933 = vector.broadcast %932 : vector<2x1xf32> to vector<2x8xf32>
    %934 = arith.mulf %933, %826 : vector<2x8xf32>
    %935 = arith.addf %931, %934 : vector<2x8xf32>
    %936 = vector.extract_strided_slice %821 {offsets = [0, 27], sizes = [2, 1], strides = [1, 1]} : vector<2x64xf32> to vector<2x1xf32>
    %937 = vector.broadcast %936 : vector<2x1xf32> to vector<2x8xf32>
    %938 = arith.mulf %937, %827 : vector<2x8xf32>
    %939 = arith.addf %935, %938 : vector<2x8xf32>
    %940 = vector.extract_strided_slice %821 {offsets = [0, 28], sizes = [2, 1], strides = [1, 1]} : vector<2x64xf32> to vector<2x1xf32>
    %941 = vector.broadcast %940 : vector<2x1xf32> to vector<2x8xf32>
    %942 = arith.mulf %941, %828 : vector<2x8xf32>
    %943 = arith.addf %939, %942 : vector<2x8xf32>
    %944 = vector.extract_strided_slice %821 {offsets = [0, 29], sizes = [2, 1], strides = [1, 1]} : vector<2x64xf32> to vector<2x1xf32>
    %945 = vector.broadcast %944 : vector<2x1xf32> to vector<2x8xf32>
    %946 = arith.mulf %945, %829 : vector<2x8xf32>
    %947 = arith.addf %943, %946 : vector<2x8xf32>
    %948 = vector.extract_strided_slice %821 {offsets = [0, 30], sizes = [2, 1], strides = [1, 1]} : vector<2x64xf32> to vector<2x1xf32>
    %949 = vector.broadcast %948 : vector<2x1xf32> to vector<2x8xf32>
    %950 = arith.mulf %949, %830 : vector<2x8xf32>
    %951 = arith.addf %947, %950 : vector<2x8xf32>
    %952 = vector.extract_strided_slice %821 {offsets = [0, 31], sizes = [2, 1], strides = [1, 1]} : vector<2x64xf32> to vector<2x1xf32>
    %953 = vector.broadcast %952 : vector<2x1xf32> to vector<2x8xf32>
    %954 = arith.mulf %953, %831 : vector<2x8xf32>
    %955 = arith.addf %951, %954 : vector<2x8xf32>
    %956 = vector.extract_strided_slice %821 {offsets = [0, 32], sizes = [2, 1], strides = [1, 1]} : vector<2x64xf32> to vector<2x1xf32>
    %957 = vector.broadcast %956 : vector<2x1xf32> to vector<2x8xf32>
    %958 = arith.mulf %957, %824 : vector<2x8xf32>
    %959 = vector.extract_strided_slice %821 {offsets = [0, 33], sizes = [2, 1], strides = [1, 1]} : vector<2x64xf32> to vector<2x1xf32>
    %960 = vector.broadcast %959 : vector<2x1xf32> to vector<2x8xf32>
    %961 = arith.mulf %960, %825 : vector<2x8xf32>
    %962 = arith.addf %958, %961 : vector<2x8xf32>
    %963 = vector.extract_strided_slice %821 {offsets = [0, 34], sizes = [2, 1], strides = [1, 1]} : vector<2x64xf32> to vector<2x1xf32>
    %964 = vector.broadcast %963 : vector<2x1xf32> to vector<2x8xf32>
    %965 = arith.mulf %964, %826 : vector<2x8xf32>
    %966 = arith.addf %962, %965 : vector<2x8xf32>
    %967 = vector.extract_strided_slice %821 {offsets = [0, 35], sizes = [2, 1], strides = [1, 1]} : vector<2x64xf32> to vector<2x1xf32>
    %968 = vector.broadcast %967 : vector<2x1xf32> to vector<2x8xf32>
    %969 = arith.mulf %968, %827 : vector<2x8xf32>
    %970 = arith.addf %966, %969 : vector<2x8xf32>
    %971 = vector.extract_strided_slice %821 {offsets = [0, 36], sizes = [2, 1], strides = [1, 1]} : vector<2x64xf32> to vector<2x1xf32>
    %972 = vector.broadcast %971 : vector<2x1xf32> to vector<2x8xf32>
    %973 = arith.mulf %972, %828 : vector<2x8xf32>
    %974 = arith.addf %970, %973 : vector<2x8xf32>
    %975 = vector.extract_strided_slice %821 {offsets = [0, 37], sizes = [2, 1], strides = [1, 1]} : vector<2x64xf32> to vector<2x1xf32>
    %976 = vector.broadcast %975 : vector<2x1xf32> to vector<2x8xf32>
    %977 = arith.mulf %976, %829 : vector<2x8xf32>
    %978 = arith.addf %974, %977 : vector<2x8xf32>
    %979 = vector.extract_strided_slice %821 {offsets = [0, 38], sizes = [2, 1], strides = [1, 1]} : vector<2x64xf32> to vector<2x1xf32>
    %980 = vector.broadcast %979 : vector<2x1xf32> to vector<2x8xf32>
    %981 = arith.mulf %980, %830 : vector<2x8xf32>
    %982 = arith.addf %978, %981 : vector<2x8xf32>
    %983 = vector.extract_strided_slice %821 {offsets = [0, 39], sizes = [2, 1], strides = [1, 1]} : vector<2x64xf32> to vector<2x1xf32>
    %984 = vector.broadcast %983 : vector<2x1xf32> to vector<2x8xf32>
    %985 = arith.mulf %984, %831 : vector<2x8xf32>
    %986 = arith.addf %982, %985 : vector<2x8xf32>
    %987 = vector.extract_strided_slice %821 {offsets = [0, 40], sizes = [2, 1], strides = [1, 1]} : vector<2x64xf32> to vector<2x1xf32>
    %988 = vector.broadcast %987 : vector<2x1xf32> to vector<2x8xf32>
    %989 = arith.mulf %988, %824 : vector<2x8xf32>
    %990 = vector.extract_strided_slice %821 {offsets = [0, 41], sizes = [2, 1], strides = [1, 1]} : vector<2x64xf32> to vector<2x1xf32>
    %991 = vector.broadcast %990 : vector<2x1xf32> to vector<2x8xf32>
    %992 = arith.mulf %991, %825 : vector<2x8xf32>
    %993 = arith.addf %989, %992 : vector<2x8xf32>
    %994 = vector.extract_strided_slice %821 {offsets = [0, 42], sizes = [2, 1], strides = [1, 1]} : vector<2x64xf32> to vector<2x1xf32>
    %995 = vector.broadcast %994 : vector<2x1xf32> to vector<2x8xf32>
    %996 = arith.mulf %995, %826 : vector<2x8xf32>
    %997 = arith.addf %993, %996 : vector<2x8xf32>
    %998 = vector.extract_strided_slice %821 {offsets = [0, 43], sizes = [2, 1], strides = [1, 1]} : vector<2x64xf32> to vector<2x1xf32>
    %999 = vector.broadcast %998 : vector<2x1xf32> to vector<2x8xf32>
    %1000 = arith.mulf %999, %827 : vector<2x8xf32>
    %1001 = arith.addf %997, %1000 : vector<2x8xf32>
    %1002 = vector.extract_strided_slice %821 {offsets = [0, 44], sizes = [2, 1], strides = [1, 1]} : vector<2x64xf32> to vector<2x1xf32>
    %1003 = vector.broadcast %1002 : vector<2x1xf32> to vector<2x8xf32>
    %1004 = arith.mulf %1003, %828 : vector<2x8xf32>
    %1005 = arith.addf %1001, %1004 : vector<2x8xf32>
    %1006 = vector.extract_strided_slice %821 {offsets = [0, 45], sizes = [2, 1], strides = [1, 1]} : vector<2x64xf32> to vector<2x1xf32>
    %1007 = vector.broadcast %1006 : vector<2x1xf32> to vector<2x8xf32>
    %1008 = arith.mulf %1007, %829 : vector<2x8xf32>
    %1009 = arith.addf %1005, %1008 : vector<2x8xf32>
    %1010 = vector.extract_strided_slice %821 {offsets = [0, 46], sizes = [2, 1], strides = [1, 1]} : vector<2x64xf32> to vector<2x1xf32>
    %1011 = vector.broadcast %1010 : vector<2x1xf32> to vector<2x8xf32>
    %1012 = arith.mulf %1011, %830 : vector<2x8xf32>
    %1013 = arith.addf %1009, %1012 : vector<2x8xf32>
    %1014 = vector.extract_strided_slice %821 {offsets = [0, 47], sizes = [2, 1], strides = [1, 1]} : vector<2x64xf32> to vector<2x1xf32>
    %1015 = vector.broadcast %1014 : vector<2x1xf32> to vector<2x8xf32>
    %1016 = arith.mulf %1015, %831 : vector<2x8xf32>
    %1017 = arith.addf %1013, %1016 : vector<2x8xf32>
    %1018 = vector.extract_strided_slice %821 {offsets = [0, 48], sizes = [2, 1], strides = [1, 1]} : vector<2x64xf32> to vector<2x1xf32>
    %1019 = vector.broadcast %1018 : vector<2x1xf32> to vector<2x8xf32>
    %1020 = arith.mulf %1019, %824 : vector<2x8xf32>
    %1021 = vector.extract_strided_slice %821 {offsets = [0, 49], sizes = [2, 1], strides = [1, 1]} : vector<2x64xf32> to vector<2x1xf32>
    %1022 = vector.broadcast %1021 : vector<2x1xf32> to vector<2x8xf32>
    %1023 = arith.mulf %1022, %825 : vector<2x8xf32>
    %1024 = arith.addf %1020, %1023 : vector<2x8xf32>
    %1025 = vector.extract_strided_slice %821 {offsets = [0, 50], sizes = [2, 1], strides = [1, 1]} : vector<2x64xf32> to vector<2x1xf32>
    %1026 = vector.broadcast %1025 : vector<2x1xf32> to vector<2x8xf32>
    %1027 = arith.mulf %1026, %826 : vector<2x8xf32>
    %1028 = arith.addf %1024, %1027 : vector<2x8xf32>
    %1029 = vector.extract_strided_slice %821 {offsets = [0, 51], sizes = [2, 1], strides = [1, 1]} : vector<2x64xf32> to vector<2x1xf32>
    %1030 = vector.broadcast %1029 : vector<2x1xf32> to vector<2x8xf32>
    %1031 = arith.mulf %1030, %827 : vector<2x8xf32>
    %1032 = arith.addf %1028, %1031 : vector<2x8xf32>
    %1033 = vector.extract_strided_slice %821 {offsets = [0, 52], sizes = [2, 1], strides = [1, 1]} : vector<2x64xf32> to vector<2x1xf32>
    %1034 = vector.broadcast %1033 : vector<2x1xf32> to vector<2x8xf32>
    %1035 = arith.mulf %1034, %828 : vector<2x8xf32>
    %1036 = arith.addf %1032, %1035 : vector<2x8xf32>
    %1037 = vector.extract_strided_slice %821 {offsets = [0, 53], sizes = [2, 1], strides = [1, 1]} : vector<2x64xf32> to vector<2x1xf32>
    %1038 = vector.broadcast %1037 : vector<2x1xf32> to vector<2x8xf32>
    %1039 = arith.mulf %1038, %829 : vector<2x8xf32>
    %1040 = arith.addf %1036, %1039 : vector<2x8xf32>
    %1041 = vector.extract_strided_slice %821 {offsets = [0, 54], sizes = [2, 1], strides = [1, 1]} : vector<2x64xf32> to vector<2x1xf32>
    %1042 = vector.broadcast %1041 : vector<2x1xf32> to vector<2x8xf32>
    %1043 = arith.mulf %1042, %830 : vector<2x8xf32>
    %1044 = arith.addf %1040, %1043 : vector<2x8xf32>
    %1045 = vector.extract_strided_slice %821 {offsets = [0, 55], sizes = [2, 1], strides = [1, 1]} : vector<2x64xf32> to vector<2x1xf32>
    %1046 = vector.broadcast %1045 : vector<2x1xf32> to vector<2x8xf32>
    %1047 = arith.mulf %1046, %831 : vector<2x8xf32>
    %1048 = arith.addf %1044, %1047 : vector<2x8xf32>
    %1049 = vector.extract_strided_slice %821 {offsets = [0, 56], sizes = [2, 1], strides = [1, 1]} : vector<2x64xf32> to vector<2x1xf32>
    %1050 = vector.broadcast %1049 : vector<2x1xf32> to vector<2x8xf32>
    %1051 = arith.mulf %1050, %824 : vector<2x8xf32>
    %1052 = vector.extract_strided_slice %821 {offsets = [0, 57], sizes = [2, 1], strides = [1, 1]} : vector<2x64xf32> to vector<2x1xf32>
    %1053 = vector.broadcast %1052 : vector<2x1xf32> to vector<2x8xf32>
    %1054 = arith.mulf %1053, %825 : vector<2x8xf32>
    %1055 = arith.addf %1051, %1054 : vector<2x8xf32>
    %1056 = vector.extract_strided_slice %821 {offsets = [0, 58], sizes = [2, 1], strides = [1, 1]} : vector<2x64xf32> to vector<2x1xf32>
    %1057 = vector.broadcast %1056 : vector<2x1xf32> to vector<2x8xf32>
    %1058 = arith.mulf %1057, %826 : vector<2x8xf32>
    %1059 = arith.addf %1055, %1058 : vector<2x8xf32>
    %1060 = vector.extract_strided_slice %821 {offsets = [0, 59], sizes = [2, 1], strides = [1, 1]} : vector<2x64xf32> to vector<2x1xf32>
    %1061 = vector.broadcast %1060 : vector<2x1xf32> to vector<2x8xf32>
    %1062 = arith.mulf %1061, %827 : vector<2x8xf32>
    %1063 = arith.addf %1059, %1062 : vector<2x8xf32>
    %1064 = vector.extract_strided_slice %821 {offsets = [0, 60], sizes = [2, 1], strides = [1, 1]} : vector<2x64xf32> to vector<2x1xf32>
    %1065 = vector.broadcast %1064 : vector<2x1xf32> to vector<2x8xf32>
    %1066 = arith.mulf %1065, %828 : vector<2x8xf32>
    %1067 = arith.addf %1063, %1066 : vector<2x8xf32>
    %1068 = vector.extract_strided_slice %821 {offsets = [0, 61], sizes = [2, 1], strides = [1, 1]} : vector<2x64xf32> to vector<2x1xf32>
    %1069 = vector.broadcast %1068 : vector<2x1xf32> to vector<2x8xf32>
    %1070 = arith.mulf %1069, %829 : vector<2x8xf32>
    %1071 = arith.addf %1067, %1070 : vector<2x8xf32>
    %1072 = vector.extract_strided_slice %821 {offsets = [0, 62], sizes = [2, 1], strides = [1, 1]} : vector<2x64xf32> to vector<2x1xf32>
    %1073 = vector.broadcast %1072 : vector<2x1xf32> to vector<2x8xf32>
    %1074 = arith.mulf %1073, %830 : vector<2x8xf32>
    %1075 = arith.addf %1071, %1074 : vector<2x8xf32>
    %1076 = vector.extract_strided_slice %821 {offsets = [0, 63], sizes = [2, 1], strides = [1, 1]} : vector<2x64xf32> to vector<2x1xf32>
    %1077 = vector.broadcast %1076 : vector<2x1xf32> to vector<2x8xf32>
    %1078 = arith.mulf %1077, %831 : vector<2x8xf32>
    %1079 = arith.addf %1075, %1078 : vector<2x8xf32>
    %1080 = tpu.concatenate %862, %893, %924, %955, %986, %1017, %1048, %1079 in 1 : vector<2x8xf32>, vector<2x8xf32>, vector<2x8xf32>, vector<2x8xf32>, vector<2x8xf32>, vector<2x8xf32>, vector<2x8xf32>, vector<2x8xf32> -> vector<2x64xf32>
    %c8 = arith.constant 8 : index
    %c0_24 = arith.constant 0 : index
    %1081 = vector.load %arg7[%c8, %c0_24] : memref<16x64xf32, #tpu.memory_space<vmem>>, vector<2x64xf32>
    tpu.vector_store %arg7[%c8, %c0_24], %1080 {strides = array<i32>} : memref<16x64xf32, #tpu.memory_space<vmem>>, vector<2x64xf32>,
    %1082 = vector.extract_strided_slice %43 {offsets = [10, 0], sizes = [2, 64], strides = [1, 1]} : vector<16x64xf32> to vector<2x64xf32>
    %1083 = vector.extract_strided_slice %1082 {offsets = [0, 0], sizes = [2, 8], strides = [1, 1]} : vector<2x64xf32> to vector<2x8xf32>
    %1084 = vector.extract_strided_slice %1082 {offsets = [0, 8], sizes = [2, 8], strides = [1, 1]} : vector<2x64xf32> to vector<2x8xf32>
    %1085 = vector.extract_strided_slice %1082 {offsets = [0, 16], sizes = [2, 8], strides = [1, 1]} : vector<2x64xf32> to vector<2x8xf32>
    %1086 = vector.extract_strided_slice %1082 {offsets = [0, 24], sizes = [2, 8], strides = [1, 1]} : vector<2x64xf32> to vector<2x8xf32>
    %1087 = vector.extract_strided_slice %1082 {offsets = [0, 32], sizes = [2, 8], strides = [1, 1]} : vector<2x64xf32> to vector<2x8xf32>
    %1088 = vector.extract_strided_slice %1082 {offsets = [0, 40], sizes = [2, 8], strides = [1, 1]} : vector<2x64xf32> to vector<2x8xf32>
    %1089 = vector.extract_strided_slice %1082 {offsets = [0, 48], sizes = [2, 8], strides = [1, 1]} : vector<2x64xf32> to vector<2x8xf32>
    %1090 = vector.extract_strided_slice %1082 {offsets = [0, 56], sizes = [2, 8], strides = [1, 1]} : vector<2x64xf32> to vector<2x8xf32>
    %1091 = vector.extract_strided_slice %1080 {offsets = [0, 0], sizes = [2, 1], strides = [1, 1]} : vector<2x64xf32> to vector<2x1xf32>
    %1092 = vector.broadcast %1091 : vector<2x1xf32> to vector<2x8xf32>
    %1093 = arith.mulf %1092, %1083 : vector<2x8xf32>
    %1094 = vector.extract_strided_slice %1080 {offsets = [0, 1], sizes = [2, 1], strides = [1, 1]} : vector<2x64xf32> to vector<2x1xf32>
    %1095 = vector.broadcast %1094 : vector<2x1xf32> to vector<2x8xf32>
    %1096 = arith.mulf %1095, %1084 : vector<2x8xf32>
    %1097 = arith.addf %1093, %1096 : vector<2x8xf32>
    %1098 = vector.extract_strided_slice %1080 {offsets = [0, 2], sizes = [2, 1], strides = [1, 1]} : vector<2x64xf32> to vector<2x1xf32>
    %1099 = vector.broadcast %1098 : vector<2x1xf32> to vector<2x8xf32>
    %1100 = arith.mulf %1099, %1085 : vector<2x8xf32>
    %1101 = arith.addf %1097, %1100 : vector<2x8xf32>
    %1102 = vector.extract_strided_slice %1080 {offsets = [0, 3], sizes = [2, 1], strides = [1, 1]} : vector<2x64xf32> to vector<2x1xf32>
    %1103 = vector.broadcast %1102 : vector<2x1xf32> to vector<2x8xf32>
    %1104 = arith.mulf %1103, %1086 : vector<2x8xf32>
    %1105 = arith.addf %1101, %1104 : vector<2x8xf32>
    %1106 = vector.extract_strided_slice %1080 {offsets = [0, 4], sizes = [2, 1], strides = [1, 1]} : vector<2x64xf32> to vector<2x1xf32>
    %1107 = vector.broadcast %1106 : vector<2x1xf32> to vector<2x8xf32>
    %1108 = arith.mulf %1107, %1087 : vector<2x8xf32>
    %1109 = arith.addf %1105, %1108 : vector<2x8xf32>
    %1110 = vector.extract_strided_slice %1080 {offsets = [0, 5], sizes = [2, 1], strides = [1, 1]} : vector<2x64xf32> to vector<2x1xf32>
    %1111 = vector.broadcast %1110 : vector<2x1xf32> to vector<2x8xf32>
    %1112 = arith.mulf %1111, %1088 : vector<2x8xf32>
    %1113 = arith.addf %1109, %1112 : vector<2x8xf32>
    %1114 = vector.extract_strided_slice %1080 {offsets = [0, 6], sizes = [2, 1], strides = [1, 1]} : vector<2x64xf32> to vector<2x1xf32>
    %1115 = vector.broadcast %1114 : vector<2x1xf32> to vector<2x8xf32>
    %1116 = arith.mulf %1115, %1089 : vector<2x8xf32>
    %1117 = arith.addf %1113, %1116 : vector<2x8xf32>
    %1118 = vector.extract_strided_slice %1080 {offsets = [0, 7], sizes = [2, 1], strides = [1, 1]} : vector<2x64xf32> to vector<2x1xf32>
    %1119 = vector.broadcast %1118 : vector<2x1xf32> to vector<2x8xf32>
    %1120 = arith.mulf %1119, %1090 : vector<2x8xf32>
    %1121 = arith.addf %1117, %1120 : vector<2x8xf32>
    %1122 = vector.extract_strided_slice %1080 {offsets = [0, 8], sizes = [2, 1], strides = [1, 1]} : vector<2x64xf32> to vector<2x1xf32>
    %1123 = vector.broadcast %1122 : vector<2x1xf32> to vector<2x8xf32>
    %1124 = arith.mulf %1123, %1083 : vector<2x8xf32>
    %1125 = vector.extract_strided_slice %1080 {offsets = [0, 9], sizes = [2, 1], strides = [1, 1]} : vector<2x64xf32> to vector<2x1xf32>
    %1126 = vector.broadcast %1125 : vector<2x1xf32> to vector<2x8xf32>
    %1127 = arith.mulf %1126, %1084 : vector<2x8xf32>
    %1128 = arith.addf %1124, %1127 : vector<2x8xf32>
    %1129 = vector.extract_strided_slice %1080 {offsets = [0, 10], sizes = [2, 1], strides = [1, 1]} : vector<2x64xf32> to vector<2x1xf32>
    %1130 = vector.broadcast %1129 : vector<2x1xf32> to vector<2x8xf32>
    %1131 = arith.mulf %1130, %1085 : vector<2x8xf32>
    %1132 = arith.addf %1128, %1131 : vector<2x8xf32>
    %1133 = vector.extract_strided_slice %1080 {offsets = [0, 11], sizes = [2, 1], strides = [1, 1]} : vector<2x64xf32> to vector<2x1xf32>
    %1134 = vector.broadcast %1133 : vector<2x1xf32> to vector<2x8xf32>
    %1135 = arith.mulf %1134, %1086 : vector<2x8xf32>
    %1136 = arith.addf %1132, %1135 : vector<2x8xf32>
    %1137 = vector.extract_strided_slice %1080 {offsets = [0, 12], sizes = [2, 1], strides = [1, 1]} : vector<2x64xf32> to vector<2x1xf32>
    %1138 = vector.broadcast %1137 : vector<2x1xf32> to vector<2x8xf32>
    %1139 = arith.mulf %1138, %1087 : vector<2x8xf32>
    %1140 = arith.addf %1136, %1139 : vector<2x8xf32>
    %1141 = vector.extract_strided_slice %1080 {offsets = [0, 13], sizes = [2, 1], strides = [1, 1]} : vector<2x64xf32> to vector<2x1xf32>
    %1142 = vector.broadcast %1141 : vector<2x1xf32> to vector<2x8xf32>
    %1143 = arith.mulf %1142, %1088 : vector<2x8xf32>
    %1144 = arith.addf %1140, %1143 : vector<2x8xf32>
    %1145 = vector.extract_strided_slice %1080 {offsets = [0, 14], sizes = [2, 1], strides = [1, 1]} : vector<2x64xf32> to vector<2x1xf32>
    %1146 = vector.broadcast %1145 : vector<2x1xf32> to vector<2x8xf32>
    %1147 = arith.mulf %1146, %1089 : vector<2x8xf32>
    %1148 = arith.addf %1144, %1147 : vector<2x8xf32>
    %1149 = vector.extract_strided_slice %1080 {offsets = [0, 15], sizes = [2, 1], strides = [1, 1]} : vector<2x64xf32> to vector<2x1xf32>
    %1150 = vector.broadcast %1149 : vector<2x1xf32> to vector<2x8xf32>
    %1151 = arith.mulf %1150, %1090 : vector<2x8xf32>
    %1152 = arith.addf %1148, %1151 : vector<2x8xf32>
    %1153 = vector.extract_strided_slice %1080 {offsets = [0, 16], sizes = [2, 1], strides = [1, 1]} : vector<2x64xf32> to vector<2x1xf32>
    %1154 = vector.broadcast %1153 : vector<2x1xf32> to vector<2x8xf32>
    %1155 = arith.mulf %1154, %1083 : vector<2x8xf32>
    %1156 = vector.extract_strided_slice %1080 {offsets = [0, 17], sizes = [2, 1], strides = [1, 1]} : vector<2x64xf32> to vector<2x1xf32>
    %1157 = vector.broadcast %1156 : vector<2x1xf32> to vector<2x8xf32>
    %1158 = arith.mulf %1157, %1084 : vector<2x8xf32>
    %1159 = arith.addf %1155, %1158 : vector<2x8xf32>
    %1160 = vector.extract_strided_slice %1080 {offsets = [0, 18], sizes = [2, 1], strides = [1, 1]} : vector<2x64xf32> to vector<2x1xf32>
    %1161 = vector.broadcast %1160 : vector<2x1xf32> to vector<2x8xf32>
    %1162 = arith.mulf %1161, %1085 : vector<2x8xf32>
    %1163 = arith.addf %1159, %1162 : vector<2x8xf32>
    %1164 = vector.extract_strided_slice %1080 {offsets = [0, 19], sizes = [2, 1], strides = [1, 1]} : vector<2x64xf32> to vector<2x1xf32>
    %1165 = vector.broadcast %1164 : vector<2x1xf32> to vector<2x8xf32>
    %1166 = arith.mulf %1165, %1086 : vector<2x8xf32>
    %1167 = arith.addf %1163, %1166 : vector<2x8xf32>
    %1168 = vector.extract_strided_slice %1080 {offsets = [0, 20], sizes = [2, 1], strides = [1, 1]} : vector<2x64xf32> to vector<2x1xf32>
    %1169 = vector.broadcast %1168 : vector<2x1xf32> to vector<2x8xf32>
    %1170 = arith.mulf %1169, %1087 : vector<2x8xf32>
    %1171 = arith.addf %1167, %1170 : vector<2x8xf32>
    %1172 = vector.extract_strided_slice %1080 {offsets = [0, 21], sizes = [2, 1], strides = [1, 1]} : vector<2x64xf32> to vector<2x1xf32>
    %1173 = vector.broadcast %1172 : vector<2x1xf32> to vector<2x8xf32>
    %1174 = arith.mulf %1173, %1088 : vector<2x8xf32>
    %1175 = arith.addf %1171, %1174 : vector<2x8xf32>
    %1176 = vector.extract_strided_slice %1080 {offsets = [0, 22], sizes = [2, 1], strides = [1, 1]} : vector<2x64xf32> to vector<2x1xf32>
    %1177 = vector.broadcast %1176 : vector<2x1xf32> to vector<2x8xf32>
    %1178 = arith.mulf %1177, %1089 : vector<2x8xf32>
    %1179 = arith.addf %1175, %1178 : vector<2x8xf32>
    %1180 = vector.extract_strided_slice %1080 {offsets = [0, 23], sizes = [2, 1], strides = [1, 1]} : vector<2x64xf32> to vector<2x1xf32>
    %1181 = vector.broadcast %1180 : vector<2x1xf32> to vector<2x8xf32>
    %1182 = arith.mulf %1181, %1090 : vector<2x8xf32>
    %1183 = arith.addf %1179, %1182 : vector<2x8xf32>
    %1184 = vector.extract_strided_slice %1080 {offsets = [0, 24], sizes = [2, 1], strides = [1, 1]} : vector<2x64xf32> to vector<2x1xf32>
    %1185 = vector.broadcast %1184 : vector<2x1xf32> to vector<2x8xf32>
    %1186 = arith.mulf %1185, %1083 : vector<2x8xf32>
    %1187 = vector.extract_strided_slice %1080 {offsets = [0, 25], sizes = [2, 1], strides = [1, 1]} : vector<2x64xf32> to vector<2x1xf32>
    %1188 = vector.broadcast %1187 : vector<2x1xf32> to vector<2x8xf32>
    %1189 = arith.mulf %1188, %1084 : vector<2x8xf32>
    %1190 = arith.addf %1186, %1189 : vector<2x8xf32>
    %1191 = vector.extract_strided_slice %1080 {offsets = [0, 26], sizes = [2, 1], strides = [1, 1]} : vector<2x64xf32> to vector<2x1xf32>
    %1192 = vector.broadcast %1191 : vector<2x1xf32> to vector<2x8xf32>
    %1193 = arith.mulf %1192, %1085 : vector<2x8xf32>
    %1194 = arith.addf %1190, %1193 : vector<2x8xf32>
    %1195 = vector.extract_strided_slice %1080 {offsets = [0, 27], sizes = [2, 1], strides = [1, 1]} : vector<2x64xf32> to vector<2x1xf32>
    %1196 = vector.broadcast %1195 : vector<2x1xf32> to vector<2x8xf32>
    %1197 = arith.mulf %1196, %1086 : vector<2x8xf32>
    %1198 = arith.addf %1194, %1197 : vector<2x8xf32>
    %1199 = vector.extract_strided_slice %1080 {offsets = [0, 28], sizes = [2, 1], strides = [1, 1]} : vector<2x64xf32> to vector<2x1xf32>
    %1200 = vector.broadcast %1199 : vector<2x1xf32> to vector<2x8xf32>
    %1201 = arith.mulf %1200, %1087 : vector<2x8xf32>
    %1202 = arith.addf %1198, %1201 : vector<2x8xf32>
    %1203 = vector.extract_strided_slice %1080 {offsets = [0, 29], sizes = [2, 1], strides = [1, 1]} : vector<2x64xf32> to vector<2x1xf32>
    %1204 = vector.broadcast %1203 : vector<2x1xf32> to vector<2x8xf32>
    %1205 = arith.mulf %1204, %1088 : vector<2x8xf32>
    %1206 = arith.addf %1202, %1205 : vector<2x8xf32>
    %1207 = vector.extract_strided_slice %1080 {offsets = [0, 30], sizes = [2, 1], strides = [1, 1]} : vector<2x64xf32> to vector<2x1xf32>
    %1208 = vector.broadcast %1207 : vector<2x1xf32> to vector<2x8xf32>
    %1209 = arith.mulf %1208, %1089 : vector<2x8xf32>
    %1210 = arith.addf %1206, %1209 : vector<2x8xf32>
    %1211 = vector.extract_strided_slice %1080 {offsets = [0, 31], sizes = [2, 1], strides = [1, 1]} : vector<2x64xf32> to vector<2x1xf32>
    %1212 = vector.broadcast %1211 : vector<2x1xf32> to vector<2x8xf32>
    %1213 = arith.mulf %1212, %1090 : vector<2x8xf32>
    %1214 = arith.addf %1210, %1213 : vector<2x8xf32>
    %1215 = vector.extract_strided_slice %1080 {offsets = [0, 32], sizes = [2, 1], strides = [1, 1]} : vector<2x64xf32> to vector<2x1xf32>
    %1216 = vector.broadcast %1215 : vector<2x1xf32> to vector<2x8xf32>
    %1217 = arith.mulf %1216, %1083 : vector<2x8xf32>
    %1218 = vector.extract_strided_slice %1080 {offsets = [0, 33], sizes = [2, 1], strides = [1, 1]} : vector<2x64xf32> to vector<2x1xf32>
    %1219 = vector.broadcast %1218 : vector<2x1xf32> to vector<2x8xf32>
    %1220 = arith.mulf %1219, %1084 : vector<2x8xf32>
    %1221 = arith.addf %1217, %1220 : vector<2x8xf32>
    %1222 = vector.extract_strided_slice %1080 {offsets = [0, 34], sizes = [2, 1], strides = [1, 1]} : vector<2x64xf32> to vector<2x1xf32>
    %1223 = vector.broadcast %1222 : vector<2x1xf32> to vector<2x8xf32>
    %1224 = arith.mulf %1223, %1085 : vector<2x8xf32>
    %1225 = arith.addf %1221, %1224 : vector<2x8xf32>
    %1226 = vector.extract_strided_slice %1080 {offsets = [0, 35], sizes = [2, 1], strides = [1, 1]} : vector<2x64xf32> to vector<2x1xf32>
    %1227 = vector.broadcast %1226 : vector<2x1xf32> to vector<2x8xf32>
    %1228 = arith.mulf %1227, %1086 : vector<2x8xf32>
    %1229 = arith.addf %1225, %1228 : vector<2x8xf32>
    %1230 = vector.extract_strided_slice %1080 {offsets = [0, 36], sizes = [2, 1], strides = [1, 1]} : vector<2x64xf32> to vector<2x1xf32>
    %1231 = vector.broadcast %1230 : vector<2x1xf32> to vector<2x8xf32>
    %1232 = arith.mulf %1231, %1087 : vector<2x8xf32>
    %1233 = arith.addf %1229, %1232 : vector<2x8xf32>
    %1234 = vector.extract_strided_slice %1080 {offsets = [0, 37], sizes = [2, 1], strides = [1, 1]} : vector<2x64xf32> to vector<2x1xf32>
    %1235 = vector.broadcast %1234 : vector<2x1xf32> to vector<2x8xf32>
    %1236 = arith.mulf %1235, %1088 : vector<2x8xf32>
    %1237 = arith.addf %1233, %1236 : vector<2x8xf32>
    %1238 = vector.extract_strided_slice %1080 {offsets = [0, 38], sizes = [2, 1], strides = [1, 1]} : vector<2x64xf32> to vector<2x1xf32>
    %1239 = vector.broadcast %1238 : vector<2x1xf32> to vector<2x8xf32>
    %1240 = arith.mulf %1239, %1089 : vector<2x8xf32>
    %1241 = arith.addf %1237, %1240 : vector<2x8xf32>
    %1242 = vector.extract_strided_slice %1080 {offsets = [0, 39], sizes = [2, 1], strides = [1, 1]} : vector<2x64xf32> to vector<2x1xf32>
    %1243 = vector.broadcast %1242 : vector<2x1xf32> to vector<2x8xf32>
    %1244 = arith.mulf %1243, %1090 : vector<2x8xf32>
    %1245 = arith.addf %1241, %1244 : vector<2x8xf32>
    %1246 = vector.extract_strided_slice %1080 {offsets = [0, 40], sizes = [2, 1], strides = [1, 1]} : vector<2x64xf32> to vector<2x1xf32>
    %1247 = vector.broadcast %1246 : vector<2x1xf32> to vector<2x8xf32>
    %1248 = arith.mulf %1247, %1083 : vector<2x8xf32>
    %1249 = vector.extract_strided_slice %1080 {offsets = [0, 41], sizes = [2, 1], strides = [1, 1]} : vector<2x64xf32> to vector<2x1xf32>
    %1250 = vector.broadcast %1249 : vector<2x1xf32> to vector<2x8xf32>
    %1251 = arith.mulf %1250, %1084 : vector<2x8xf32>
    %1252 = arith.addf %1248, %1251 : vector<2x8xf32>
    %1253 = vector.extract_strided_slice %1080 {offsets = [0, 42], sizes = [2, 1], strides = [1, 1]} : vector<2x64xf32> to vector<2x1xf32>
    %1254 = vector.broadcast %1253 : vector<2x1xf32> to vector<2x8xf32>
    %1255 = arith.mulf %1254, %1085 : vector<2x8xf32>
    %1256 = arith.addf %1252, %1255 : vector<2x8xf32>
    %1257 = vector.extract_strided_slice %1080 {offsets = [0, 43], sizes = [2, 1], strides = [1, 1]} : vector<2x64xf32> to vector<2x1xf32>
    %1258 = vector.broadcast %1257 : vector<2x1xf32> to vector<2x8xf32>
    %1259 = arith.mulf %1258, %1086 : vector<2x8xf32>
    %1260 = arith.addf %1256, %1259 : vector<2x8xf32>
    %1261 = vector.extract_strided_slice %1080 {offsets = [0, 44], sizes = [2, 1], strides = [1, 1]} : vector<2x64xf32> to vector<2x1xf32>
    %1262 = vector.broadcast %1261 : vector<2x1xf32> to vector<2x8xf32>
    %1263 = arith.mulf %1262, %1087 : vector<2x8xf32>
    %1264 = arith.addf %1260, %1263 : vector<2x8xf32>
    %1265 = vector.extract_strided_slice %1080 {offsets = [0, 45], sizes = [2, 1], strides = [1, 1]} : vector<2x64xf32> to vector<2x1xf32>
    %1266 = vector.broadcast %1265 : vector<2x1xf32> to vector<2x8xf32>
    %1267 = arith.mulf %1266, %1088 : vector<2x8xf32>
    %1268 = arith.addf %1264, %1267 : vector<2x8xf32>
    %1269 = vector.extract_strided_slice %1080 {offsets = [0, 46], sizes = [2, 1], strides = [1, 1]} : vector<2x64xf32> to vector<2x1xf32>
    %1270 = vector.broadcast %1269 : vector<2x1xf32> to vector<2x8xf32>
    %1271 = arith.mulf %1270, %1089 : vector<2x8xf32>
    %1272 = arith.addf %1268, %1271 : vector<2x8xf32>
    %1273 = vector.extract_strided_slice %1080 {offsets = [0, 47], sizes = [2, 1], strides = [1, 1]} : vector<2x64xf32> to vector<2x1xf32>
    %1274 = vector.broadcast %1273 : vector<2x1xf32> to vector<2x8xf32>
    %1275 = arith.mulf %1274, %1090 : vector<2x8xf32>
    %1276 = arith.addf %1272, %1275 : vector<2x8xf32>
    %1277 = vector.extract_strided_slice %1080 {offsets = [0, 48], sizes = [2, 1], strides = [1, 1]} : vector<2x64xf32> to vector<2x1xf32>
    %1278 = vector.broadcast %1277 : vector<2x1xf32> to vector<2x8xf32>
    %1279 = arith.mulf %1278, %1083 : vector<2x8xf32>
    %1280 = vector.extract_strided_slice %1080 {offsets = [0, 49], sizes = [2, 1], strides = [1, 1]} : vector<2x64xf32> to vector<2x1xf32>
    %1281 = vector.broadcast %1280 : vector<2x1xf32> to vector<2x8xf32>
    %1282 = arith.mulf %1281, %1084 : vector<2x8xf32>
    %1283 = arith.addf %1279, %1282 : vector<2x8xf32>
    %1284 = vector.extract_strided_slice %1080 {offsets = [0, 50], sizes = [2, 1], strides = [1, 1]} : vector<2x64xf32> to vector<2x1xf32>
    %1285 = vector.broadcast %1284 : vector<2x1xf32> to vector<2x8xf32>
    %1286 = arith.mulf %1285, %1085 : vector<2x8xf32>
    %1287 = arith.addf %1283, %1286 : vector<2x8xf32>
    %1288 = vector.extract_strided_slice %1080 {offsets = [0, 51], sizes = [2, 1], strides = [1, 1]} : vector<2x64xf32> to vector<2x1xf32>
    %1289 = vector.broadcast %1288 : vector<2x1xf32> to vector<2x8xf32>
    %1290 = arith.mulf %1289, %1086 : vector<2x8xf32>
    %1291 = arith.addf %1287, %1290 : vector<2x8xf32>
    %1292 = vector.extract_strided_slice %1080 {offsets = [0, 52], sizes = [2, 1], strides = [1, 1]} : vector<2x64xf32> to vector<2x1xf32>
    %1293 = vector.broadcast %1292 : vector<2x1xf32> to vector<2x8xf32>
    %1294 = arith.mulf %1293, %1087 : vector<2x8xf32>
    %1295 = arith.addf %1291, %1294 : vector<2x8xf32>
    %1296 = vector.extract_strided_slice %1080 {offsets = [0, 53], sizes = [2, 1], strides = [1, 1]} : vector<2x64xf32> to vector<2x1xf32>
    %1297 = vector.broadcast %1296 : vector<2x1xf32> to vector<2x8xf32>
    %1298 = arith.mulf %1297, %1088 : vector<2x8xf32>
    %1299 = arith.addf %1295, %1298 : vector<2x8xf32>
    %1300 = vector.extract_strided_slice %1080 {offsets = [0, 54], sizes = [2, 1], strides = [1, 1]} : vector<2x64xf32> to vector<2x1xf32>
    %1301 = vector.broadcast %1300 : vector<2x1xf32> to vector<2x8xf32>
    %1302 = arith.mulf %1301, %1089 : vector<2x8xf32>
    %1303 = arith.addf %1299, %1302 : vector<2x8xf32>
    %1304 = vector.extract_strided_slice %1080 {offsets = [0, 55], sizes = [2, 1], strides = [1, 1]} : vector<2x64xf32> to vector<2x1xf32>
    %1305 = vector.broadcast %1304 : vector<2x1xf32> to vector<2x8xf32>
    %1306 = arith.mulf %1305, %1090 : vector<2x8xf32>
    %1307 = arith.addf %1303, %1306 : vector<2x8xf32>
    %1308 = vector.extract_strided_slice %1080 {offsets = [0, 56], sizes = [2, 1], strides = [1, 1]} : vector<2x64xf32> to vector<2x1xf32>
    %1309 = vector.broadcast %1308 : vector<2x1xf32> to vector<2x8xf32>
    %1310 = arith.mulf %1309, %1083 : vector<2x8xf32>
    %1311 = vector.extract_strided_slice %1080 {offsets = [0, 57], sizes = [2, 1], strides = [1, 1]} : vector<2x64xf32> to vector<2x1xf32>
    %1312 = vector.broadcast %1311 : vector<2x1xf32> to vector<2x8xf32>
    %1313 = arith.mulf %1312, %1084 : vector<2x8xf32>
    %1314 = arith.addf %1310, %1313 : vector<2x8xf32>
    %1315 = vector.extract_strided_slice %1080 {offsets = [0, 58], sizes = [2, 1], strides = [1, 1]} : vector<2x64xf32> to vector<2x1xf32>
    %1316 = vector.broadcast %1315 : vector<2x1xf32> to vector<2x8xf32>
    %1317 = arith.mulf %1316, %1085 : vector<2x8xf32>
    %1318 = arith.addf %1314, %1317 : vector<2x8xf32>
    %1319 = vector.extract_strided_slice %1080 {offsets = [0, 59], sizes = [2, 1], strides = [1, 1]} : vector<2x64xf32> to vector<2x1xf32>
    %1320 = vector.broadcast %1319 : vector<2x1xf32> to vector<2x8xf32>
    %1321 = arith.mulf %1320, %1086 : vector<2x8xf32>
    %1322 = arith.addf %1318, %1321 : vector<2x8xf32>
    %1323 = vector.extract_strided_slice %1080 {offsets = [0, 60], sizes = [2, 1], strides = [1, 1]} : vector<2x64xf32> to vector<2x1xf32>
    %1324 = vector.broadcast %1323 : vector<2x1xf32> to vector<2x8xf32>
    %1325 = arith.mulf %1324, %1087 : vector<2x8xf32>
    %1326 = arith.addf %1322, %1325 : vector<2x8xf32>
    %1327 = vector.extract_strided_slice %1080 {offsets = [0, 61], sizes = [2, 1], strides = [1, 1]} : vector<2x64xf32> to vector<2x1xf32>
    %1328 = vector.broadcast %1327 : vector<2x1xf32> to vector<2x8xf32>
    %1329 = arith.mulf %1328, %1088 : vector<2x8xf32>
    %1330 = arith.addf %1326, %1329 : vector<2x8xf32>
    %1331 = vector.extract_strided_slice %1080 {offsets = [0, 62], sizes = [2, 1], strides = [1, 1]} : vector<2x64xf32> to vector<2x1xf32>
    %1332 = vector.broadcast %1331 : vector<2x1xf32> to vector<2x8xf32>
    %1333 = arith.mulf %1332, %1089 : vector<2x8xf32>
    %1334 = arith.addf %1330, %1333 : vector<2x8xf32>
    %1335 = vector.extract_strided_slice %1080 {offsets = [0, 63], sizes = [2, 1], strides = [1, 1]} : vector<2x64xf32> to vector<2x1xf32>
    %1336 = vector.broadcast %1335 : vector<2x1xf32> to vector<2x8xf32>
    %1337 = arith.mulf %1336, %1090 : vector<2x8xf32>
    %1338 = arith.addf %1334, %1337 : vector<2x8xf32>
    %1339 = tpu.concatenate %1121, %1152, %1183, %1214, %1245, %1276, %1307, %1338 in 1 : vector<2x8xf32>, vector<2x8xf32>, vector<2x8xf32>, vector<2x8xf32>, vector<2x8xf32>, vector<2x8xf32>, vector<2x8xf32>, vector<2x8xf32> -> vector<2x64xf32>
    %c10 = arith.constant 10 : index
    %c0_25 = arith.constant 0 : index
    %1340 = vector.load %arg7[%c10, %c0_25] : memref<16x64xf32, #tpu.memory_space<vmem>>, vector<2x64xf32>
    tpu.vector_store %arg7[%c10, %c0_25], %1339 {strides = array<i32>} : memref<16x64xf32, #tpu.memory_space<vmem>>, vector<2x64xf32>,
    %1341 = vector.extract_strided_slice %43 {offsets = [12, 0], sizes = [2, 64], strides = [1, 1]} : vector<16x64xf32> to vector<2x64xf32>
    %1342 = vector.extract_strided_slice %1341 {offsets = [0, 0], sizes = [2, 8], strides = [1, 1]} : vector<2x64xf32> to vector<2x8xf32>
    %1343 = vector.extract_strided_slice %1341 {offsets = [0, 8], sizes = [2, 8], strides = [1, 1]} : vector<2x64xf32> to vector<2x8xf32>
    %1344 = vector.extract_strided_slice %1341 {offsets = [0, 16], sizes = [2, 8], strides = [1, 1]} : vector<2x64xf32> to vector<2x8xf32>
    %1345 = vector.extract_strided_slice %1341 {offsets = [0, 24], sizes = [2, 8], strides = [1, 1]} : vector<2x64xf32> to vector<2x8xf32>
    %1346 = vector.extract_strided_slice %1341 {offsets = [0, 32], sizes = [2, 8], strides = [1, 1]} : vector<2x64xf32> to vector<2x8xf32>
    %1347 = vector.extract_strided_slice %1341 {offsets = [0, 40], sizes = [2, 8], strides = [1, 1]} : vector<2x64xf32> to vector<2x8xf32>
    %1348 = vector.extract_strided_slice %1341 {offsets = [0, 48], sizes = [2, 8], strides = [1, 1]} : vector<2x64xf32> to vector<2x8xf32>
    %1349 = vector.extract_strided_slice %1341 {offsets = [0, 56], sizes = [2, 8], strides = [1, 1]} : vector<2x64xf32> to vector<2x8xf32>
    %1350 = vector.extract_strided_slice %1339 {offsets = [0, 0], sizes = [2, 1], strides = [1, 1]} : vector<2x64xf32> to vector<2x1xf32>
    %1351 = vector.broadcast %1350 : vector<2x1xf32> to vector<2x8xf32>
    %1352 = arith.mulf %1351, %1342 : vector<2x8xf32>
    %1353 = vector.extract_strided_slice %1339 {offsets = [0, 1], sizes = [2, 1], strides = [1, 1]} : vector<2x64xf32> to vector<2x1xf32>
    %1354 = vector.broadcast %1353 : vector<2x1xf32> to vector<2x8xf32>
    %1355 = arith.mulf %1354, %1343 : vector<2x8xf32>
    %1356 = arith.addf %1352, %1355 : vector<2x8xf32>
    %1357 = vector.extract_strided_slice %1339 {offsets = [0, 2], sizes = [2, 1], strides = [1, 1]} : vector<2x64xf32> to vector<2x1xf32>
    %1358 = vector.broadcast %1357 : vector<2x1xf32> to vector<2x8xf32>
    %1359 = arith.mulf %1358, %1344 : vector<2x8xf32>
    %1360 = arith.addf %1356, %1359 : vector<2x8xf32>
    %1361 = vector.extract_strided_slice %1339 {offsets = [0, 3], sizes = [2, 1], strides = [1, 1]} : vector<2x64xf32> to vector<2x1xf32>
    %1362 = vector.broadcast %1361 : vector<2x1xf32> to vector<2x8xf32>
    %1363 = arith.mulf %1362, %1345 : vector<2x8xf32>
    %1364 = arith.addf %1360, %1363 : vector<2x8xf32>
    %1365 = vector.extract_strided_slice %1339 {offsets = [0, 4], sizes = [2, 1], strides = [1, 1]} : vector<2x64xf32> to vector<2x1xf32>
    %1366 = vector.broadcast %1365 : vector<2x1xf32> to vector<2x8xf32>
    %1367 = arith.mulf %1366, %1346 : vector<2x8xf32>
    %1368 = arith.addf %1364, %1367 : vector<2x8xf32>
    %1369 = vector.extract_strided_slice %1339 {offsets = [0, 5], sizes = [2, 1], strides = [1, 1]} : vector<2x64xf32> to vector<2x1xf32>
    %1370 = vector.broadcast %1369 : vector<2x1xf32> to vector<2x8xf32>
    %1371 = arith.mulf %1370, %1347 : vector<2x8xf32>
    %1372 = arith.addf %1368, %1371 : vector<2x8xf32>
    %1373 = vector.extract_strided_slice %1339 {offsets = [0, 6], sizes = [2, 1], strides = [1, 1]} : vector<2x64xf32> to vector<2x1xf32>
    %1374 = vector.broadcast %1373 : vector<2x1xf32> to vector<2x8xf32>
    %1375 = arith.mulf %1374, %1348 : vector<2x8xf32>
    %1376 = arith.addf %1372, %1375 : vector<2x8xf32>
    %1377 = vector.extract_strided_slice %1339 {offsets = [0, 7], sizes = [2, 1], strides = [1, 1]} : vector<2x64xf32> to vector<2x1xf32>
    %1378 = vector.broadcast %1377 : vector<2x1xf32> to vector<2x8xf32>
    %1379 = arith.mulf %1378, %1349 : vector<2x8xf32>
    %1380 = arith.addf %1376, %1379 : vector<2x8xf32>
    %1381 = vector.extract_strided_slice %1339 {offsets = [0, 8], sizes = [2, 1], strides = [1, 1]} : vector<2x64xf32> to vector<2x1xf32>
    %1382 = vector.broadcast %1381 : vector<2x1xf32> to vector<2x8xf32>
    %1383 = arith.mulf %1382, %1342 : vector<2x8xf32>
    %1384 = vector.extract_strided_slice %1339 {offsets = [0, 9], sizes = [2, 1], strides = [1, 1]} : vector<2x64xf32> to vector<2x1xf32>
    %1385 = vector.broadcast %1384 : vector<2x1xf32> to vector<2x8xf32>
    %1386 = arith.mulf %1385, %1343 : vector<2x8xf32>
    %1387 = arith.addf %1383, %1386 : vector<2x8xf32>
    %1388 = vector.extract_strided_slice %1339 {offsets = [0, 10], sizes = [2, 1], strides = [1, 1]} : vector<2x64xf32> to vector<2x1xf32>
    %1389 = vector.broadcast %1388 : vector<2x1xf32> to vector<2x8xf32>
    %1390 = arith.mulf %1389, %1344 : vector<2x8xf32>
    %1391 = arith.addf %1387, %1390 : vector<2x8xf32>
    %1392 = vector.extract_strided_slice %1339 {offsets = [0, 11], sizes = [2, 1], strides = [1, 1]} : vector<2x64xf32> to vector<2x1xf32>
    %1393 = vector.broadcast %1392 : vector<2x1xf32> to vector<2x8xf32>
    %1394 = arith.mulf %1393, %1345 : vector<2x8xf32>
    %1395 = arith.addf %1391, %1394 : vector<2x8xf32>
    %1396 = vector.extract_strided_slice %1339 {offsets = [0, 12], sizes = [2, 1], strides = [1, 1]} : vector<2x64xf32> to vector<2x1xf32>
    %1397 = vector.broadcast %1396 : vector<2x1xf32> to vector<2x8xf32>
    %1398 = arith.mulf %1397, %1346 : vector<2x8xf32>
    %1399 = arith.addf %1395, %1398 : vector<2x8xf32>
    %1400 = vector.extract_strided_slice %1339 {offsets = [0, 13], sizes = [2, 1], strides = [1, 1]} : vector<2x64xf32> to vector<2x1xf32>
    %1401 = vector.broadcast %1400 : vector<2x1xf32> to vector<2x8xf32>
    %1402 = arith.mulf %1401, %1347 : vector<2x8xf32>
    %1403 = arith.addf %1399, %1402 : vector<2x8xf32>
    %1404 = vector.extract_strided_slice %1339 {offsets = [0, 14], sizes = [2, 1], strides = [1, 1]} : vector<2x64xf32> to vector<2x1xf32>
    %1405 = vector.broadcast %1404 : vector<2x1xf32> to vector<2x8xf32>
    %1406 = arith.mulf %1405, %1348 : vector<2x8xf32>
    %1407 = arith.addf %1403, %1406 : vector<2x8xf32>
    %1408 = vector.extract_strided_slice %1339 {offsets = [0, 15], sizes = [2, 1], strides = [1, 1]} : vector<2x64xf32> to vector<2x1xf32>
    %1409 = vector.broadcast %1408 : vector<2x1xf32> to vector<2x8xf32>
    %1410 = arith.mulf %1409, %1349 : vector<2x8xf32>
    %1411 = arith.addf %1407, %1410 : vector<2x8xf32>
    %1412 = vector.extract_strided_slice %1339 {offsets = [0, 16], sizes = [2, 1], strides = [1, 1]} : vector<2x64xf32> to vector<2x1xf32>
    %1413 = vector.broadcast %1412 : vector<2x1xf32> to vector<2x8xf32>
    %1414 = arith.mulf %1413, %1342 : vector<2x8xf32>
    %1415 = vector.extract_strided_slice %1339 {offsets = [0, 17], sizes = [2, 1], strides = [1, 1]} : vector<2x64xf32> to vector<2x1xf32>
    %1416 = vector.broadcast %1415 : vector<2x1xf32> to vector<2x8xf32>
    %1417 = arith.mulf %1416, %1343 : vector<2x8xf32>
    %1418 = arith.addf %1414, %1417 : vector<2x8xf32>
    %1419 = vector.extract_strided_slice %1339 {offsets = [0, 18], sizes = [2, 1], strides = [1, 1]} : vector<2x64xf32> to vector<2x1xf32>
    %1420 = vector.broadcast %1419 : vector<2x1xf32> to vector<2x8xf32>
    %1421 = arith.mulf %1420, %1344 : vector<2x8xf32>
    %1422 = arith.addf %1418, %1421 : vector<2x8xf32>
    %1423 = vector.extract_strided_slice %1339 {offsets = [0, 19], sizes = [2, 1], strides = [1, 1]} : vector<2x64xf32> to vector<2x1xf32>
    %1424 = vector.broadcast %1423 : vector<2x1xf32> to vector<2x8xf32>
    %1425 = arith.mulf %1424, %1345 : vector<2x8xf32>
    %1426 = arith.addf %1422, %1425 : vector<2x8xf32>
    %1427 = vector.extract_strided_slice %1339 {offsets = [0, 20], sizes = [2, 1], strides = [1, 1]} : vector<2x64xf32> to vector<2x1xf32>
    %1428 = vector.broadcast %1427 : vector<2x1xf32> to vector<2x8xf32>
    %1429 = arith.mulf %1428, %1346 : vector<2x8xf32>
    %1430 = arith.addf %1426, %1429 : vector<2x8xf32>
    %1431 = vector.extract_strided_slice %1339 {offsets = [0, 21], sizes = [2, 1], strides = [1, 1]} : vector<2x64xf32> to vector<2x1xf32>
    %1432 = vector.broadcast %1431 : vector<2x1xf32> to vector<2x8xf32>
    %1433 = arith.mulf %1432, %1347 : vector<2x8xf32>
    %1434 = arith.addf %1430, %1433 : vector<2x8xf32>
    %1435 = vector.extract_strided_slice %1339 {offsets = [0, 22], sizes = [2, 1], strides = [1, 1]} : vector<2x64xf32> to vector<2x1xf32>
    %1436 = vector.broadcast %1435 : vector<2x1xf32> to vector<2x8xf32>
    %1437 = arith.mulf %1436, %1348 : vector<2x8xf32>
    %1438 = arith.addf %1434, %1437 : vector<2x8xf32>
    %1439 = vector.extract_strided_slice %1339 {offsets = [0, 23], sizes = [2, 1], strides = [1, 1]} : vector<2x64xf32> to vector<2x1xf32>
    %1440 = vector.broadcast %1439 : vector<2x1xf32> to vector<2x8xf32>
    %1441 = arith.mulf %1440, %1349 : vector<2x8xf32>
    %1442 = arith.addf %1438, %1441 : vector<2x8xf32>
    %1443 = vector.extract_strided_slice %1339 {offsets = [0, 24], sizes = [2, 1], strides = [1, 1]} : vector<2x64xf32> to vector<2x1xf32>
    %1444 = vector.broadcast %1443 : vector<2x1xf32> to vector<2x8xf32>
    %1445 = arith.mulf %1444, %1342 : vector<2x8xf32>
    %1446 = vector.extract_strided_slice %1339 {offsets = [0, 25], sizes = [2, 1], strides = [1, 1]} : vector<2x64xf32> to vector<2x1xf32>
    %1447 = vector.broadcast %1446 : vector<2x1xf32> to vector<2x8xf32>
    %1448 = arith.mulf %1447, %1343 : vector<2x8xf32>
    %1449 = arith.addf %1445, %1448 : vector<2x8xf32>
    %1450 = vector.extract_strided_slice %1339 {offsets = [0, 26], sizes = [2, 1], strides = [1, 1]} : vector<2x64xf32> to vector<2x1xf32>
    %1451 = vector.broadcast %1450 : vector<2x1xf32> to vector<2x8xf32>
    %1452 = arith.mulf %1451, %1344 : vector<2x8xf32>
    %1453 = arith.addf %1449, %1452 : vector<2x8xf32>
    %1454 = vector.extract_strided_slice %1339 {offsets = [0, 27], sizes = [2, 1], strides = [1, 1]} : vector<2x64xf32> to vector<2x1xf32>
    %1455 = vector.broadcast %1454 : vector<2x1xf32> to vector<2x8xf32>
    %1456 = arith.mulf %1455, %1345 : vector<2x8xf32>
    %1457 = arith.addf %1453, %1456 : vector<2x8xf32>
    %1458 = vector.extract_strided_slice %1339 {offsets = [0, 28], sizes = [2, 1], strides = [1, 1]} : vector<2x64xf32> to vector<2x1xf32>
    %1459 = vector.broadcast %1458 : vector<2x1xf32> to vector<2x8xf32>
    %1460 = arith.mulf %1459, %1346 : vector<2x8xf32>
    %1461 = arith.addf %1457, %1460 : vector<2x8xf32>
    %1462 = vector.extract_strided_slice %1339 {offsets = [0, 29], sizes = [2, 1], strides = [1, 1]} : vector<2x64xf32> to vector<2x1xf32>
    %1463 = vector.broadcast %1462 : vector<2x1xf32> to vector<2x8xf32>
    %1464 = arith.mulf %1463, %1347 : vector<2x8xf32>
    %1465 = arith.addf %1461, %1464 : vector<2x8xf32>
    %1466 = vector.extract_strided_slice %1339 {offsets = [0, 30], sizes = [2, 1], strides = [1, 1]} : vector<2x64xf32> to vector<2x1xf32>
    %1467 = vector.broadcast %1466 : vector<2x1xf32> to vector<2x8xf32>
    %1468 = arith.mulf %1467, %1348 : vector<2x8xf32>
    %1469 = arith.addf %1465, %1468 : vector<2x8xf32>
    %1470 = vector.extract_strided_slice %1339 {offsets = [0, 31], sizes = [2, 1], strides = [1, 1]} : vector<2x64xf32> to vector<2x1xf32>
    %1471 = vector.broadcast %1470 : vector<2x1xf32> to vector<2x8xf32>
    %1472 = arith.mulf %1471, %1349 : vector<2x8xf32>
    %1473 = arith.addf %1469, %1472 : vector<2x8xf32>
    %1474 = vector.extract_strided_slice %1339 {offsets = [0, 32], sizes = [2, 1], strides = [1, 1]} : vector<2x64xf32> to vector<2x1xf32>
    %1475 = vector.broadcast %1474 : vector<2x1xf32> to vector<2x8xf32>
    %1476 = arith.mulf %1475, %1342 : vector<2x8xf32>
    %1477 = vector.extract_strided_slice %1339 {offsets = [0, 33], sizes = [2, 1], strides = [1, 1]} : vector<2x64xf32> to vector<2x1xf32>
    %1478 = vector.broadcast %1477 : vector<2x1xf32> to vector<2x8xf32>
    %1479 = arith.mulf %1478, %1343 : vector<2x8xf32>
    %1480 = arith.addf %1476, %1479 : vector<2x8xf32>
    %1481 = vector.extract_strided_slice %1339 {offsets = [0, 34], sizes = [2, 1], strides = [1, 1]} : vector<2x64xf32> to vector<2x1xf32>
    %1482 = vector.broadcast %1481 : vector<2x1xf32> to vector<2x8xf32>
    %1483 = arith.mulf %1482, %1344 : vector<2x8xf32>
    %1484 = arith.addf %1480, %1483 : vector<2x8xf32>
    %1485 = vector.extract_strided_slice %1339 {offsets = [0, 35], sizes = [2, 1], strides = [1, 1]} : vector<2x64xf32> to vector<2x1xf32>
    %1486 = vector.broadcast %1485 : vector<2x1xf32> to vector<2x8xf32>
    %1487 = arith.mulf %1486, %1345 : vector<2x8xf32>
    %1488 = arith.addf %1484, %1487 : vector<2x8xf32>
    %1489 = vector.extract_strided_slice %1339 {offsets = [0, 36], sizes = [2, 1], strides = [1, 1]} : vector<2x64xf32> to vector<2x1xf32>
    %1490 = vector.broadcast %1489 : vector<2x1xf32> to vector<2x8xf32>
    %1491 = arith.mulf %1490, %1346 : vector<2x8xf32>
    %1492 = arith.addf %1488, %1491 : vector<2x8xf32>
    %1493 = vector.extract_strided_slice %1339 {offsets = [0, 37], sizes = [2, 1], strides = [1, 1]} : vector<2x64xf32> to vector<2x1xf32>
    %1494 = vector.broadcast %1493 : vector<2x1xf32> to vector<2x8xf32>
    %1495 = arith.mulf %1494, %1347 : vector<2x8xf32>
    %1496 = arith.addf %1492, %1495 : vector<2x8xf32>
    %1497 = vector.extract_strided_slice %1339 {offsets = [0, 38], sizes = [2, 1], strides = [1, 1]} : vector<2x64xf32> to vector<2x1xf32>
    %1498 = vector.broadcast %1497 : vector<2x1xf32> to vector<2x8xf32>
    %1499 = arith.mulf %1498, %1348 : vector<2x8xf32>
    %1500 = arith.addf %1496, %1499 : vector<2x8xf32>
    %1501 = vector.extract_strided_slice %1339 {offsets = [0, 39], sizes = [2, 1], strides = [1, 1]} : vector<2x64xf32> to vector<2x1xf32>
    %1502 = vector.broadcast %1501 : vector<2x1xf32> to vector<2x8xf32>
    %1503 = arith.mulf %1502, %1349 : vector<2x8xf32>
    %1504 = arith.addf %1500, %1503 : vector<2x8xf32>
    %1505 = vector.extract_strided_slice %1339 {offsets = [0, 40], sizes = [2, 1], strides = [1, 1]} : vector<2x64xf32> to vector<2x1xf32>
    %1506 = vector.broadcast %1505 : vector<2x1xf32> to vector<2x8xf32>
    %1507 = arith.mulf %1506, %1342 : vector<2x8xf32>
    %1508 = vector.extract_strided_slice %1339 {offsets = [0, 41], sizes = [2, 1], strides = [1, 1]} : vector<2x64xf32> to vector<2x1xf32>
    %1509 = vector.broadcast %1508 : vector<2x1xf32> to vector<2x8xf32>
    %1510 = arith.mulf %1509, %1343 : vector<2x8xf32>
    %1511 = arith.addf %1507, %1510 : vector<2x8xf32>
    %1512 = vector.extract_strided_slice %1339 {offsets = [0, 42], sizes = [2, 1], strides = [1, 1]} : vector<2x64xf32> to vector<2x1xf32>
    %1513 = vector.broadcast %1512 : vector<2x1xf32> to vector<2x8xf32>
    %1514 = arith.mulf %1513, %1344 : vector<2x8xf32>
    %1515 = arith.addf %1511, %1514 : vector<2x8xf32>
    %1516 = vector.extract_strided_slice %1339 {offsets = [0, 43], sizes = [2, 1], strides = [1, 1]} : vector<2x64xf32> to vector<2x1xf32>
    %1517 = vector.broadcast %1516 : vector<2x1xf32> to vector<2x8xf32>
    %1518 = arith.mulf %1517, %1345 : vector<2x8xf32>
    %1519 = arith.addf %1515, %1518 : vector<2x8xf32>
    %1520 = vector.extract_strided_slice %1339 {offsets = [0, 44], sizes = [2, 1], strides = [1, 1]} : vector<2x64xf32> to vector<2x1xf32>
    %1521 = vector.broadcast %1520 : vector<2x1xf32> to vector<2x8xf32>
    %1522 = arith.mulf %1521, %1346 : vector<2x8xf32>
    %1523 = arith.addf %1519, %1522 : vector<2x8xf32>
    %1524 = vector.extract_strided_slice %1339 {offsets = [0, 45], sizes = [2, 1], strides = [1, 1]} : vector<2x64xf32> to vector<2x1xf32>
    %1525 = vector.broadcast %1524 : vector<2x1xf32> to vector<2x8xf32>
    %1526 = arith.mulf %1525, %1347 : vector<2x8xf32>
    %1527 = arith.addf %1523, %1526 : vector<2x8xf32>
    %1528 = vector.extract_strided_slice %1339 {offsets = [0, 46], sizes = [2, 1], strides = [1, 1]} : vector<2x64xf32> to vector<2x1xf32>
    %1529 = vector.broadcast %1528 : vector<2x1xf32> to vector<2x8xf32>
    %1530 = arith.mulf %1529, %1348 : vector<2x8xf32>
    %1531 = arith.addf %1527, %1530 : vector<2x8xf32>
    %1532 = vector.extract_strided_slice %1339 {offsets = [0, 47], sizes = [2, 1], strides = [1, 1]} : vector<2x64xf32> to vector<2x1xf32>
    %1533 = vector.broadcast %1532 : vector<2x1xf32> to vector<2x8xf32>
    %1534 = arith.mulf %1533, %1349 : vector<2x8xf32>
    %1535 = arith.addf %1531, %1534 : vector<2x8xf32>
    %1536 = vector.extract_strided_slice %1339 {offsets = [0, 48], sizes = [2, 1], strides = [1, 1]} : vector<2x64xf32> to vector<2x1xf32>
    %1537 = vector.broadcast %1536 : vector<2x1xf32> to vector<2x8xf32>
    %1538 = arith.mulf %1537, %1342 : vector<2x8xf32>
    %1539 = vector.extract_strided_slice %1339 {offsets = [0, 49], sizes = [2, 1], strides = [1, 1]} : vector<2x64xf32> to vector<2x1xf32>
    %1540 = vector.broadcast %1539 : vector<2x1xf32> to vector<2x8xf32>
    %1541 = arith.mulf %1540, %1343 : vector<2x8xf32>
    %1542 = arith.addf %1538, %1541 : vector<2x8xf32>
    %1543 = vector.extract_strided_slice %1339 {offsets = [0, 50], sizes = [2, 1], strides = [1, 1]} : vector<2x64xf32> to vector<2x1xf32>
    %1544 = vector.broadcast %1543 : vector<2x1xf32> to vector<2x8xf32>
    %1545 = arith.mulf %1544, %1344 : vector<2x8xf32>
    %1546 = arith.addf %1542, %1545 : vector<2x8xf32>
    %1547 = vector.extract_strided_slice %1339 {offsets = [0, 51], sizes = [2, 1], strides = [1, 1]} : vector<2x64xf32> to vector<2x1xf32>
    %1548 = vector.broadcast %1547 : vector<2x1xf32> to vector<2x8xf32>
    %1549 = arith.mulf %1548, %1345 : vector<2x8xf32>
    %1550 = arith.addf %1546, %1549 : vector<2x8xf32>
    %1551 = vector.extract_strided_slice %1339 {offsets = [0, 52], sizes = [2, 1], strides = [1, 1]} : vector<2x64xf32> to vector<2x1xf32>
    %1552 = vector.broadcast %1551 : vector<2x1xf32> to vector<2x8xf32>
    %1553 = arith.mulf %1552, %1346 : vector<2x8xf32>
    %1554 = arith.addf %1550, %1553 : vector<2x8xf32>
    %1555 = vector.extract_strided_slice %1339 {offsets = [0, 53], sizes = [2, 1], strides = [1, 1]} : vector<2x64xf32> to vector<2x1xf32>
    %1556 = vector.broadcast %1555 : vector<2x1xf32> to vector<2x8xf32>
    %1557 = arith.mulf %1556, %1347 : vector<2x8xf32>
    %1558 = arith.addf %1554, %1557 : vector<2x8xf32>
    %1559 = vector.extract_strided_slice %1339 {offsets = [0, 54], sizes = [2, 1], strides = [1, 1]} : vector<2x64xf32> to vector<2x1xf32>
    %1560 = vector.broadcast %1559 : vector<2x1xf32> to vector<2x8xf32>
    %1561 = arith.mulf %1560, %1348 : vector<2x8xf32>
    %1562 = arith.addf %1558, %1561 : vector<2x8xf32>
    %1563 = vector.extract_strided_slice %1339 {offsets = [0, 55], sizes = [2, 1], strides = [1, 1]} : vector<2x64xf32> to vector<2x1xf32>
    %1564 = vector.broadcast %1563 : vector<2x1xf32> to vector<2x8xf32>
    %1565 = arith.mulf %1564, %1349 : vector<2x8xf32>
    %1566 = arith.addf %1562, %1565 : vector<2x8xf32>
    %1567 = vector.extract_strided_slice %1339 {offsets = [0, 56], sizes = [2, 1], strides = [1, 1]} : vector<2x64xf32> to vector<2x1xf32>
    %1568 = vector.broadcast %1567 : vector<2x1xf32> to vector<2x8xf32>
    %1569 = arith.mulf %1568, %1342 : vector<2x8xf32>
    %1570 = vector.extract_strided_slice %1339 {offsets = [0, 57], sizes = [2, 1], strides = [1, 1]} : vector<2x64xf32> to vector<2x1xf32>
    %1571 = vector.broadcast %1570 : vector<2x1xf32> to vector<2x8xf32>
    %1572 = arith.mulf %1571, %1343 : vector<2x8xf32>
    %1573 = arith.addf %1569, %1572 : vector<2x8xf32>
    %1574 = vector.extract_strided_slice %1339 {offsets = [0, 58], sizes = [2, 1], strides = [1, 1]} : vector<2x64xf32> to vector<2x1xf32>
    %1575 = vector.broadcast %1574 : vector<2x1xf32> to vector<2x8xf32>
    %1576 = arith.mulf %1575, %1344 : vector<2x8xf32>
    %1577 = arith.addf %1573, %1576 : vector<2x8xf32>
    %1578 = vector.extract_strided_slice %1339 {offsets = [0, 59], sizes = [2, 1], strides = [1, 1]} : vector<2x64xf32> to vector<2x1xf32>
    %1579 = vector.broadcast %1578 : vector<2x1xf32> to vector<2x8xf32>
    %1580 = arith.mulf %1579, %1345 : vector<2x8xf32>
    %1581 = arith.addf %1577, %1580 : vector<2x8xf32>
    %1582 = vector.extract_strided_slice %1339 {offsets = [0, 60], sizes = [2, 1], strides = [1, 1]} : vector<2x64xf32> to vector<2x1xf32>
    %1583 = vector.broadcast %1582 : vector<2x1xf32> to vector<2x8xf32>
    %1584 = arith.mulf %1583, %1346 : vector<2x8xf32>
    %1585 = arith.addf %1581, %1584 : vector<2x8xf32>
    %1586 = vector.extract_strided_slice %1339 {offsets = [0, 61], sizes = [2, 1], strides = [1, 1]} : vector<2x64xf32> to vector<2x1xf32>
    %1587 = vector.broadcast %1586 : vector<2x1xf32> to vector<2x8xf32>
    %1588 = arith.mulf %1587, %1347 : vector<2x8xf32>
    %1589 = arith.addf %1585, %1588 : vector<2x8xf32>
    %1590 = vector.extract_strided_slice %1339 {offsets = [0, 62], sizes = [2, 1], strides = [1, 1]} : vector<2x64xf32> to vector<2x1xf32>
    %1591 = vector.broadcast %1590 : vector<2x1xf32> to vector<2x8xf32>
    %1592 = arith.mulf %1591, %1348 : vector<2x8xf32>
    %1593 = arith.addf %1589, %1592 : vector<2x8xf32>
    %1594 = vector.extract_strided_slice %1339 {offsets = [0, 63], sizes = [2, 1], strides = [1, 1]} : vector<2x64xf32> to vector<2x1xf32>
    %1595 = vector.broadcast %1594 : vector<2x1xf32> to vector<2x8xf32>
    %1596 = arith.mulf %1595, %1349 : vector<2x8xf32>
    %1597 = arith.addf %1593, %1596 : vector<2x8xf32>
    %1598 = tpu.concatenate %1380, %1411, %1442, %1473, %1504, %1535, %1566, %1597 in 1 : vector<2x8xf32>, vector<2x8xf32>, vector<2x8xf32>, vector<2x8xf32>, vector<2x8xf32>, vector<2x8xf32>, vector<2x8xf32>, vector<2x8xf32> -> vector<2x64xf32>
    %c12 = arith.constant 12 : index
    %c0_26 = arith.constant 0 : index
    %1599 = vector.load %arg7[%c12, %c0_26] : memref<16x64xf32, #tpu.memory_space<vmem>>, vector<2x64xf32>
    tpu.vector_store %arg7[%c12, %c0_26], %1598 {strides = array<i32>} : memref<16x64xf32, #tpu.memory_space<vmem>>, vector<2x64xf32>,
    %1600 = vector.extract_strided_slice %43 {offsets = [14, 0], sizes = [2, 64], strides = [1, 1]} : vector<16x64xf32> to vector<2x64xf32>
    %1601 = vector.extract_strided_slice %1600 {offsets = [0, 0], sizes = [2, 8], strides = [1, 1]} : vector<2x64xf32> to vector<2x8xf32>
    %1602 = vector.extract_strided_slice %1600 {offsets = [0, 8], sizes = [2, 8], strides = [1, 1]} : vector<2x64xf32> to vector<2x8xf32>
    %1603 = vector.extract_strided_slice %1600 {offsets = [0, 16], sizes = [2, 8], strides = [1, 1]} : vector<2x64xf32> to vector<2x8xf32>
    %1604 = vector.extract_strided_slice %1600 {offsets = [0, 24], sizes = [2, 8], strides = [1, 1]} : vector<2x64xf32> to vector<2x8xf32>
    %1605 = vector.extract_strided_slice %1600 {offsets = [0, 32], sizes = [2, 8], strides = [1, 1]} : vector<2x64xf32> to vector<2x8xf32>
    %1606 = vector.extract_strided_slice %1600 {offsets = [0, 40], sizes = [2, 8], strides = [1, 1]} : vector<2x64xf32> to vector<2x8xf32>
    %1607 = vector.extract_strided_slice %1600 {offsets = [0, 48], sizes = [2, 8], strides = [1, 1]} : vector<2x64xf32> to vector<2x8xf32>
    %1608 = vector.extract_strided_slice %1600 {offsets = [0, 56], sizes = [2, 8], strides = [1, 1]} : vector<2x64xf32> to vector<2x8xf32>
    %1609 = vector.extract_strided_slice %1598 {offsets = [0, 0], sizes = [2, 1], strides = [1, 1]} : vector<2x64xf32> to vector<2x1xf32>
    %1610 = vector.broadcast %1609 : vector<2x1xf32> to vector<2x8xf32>
    %1611 = arith.mulf %1610, %1601 : vector<2x8xf32>
    %1612 = vector.extract_strided_slice %1598 {offsets = [0, 1], sizes = [2, 1], strides = [1, 1]} : vector<2x64xf32> to vector<2x1xf32>
    %1613 = vector.broadcast %1612 : vector<2x1xf32> to vector<2x8xf32>
    %1614 = arith.mulf %1613, %1602 : vector<2x8xf32>
    %1615 = arith.addf %1611, %1614 : vector<2x8xf32>
    %1616 = vector.extract_strided_slice %1598 {offsets = [0, 2], sizes = [2, 1], strides = [1, 1]} : vector<2x64xf32> to vector<2x1xf32>
    %1617 = vector.broadcast %1616 : vector<2x1xf32> to vector<2x8xf32>
    %1618 = arith.mulf %1617, %1603 : vector<2x8xf32>
    %1619 = arith.addf %1615, %1618 : vector<2x8xf32>
    %1620 = vector.extract_strided_slice %1598 {offsets = [0, 3], sizes = [2, 1], strides = [1, 1]} : vector<2x64xf32> to vector<2x1xf32>
    %1621 = vector.broadcast %1620 : vector<2x1xf32> to vector<2x8xf32>
    %1622 = arith.mulf %1621, %1604 : vector<2x8xf32>
    %1623 = arith.addf %1619, %1622 : vector<2x8xf32>
    %1624 = vector.extract_strided_slice %1598 {offsets = [0, 4], sizes = [2, 1], strides = [1, 1]} : vector<2x64xf32> to vector<2x1xf32>
    %1625 = vector.broadcast %1624 : vector<2x1xf32> to vector<2x8xf32>
    %1626 = arith.mulf %1625, %1605 : vector<2x8xf32>
    %1627 = arith.addf %1623, %1626 : vector<2x8xf32>
    %1628 = vector.extract_strided_slice %1598 {offsets = [0, 5], sizes = [2, 1], strides = [1, 1]} : vector<2x64xf32> to vector<2x1xf32>
    %1629 = vector.broadcast %1628 : vector<2x1xf32> to vector<2x8xf32>
    %1630 = arith.mulf %1629, %1606 : vector<2x8xf32>
    %1631 = arith.addf %1627, %1630 : vector<2x8xf32>
    %1632 = vector.extract_strided_slice %1598 {offsets = [0, 6], sizes = [2, 1], strides = [1, 1]} : vector<2x64xf32> to vector<2x1xf32>
    %1633 = vector.broadcast %1632 : vector<2x1xf32> to vector<2x8xf32>
    %1634 = arith.mulf %1633, %1607 : vector<2x8xf32>
    %1635 = arith.addf %1631, %1634 : vector<2x8xf32>
    %1636 = vector.extract_strided_slice %1598 {offsets = [0, 7], sizes = [2, 1], strides = [1, 1]} : vector<2x64xf32> to vector<2x1xf32>
    %1637 = vector.broadcast %1636 : vector<2x1xf32> to vector<2x8xf32>
    %1638 = arith.mulf %1637, %1608 : vector<2x8xf32>
    %1639 = arith.addf %1635, %1638 : vector<2x8xf32>
    %1640 = vector.extract_strided_slice %1598 {offsets = [0, 8], sizes = [2, 1], strides = [1, 1]} : vector<2x64xf32> to vector<2x1xf32>
    %1641 = vector.broadcast %1640 : vector<2x1xf32> to vector<2x8xf32>
    %1642 = arith.mulf %1641, %1601 : vector<2x8xf32>
    %1643 = vector.extract_strided_slice %1598 {offsets = [0, 9], sizes = [2, 1], strides = [1, 1]} : vector<2x64xf32> to vector<2x1xf32>
    %1644 = vector.broadcast %1643 : vector<2x1xf32> to vector<2x8xf32>
    %1645 = arith.mulf %1644, %1602 : vector<2x8xf32>
    %1646 = arith.addf %1642, %1645 : vector<2x8xf32>
    %1647 = vector.extract_strided_slice %1598 {offsets = [0, 10], sizes = [2, 1], strides = [1, 1]} : vector<2x64xf32> to vector<2x1xf32>
    %1648 = vector.broadcast %1647 : vector<2x1xf32> to vector<2x8xf32>
    %1649 = arith.mulf %1648, %1603 : vector<2x8xf32>
    %1650 = arith.addf %1646, %1649 : vector<2x8xf32>
    %1651 = vector.extract_strided_slice %1598 {offsets = [0, 11], sizes = [2, 1], strides = [1, 1]} : vector<2x64xf32> to vector<2x1xf32>
    %1652 = vector.broadcast %1651 : vector<2x1xf32> to vector<2x8xf32>
    %1653 = arith.mulf %1652, %1604 : vector<2x8xf32>
    %1654 = arith.addf %1650, %1653 : vector<2x8xf32>
    %1655 = vector.extract_strided_slice %1598 {offsets = [0, 12], sizes = [2, 1], strides = [1, 1]} : vector<2x64xf32> to vector<2x1xf32>
    %1656 = vector.broadcast %1655 : vector<2x1xf32> to vector<2x8xf32>
    %1657 = arith.mulf %1656, %1605 : vector<2x8xf32>
    %1658 = arith.addf %1654, %1657 : vector<2x8xf32>
    %1659 = vector.extract_strided_slice %1598 {offsets = [0, 13], sizes = [2, 1], strides = [1, 1]} : vector<2x64xf32> to vector<2x1xf32>
    %1660 = vector.broadcast %1659 : vector<2x1xf32> to vector<2x8xf32>
    %1661 = arith.mulf %1660, %1606 : vector<2x8xf32>
    %1662 = arith.addf %1658, %1661 : vector<2x8xf32>
    %1663 = vector.extract_strided_slice %1598 {offsets = [0, 14], sizes = [2, 1], strides = [1, 1]} : vector<2x64xf32> to vector<2x1xf32>
    %1664 = vector.broadcast %1663 : vector<2x1xf32> to vector<2x8xf32>
    %1665 = arith.mulf %1664, %1607 : vector<2x8xf32>
    %1666 = arith.addf %1662, %1665 : vector<2x8xf32>
    %1667 = vector.extract_strided_slice %1598 {offsets = [0, 15], sizes = [2, 1], strides = [1, 1]} : vector<2x64xf32> to vector<2x1xf32>
    %1668 = vector.broadcast %1667 : vector<2x1xf32> to vector<2x8xf32>
    %1669 = arith.mulf %1668, %1608 : vector<2x8xf32>
    %1670 = arith.addf %1666, %1669 : vector<2x8xf32>
    %1671 = vector.extract_strided_slice %1598 {offsets = [0, 16], sizes = [2, 1], strides = [1, 1]} : vector<2x64xf32> to vector<2x1xf32>
    %1672 = vector.broadcast %1671 : vector<2x1xf32> to vector<2x8xf32>
    %1673 = arith.mulf %1672, %1601 : vector<2x8xf32>
    %1674 = vector.extract_strided_slice %1598 {offsets = [0, 17], sizes = [2, 1], strides = [1, 1]} : vector<2x64xf32> to vector<2x1xf32>
    %1675 = vector.broadcast %1674 : vector<2x1xf32> to vector<2x8xf32>
    %1676 = arith.mulf %1675, %1602 : vector<2x8xf32>
    %1677 = arith.addf %1673, %1676 : vector<2x8xf32>
    %1678 = vector.extract_strided_slice %1598 {offsets = [0, 18], sizes = [2, 1], strides = [1, 1]} : vector<2x64xf32> to vector<2x1xf32>
    %1679 = vector.broadcast %1678 : vector<2x1xf32> to vector<2x8xf32>
    %1680 = arith.mulf %1679, %1603 : vector<2x8xf32>
    %1681 = arith.addf %1677, %1680 : vector<2x8xf32>
    %1682 = vector.extract_strided_slice %1598 {offsets = [0, 19], sizes = [2, 1], strides = [1, 1]} : vector<2x64xf32> to vector<2x1xf32>
    %1683 = vector.broadcast %1682 : vector<2x1xf32> to vector<2x8xf32>
    %1684 = arith.mulf %1683, %1604 : vector<2x8xf32>
    %1685 = arith.addf %1681, %1684 : vector<2x8xf32>
    %1686 = vector.extract_strided_slice %1598 {offsets = [0, 20], sizes = [2, 1], strides = [1, 1]} : vector<2x64xf32> to vector<2x1xf32>
    %1687 = vector.broadcast %1686 : vector<2x1xf32> to vector<2x8xf32>
    %1688 = arith.mulf %1687, %1605 : vector<2x8xf32>
    %1689 = arith.addf %1685, %1688 : vector<2x8xf32>
    %1690 = vector.extract_strided_slice %1598 {offsets = [0, 21], sizes = [2, 1], strides = [1, 1]} : vector<2x64xf32> to vector<2x1xf32>
    %1691 = vector.broadcast %1690 : vector<2x1xf32> to vector<2x8xf32>
    %1692 = arith.mulf %1691, %1606 : vector<2x8xf32>
    %1693 = arith.addf %1689, %1692 : vector<2x8xf32>
    %1694 = vector.extract_strided_slice %1598 {offsets = [0, 22], sizes = [2, 1], strides = [1, 1]} : vector<2x64xf32> to vector<2x1xf32>
    %1695 = vector.broadcast %1694 : vector<2x1xf32> to vector<2x8xf32>
    %1696 = arith.mulf %1695, %1607 : vector<2x8xf32>
    %1697 = arith.addf %1693, %1696 : vector<2x8xf32>
    %1698 = vector.extract_strided_slice %1598 {offsets = [0, 23], sizes = [2, 1], strides = [1, 1]} : vector<2x64xf32> to vector<2x1xf32>
    %1699 = vector.broadcast %1698 : vector<2x1xf32> to vector<2x8xf32>
    %1700 = arith.mulf %1699, %1608 : vector<2x8xf32>
    %1701 = arith.addf %1697, %1700 : vector<2x8xf32>
    %1702 = vector.extract_strided_slice %1598 {offsets = [0, 24], sizes = [2, 1], strides = [1, 1]} : vector<2x64xf32> to vector<2x1xf32>
    %1703 = vector.broadcast %1702 : vector<2x1xf32> to vector<2x8xf32>
    %1704 = arith.mulf %1703, %1601 : vector<2x8xf32>
    %1705 = vector.extract_strided_slice %1598 {offsets = [0, 25], sizes = [2, 1], strides = [1, 1]} : vector<2x64xf32> to vector<2x1xf32>
    %1706 = vector.broadcast %1705 : vector<2x1xf32> to vector<2x8xf32>
    %1707 = arith.mulf %1706, %1602 : vector<2x8xf32>
    %1708 = arith.addf %1704, %1707 : vector<2x8xf32>
    %1709 = vector.extract_strided_slice %1598 {offsets = [0, 26], sizes = [2, 1], strides = [1, 1]} : vector<2x64xf32> to vector<2x1xf32>
    %1710 = vector.broadcast %1709 : vector<2x1xf32> to vector<2x8xf32>
    %1711 = arith.mulf %1710, %1603 : vector<2x8xf32>
    %1712 = arith.addf %1708, %1711 : vector<2x8xf32>
    %1713 = vector.extract_strided_slice %1598 {offsets = [0, 27], sizes = [2, 1], strides = [1, 1]} : vector<2x64xf32> to vector<2x1xf32>
    %1714 = vector.broadcast %1713 : vector<2x1xf32> to vector<2x8xf32>
    %1715 = arith.mulf %1714, %1604 : vector<2x8xf32>
    %1716 = arith.addf %1712, %1715 : vector<2x8xf32>
    %1717 = vector.extract_strided_slice %1598 {offsets = [0, 28], sizes = [2, 1], strides = [1, 1]} : vector<2x64xf32> to vector<2x1xf32>
    %1718 = vector.broadcast %1717 : vector<2x1xf32> to vector<2x8xf32>
    %1719 = arith.mulf %1718, %1605 : vector<2x8xf32>
    %1720 = arith.addf %1716, %1719 : vector<2x8xf32>
    %1721 = vector.extract_strided_slice %1598 {offsets = [0, 29], sizes = [2, 1], strides = [1, 1]} : vector<2x64xf32> to vector<2x1xf32>
    %1722 = vector.broadcast %1721 : vector<2x1xf32> to vector<2x8xf32>
    %1723 = arith.mulf %1722, %1606 : vector<2x8xf32>
    %1724 = arith.addf %1720, %1723 : vector<2x8xf32>
    %1725 = vector.extract_strided_slice %1598 {offsets = [0, 30], sizes = [2, 1], strides = [1, 1]} : vector<2x64xf32> to vector<2x1xf32>
    %1726 = vector.broadcast %1725 : vector<2x1xf32> to vector<2x8xf32>
    %1727 = arith.mulf %1726, %1607 : vector<2x8xf32>
    %1728 = arith.addf %1724, %1727 : vector<2x8xf32>
    %1729 = vector.extract_strided_slice %1598 {offsets = [0, 31], sizes = [2, 1], strides = [1, 1]} : vector<2x64xf32> to vector<2x1xf32>
    %1730 = vector.broadcast %1729 : vector<2x1xf32> to vector<2x8xf32>
    %1731 = arith.mulf %1730, %1608 : vector<2x8xf32>
    %1732 = arith.addf %1728, %1731 : vector<2x8xf32>
    %1733 = vector.extract_strided_slice %1598 {offsets = [0, 32], sizes = [2, 1], strides = [1, 1]} : vector<2x64xf32> to vector<2x1xf32>
    %1734 = vector.broadcast %1733 : vector<2x1xf32> to vector<2x8xf32>
    %1735 = arith.mulf %1734, %1601 : vector<2x8xf32>
    %1736 = vector.extract_strided_slice %1598 {offsets = [0, 33], sizes = [2, 1], strides = [1, 1]} : vector<2x64xf32> to vector<2x1xf32>
    %1737 = vector.broadcast %1736 : vector<2x1xf32> to vector<2x8xf32>
    %1738 = arith.mulf %1737, %1602 : vector<2x8xf32>
    %1739 = arith.addf %1735, %1738 : vector<2x8xf32>
    %1740 = vector.extract_strided_slice %1598 {offsets = [0, 34], sizes = [2, 1], strides = [1, 1]} : vector<2x64xf32> to vector<2x1xf32>
    %1741 = vector.broadcast %1740 : vector<2x1xf32> to vector<2x8xf32>
    %1742 = arith.mulf %1741, %1603 : vector<2x8xf32>
    %1743 = arith.addf %1739, %1742 : vector<2x8xf32>
    %1744 = vector.extract_strided_slice %1598 {offsets = [0, 35], sizes = [2, 1], strides = [1, 1]} : vector<2x64xf32> to vector<2x1xf32>
    %1745 = vector.broadcast %1744 : vector<2x1xf32> to vector<2x8xf32>
    %1746 = arith.mulf %1745, %1604 : vector<2x8xf32>
    %1747 = arith.addf %1743, %1746 : vector<2x8xf32>
    %1748 = vector.extract_strided_slice %1598 {offsets = [0, 36], sizes = [2, 1], strides = [1, 1]} : vector<2x64xf32> to vector<2x1xf32>
    %1749 = vector.broadcast %1748 : vector<2x1xf32> to vector<2x8xf32>
    %1750 = arith.mulf %1749, %1605 : vector<2x8xf32>
    %1751 = arith.addf %1747, %1750 : vector<2x8xf32>
    %1752 = vector.extract_strided_slice %1598 {offsets = [0, 37], sizes = [2, 1], strides = [1, 1]} : vector<2x64xf32> to vector<2x1xf32>
    %1753 = vector.broadcast %1752 : vector<2x1xf32> to vector<2x8xf32>
    %1754 = arith.mulf %1753, %1606 : vector<2x8xf32>
    %1755 = arith.addf %1751, %1754 : vector<2x8xf32>
    %1756 = vector.extract_strided_slice %1598 {offsets = [0, 38], sizes = [2, 1], strides = [1, 1]} : vector<2x64xf32> to vector<2x1xf32>
    %1757 = vector.broadcast %1756 : vector<2x1xf32> to vector<2x8xf32>
    %1758 = arith.mulf %1757, %1607 : vector<2x8xf32>
    %1759 = arith.addf %1755, %1758 : vector<2x8xf32>
    %1760 = vector.extract_strided_slice %1598 {offsets = [0, 39], sizes = [2, 1], strides = [1, 1]} : vector<2x64xf32> to vector<2x1xf32>
    %1761 = vector.broadcast %1760 : vector<2x1xf32> to vector<2x8xf32>
    %1762 = arith.mulf %1761, %1608 : vector<2x8xf32>
    %1763 = arith.addf %1759, %1762 : vector<2x8xf32>
    %1764 = vector.extract_strided_slice %1598 {offsets = [0, 40], sizes = [2, 1], strides = [1, 1]} : vector<2x64xf32> to vector<2x1xf32>
    %1765 = vector.broadcast %1764 : vector<2x1xf32> to vector<2x8xf32>
    %1766 = arith.mulf %1765, %1601 : vector<2x8xf32>
    %1767 = vector.extract_strided_slice %1598 {offsets = [0, 41], sizes = [2, 1], strides = [1, 1]} : vector<2x64xf32> to vector<2x1xf32>
    %1768 = vector.broadcast %1767 : vector<2x1xf32> to vector<2x8xf32>
    %1769 = arith.mulf %1768, %1602 : vector<2x8xf32>
    %1770 = arith.addf %1766, %1769 : vector<2x8xf32>
    %1771 = vector.extract_strided_slice %1598 {offsets = [0, 42], sizes = [2, 1], strides = [1, 1]} : vector<2x64xf32> to vector<2x1xf32>
    %1772 = vector.broadcast %1771 : vector<2x1xf32> to vector<2x8xf32>
    %1773 = arith.mulf %1772, %1603 : vector<2x8xf32>
    %1774 = arith.addf %1770, %1773 : vector<2x8xf32>
    %1775 = vector.extract_strided_slice %1598 {offsets = [0, 43], sizes = [2, 1], strides = [1, 1]} : vector<2x64xf32> to vector<2x1xf32>
    %1776 = vector.broadcast %1775 : vector<2x1xf32> to vector<2x8xf32>
    %1777 = arith.mulf %1776, %1604 : vector<2x8xf32>
    %1778 = arith.addf %1774, %1777 : vector<2x8xf32>
    %1779 = vector.extract_strided_slice %1598 {offsets = [0, 44], sizes = [2, 1], strides = [1, 1]} : vector<2x64xf32> to vector<2x1xf32>
    %1780 = vector.broadcast %1779 : vector<2x1xf32> to vector<2x8xf32>
    %1781 = arith.mulf %1780, %1605 : vector<2x8xf32>
    %1782 = arith.addf %1778, %1781 : vector<2x8xf32>
    %1783 = vector.extract_strided_slice %1598 {offsets = [0, 45], sizes = [2, 1], strides = [1, 1]} : vector<2x64xf32> to vector<2x1xf32>
    %1784 = vector.broadcast %1783 : vector<2x1xf32> to vector<2x8xf32>
    %1785 = arith.mulf %1784, %1606 : vector<2x8xf32>
    %1786 = arith.addf %1782, %1785 : vector<2x8xf32>
    %1787 = vector.extract_strided_slice %1598 {offsets = [0, 46], sizes = [2, 1], strides = [1, 1]} : vector<2x64xf32> to vector<2x1xf32>
    %1788 = vector.broadcast %1787 : vector<2x1xf32> to vector<2x8xf32>
    %1789 = arith.mulf %1788, %1607 : vector<2x8xf32>
    %1790 = arith.addf %1786, %1789 : vector<2x8xf32>
    %1791 = vector.extract_strided_slice %1598 {offsets = [0, 47], sizes = [2, 1], strides = [1, 1]} : vector<2x64xf32> to vector<2x1xf32>
    %1792 = vector.broadcast %1791 : vector<2x1xf32> to vector<2x8xf32>
    %1793 = arith.mulf %1792, %1608 : vector<2x8xf32>
    %1794 = arith.addf %1790, %1793 : vector<2x8xf32>
    %1795 = vector.extract_strided_slice %1598 {offsets = [0, 48], sizes = [2, 1], strides = [1, 1]} : vector<2x64xf32> to vector<2x1xf32>
    %1796 = vector.broadcast %1795 : vector<2x1xf32> to vector<2x8xf32>
    %1797 = arith.mulf %1796, %1601 : vector<2x8xf32>
    %1798 = vector.extract_strided_slice %1598 {offsets = [0, 49], sizes = [2, 1], strides = [1, 1]} : vector<2x64xf32> to vector<2x1xf32>
    %1799 = vector.broadcast %1798 : vector<2x1xf32> to vector<2x8xf32>
    %1800 = arith.mulf %1799, %1602 : vector<2x8xf32>
    %1801 = arith.addf %1797, %1800 : vector<2x8xf32>
    %1802 = vector.extract_strided_slice %1598 {offsets = [0, 50], sizes = [2, 1], strides = [1, 1]} : vector<2x64xf32> to vector<2x1xf32>
    %1803 = vector.broadcast %1802 : vector<2x1xf32> to vector<2x8xf32>
    %1804 = arith.mulf %1803, %1603 : vector<2x8xf32>
    %1805 = arith.addf %1801, %1804 : vector<2x8xf32>
    %1806 = vector.extract_strided_slice %1598 {offsets = [0, 51], sizes = [2, 1], strides = [1, 1]} : vector<2x64xf32> to vector<2x1xf32>
    %1807 = vector.broadcast %1806 : vector<2x1xf32> to vector<2x8xf32>
    %1808 = arith.mulf %1807, %1604 : vector<2x8xf32>
    %1809 = arith.addf %1805, %1808 : vector<2x8xf32>
    %1810 = vector.extract_strided_slice %1598 {offsets = [0, 52], sizes = [2, 1], strides = [1, 1]} : vector<2x64xf32> to vector<2x1xf32>
    %1811 = vector.broadcast %1810 : vector<2x1xf32> to vector<2x8xf32>
    %1812 = arith.mulf %1811, %1605 : vector<2x8xf32>
    %1813 = arith.addf %1809, %1812 : vector<2x8xf32>
    %1814 = vector.extract_strided_slice %1598 {offsets = [0, 53], sizes = [2, 1], strides = [1, 1]} : vector<2x64xf32> to vector<2x1xf32>
    %1815 = vector.broadcast %1814 : vector<2x1xf32> to vector<2x8xf32>
    %1816 = arith.mulf %1815, %1606 : vector<2x8xf32>
    %1817 = arith.addf %1813, %1816 : vector<2x8xf32>
    %1818 = vector.extract_strided_slice %1598 {offsets = [0, 54], sizes = [2, 1], strides = [1, 1]} : vector<2x64xf32> to vector<2x1xf32>
    %1819 = vector.broadcast %1818 : vector<2x1xf32> to vector<2x8xf32>
    %1820 = arith.mulf %1819, %1607 : vector<2x8xf32>
    %1821 = arith.addf %1817, %1820 : vector<2x8xf32>
    %1822 = vector.extract_strided_slice %1598 {offsets = [0, 55], sizes = [2, 1], strides = [1, 1]} : vector<2x64xf32> to vector<2x1xf32>
    %1823 = vector.broadcast %1822 : vector<2x1xf32> to vector<2x8xf32>
    %1824 = arith.mulf %1823, %1608 : vector<2x8xf32>
    %1825 = arith.addf %1821, %1824 : vector<2x8xf32>
    %1826 = vector.extract_strided_slice %1598 {offsets = [0, 56], sizes = [2, 1], strides = [1, 1]} : vector<2x64xf32> to vector<2x1xf32>
    %1827 = vector.broadcast %1826 : vector<2x1xf32> to vector<2x8xf32>
    %1828 = arith.mulf %1827, %1601 : vector<2x8xf32>
    %1829 = vector.extract_strided_slice %1598 {offsets = [0, 57], sizes = [2, 1], strides = [1, 1]} : vector<2x64xf32> to vector<2x1xf32>
    %1830 = vector.broadcast %1829 : vector<2x1xf32> to vector<2x8xf32>
    %1831 = arith.mulf %1830, %1602 : vector<2x8xf32>
    %1832 = arith.addf %1828, %1831 : vector<2x8xf32>
    %1833 = vector.extract_strided_slice %1598 {offsets = [0, 58], sizes = [2, 1], strides = [1, 1]} : vector<2x64xf32> to vector<2x1xf32>
    %1834 = vector.broadcast %1833 : vector<2x1xf32> to vector<2x8xf32>
    %1835 = arith.mulf %1834, %1603 : vector<2x8xf32>
    %1836 = arith.addf %1832, %1835 : vector<2x8xf32>
    %1837 = vector.extract_strided_slice %1598 {offsets = [0, 59], sizes = [2, 1], strides = [1, 1]} : vector<2x64xf32> to vector<2x1xf32>
    %1838 = vector.broadcast %1837 : vector<2x1xf32> to vector<2x8xf32>
    %1839 = arith.mulf %1838, %1604 : vector<2x8xf32>
    %1840 = arith.addf %1836, %1839 : vector<2x8xf32>
    %1841 = vector.extract_strided_slice %1598 {offsets = [0, 60], sizes = [2, 1], strides = [1, 1]} : vector<2x64xf32> to vector<2x1xf32>
    %1842 = vector.broadcast %1841 : vector<2x1xf32> to vector<2x8xf32>
    %1843 = arith.mulf %1842, %1605 : vector<2x8xf32>
    %1844 = arith.addf %1840, %1843 : vector<2x8xf32>
    %1845 = vector.extract_strided_slice %1598 {offsets = [0, 61], sizes = [2, 1], strides = [1, 1]} : vector<2x64xf32> to vector<2x1xf32>
    %1846 = vector.broadcast %1845 : vector<2x1xf32> to vector<2x8xf32>
    %1847 = arith.mulf %1846, %1606 : vector<2x8xf32>
    %1848 = arith.addf %1844, %1847 : vector<2x8xf32>
    %1849 = vector.extract_strided_slice %1598 {offsets = [0, 62], sizes = [2, 1], strides = [1, 1]} : vector<2x64xf32> to vector<2x1xf32>
    %1850 = vector.broadcast %1849 : vector<2x1xf32> to vector<2x8xf32>
    %1851 = arith.mulf %1850, %1607 : vector<2x8xf32>
    %1852 = arith.addf %1848, %1851 : vector<2x8xf32>
    %1853 = vector.extract_strided_slice %1598 {offsets = [0, 63], sizes = [2, 1], strides = [1, 1]} : vector<2x64xf32> to vector<2x1xf32>
    %1854 = vector.broadcast %1853 : vector<2x1xf32> to vector<2x8xf32>
    %1855 = arith.mulf %1854, %1608 : vector<2x8xf32>
    %1856 = arith.addf %1852, %1855 : vector<2x8xf32>
    %1857 = tpu.concatenate %1639, %1670, %1701, %1732, %1763, %1794, %1825, %1856 in 1 : vector<2x8xf32>, vector<2x8xf32>, vector<2x8xf32>, vector<2x8xf32>, vector<2x8xf32>, vector<2x8xf32>, vector<2x8xf32>, vector<2x8xf32> -> vector<2x64xf32>
    %c14 = arith.constant 14 : index
    %c0_27 = arith.constant 0 : index
    %1858 = vector.load %arg7[%c14, %c0_27] : memref<16x64xf32, #tpu.memory_space<vmem>>, vector<2x64xf32>
    tpu.vector_store %arg7[%c14, %c0_27], %1857 {strides = array<i32>} : memref<16x64xf32, #tpu.memory_space<vmem>>, vector<2x64xf32>,
    %c0_28 = arith.constant 0 : index
    %c0_29 = arith.constant 0 : index
    %1859 = vector.load %arg7[%c0_28, %c0_29] : memref<16x64xf32, #tpu.memory_space<vmem>>, vector<16x64xf32>
    %c0_30 = arith.constant 0 : index
    %c0_31 = arith.constant 0 : index
    %1860 = vector.load %arg3[%c0_30, %c0_31] : memref<64x32xf32, #tpu.memory_space<vmem>>, vector<64x32xf32>
    %cst_32 = arith.constant dense<0.000000e+00> : vector<16x32xf32>
    %1861 = tpu.matmul %1859, %1860, %cst_32 {dimension_numbers = #tpu.dot_dimension_numbers<[1], [0], [0], [1], [0, 0, 1, 1], [], []>, precision = #tpu.contract_precision<fp32>} : vector<16x64xf32>, vector<64x32xf32>, vector<16x32xf32> -> vector<16x32xf32>
    %c0_33 = arith.constant 0 : index
    %c0_34 = arith.constant 0 : index
    %1862 = vector.load %arg4[%c0_33, %c0_34] : memref<32x32xf32, #tpu.memory_space<vmem>>, vector<32x32xf32>
    %cst_35 = arith.constant dense<0.000000e+00> : vector<16x32xf32>
    %1863 = tpu.matmul %0, %1862, %cst_35 {dimension_numbers = #tpu.dot_dimension_numbers<[1], [0], [0], [1], [0, 0, 1, 1], [], []>, precision = #tpu.contract_precision<fp32>} : vector<16x32xf32>, vector<32x32xf32>, vector<16x32xf32> -> vector<16x32xf32>
    %1864 = arith.addf %1861, %1863 : vector<16x32xf32>
    %c0_36 = arith.constant 0 : index
    %c0_37 = arith.constant 0 : index
    %1865 = vector.load %arg5[%c0_36, %c0_37] : memref<1x32xf32, #tpu.memory_space<vmem>>, vector<1x32xf32>
    %1866 = vector.broadcast %1865 : vector<1x32xf32> to vector<16x32xf32>
    %1867 = arith.addf %1864, %1866 : vector<16x32xf32>
    %c0_38 = arith.constant 0 : index
    %c0_39 = arith.constant 0 : index
    %1868 = vector.load %arg6[%c0_38, %c0_39] : memref<16x32xf32, #tpu.memory_space<vmem>>, vector<16x32xf32>
    tpu.vector_store %arg6[%c0_38, %c0_39], %1867 {strides = array<i32>} : memref<16x32xf32, #tpu.memory_space<vmem>>, vector<16x32xf32>,
    return
  }
  func.func @transform_0(%arg0: i32) -> (i32, i32) {
    %c0_i32 = arith.constant 0 : i32
    %c0_i32_0 = arith.constant 0 : i32
    return %arg0, %c0_i32 : i32, i32
  }
  func.func @transform_1(%arg0: i32) -> (i32, i32) {
    %c0_i32 = arith.constant 0 : i32
    %c0_i32_0 = arith.constant 0 : i32
    %c0_i32_1 = arith.constant 0 : i32
    return %c0_i32, %c0_i32_0 : i32, i32
  }
  func.func @transform_2(%arg0: i32) -> (i32, i32) {
    %c0_i32 = arith.constant 0 : i32
    %c0_i32_0 = arith.constant 0 : i32
    %c0_i32_1 = arith.constant 0 : i32
    return %c0_i32, %c0_i32_0 : i32, i32
  }
  func.func @transform_3(%arg0: i32) -> (i32, i32) {
    %c0_i32 = arith.constant 0 : i32
    %c0_i32_0 = arith.constant 0 : i32
    %c0_i32_1 = arith.constant 0 : i32
    return %c0_i32, %c0_i32_0 : i32, i32
  }
  func.func @transform_4(%arg0: i32) -> (i32, i32) {
    %c0_i32 = arith.constant 0 : i32
    %c0_i32_0 = arith.constant 0 : i32
    %c0_i32_1 = arith.constant 0 : i32
    return %c0_i32, %c0_i32_0 : i32, i32
  }
  func.func @transform_5(%arg0: i32) -> (i32, i32) {
    %c0_i32 = arith.constant 0 : i32
    %c0_i32_0 = arith.constant 0 : i32
    return %arg0, %c0_i32 : i32, i32
  }
}

</mosaic_0001>

<bundles_post_ra>
// kernel: tpu_custom_call.1
= control target key start
LH: loop header
LB: loop body
LE: loop exit
PB: predicated region body
PF: predicated region fallthrough
CT: control target
= control target key end

     0   :  { %vm27_vm0 = vcmask 261120   ;;  %s8670_s0 = inlined_call_operand.vmem [shape: f32[16,32], index: 0, kind: input, shape index: {}]   ;;  %s8671_s1 = inlined_call_operand.vmem [shape: f32[32,64], index: 1, kind: input, shape index: {}]   ;;  %s8672_s2 = inlined_call_operand.vmem [shape: f32[64,32], index: 2, kind: input, shape index: {}]   ;;  %s8673_s3 = inlined_call_operand.vmem [shape: f32[32,32], index: 3, kind: input, shape index: {}]   ;;  %s8674_s4 = inlined_call_operand.vmem [shape: f32[1,32], index: 4, kind: input, shape index: {}]   ;;  %s8675_s5 = inlined_call_operand.hbm [shape: f32[16,32], index: 5, kind: output, shape index: {}]  }
   0x1   :  { %v26_v0 = vld [vmem:[%s8671_s1 + $0x18] sm:$0xff]  ;;  %v25_v1 = vld [vmem:[%s8671_s1 + $0x10] sm:$0xff]  ;;  %v24_v2 = vld [vmem:[%s8671_s1 + $0x8] sm:$0xff] }
   0x2   :  { %v6093_v3 = vand.u32 4294901760, %v26_v0  ;;  %v6095_v4 = vand.u32 4294901760, %v25_v1  ;;  %v6097_v5 = vand.u32 4294901760, %v24_v2  ;;  %v23_v6 = vld [vmem:[%s8671_s1] sm:$0xff]  ;;  %v22_v8 = vld [vmem:[%s8670_s0 + $0x8] sm:$0xff] }
   0x3   :  { %v21_v7 = vld [vmem:[%s8670_s0] sm:$0xff]  ;;  %v6108_v9 = vand.u32 4294901760, %v23_v6  ;;  %v32_v11 = vsel %vm27_vm0, %v22_v8, 0 }
   0x4   :  { %v29_v10 = vsel %vm27_vm0, %v21_v7, 0 }
   0x5   :  { %10 = vsyncpa [#allocation4], 0  ;;  %5167 = vmatprep.subr.mxu0 %v6093_v3  ;;  %v149_v12 = vsub.f32 %v26_v0, %v6093_v3  ;;  %v6114_v13 = vand.u32 4294901760, %v29_v10  ;;  %v156_v14 = vsub.f32 %v25_v1, %v6095_v4  ;;  %v6117_v15 = vand.u32 4294901760, %v32_v11  ;;  %s6019_s0 = smov 104   ;;  %s6020_s1 = smov 96  }
   0x6   :  { %5168 = vmatpush3.msra.mxu0 %v6093_v3  ;;  %v163_v16 = vsub.f32 %v24_v2, %v6097_v5  ;;  %v170_v17 = vsub.f32 %v23_v6, %v6108_v9  ;;  %v8800_v38 = vmov 2   ;;  %v8762_v39 = vmov 0   ;;  %s6022_s30 = smov 88   ;;  %s6024_s6 = smov 80  }
   0x7   :  { %8898 = vst [vmem:[#allocation6_spill] sm:$0xff] %v6114_v13  ;;  %8899 = vst [vmem:[#allocation7_spill] sm:$0xff] %v6117_v15  ;;  %5169 = vmatprep.subr.mxu0 %v6095_v4  ;;  %v150_v18 = vand.u32 4294901760, %v149_v12  ;;  %v6124_v19 = vsub.f32 %v29_v10, %v6114_v13  ;;  %v157_v20 = vand.u32 4294901760, %v156_v14  ;;  %v6127_v21 = vsub.f32 %v32_v11, %v6117_v15  ;;  %s6026_s7 = smov 72   ;;  %s6028_s8 = smov 112  }
   0x8   :  { %5186 = vmatprep.mubr.f32.mxu1 %v6114_v13  ;;  %5170 = vmatpush3.msra.mxu0 %v6095_v4  ;;  %v164_v22 = vand.u32 4294901760, %v163_v16  ;;  %v171_v23 = vand.u32 4294901760, %v170_v17  ;;  %v5975_v1 = vmov 1.0   ;;  %vm616_vm3 = vcmask 517120   ;;  %s6044_s9 = smov 120   ;;  %s6045_s10 = smov 24  }
   0x9   :  { %8900 = vst [vmem:[#allocation8_spill] sm:$0xff] %v6124_v19  ;;  %8901 = vst [vmem:[#allocation9_spill] sm:$0xff] %v6127_v21  ;;  %5171 = vmatprep.subr.mxu0 %v6097_v5  ;;  %v151_v24 = vsub.f32 %v149_v12, %v150_v18  ;;  %v6133_v25 = vand.u32 4294901760, %v6124_v19  ;;  %v158_v26 = vsub.f32 %v156_v14, %v157_v20  ;;  %v6136_v27 = vand.u32 4294901760, %v6127_v21  ;;  %s6046_s11 = smov 8   ;;  %s6047_s12 = smov 40  }
   0xa   :  { %5172 = vmatpush3.msra.mxu0 %v6097_v5  ;;  %v165_v28 = vsub.f32 %v163_v16, %v164_v22  ;;  %v172_v29 = vsub.f32 %v170_v17, %v171_v23  ;;  %5496 = vset.pattern.permute.xlu1 %v8800_v38  ;;  %s6048_s13 = smov 16   ;;  %s6049_s14 = smov 56   ;;  %vm1046_vm4 = vcmask 64512   ;;  %vm1048_vm5 = vcmask 130048  }
   0xb   :  { %8902 = vst [vmem:[#allocation10_spill] sm:$0xff] %v6133_v25  ;;  %8903 = vst [vmem:[#allocation11_spill] sm:$0xff] %v6136_v27  ;;  %5173 = vmatprep.subr.mxu0 %v6108_v9  ;;  %v152_v30 = vand.u32 4294901760, %v151_v24  ;;  %v106_v31 = vsub.f32 %v6124_v19, %v6133_v25  ;;  %v159_v32 = vand.u32 4294901760, %v158_v26  ;;  %v116_v33 = vsub.f32 %v6127_v21, %v6136_v27  ;;  %s6050_s15 = smov 32   ;;  %s6051_s16 = smov 48  }
   0xc   :  { %5174 = vmatpush3.msra.mxu0 %v6108_v9  ;;  %v166_v36 = vand.u32 4294901760, %v165_v28  ;;  %v173_v37 = vand.u32 4294901760, %v172_v29  ;;  %5494 = vset.pattern.permute.xlu0 %v8762_v39  ;;  %vm1050_vm6 = vcmask 195584   ;;  %vm1053_vm7 = vcmask 326656  }
   0xd   :  { %5178 = vmatprep.subr.mxu1 %v152_v30  ;;  %v107_v34 = vand.u32 4294901760, %v106_v31  ;;  %5189 = vmatprep.subr.mxu0 %v149_v12  ;;  %v6145_v35 = vand.u32 4294901760, %v116_v33  ;;  %vm1055_vm8 = vcmask 392192   ;;  %vm1057_vm9 = vcmask 457728  }
   0xe   :  { %5179 = vmatpush3.msra.mxu1 %v152_v30  ;;  %vm4420_vm10 = vcmask 523264  }
   0xf   :  { %8904 = vst [vmem:[#allocation12_spill] sm:$0xff] %v6145_v35  ;;  %5175 = vmatprep.mubr.f32.mxu0 %v107_v34  ;;  %5180 = vmatprep.subr.mxu1 %v159_v32 }
  0x10   :  { %5176 = vmatmul.mubr.f32.vlgmr.msra.gmra.mxu0 %v6145_v35  ;;  %5181 = vmatpush3.msra.mxu1 %v159_v32 }
  0x11   :  { %5190 = vmatpush3.msra.mxu0 %v149_v12  ;;  %5182 = vmatprep.subr.mxu1 %v166_v36 }
  0x12   :  { %5191 = vmatprep.subr.mxu0 %v156_v14  ;;  %5183 = vmatpush3.msra.mxu1 %v166_v36 }
  0x13   :  { %5192 = vmatpush3.msra.mxu0 %v156_v14  ;;  %5184 = vmatprep.subr.mxu1 %v173_v37 }
  0x14   :  { %5193 = vmatprep.subr.mxu0 %v163_v16  ;;  %5185 = vmatpush3.msra.mxu1 %v173_v37 }
  0x15   :  { %5194 = vmatpush3.msra.mxu0 %v163_v16  ;;  %5187 = vmatmul.mubr.f32.vlgmr.msra.gmra.mxu1 %v6117_v15 }
  0x16   :  { %5195 = vmatprep.subr.mxu0 %v170_v17  ;;  %5200 = vmatprep.subr.mxu1 %v6093_v3 }
  0x17   :  { %5196 = vmatpush3.msra.mxu0 %v170_v17  ;;  %5197 = vmatprep.mubr.f32.mxu0 %v6124_v19 }
  0x18   :  { %5201 = vmatpush3.msra.mxu1 %v6093_v3  ;;  %5198 = vmatmul.mubr.f32.vlgmr.msra.gmra.mxu0 %v6127_v21 }
  0x19   :  { %5202 = vmatprep.subr.mxu1 %v6095_v4  ;;  %5211 = vmatprep.subr.mxu0 %v150_v18 }
  0x1a   :  { %5203 = vmatpush3.msra.mxu1 %v6095_v4  ;;  %5212 = vmatpush3.msra.mxu0 %v150_v18 }
  0x1b   :  { %5204 = vmatprep.subr.mxu1 %v6097_v5  ;;  %5213 = vmatprep.subr.mxu0 %v157_v20 }
  0x1c   :  { %5205 = vmatpush3.msra.mxu1 %v6097_v5  ;;  %5214 = vmatpush3.msra.mxu0 %v157_v20 }
  0x1d   :  { %5206 = vmatprep.subr.mxu1 %v6108_v9  ;;  %5215 = vmatprep.subr.mxu0 %v164_v22 }
  0x1e   :  { %5207 = vmatpush3.msra.mxu1 %v6108_v9  ;;  %5208 = vmatprep.mubr.f32.mxu1 %v6133_v25 }
  0x1f   :  { %5216 = vmatpush3.msra.mxu0 %v164_v22  ;;  %5209 = vmatmul.mubr.f32.vlgmr.msra.gmra.mxu1 %v6136_v27 }
  0x20   :  { %5217 = vmatprep.subr.mxu0 %v171_v23  ;;  %5222 = vmatprep.subr.mxu1 %v6093_v3 }
  0x21   :  { %5218 = vmatpush3.msra.mxu0 %v171_v23  ;;  %5219 = vmatprep.mubr.f32.mxu0 %v6114_v13 }
  0x22   :  { %5223 = vmatpush3.msra.mxu1 %v6093_v3  ;;  %5220 = vmatmul.mubr.f32.vlgmr.msra.gmra.mxu0 %v6117_v15 }
  0x23   :  { %5224 = vmatprep.subr.mxu1 %v6095_v4  ;;  %5230 = vmatprep.mubr.f32.mxu1 %v6114_v13 }
  0x24   :  { %5225 = vmatpush3.msra.mxu1 %v6095_v4  ;;  %5241 = vmatprep.mubr.f32.mxu0 %v107_v34 }
  0x25   :  { %5226 = vmatprep.subr.mxu1 %v6097_v5 }
  0x26   :  { %5227 = vmatpush3.msra.mxu1 %v6097_v5 }
  0x27   :  { %5228 = vmatprep.subr.mxu1 %v6108_v9 }
  0x28   :  { %5229 = vmatpush3.msra.mxu1 %v6108_v9 }
  0x29   :  { %5231 = vmatmul.mubr.f32.vlgmr.msra.gmra.mxu1 %v6117_v15 }
  0x2a   :  { %5252 = vmatprep.mubr.f32.mxu1 %v6114_v13 }
  0xd0   :  { %v5177_v40 = vpop.f32.mrf.mxu0 }
  0xd2   :  { %v109_v41 = vpop.f32.mrf.mxu0 }
  0xd5   :  { %v5188_v42 = vpop.f32.mrf.mxu1 }
  0xd6   :  { %v217_v43 = vadd.f32 %v5188_v42, %v5177_v40 }
  0xd7   :  { %v210_v46 = vpop.f32.mrf.mxu1 }
  0xd8   :  { %v5199_v44 = vpop.f32.mrf.mxu0  ;;  %v211_v48 = vadd.f32 %v210_v46, %v109_v41 }
  0xd9   :  { %v304_v45 = vadd.f32 %v5199_v44, %v217_v43 }
  0xda   :  { %v296_v49 = vpop.f32.mrf.mxu0 }
  0xdb   :  { %v297_v54 = vadd.f32 %v296_v49, %v211_v48 }
  0xdf   :  { %v5210_v47 = vpop.f32.mrf.mxu1 }
  0xe0   :  { %v389_v50 = vadd.f32 %v5210_v47, %v304_v45 }
  0xe1   :  { %v380_v52 = vpop.f32.mrf.mxu1 }
  0xe2   :  { %v5221_v51 = vpop.f32.mrf.mxu0  ;;  %v381_v55 = vadd.f32 %v380_v52, %v297_v54 }
  0xe3   :  { %v478_v53 = vadd.f32 %v5221_v51, %v389_v50 }
  0xe4   :  { %v471_v56 = vpop.f32.mrf.mxu0 }
  0xe5   :  { %v472_v58 = vadd.f32 %v471_v56, %v381_v55 }
  0xe9   :  { %v5232_v57 = vpop.f32.mrf.mxu1 }
  0xea   :  { %v559_v59 = vadd.f32 %v5232_v57, %v478_v53 }
  0xeb   :  { %v552_v60 = vpop.f32.mrf.mxu1 }
  0xec   :  { %v565_v61 = vmul.f32 0.70710677, %v559_v59  ;;  %v553_v62 = vadd.f32 %v552_v60, %v472_v58  ;;  %v563_v50 = vmul.f32 0.5, %v559_v59  ;;  %v8792_v58 = vmov 4  }
  0xed   :  { %v8700_v59 = vmov 1   ;;  %v8788_v60 = vmov 5  }
  0xee   :  { %vm567_vm1 = vcmp.lt.f32.partialorder %v565_v61, 0.0  ;;  %v571_v63 = vand.u32 2147483647, %v565_v61  ;;  %v564_v0 = vmul.f32 0.70710677, %v553_v62  ;;  %v562_v55 = vmul.f32 0.5, %v553_v62 }
  0xef   :  { %v569_v2 = vsel %vm567_vm1, -1.0, %v5975_v1  ;;  %v8796_v61 = vmov 3   ;;  %v8784_v62 = vmov 6  }
  0xf0   :  { %v573_v3 = vmul.f32 0.3275911, %v571_v63  ;;  %v570_v4 = vand.u32 2147483647, %v564_v0  ;;  %v599_v8 = vsub.f32 0.0, %v571_v63  ;;  %vm566_vm2 = vcmp.lt.f32.partialorder %v564_v0, 0.0 }
  0xf1   :  { %v568_v52 = vsel %vm566_vm2, -1.0, %v5975_v1  ;;  %v8780_v0 = vmov 7   ;;  %v8798_v1 = vmov 12  }
  0xf2   :  { %v575_v5 = vadd.f32 1.0, %v573_v3  ;;  %v572_v6 = vmul.f32 0.3275911, %v570_v4  ;;  %v598_v9 = vsub.f32 0.0, %v570_v4  ;;  %v601_v10 = vmul.f32 %v599_v8, %v571_v63 }
  0xf3   :  { %v8802_v63 = vmov 9   ;;  %v8794_v3 = vmov 15   ;;  %v8764_v8 = vmov 13  }
  0xf4   :  { %5943 = vrcp.f32 %v575_v5  ;;  %v574_v7 = vadd.f32 1.0, %v572_v6  ;;  %v600_v12 = vmul.f32 %v598_v9, %v570_v4  ;;  %v604_v16 = vmul.f32 1.442695, %v601_v10 }
  0xf5   :  { %v8772_v4 = vmov 10   ;;  %v8790_v5 = vmov 18   ;;  %v8768_v6 = vmov 11   ;;  %v8782_v9 = vmov 24  }
  0xf6   :  { %5945 = vrcp.f32 %v574_v7  ;;  %v602_v22 = vmul.f32 1.442695, %v600_v12  ;;  %v8786_v7 = vmov 21   ;;  %v8758_v10 = vmov 14  }
  0xf7   :  { %5947 = vpow2.f32 %v604_v16  ;;  %v8750_v12 = vmov 16   ;;  %v8744_v16 = vmov 17  }
  0xf8   :  { %5949 = vpow2.f32 %v602_v22  ;;  %v8732_v22 = vmov 20  }
 0x101   :  { %v5944_v11 = vpop.eup %5943 }
 0x102   :  { %v581_v14 = vmul.f32 1.0614054, %v5944_v11 }
 0x103   :  { %v5946_v17 = vpop.eup %5945 }
 0x104   :  { %v583_v18 = vadd.f32 -1.4531521, %v581_v14  ;;  %v580_v20 = vmul.f32 1.0614054, %v5946_v17  ;;  %v5948_v41 = vpop.eup %5947  ;;  %v8774_v14 = vmov 30  }
 0x105   :  { %v5950_v45 = vpop.eup %5949 }
 0x106   :  { %v585_v23 = vmul.f32 %v5944_v11, %v583_v18  ;;  %v582_v24 = vadd.f32 -1.4531521, %v580_v20  ;;  %v8738_v18 = vmov 19   ;;  %v8766_v20 = vmov 36  }
 0x108   :  { %v587_v26 = vadd.f32 1.4214138, %v585_v23  ;;  %v584_v28 = vmul.f32 %v5946_v17, %v582_v24  ;;  %v8760_v23 = vmov 39   ;;  %v8726_v24 = vmov 22  }
 0x10a   :  { %v589_v29 = vmul.f32 %v5944_v11, %v587_v26  ;;  %v586_v30 = vadd.f32 1.4214138, %v584_v28  ;;  %v8754_v26 = vmov 42   ;;  %v8720_v28 = vmov 23  }
 0x10c   :  { %v591_v31 = vadd.f32 -0.28449672, %v589_v29  ;;  %v588_v32 = vmul.f32 %v5946_v17, %v586_v30  ;;  %v8746_v29 = vmov 45   ;;  %v8714_v30 = vmov 25  }
 0x10e   :  { %v593_v33 = vmul.f32 %v5944_v11, %v591_v31  ;;  %v590_v34 = vadd.f32 -0.28449672, %v588_v32  ;;  %v8742_v31 = vmov 48   ;;  %v8706_v32 = vmov 26  }
 0x110   :  { %v595_v36 = vadd.f32 0.2548296, %v593_v33  ;;  %v592_v37 = vmul.f32 %v5946_v17, %v590_v34  ;;  %v8736_v33 = vmov 51   ;;  %v8702_v34 = vmov 28  }
 0x112   :  { %v597_v40 = vmul.f32 %v5944_v11, %v595_v36  ;;  %v594_v42 = vadd.f32 0.2548296, %v592_v37  ;;  %v8778_v11 = vmov 27   ;;  %v8730_v36 = vmov 54  }
 0x113   :  { %v8696_v37 = vmov 29  }
 0x114   :  { %v607_v43 = vmul.f32 %v5948_v41, %v597_v40  ;;  %v596_v44 = vmul.f32 %v5946_v17, %v594_v42  ;;  %v8770_v17 = vmov 33   ;;  %v8724_v40 = vmov 57  }
 0x115   :  { %v8692_v41 = vmov 31   ;;  %v8718_v42 = vmov 60  }
 0x116   :  { %v609_v46 = vsub.f32 1.0, %v607_v43  ;;  %v606_v47 = vmul.f32 %v5950_v45, %v596_v44  ;;  %v8690_v43 = vmov 32   ;;  %v8710_v44 = vmov 63  }
 0x118   :  { %v611_v48 = vmul.f32 %v609_v46, %v569_v2  ;;  %v608_v49 = vsub.f32 1.0, %v606_v47  ;;  %v8776_v2 = vmov 8   ;;  %v8688_v46 = vmov 34  }
 0x119   :  { %v8682_v47 = vmov 35  }
 0x11a   :  { %v613_v51 = vadd.f32 1.0, %v611_v48  ;;  %v610_v53 = vmul.f32 %v608_v49, %v568_v52  ;;  %v8680_v48 = vmov 37  }
 0x11c   :  { %v6176_v54 = vmul.f32 %v613_v51, %v563_v50  ;;  %v612_v56 = vadd.f32 1.0, %v610_v53  ;;  %v8678_v50 = vmov 38   ;;  %v8676_v53 = vmov 40  }
 0x11e   :  { %8905 = vst [vmem:[#allocation13_spill] sm:$0xff] %v6176_v54  ;;  %v6178_v57 = vmul.f32 %v612_v56, %v562_v55  ;;  %v6269_v45 = vrot.slane %v6176_v54, 2  ;;  %v6293_v51 = vrot.slane %v6176_v54, 4  ;;  %v8684_v56 = vmov 41  }
 0x120   :  { %636 = vperm.xlu1 %5496, %v6178_v57   ;;  %620 = vperm.xlu0 %5494, %v6178_v57   ;;  %617 = vst.msk [vmem:[#allocation2] sm:$0x3] %vm616_vm3, %v6178_v57  ;;  %8906 = vst [vmem:[#allocation14_spill] sm:$0xff] %v6269_v45 }
 0x121   :  { %8908 = vst [vmem:[#allocation16_spill] sm:$0xff] %v6293_v51 }
 0x124   :  { %5498 = vset.pattern.permute.xlu1 %v8792_v58  ;;  %5495 = vset.pattern.permute.xlu0 %v8700_v59 }
 0x125   :  { %654 = vperm.xlu1 %5498, %v6178_v57   ;;  %627 = vperm.xlu0 %5495, %v6178_v57  }
 0x129   :  { %5499 = vset.pattern.permute.xlu1 %v8788_v60  ;;  %5497 = vset.pattern.permute.xlu0 %v8796_v61 }
 0x12a   :  { %663 = vperm.xlu1 %5499, %v6178_v57   ;;  %645 = vperm.xlu0 %5497, %v6178_v57  }
 0x12e   :  { %5500 = vset.pattern.permute.xlu1 %v8784_v62  ;;  %5503 = vset.pattern.permute.xlu0 %v8802_v63 }
 0x12f   :  { %672 = vperm.xlu1 %5500, %v6178_v57   ;;  %695 = vperm.xlu0 %5503, %v6178_v57  }
 0x133   :  { %5501 = vset.pattern.permute.xlu1 %v8780_v0  ;;  %5506 = vset.pattern.permute.xlu0 %v8798_v1 }
 0x134   :  { %681 = vperm.xlu1 %5501, %v6178_v57   ;;  %713 = vperm.xlu0 %5506, %v6178_v57  }
 0x138   :  { %5502 = vset.pattern.permute.xlu1 %v8776_v2  ;;  %5509 = vset.pattern.permute.xlu0 %v8794_v3 }
 0x139   :  { %690 = vperm.xlu1 %5502, %v6178_v57   ;;  %731 = vperm.xlu0 %5509, %v6178_v57  }
 0x13d   :  { %5504 = vset.pattern.permute.xlu1 %v8772_v4  ;;  %5512 = vset.pattern.permute.xlu0 %v8790_v5 }
 0x13e   :  { %701 = vperm.xlu1 %5504, %v6178_v57   ;;  %748 = vperm.xlu0 %5512, %v6178_v57  }
 0x142   :  { %5505 = vset.pattern.permute.xlu1 %v8768_v6  ;;  %5515 = vset.pattern.permute.xlu0 %v8786_v7 }
 0x143   :  { %707 = vperm.xlu1 %5505, %v6178_v57   ;;  %766 = vperm.xlu0 %5515, %v6178_v57  }
 0x147   :  { %5507 = vset.pattern.permute.xlu1 %v8764_v8  ;;  %5518 = vset.pattern.permute.xlu0 %v8782_v9 }
 0x148   :  { %719 = vperm.xlu1 %5507, %v6178_v57   ;;  %784 = vperm.xlu0 %5518, %v6178_v57  }
 0x14c   :  { %5508 = vset.pattern.permute.xlu1 %v8758_v10  ;;  %5521 = vset.pattern.permute.xlu0 %v8778_v11 }
 0x14d   :  { %725 = vperm.xlu1 %5508, %v6178_v57   ;;  %801 = vperm.xlu0 %5521, %v6178_v57  }
 0x151   :  { %5510 = vset.pattern.permute.xlu1 %v8750_v12  ;;  %5524 = vset.pattern.permute.xlu0 %v8774_v14 }
 0x152   :  { %737 = vperm.xlu1 %5510, %v6178_v57   ;;  %819 = vperm.xlu0 %5524, %v6178_v57  }
 0x156   :  { %5511 = vset.pattern.permute.xlu1 %v8744_v16  ;;  %5527 = vset.pattern.permute.xlu0 %v8770_v17 }
 0x157   :  { %742 = vperm.xlu1 %5511, %v6178_v57   ;;  %836 = vperm.xlu0 %5527, %v6178_v57  }
 0x15b   :  { %5513 = vset.pattern.permute.xlu1 %v8738_v18  ;;  %5530 = vset.pattern.permute.xlu0 %v8766_v20  ;;  %v8748_v18 = vmov 59  }
 0x15c   :  { %754 = vperm.xlu1 %5513, %v6178_v57   ;;  %854 = vperm.xlu0 %5530, %v6178_v57  }
 0x160   :  { %5514 = vset.pattern.permute.xlu1 %v8732_v22  ;;  %5533 = vset.pattern.permute.xlu0 %v8760_v23  ;;  %v8740_v22 = vmov 58  }
 0x161   :  { %760 = vperm.xlu1 %5514, %v6178_v57   ;;  %872 = vperm.xlu0 %5533, %v6178_v57  }
 0x165   :  { %5516 = vset.pattern.permute.xlu1 %v8726_v24  ;;  %5536 = vset.pattern.permute.xlu0 %v8754_v26  ;;  %v6387_v24 = vrot.slane %v6178_v57, 6 }
 0x166   :  { %772 = vperm.xlu1 %5516, %v6178_v57   ;;  %889 = vperm.xlu0 %5536, %v6178_v57  }
 0x167   :  { %8917 = vst [vmem:[#allocation25_spill] sm:$0xff] %v6387_v24 }
 0x16a   :  { %5517 = vset.pattern.permute.xlu1 %v8720_v28  ;;  %5539 = vset.pattern.permute.xlu0 %v8746_v29 }
 0x16b   :  { %778 = vperm.xlu1 %5517, %v6178_v57   ;;  %907 = vperm.xlu0 %5539, %v6178_v57  }
 0x16f   :  { %5519 = vset.pattern.permute.xlu1 %v8714_v30  ;;  %5542 = vset.pattern.permute.xlu0 %v8742_v31  ;;  %v8752_v31 = vmov 61  }
 0x170   :  { %789 = vperm.xlu1 %5519, %v6178_v57   ;;  %925 = vperm.xlu0 %5542, %v6178_v57  }
 0x174   :  { %5520 = vset.pattern.permute.xlu1 %v8706_v32  ;;  %5545 = vset.pattern.permute.xlu0 %v8736_v33 }
 0x175   :  { %795 = vperm.xlu1 %5520, %v6178_v57   ;;  %942 = vperm.xlu0 %5545, %v6178_v57  }
 0x179   :  { %5522 = vset.pattern.permute.xlu1 %v8702_v34  ;;  %5548 = vset.pattern.permute.xlu0 %v8730_v36  ;;  %v6350_v34 = vrot.slane %v6178_v57, 4 }
 0x17a   :  { %807 = vperm.xlu1 %5522, %v6178_v57   ;;  %960 = vperm.xlu0 %5548, %v6178_v57  }
 0x17b   :  { %8914 = vst [vmem:[#allocation22_spill] sm:$0xff] %v6350_v34 }
 0x17e   :  { %5523 = vset.pattern.permute.xlu1 %v8696_v37  ;;  %5551 = vset.pattern.permute.xlu0 %v8724_v40  ;;  %v8734_v40 = vmov 56  }
 0x17f   :  { %813 = vperm.xlu1 %5523, %v6178_v57   ;;  %977 = vperm.xlu0 %5551, %v6178_v57  }
 0x183   :  { %5525 = vset.pattern.permute.xlu1 %v8692_v41  ;;  %5554 = vset.pattern.permute.xlu0 %v8718_v42  ;;  %v8728_v42 = vmov 55  }
 0x184   :  { %825 = vperm.xlu1 %5525, %v6178_v57   ;;  %995 = vperm.xlu0 %5554, %v6178_v57  }
 0x188   :  { %5526 = vset.pattern.permute.xlu1 %v8690_v43  ;;  %5557 = vset.pattern.permute.xlu0 %v8710_v44  ;;  %v8698_v43 = vmov 46  }
 0x189   :  { %831 = vperm.xlu1 %5526, %v6178_v57   ;;  %1013 = vperm.xlu0 %5557, %v6178_v57  }
 0x18d   :  { %5528 = vset.pattern.permute.xlu1 %v8688_v46  ;;  %2600 = vrot.lane.b32.xlu0 %v6269_v45, %s6019_s0 }
 0x18e   :  { %842 = vperm.xlu1 %5528, %v6178_v57   ;;  %5559 = vset.pattern.permute.xlu0 %v8700_v59 }
 0x191   :  { %2609 = vrot.lane.b32.xlu0 %v6269_v45, %s6020_s1 }
 0x192   :  { %5529 = vset.pattern.permute.xlu1 %v8682_v47 }
 0x193   :  { %848 = vperm.xlu1 %5529, %v6178_v57  }
 0x195   :  { %2618 = vrot.lane.b32.xlu0 %v6269_v45, %s6022_s30 }
 0x197   :  { %5531 = vset.pattern.permute.xlu1 %v8680_v48  ;;  %v6313_v48 = vrot.slane %v6176_v54, 6 }
 0x198   :  { %860 = vperm.xlu1 %5531, %v6178_v57  }
 0x199   :  { %2627 = vrot.lane.b32.xlu0 %v6269_v45, %s6024_s6  ;;  %8912 = vst [vmem:[#allocation20_spill] sm:$0xff] %v6313_v48 }
 0x19b   :  { %v6286_v49 = vpop.permute.xlu1 %636  ;;  %v6368_v30 = vpop.permute.xlu0 %620 }
 0x19c   :  { %8907 = vst [vmem:[#allocation15_spill] sm:$0xff] %v6286_v49  ;;  %5532 = vset.pattern.permute.xlu1 %v8678_v50  ;;  %v8686_v50 = vmov 43   ;;  %8915 = vst [vmem:[#allocation23_spill] sm:$0xff] %v6368_v30 }
 0x19d   :  { %866 = vperm.xlu1 %5532, %v6178_v57   ;;  %2636 = vrot.lane.b32.xlu0 %v6269_v45, %s6026_s7 }
 0x1a0   :  { %v6295_v52 = vpop.permute.xlu1 %654  ;;  %v6378_v28 = vpop.permute.xlu0 %627 }
 0x1a1   :  { %8909 = vst [vmem:[#allocation17_spill] sm:$0xff] %v6295_v52  ;;  %5534 = vset.pattern.permute.xlu1 %v8676_v53  ;;  %3027 = vrot.lane.b32.xlu0 %v6293_v51, %s6028_s8  ;;  %8916 = vst [vmem:[#allocation24_spill] sm:$0xff] %v6378_v28 }
 0x1a2   :  { %878 = vperm.xlu1 %5534, %v6178_v57  }
 0x1a5   :  { %v6301_v55 = vpop.permute.xlu1 %663  ;;  %3036 = vrot.lane.b32.xlu0 %v6293_v51, %s6019_s0 }
 0x1a6   :  { %8910 = vst [vmem:[#allocation18_spill] sm:$0xff] %v6301_v55  ;;  %5535 = vset.pattern.permute.xlu1 %v8684_v56  ;;  %v8694_v56 = vmov 44  }
 0x1a7   :  { %883 = vperm.xlu1 %5535, %v6178_v57  }
 0x1a9   :  { %3045 = vrot.lane.b32.xlu0 %v6293_v51, %s6020_s1 }
 0x1aa   :  { %v6309_v53 = vpop.permute.xlu1 %672 }
 0x1ab   :  { %8911 = vst [vmem:[#allocation19_spill] sm:$0xff] %v6309_v53  ;;  %5537 = vset.pattern.permute.xlu1 %v8686_v50  ;;  %v6325_v50 = vrot.slane %v6178_v57, 2 }
 0x1ac   :  { %895 = vperm.xlu1 %5537, %v6178_v57  }
 0x1ad   :  { %3481 = vrot.lane.b32.xlu0 %v6313_v48, %s6020_s1 }
 0x1af   :  { %v6318_v47 = vpop.permute.xlu1 %681 }
 0x1b0   :  { %8913 = vst [vmem:[#allocation21_spill] sm:$0xff] %v6318_v47  ;;  %5538 = vset.pattern.permute.xlu1 %v8694_v56  ;;  %v8704_v56 = vmov 47  }
 0x1b1   :  { %901 = vperm.xlu1 %5538, %v6178_v57   ;;  %3490 = vrot.lane.b32.xlu0 %v6313_v48, %s6022_s30 }
 0x1b4   :  { %v6327_v46 = vpop.permute.xlu1 %690 }
 0x1b5   :  { %5540 = vset.pattern.permute.xlu1 %v8698_v43  ;;  %657 = vrot.lane.b32.xlu0 %v6325_v50, %s6020_s1  ;;  %v8708_v43 = vmov 49  }
 0x1b6   :  { %913 = vperm.xlu1 %5540, %v6178_v57  }
 0x1b9   :  { %v6333_v41 = vpop.permute.xlu1 %701  ;;  %666 = vrot.lane.b32.xlu0 %v6325_v50, %s6022_s30 }
 0x1ba   :  { %5541 = vset.pattern.permute.xlu1 %v8704_v56  ;;  %v8712_v56 = vmov 50  }
 0x1bb   :  { %919 = vperm.xlu1 %5541, %v6178_v57  }
 0x1bd   :  { %675 = vrot.lane.b32.xlu0 %v6325_v50, %s6024_s6 }
 0x1be   :  { %v6341_v37 = vpop.permute.xlu1 %707 }
 0x1bf   :  { %5543 = vset.pattern.permute.xlu1 %v8708_v43  ;;  %v8716_v43 = vmov 52  }
 0x1c0   :  { %930 = vperm.xlu1 %5543, %v6178_v57  }
 0x1c1   :  { %684 = vrot.lane.b32.xlu0 %v6325_v50, %s6026_s7 }
 0x1c3   :  { %v6347_v59 = vpop.permute.xlu1 %719 }
 0x1c4   :  { %5544 = vset.pattern.permute.xlu1 %v8712_v56  ;;  %v8722_v56 = vmov 53  }
 0x1c5   :  { %936 = vperm.xlu1 %5544, %v6178_v57   ;;  %1081 = vrot.lane.b32.xlu0 %v6350_v34, %s6028_s8 }
 0x1c8   :  { %v6356_v32 = vpop.permute.xlu1 %725 }
 0x1c9   :  { %5546 = vset.pattern.permute.xlu1 %v8716_v43  ;;  %1090 = vrot.lane.b32.xlu0 %v6350_v34, %s6019_s0 }
 0x1ca   :  { %948 = vperm.xlu1 %5546, %v6178_v57  }
 0x1cd   :  { %v6362_v44 = vpop.permute.xlu1 %737  ;;  %1099 = vrot.lane.b32.xlu0 %v6350_v34, %s6020_s1 }
 0x1ce   :  { %5547 = vset.pattern.permute.xlu1 %v8722_v56 }
 0x1cf   :  { %954 = vperm.xlu1 %5547, %v6178_v57  }
 0x1d1   :  { %1108 = vrot.lane.b32.xlu0 %v6350_v34, %s6022_s30 }
 0x1d2   :  { %v6372_v43 = vpop.permute.xlu1 %742 }
 0x1d3   :  { %5549 = vset.pattern.permute.xlu1 %v8728_v42  ;;  %v6389_v42 = vpop.permute.xlu0 %645 }
 0x1d4   :  { %966 = vperm.xlu1 %5549, %v6178_v57   ;;  %8918 = vst [vmem:[#allocation26_spill] sm:$0xff] %v6389_v42 }
 0x1d5   :  { %1117 = vrot.lane.b32.xlu0 %v6350_v34, %s6024_s6 }
 0x1d7   :  { %v6380_v56 = vpop.permute.xlu1 %754  ;;  %v6401_v33 = vpop.permute.xlu0 %695 }
 0x1d8   :  { %5550 = vset.pattern.permute.xlu1 %v8734_v40 }
 0x1d9   :  { %972 = vperm.xlu1 %5550, %v6178_v57   ;;  %1126 = vrot.lane.b32.xlu0 %v6350_v34, %s6026_s7 }
 0x1db   :  { %v6410_v16 = vpop.permute.xlu0 %713 }
 0x1dc   :  { %v6391_v36 = vpop.permute.xlu1 %760 }
 0x1dd   :  { %5552 = vset.pattern.permute.xlu1 %v8740_v22  ;;  %1517 = vrot.lane.b32.xlu0 %v6387_v24, %s6028_s8 }
 0x1de   :  { %983 = vperm.xlu1 %5552, %v6178_v57  }
 0x1df   :  { %v6421_v12 = vpop.permute.xlu0 %731 }
 0x1e1   :  { %v6397_v40 = vpop.permute.xlu1 %772  ;;  %1526 = vrot.lane.b32.xlu0 %v6387_v24, %s6019_s0 }
 0x1e2   :  { %5553 = vset.pattern.permute.xlu1 %v8748_v18  ;;  %v8756_v18 = vmov 62  }
 0x1e3   :  { %989 = vperm.xlu1 %5553, %v6178_v57   ;;  %v6430_v26 = vpop.permute.xlu0 %748 }
 0x1e5   :  { %1535 = vrot.lane.b32.xlu0 %v6387_v24, %s6020_s1 }
 0x1e6   :  { %v6407_v22 = vpop.permute.xlu1 %778 }
 0x1e7   :  { %8919 = vst [vmem:[#allocation27_spill] sm:$0xff] %v6407_v22  ;;  %5555 = vset.pattern.permute.xlu1 %v8752_v31 }
 0x1e8   :  { %1001 = vperm.xlu1 %5555, %v6178_v57  }
 0x1e9   :  { %1544 = vrot.lane.b32.xlu0 %v6387_v24, %s6022_s30 }
 0x1eb   :  { %v6415_v29 = vpop.permute.xlu1 %789 }
 0x1ec   :  { %5556 = vset.pattern.permute.xlu1 %v8756_v18  ;;  %v6438_v18 = vpop.permute.xlu0 %766 }
 0x1ed   :  { %1007 = vperm.xlu1 %5556, %v6178_v57   ;;  %1553 = vrot.lane.b32.xlu0 %v6387_v24, %s6024_s6 }
 0x1f0   :  { %v6423_v31 = vpop.permute.xlu1 %795 }
 0x1f1   :  { %2582 = vrot.lane.b32.xlu1 %v6269_v45, %s6044_s9  ;;  %1562 = vrot.lane.b32.xlu0 %v6387_v24, %s6026_s7 }
 0x1f2   :  { %5558 = vset.pattern.permute.xlu1 %v8762_v39  ;;  %v6446_v39 = vpop.permute.xlu0 %784 }
 0x1f5   :  { %2591 = vrot.lane.b32.xlu1 %v6269_v45, %s6028_s8  ;;  %v6434_v57 = vpop.permute.xlu1 %807 }
 0x1f6   :  { %v6454_v20 = vpop.permute.xlu0 %801 }
 0x1f9   :  { %3018 = vrot.lane.b32.xlu1 %v6293_v51, %s6044_s9 }
 0x1fa   :  { %v6440_v10 = vpop.permute.xlu1 %813  ;;  %v6460_v17 = vpop.permute.xlu0 %819 }
 0x1fd   :  { %3054 = vrot.lane.b32.xlu1 %v6293_v51, %s6022_s30 }
 0x1fe   :  { %v6468_v14 = vpop.permute.xlu0 %836 }
 0x1ff   :  { %v6444_v23 = vpop.permute.xlu1 %825 }
 0x201   :  { %3063 = vrot.lane.b32.xlu1 %v6293_v51, %s6024_s6 }
 0x202   :  { %v6474_v11 = vpop.permute.xlu0 %854 }
 0x204   :  { %v6450_v8 = vpop.permute.xlu1 %831 }
 0x205   :  { %3072 = vrot.lane.b32.xlu1 %v6293_v51, %s6026_s7 }
 0x206   :  { %v6482_v62 = vpop.permute.xlu0 %872 }
 0x207   :  { %8920 = vst [vmem:[#allocation28_spill] sm:$0xff] %v6482_v62 }
 0x209   :  { %3454 = vrot.lane.b32.xlu1 %v6313_v48, %s6044_s9  ;;  %v6458_v6 = vpop.permute.xlu1 %842 }
 0x20a   :  { %v6488_v60 = vpop.permute.xlu0 %889 }
 0x20d   :  { %3463 = vrot.lane.b32.xlu1 %v6313_v48, %s6028_s8 }
 0x20e   :  { %v6464_v4 = vpop.permute.xlu1 %848  ;;  %v908_v58 = vpop.permute.xlu0 %907 }
 0x211   :  { %3472 = vrot.lane.b32.xlu1 %v6313_v48, %s6019_s0 }
 0x212   :  { %v926_v61 = vpop.permute.xlu0 %925 }
 0x213   :  { %v6470_v2 = vpop.permute.xlu1 %860 }
 0x215   :  { %3499 = vrot.lane.b32.xlu1 %v6313_v48, %s6024_s6 }
 0x216   :  { %v6500_v38 = vpop.permute.xlu0 %942 }
 0x218   :  { %v6476_v0 = vpop.permute.xlu1 %866 }
 0x219   :  { %3508 = vrot.lane.b32.xlu1 %v6313_v48, %s6026_s7 }
 0x21a   :  { %v6504_v51 = vpop.permute.xlu0 %960 }
 0x21b   :  { %8922 = vst [vmem:[#allocation30_spill] sm:$0xff] %v6504_v51 }
 0x21d   :  { %v879_v9 = vpop.permute.xlu1 %878  ;;  %630 = vrot.lane.b32.xlu1 %v6325_v50, %s6044_s9 }
 0x21e   :  { %v978_v54 = vpop.permute.xlu0 %977 }
 0x221   :  { %639 = vrot.lane.b32.xlu1 %v6325_v50, %s6028_s8 }
 0x222   :  { %v6486_v7 = vpop.permute.xlu1 %883  ;;  %v996_v27 = vpop.permute.xlu0 %995 }
 0x225   :  { %648 = vrot.lane.b32.xlu1 %v6325_v50, %s6019_s0 }
 0x226   :  { %v6512_v19 = vpop.permute.xlu0 %1013 }
 0x227   :  { %v6492_v5 = vpop.permute.xlu1 %895  ;;  %8923 = vst [vmem:[#allocation31_spill] sm:$0xff] %v6512_v19 }
 0x229   :  { %1072 = vrot.lane.b32.xlu1 %v6350_v34, %s6044_s9 }
 0x22a   :  { %v6516_v15 = vpop.permute.xlu0 %2600 }
 0x22b   :  { %8925 = vst [vmem:[#allocation33_spill] sm:$0xff] %v6516_v15 }
 0x22c   :  { %v902_v3 = vpop.permute.xlu1 %901 }
 0x22d   :  { %1508 = vrot.lane.b32.xlu1 %v6387_v24, %s6044_s9 }
 0x22e   :  { %v6518_v34 = vpop.permute.xlu0 %2609 }
 0x22f   :  { %8926 = vst [vmem:[#allocation34_spill] sm:$0xff] %v6518_v34 }
 0x231   :  { %v6498_v1 = vpop.permute.xlu1 %913 }
 0x232   :  { %v6522_v53 = vpop.permute.xlu0 %2618 }
 0x233   :  { %8927 = vst [vmem:[#allocation35_spill] sm:$0xff] %v6522_v53 }
 0x236   :  { %v6502_v63 = vpop.permute.xlu1 %919  ;;  %v6526_v52 = vpop.permute.xlu0 %2627 }
 0x237   :  { %8921 = vst [vmem:[#allocation29_spill] sm:$0xff] %v6502_v63  ;;  %8928 = vst [vmem:[#allocation36_spill] sm:$0xff] %v6526_v52 }
 0x23a   :  { %v6530_v49 = vpop.permute.xlu0 %2636 }
 0x23b   :  { %v931_v48 = vpop.permute.xlu1 %930  ;;  %8929 = vst [vmem:[#allocation37_spill] sm:$0xff] %v6530_v49 }
 0x23e   :  { %v6536_v15 = vpop.permute.xlu0 %3027 }
 0x23f   :  { %8932 = vst [vmem:[#allocation40_spill] sm:$0xff] %v6536_v15 }
 0x240   :  { %v6506_v45 = vpop.permute.xlu1 %936 }
 0x242   :  { %v6540_v34 = vpop.permute.xlu0 %3036 }
 0x243   :  { %8934 = vst [vmem:[#allocation42_spill] sm:$0xff] %v6540_v34 }
 0x245   :  { %v6508_v13 = vpop.permute.xlu1 %948 }
 0x246   :  { %v6546_v62 = vpop.permute.xlu0 %3045 }
 0x247   :  { %8937 = vst [vmem:[#allocation45_spill] sm:$0xff] %v6546_v62 }
 0x24a   :  { %v6510_v21 = vpop.permute.xlu1 %954  ;;  %v6550_v19 = vpop.permute.xlu0 %3481 }
 0x24b   :  { %8939 = vst [vmem:[#allocation47_spill] sm:$0xff] %v6550_v19  ;;  %v787_v19 = vmul.f32 %v6446_v39, %v6325_v50 }
 0x24f   :  { %v6514_v25 = vpop.permute.xlu1 %966 }
 0x250   :  { %8924 = vst [vmem:[#allocation32_spill] sm:$0xff] %v6514_v25 }
 0x254   :  { %v973_v35 = vpop.permute.xlu1 %972 }
 0x259   :  { %v984_v24 = vpop.permute.xlu1 %983 }
 0x25e   :  { %v6520_v47 = vpop.permute.xlu1 %989 }
 0x263   :  { %v6524_v55 = vpop.permute.xlu1 %1001 }
 0x268   :  { %v6528_v42 = vpop.permute.xlu1 %1007 }
 0x26c   :  { %v6532_v30 = vpop.permute.xlu1 %2582 }
 0x26d   :  { %8930 = vst [vmem:[#allocation38_spill] sm:$0xff] %v6532_v30 }
 0x270   :  { %v6534_v28 = vpop.permute.xlu1 %2591 }
 0x271   :  { %8931 = vst [vmem:[#allocation39_spill] sm:$0xff] %v6534_v28  ;;  %v6556_v28 = vpop.permute.xlu0 %3490 }
 0x272   :  { %8942 = vst [vmem:[#allocation50_spill] sm:$0xff] %v6556_v28 }
 0x274   :  { %v6538_v25 = vpop.permute.xlu1 %3018 }
 0x275   :  { %8933 = vst [vmem:[#allocation41_spill] sm:$0xff] %v6538_v25  ;;  %v6560_v25 = vpop.permute.xlu0 %657 }
 0x276   :  { %v904_v39 = vmul.f32 %v902_v3, %v6560_v25 }
 0x278   :  { %v6542_v51 = vpop.permute.xlu1 %3054 }
 0x279   :  { %8935 = vst [vmem:[#allocation43_spill] sm:$0xff] %v6542_v51  ;;  %v6573_v28 = vpop.permute.xlu0 %666 }
 0x27c   :  { %v6544_v53 = vpop.permute.xlu1 %3063 }
 0x27d   :  { %8936 = vst [vmem:[#allocation44_spill] sm:$0xff] %v6544_v53  ;;  %v693_v53 = vmul.f32 %v6327_v46, %v6325_v50  ;;  %v716_v46 = vmul.f32 %v6410_v16, %v6560_v25 }
 0x280   :  { %v6548_v52 = vpop.permute.xlu1 %3072 }
 0x281   :  { %8938 = vst [vmem:[#allocation46_spill] sm:$0xff] %v6548_v52 }
 0x284   :  { %v6552_v49 = vpop.permute.xlu1 %3454 }
 0x285   :  { %8940 = vst [vmem:[#allocation48_spill] sm:$0xff] %v6552_v49  ;;  %v740_v49 = vmul.f32 %v6362_v44, %v6325_v50  ;;  %v998_v44 = vmul.f32 %v996_v27, %v6560_v25  ;;  %v910_v27 = vmul.f32 %v908_v58, %v6573_v28 }
 0x288   :  { %v6554_v30 = vpop.permute.xlu1 %3463 }
 0x289   :  { %8941 = vst [vmem:[#allocation49_spill] sm:$0xff] %v6554_v30  ;;  %v928_v30 = vmul.f32 %v926_v61, %v6325_v50  ;;  %v763_v61 = vmul.f32 %v6391_v36, %v6560_v25  ;;  %v722_v36 = vmul.f32 %v6347_v59, %v6573_v28  ;;  %v975_v59 = vmul.f32 %v973_v35, %v6325_v50 }
 0x28c   :  { %v6558_v15 = vpop.permute.xlu1 %3472 }
 0x28d   :  { %8943 = vst [vmem:[#allocation51_spill] sm:$0xff] %v6558_v15  ;;  %v834_v15 = vmul.f32 %v6450_v8, %v6325_v50  ;;  %v857_v8 = vmul.f32 %v6474_v11, %v6560_v25 }
 0x290   :  { %v6562_v34 = vpop.permute.xlu1 %3499 }
 0x291   :  { %8944 = vst [vmem:[#allocation52_spill] sm:$0xff] %v6562_v34  ;;  %v881_v34 = vmul.f32 %v879_v9, %v6325_v50 }
 0x294   :  { %v6564_v51 = vpop.permute.xlu1 %3508 }
 0x295   :  { %8945 = vst [vmem:[#allocation53_spill] sm:$0xff] %v6564_v51  ;;  %v810_v51 = vmul.f32 %v6434_v57, %v6560_v25  ;;  %v816_v57 = vmul.f32 %v6440_v10, %v6573_v28 }
 0x298   :  { %v6582_v52 = vpop.permute.xlu1 %630 }
 0x299   :  { %8946 = vst [vmem:[#allocation54_spill] sm:$0xff] %v6582_v52  ;;  %v792_v9 = vmul.f32 %v6415_v29, %v6582_v52  ;;  %v698_v16 = vmul.f32 %v6401_v33, %v6582_v52  ;;  %v886_v3 = vmul.f32 %v6486_v7, %v6582_v52  ;;  %v745_v11 = vmul.f32 %v6372_v43, %v6582_v52 }
 0x29a   :  { %v980_v62 = vmul.f32 %v978_v54, %v6582_v52  ;;  %v769_v29 = vmul.f32 %v6438_v18, %v6573_v28  ;;  %v839_v10 = vmul.f32 %v6468_v14, %v6582_v52  ;;  %v6610_v33 = vmul.f32 %v6470_v2, %v6573_v28 }
 0x29b   :  { %v933_v7 = vmul.f32 %v931_v48, %v6582_v52  ;;  %v793_v22 = vadd.f32 %v792_v9, %v787_v19  ;;  %v699_v43 = vadd.f32 %v698_v16, %v693_v53  ;;  %v887_v63 = vadd.f32 %v886_v3, %v881_v34 }
 0x29c   :  { %v6614_v58 = vpop.permute.xlu1 %639  ;;  %v746_v48 = vadd.f32 %v745_v11, %v740_v49  ;;  %v981_v52 = vadd.f32 %v980_v62, %v975_v59  ;;  %v840_v53 = vadd.f32 %v839_v10, %v834_v15 }
 0x29d   :  { %v798_v54 = vmul.f32 %v6423_v31, %v6614_v58  ;;  %v704_v18 = vmul.f32 %v6333_v41, %v6614_v58  ;;  %v892_v14 = vmul.f32 %v6488_v60, %v6614_v58  ;;  %v751_v2 = vmul.f32 %v6430_v26, %v6614_v58  ;;  %v6629_v41 = vpop.permute.xlu0 %675 }
 0x29e   :  { %v986_v35 = vmul.f32 %v984_v24, %v6614_v58  ;;  %v845_v19 = vmul.f32 %v6458_v6, %v6614_v58  ;;  %v934_v9 = vadd.f32 %v933_v7, %v928_v30  ;;  %v939_v31 = vmul.f32 %v6506_v45, %v6614_v58 }
 0x29f   :  { %v799_v34 = vadd.f32 %v798_v54, %v793_v22  ;;  %v705_v60 = vadd.f32 %v704_v18, %v699_v43  ;;  %v893_v3 = vadd.f32 %v892_v14, %v887_v63  ;;  %v752_v26 = vadd.f32 %v751_v2, %v746_v48 }
 0x2a0   :  { %v6631_v16 = vpop.permute.xlu1 %648  ;;  %v987_v49 = vadd.f32 %v986_v35, %v981_v52  ;;  %v846_v30 = vadd.f32 %v845_v19, %v840_v53 }
 0x2a1   :  { %v804_v62 = vmul.f32 %v6454_v20, %v6631_v16  ;;  %v710_v6 = vmul.f32 %v6341_v37, %v6631_v16  ;;  %v898_v15 = vmul.f32 %v6492_v5, %v6631_v16  ;;  %v757_v22 = vmul.f32 %v6380_v56, %v6631_v16  ;;  %v6649_v18 = vpop.permute.xlu0 %684 }
 0x2a2   :  { %v992_v24 = vmul.f32 %v6520_v47, %v6631_v16  ;;  %v851_v63 = vmul.f32 %v6464_v4, %v6631_v16  ;;  %v945_v45 = vmul.f32 %v6500_v38, %v6631_v16  ;;  %v822_v5 = vmul.f32 %v6460_v17, %v6629_v41 }
 0x2a3   :  { %v805_v20 = vadd.f32 %v804_v62, %v799_v34  ;;  %v711_v52 = vadd.f32 %v710_v6, %v705_v60  ;;  %v899_v11 = vadd.f32 %v898_v15, %v893_v3  ;;  %v758_v37 = vadd.f32 %v757_v22, %v752_v26  ;;  %v8950_v62 = vld [vmem:[#allocation28_spill] sm:$0xff]  ;;  %v8951_v15 = vld [vmem:[#allocation30_spill] sm:$0xff] }
 0x2a4   :  { %v993_v10 = vadd.f32 %v992_v24, %v987_v49  ;;  %v852_v7 = vadd.f32 %v851_v63, %v846_v30  ;;  %v940_v56 = vadd.f32 %v939_v31, %v934_v9  ;;  %v728_v4 = vmul.f32 %v6356_v32, %v6629_v41  ;;  %v8948_v9 = vld [vmem:[#allocation27_spill] sm:$0xff] }
 0x2a5   :  { %v811_v59 = vadd.f32 %v810_v51, %v805_v20  ;;  %v717_v43 = vadd.f32 %v716_v46, %v711_v52  ;;  %v905_v47 = vadd.f32 %v904_v39, %v899_v11  ;;  %v764_v54 = vadd.f32 %v763_v61, %v758_v37  ;;  %v6691_v11 = vpop.permute.xlu0 %1081 }
 0x2a6   :  { %v999_v38 = vadd.f32 %v998_v44, %v993_v10  ;;  %v858_v14 = vadd.f32 %v857_v8, %v852_v7  ;;  %v946_v2 = vadd.f32 %v945_v45, %v940_v56  ;;  %v951_v17 = vmul.f32 %v6508_v13, %v6560_v25  ;;  %v8952_v45 = vld [vmem:[#allocation32_spill] sm:$0xff] }
 0x2a7   :  { %v817_v48 = vadd.f32 %v816_v57, %v811_v59  ;;  %v723_v35 = vadd.f32 %v722_v36, %v717_v43  ;;  %v911_v19 = vadd.f32 %v910_v27, %v905_v47  ;;  %v770_v34 = vadd.f32 %v769_v29, %v764_v54  ;;  %v8955_v47 = vld [vmem:[#allocation24_spill] sm:$0xff]  ;;  %v8956_v54 = vld [vmem:[#allocation54_spill] sm:$0xff] }
 0x2a8   :  { %v1004_v51 = vmul.f32 %v6524_v55, %v6573_v28  ;;  %v916_v46 = vmul.f32 %v6498_v1, %v6629_v41  ;;  %v775_v39 = vmul.f32 %v6397_v40, %v6629_v41  ;;  %v828_v61 = vmul.f32 %v6444_v23, %v6649_v18 }
 0x2a9   :  { %v823_v32 = vadd.f32 %v822_v5, %v817_v48  ;;  %v729_v44 = vadd.f32 %v728_v4, %v723_v35  ;;  %v734_v8 = vmul.f32 %v6421_v12, %v6649_v18  ;;  %v864_v13 = vadd.f32 %v6610_v33, %v858_v14  ;;  %v8947_v12 = vld [vmem:[#allocation29_spill] sm:$0xff]  ;;  %v6693_v37 = vpop.permute.xlu0 %1090  ;;  %v8958_v14 = vld [vmem:[#allocation23_spill] sm:$0xff] }
 0x2aa   :  { %v1005_v57 = vadd.f32 %v1004_v51, %v999_v38  ;;  %v952_v36 = vadd.f32 %v951_v17, %v946_v2  ;;  %v917_v29 = vadd.f32 %v916_v46, %v911_v19  ;;  %v776_v53 = vadd.f32 %v775_v39, %v770_v34  ;;  %v8959_v48 = vld [vmem:[#allocation15_spill] sm:$0xff]  ;;  %v8960_v19 = vld [vmem:[#allocation26_spill] sm:$0xff] }
 0x2ab   :  { %v829_v27 = vadd.f32 %v828_v61, %v823_v32  ;;  %v735_v55 = vadd.f32 %v734_v8, %v729_v44  ;;  %v957_v1 = vmul.f32 %v6510_v21, %v6573_v28  ;;  %v869_v40 = vmul.f32 %v6476_v0, %v6629_v41  ;;  %v8962_v32 = vld [vmem:[#allocation17_spill] sm:$0xff]  ;;  %v6721_v44 = vpop.permute.xlu1 %1072 }
 0x2ac   :  { %v1010_v23 = vmul.f32 %v6528_v42, %v6629_v41  ;;  %v922_v33 = vmul.f32 %v8947_v12, %v6649_v18  ;;  %v781_v31 = vmul.f32 %v8948_v9, %v6649_v18  ;;  %v8949_v42 = vld [vmem:[#allocation31_spill] sm:$0xff]  ;;  %v875_v6 = vmul.f32 %v8950_v62, %v6649_v18 }
 0x2ad   :  { %1027 = vrot.lane.b32.xlu0 %v829_v27, %s6045_s10  ;;  %1019 = vrot.lane.b32.xlu1 %v735_v55, %s6046_s11  ;;  %v958_v60 = vadd.f32 %v957_v1, %v952_v36  ;;  %v870_v0 = vadd.f32 %v869_v40, %v864_v13  ;;  %v1016_v49 = vmul.f32 %v8949_v42, %v6649_v18  ;;  %v6695_v5 = vpop.permute.xlu0 %1099  ;;  %v8969_v42 = vmov 9  }
 0x2ae   :  { %v923_v21 = vadd.f32 %v922_v33, %v917_v29  ;;  %v782_v3 = vadd.f32 %v781_v31, %v776_v53  ;;  %v1011_v26 = vadd.f32 %v1010_v23, %v1005_v57  ;;  %v963_v22 = vmul.f32 %v8951_v15, %v6629_v41  ;;  %v8968_v53 = vld [vmem:[#allocation21_spill] sm:$0xff] }
 0x2af   :  { %v876_v30 = vadd.f32 %v875_v6, %v870_v0  ;;  %v969_v20 = vmul.f32 %v8952_v45, %v6649_v18  ;;  %v633_v4 = vmul.f32 %v8956_v54, %v8955_v47  ;;  %v625_v2 = vmul.f32 %v6325_v50, %v8958_v14  ;;  %v8964_v50 = vld [vmem:[#allocation18_spill] sm:$0xff]  ;;  %v6727_v36 = vpop.permute.xlu1 %1508 }
 0x2b0   :  { %v1017_v24 = vadd.f32 %v1016_v49, %v1011_v26  ;;  %v964_v63 = vadd.f32 %v963_v22, %v958_v60  ;;  %v642_v35 = vmul.f32 %v6614_v58, %v8959_v48  ;;  %v651_v34 = vmul.f32 %v6631_v16, %v8960_v19  ;;  %8965 = vst [vmem:[#allocation32_spill] sm:$0xff] %v6727_v36  ;;  %v8966_v16 = vld [vmem:[#allocation19_spill] sm:$0xff] }
 0x2b1   :  { %1035 = vrot.lane.b32.xlu0 %v923_v21, %s6047_s12  ;;  %1023 = vrot.lane.b32.xlu1 %v782_v3, %s6048_s13  ;;  %v6697_v10 = vpop.permute.xlu0 %1108  ;;  %v634_v17 = vadd.f32 %v633_v4, %v625_v2  ;;  %v660_v61 = vmul.f32 %v6560_v25, %v8962_v32  ;;  %v669_v13 = vmul.f32 %v6573_v28, %v8964_v50  ;;  %v8970_v49 = vmov 2  }
 0x2b2   :  { %v970_v52 = vadd.f32 %v969_v20, %v964_v63  ;;  %v678_v27 = vmul.f32 %v6629_v41, %v8966_v16  ;;  %v687_v25 = vmul.f32 %v6649_v18, %v8968_v53  ;;  %v8971_v62 = vmov 12  }
 0x2b3   :  { %v643_v51 = vadd.f32 %v642_v35, %v634_v17  ;;  %v8972_v6 = vmov 3   ;;  %v8973_v15 = vmov 15   ;;  %v8974_v22 = vmov 4  }
 0x2b4   :  { %v8977_v63 = vmov 21   ;;  %v8978_v45 = vmov 6   ;;  %v8979_v20 = vmov 24   ;;  %v8981_v47 = vmov 27  }
 0x2b5   :  { %1043 = vrot.lane.b32.xlu0 %v1017_v24, %s6049_s14  ;;  %1031 = vrot.lane.b32.xlu1 %v876_v30, %s6050_s15  ;;  %v6699_v7 = vpop.permute.xlu0 %1117  ;;  %v652_v39 = vadd.f32 %v651_v34, %v643_v51  ;;  %v8975_v24 = vmov 18   ;;  %v8976_v30 = vmov 5   ;;  %v8982_v54 = vmov 8  }
 0x2b6   :  { %v8983_v4 = vmov 30   ;;  %v8984_v14 = vmov 10   ;;  %v8985_v2 = vmov 33   ;;  %v8986_v48 = vmov 11  }
 0x2b7   :  { %v661_v8 = vadd.f32 %v660_v61, %v652_v39  ;;  %v8987_v35 = vmov 36   ;;  %v8988_v19 = vmov 13   ;;  %v8989_v34 = vmov 39  }
 0x2b8   :  { %v8990_v17 = vmov 14   ;;  %v8991_v51 = vmov 42   ;;  %v8992_v39 = vmov 16   ;;  %v8993_v32 = vmov 45  }
 0x2b9   :  { %1039 = vrot.lane.b32.xlu1 %v970_v52, %s6051_s16  ;;  %v6701_v56 = vpop.permute.xlu0 %1126  ;;  %v670_v58 = vadd.f32 %v669_v13, %v661_v8  ;;  %v8980_v52 = vmov 7   ;;  %v8994_v61 = vmov 17   ;;  %v8995_v8 = vmov 48  }
 0x2ba   :  { %v8996_v50 = vmov 19   ;;  %v8997_v13 = vmov 51   ;;  %v8999_v16 = vmov 54   ;;  %v9002_v53 = vmov 23  }
 0x2bb   :  { %v679_v29 = vadd.f32 %v678_v27, %v670_v58  ;;  %v8998_v58 = vmov 20   ;;  %v9000_v27 = vmov 22   ;;  %v9018_v36 = vmov 43  }
 0x2bd   :  { %v6703_v59 = vpop.permute.xlu0 %1517  ;;  %v688_v23 = vadd.f32 %v687_v25, %v679_v29  ;;  %v9001_v29 = vmov 57   ;;  %v9003_v25 = vmov 60  }
 0x2be   :  { %8953 = vst [vmem:[#allocation29_spill] sm:$0xff] %v6703_v59 }
 0x2c1   :  { %v6705_v43 = vpop.permute.xlu0 %1526 }
 0x2c2   :  { %8954 = vst [vmem:[#allocation27_spill] sm:$0xff] %v6705_v43  ;;  %v9017_v43 = vmov 41  }
 0x2c5   :  { %v6709_v38 = vpop.permute.xlu0 %1535 }
 0x2c6   :  { %8957 = vst [vmem:[#allocation31_spill] sm:$0xff] %v6709_v38 }
 0x2c9   :  { %v6717_v46 = vpop.permute.xlu0 %1544 }
 0x2ca   :  { %8961 = vst [vmem:[#allocation28_spill] sm:$0xff] %v6717_v46  ;;  %v9016_v46 = vmov 40  }
 0x2cd   :  { %v6723_v57 = vpop.permute.xlu0 %1553 }
 0x2ce   :  { %8963 = vst [vmem:[#allocation30_spill] sm:$0xff] %v6723_v57 }
 0x2d1   :  { %v6731_v55 = vpop.permute.xlu0 %1562 }
 0x2d2   :  { %8967 = vst [vmem:[#allocation24_spill] sm:$0xff] %v6731_v55  ;;  %v9015_v55 = vmov 38  }
 0x31f   :  { %v1020_v1 = vpop.permute.xlu1 %1019  ;;  %v1028_v40 = vpop.permute.xlu0 %1027 }
 0x320   :  { %v1047_v12 = vsel %vm1046_vm4, %v688_v23, %v1020_v1  ;;  %v9004_v1 = vmov 25   ;;  %v9006_v23 = vmov 26  }
 0x323   :  { %v1024_v28 = vpop.permute.xlu1 %1023  ;;  %v1036_v9 = vpop.permute.xlu0 %1035 }
 0x324   :  { %v1049_v33 = vsel %vm1048_vm5, %v1047_v12, %v1024_v28  ;;  %v9007_v12 = vmov 28   ;;  %v9008_v28 = vmov 1  }
 0x325   :  { %v1051_v41 = vsel %vm1050_vm6, %v1049_v33, %v1028_v40  ;;  %v9005_v40 = vmov 63   ;;  %v9009_v33 = vmov 29  }
 0x327   :  { %v1032_v31 = vpop.permute.xlu1 %1031  ;;  %v1044_v3 = vpop.permute.xlu0 %1043 }
 0x328   :  { %v1052_v60 = vsel %vm27_vm0, %v1051_v41, %v1032_v31  ;;  %v9011_v31 = vmov 32   ;;  %v9012_v41 = vmov 34  }
 0x329   :  { %v1054_v21 = vsel %vm1053_vm7, %v1052_v60, %v1036_v9  ;;  %v9010_v9 = vmov 31  }
 0x32b   :  { %v1040_v18 = vpop.permute.xlu1 %1039 }
 0x32c   :  { %v1056_v26 = vsel %vm1055_vm8, %v1054_v21, %v1040_v18  ;;  %v9013_v18 = vmov 35  }
 0x32d   :  { %v6742_v0 = vsel %vm1057_vm9, %v1056_v26, %v1044_v3  ;;  %v9014_v3 = vmov 37  }
 0x32e   :  { %1069 = vperm.xlu0 %5559, %v6742_v0   ;;  %1062 = vperm.xlu1 %5558, %v6742_v0   ;;  %1059 = vst.msk [vmem:[#allocation2 + $0x2] sm:$0x3] %vm616_vm3, %v6742_v0 }
 0x332   :  { %5567 = vset.pattern.permute.xlu0 %v8969_v42  ;;  %5560 = vset.pattern.permute.xlu1 %v8970_v49 }
 0x333   :  { %1137 = vperm.xlu0 %5567, %v6742_v0   ;;  %1078 = vperm.xlu1 %5560, %v6742_v0  }
 0x337   :  { %5570 = vset.pattern.permute.xlu0 %v8971_v62  ;;  %5561 = vset.pattern.permute.xlu1 %v8972_v6 }
 0x338   :  { %1155 = vperm.xlu0 %5570, %v6742_v0   ;;  %1087 = vperm.xlu1 %5561, %v6742_v0  }
 0x33c   :  { %5573 = vset.pattern.permute.xlu0 %v8973_v15  ;;  %5562 = vset.pattern.permute.xlu1 %v8974_v22 }
 0x33d   :  { %1173 = vperm.xlu0 %5573, %v6742_v0   ;;  %1096 = vperm.xlu1 %5562, %v6742_v0  }
 0x341   :  { %5576 = vset.pattern.permute.xlu0 %v8975_v24  ;;  %5563 = vset.pattern.permute.xlu1 %v8976_v30 }
 0x342   :  { %1190 = vperm.xlu0 %5576, %v6742_v0   ;;  %1105 = vperm.xlu1 %5563, %v6742_v0  }
 0x346   :  { %5579 = vset.pattern.permute.xlu0 %v8977_v63  ;;  %5564 = vset.pattern.permute.xlu1 %v8978_v45 }
 0x347   :  { %1208 = vperm.xlu0 %5579, %v6742_v0   ;;  %1114 = vperm.xlu1 %5564, %v6742_v0  }
 0x34b   :  { %5582 = vset.pattern.permute.xlu0 %v8979_v20  ;;  %5565 = vset.pattern.permute.xlu1 %v8980_v52 }
 0x34c   :  { %1226 = vperm.xlu0 %5582, %v6742_v0   ;;  %1123 = vperm.xlu1 %5565, %v6742_v0  }
 0x350   :  { %5585 = vset.pattern.permute.xlu0 %v8981_v47  ;;  %5566 = vset.pattern.permute.xlu1 %v8982_v54 }
 0x351   :  { %1243 = vperm.xlu0 %5585, %v6742_v0   ;;  %1132 = vperm.xlu1 %5566, %v6742_v0  }
 0x355   :  { %5588 = vset.pattern.permute.xlu0 %v8983_v4  ;;  %5568 = vset.pattern.permute.xlu1 %v8984_v14 }
 0x356   :  { %1261 = vperm.xlu0 %5588, %v6742_v0   ;;  %1143 = vperm.xlu1 %5568, %v6742_v0  }
 0x35a   :  { %5591 = vset.pattern.permute.xlu0 %v8985_v2  ;;  %5569 = vset.pattern.permute.xlu1 %v8986_v48 }
 0x35b   :  { %1278 = vperm.xlu0 %5591, %v6742_v0   ;;  %1149 = vperm.xlu1 %5569, %v6742_v0  }
 0x35f   :  { %5594 = vset.pattern.permute.xlu0 %v8987_v35  ;;  %5571 = vset.pattern.permute.xlu1 %v8988_v19 }
 0x360   :  { %1296 = vperm.xlu0 %5594, %v6742_v0   ;;  %1161 = vperm.xlu1 %5571, %v6742_v0  }
 0x364   :  { %5597 = vset.pattern.permute.xlu0 %v8989_v34  ;;  %5572 = vset.pattern.permute.xlu1 %v8990_v17 }
 0x365   :  { %1314 = vperm.xlu0 %5597, %v6742_v0   ;;  %1167 = vperm.xlu1 %5572, %v6742_v0  }
 0x369   :  { %5600 = vset.pattern.permute.xlu0 %v8991_v51  ;;  %5574 = vset.pattern.permute.xlu1 %v8992_v39 }
 0x36a   :  { %1331 = vperm.xlu0 %5600, %v6742_v0   ;;  %1179 = vperm.xlu1 %5574, %v6742_v0  }
 0x36e   :  { %5603 = vset.pattern.permute.xlu0 %v8993_v32  ;;  %5575 = vset.pattern.permute.xlu1 %v8994_v61 }
 0x36f   :  { %1349 = vperm.xlu0 %5603, %v6742_v0   ;;  %1184 = vperm.xlu1 %5575, %v6742_v0  }
 0x373   :  { %5606 = vset.pattern.permute.xlu0 %v8995_v8  ;;  %5577 = vset.pattern.permute.xlu1 %v8996_v50  ;;  %v9029_v8 = vmov 58  }
 0x374   :  { %1367 = vperm.xlu0 %5606, %v6742_v0   ;;  %1196 = vperm.xlu1 %5577, %v6742_v0  }
 0x378   :  { %5609 = vset.pattern.permute.xlu0 %v8997_v13  ;;  %5578 = vset.pattern.permute.xlu1 %v8998_v58 }
 0x379   :  { %1384 = vperm.xlu0 %5609, %v6742_v0   ;;  %1202 = vperm.xlu1 %5578, %v6742_v0  }
 0x37d   :  { %5612 = vset.pattern.permute.xlu0 %v8999_v16  ;;  %5580 = vset.pattern.permute.xlu1 %v9000_v27 }
 0x37e   :  { %1402 = vperm.xlu0 %5612, %v6742_v0   ;;  %1214 = vperm.xlu1 %5580, %v6742_v0  }
 0x382   :  { %5615 = vset.pattern.permute.xlu0 %v9001_v29  ;;  %5581 = vset.pattern.permute.xlu1 %v9002_v53  ;;  %v9027_v53 = vmov 56   ;;  %v9028_v29 = vld [vmem:[#allocation22_spill] sm:$0xff] }
 0x383   :  { %1419 = vperm.xlu0 %5615, %v6742_v0   ;;  %1220 = vperm.xlu1 %5581, %v6742_v0  }
 0x387   :  { %5618 = vset.pattern.permute.xlu0 %v9003_v25  ;;  %5583 = vset.pattern.permute.xlu1 %v9004_v1  ;;  %v9026_v1 = vmov 55  }
 0x388   :  { %1437 = vperm.xlu0 %5618, %v6742_v0   ;;  %1231 = vperm.xlu1 %5583, %v6742_v0  }
 0x38c   :  { %5621 = vset.pattern.permute.xlu0 %v9005_v40  ;;  %5584 = vset.pattern.permute.xlu1 %v9006_v23  ;;  %v9025_v23 = vmov 53  }
 0x38d   :  { %1455 = vperm.xlu0 %5621, %v6742_v0   ;;  %1237 = vperm.xlu1 %5584, %v6742_v0  }
 0x391   :  { %5586 = vset.pattern.permute.xlu1 %v9007_v12  ;;  %5623 = vset.pattern.permute.xlu0 %v9008_v28  ;;  %v9024_v28 = vmov 52  }
 0x392   :  { %1249 = vperm.xlu1 %5586, %v6742_v0  }
 0x396   :  { %5587 = vset.pattern.permute.xlu1 %v9009_v33  ;;  %v9023_v33 = vmov 50  }
 0x397   :  { %1255 = vperm.xlu1 %5587, %v6742_v0  }
 0x39b   :  { %5589 = vset.pattern.permute.xlu1 %v9010_v9 }
 0x39c   :  { %1267 = vperm.xlu1 %5589, %v6742_v0  }
 0x3a0   :  { %5590 = vset.pattern.permute.xlu1 %v9011_v31 }
 0x3a1   :  { %1273 = vperm.xlu1 %5590, %v6742_v0  }
 0x3a5   :  { %5592 = vset.pattern.permute.xlu1 %v9012_v41  ;;  %v9021_v41 = vmov 47  }
 0x3a6   :  { %1284 = vperm.xlu1 %5592, %v6742_v0  }
 0x3a9   :  { %v6835_v60 = vpop.permute.xlu1 %1062 }
 0x3aa   :  { %5593 = vset.pattern.permute.xlu1 %v9013_v18  ;;  %v9020_v18 = vmov 46  }
 0x3ab   :  { %1290 = vperm.xlu1 %5593, %v6742_v0  }
 0x3ae   :  { %v6839_v21 = vpop.permute.xlu1 %1078 }
 0x3af   :  { %5595 = vset.pattern.permute.xlu1 %v9014_v3  ;;  %v9019_v3 = vmov 44  }
 0x3b0   :  { %1302 = vperm.xlu1 %5595, %v6742_v0  }
 0x3b3   :  { %v6843_v26 = vpop.permute.xlu1 %1087 }
 0x3b4   :  { %5596 = vset.pattern.permute.xlu1 %v9015_v55 }
 0x3b5   :  { %1308 = vperm.xlu1 %5596, %v6742_v0  }
 0x3b8   :  { %v6847_v57 = vpop.permute.xlu1 %1096 }
 0x3b9   :  { %5598 = vset.pattern.permute.xlu1 %v9016_v46 }
 0x3ba   :  { %1320 = vperm.xlu1 %5598, %v6742_v0  }
 0x3bd   :  { %v6851_v38 = vpop.permute.xlu1 %1105 }
 0x3be   :  { %5599 = vset.pattern.permute.xlu1 %v9017_v43 }
 0x3bf   :  { %1325 = vperm.xlu1 %5599, %v6742_v0  }
 0x3c2   :  { %v6855_v59 = vpop.permute.xlu1 %1114 }
 0x3c3   :  { %5601 = vset.pattern.permute.xlu1 %v9018_v36  ;;  %v9022_v36 = vmov 49  }
 0x3c4   :  { %1337 = vperm.xlu1 %5601, %v6742_v0  }
 0x3c7   :  { %v6859_v55 = vpop.permute.xlu1 %1123 }
 0x3c8   :  { %5602 = vset.pattern.permute.xlu1 %v9019_v3  ;;  %v6871_v3 = vpop.permute.xlu0 %1069 }
 0x3c9   :  { %1343 = vperm.xlu1 %5602, %v6742_v0  }
 0x3cc   :  { %v1133_v46 = vpop.permute.xlu1 %1132 }
 0x3cd   :  { %5604 = vset.pattern.permute.xlu1 %v9020_v18 }
 0x3ce   :  { %1355 = vperm.xlu1 %5604, %v6742_v0  }
 0x3d1   :  { %v1144_v43 = vpop.permute.xlu1 %1143 }
 0x3d2   :  { %5605 = vset.pattern.permute.xlu1 %v9021_v41  ;;  %v1138_v41 = vpop.permute.xlu0 %1137 }
 0x3d3   :  { %1361 = vperm.xlu1 %5605, %v6742_v0   ;;  %v1140_v27 = vmul.f32 %v1138_v41, %v6721_v44 }
 0x3d6   :  { %v1150_v31 = vpop.permute.xlu1 %1149 }
 0x3d7   :  { %5607 = vset.pattern.permute.xlu1 %v9022_v36  ;;  %v1156_v36 = vpop.permute.xlu0 %1155 }
 0x3d8   :  { %1372 = vperm.xlu1 %5607, %v6742_v0  }
 0x3db   :  { %v1162_v9 = vpop.permute.xlu1 %1161  ;;  %v1174_v25 = vpop.permute.xlu0 %1173 }
 0x3dc   :  { %5608 = vset.pattern.permute.xlu1 %v9023_v33 }
 0x3dd   :  { %1378 = vperm.xlu1 %5608, %v6742_v0  }
 0x3df   :  { %v1191_v61 = vpop.permute.xlu0 %1190 }
 0x3e0   :  { %v1168_v18 = vpop.permute.xlu1 %1167  ;;  %v1193_v32 = vmul.f32 %v1191_v61, %v6691_v11 }
 0x3e1   :  { %5610 = vset.pattern.permute.xlu1 %v9024_v28  ;;  %v1135_v28 = vmul.f32 %v1133_v46, %v9028_v29  ;;  %v1170_v61 = vmul.f32 %v1168_v18, %v6699_v7 }
 0x3e2   :  { %1390 = vperm.xlu1 %5610, %v6742_v0  }
 0x3e3   :  { %v1141_v13 = vadd.f32 %v1140_v27, %v1135_v28 }
 0x3e5   :  { %v1180_v12 = vpop.permute.xlu1 %1179 }
 0x3e6   :  { %5611 = vset.pattern.permute.xlu1 %v9025_v23  ;;  %v1146_v23 = vmul.f32 %v1144_v43, %v6691_v11  ;;  %v1182_v50 = vmul.f32 %v1180_v12, %v9028_v29  ;;  %v9030_v43 = vmov 59  }
 0x3e7   :  { %1396 = vperm.xlu1 %5611, %v6742_v0  }
 0x3e8   :  { %v1147_v46 = vadd.f32 %v1146_v23, %v1141_v13  ;;  %v1209_v13 = vpop.permute.xlu0 %1208 }
 0x3ea   :  { %v1185_v40 = vpop.permute.xlu1 %1184 }
 0x3eb   :  { %5613 = vset.pattern.permute.xlu1 %v9026_v1  ;;  %v1187_v16 = vmul.f32 %v1185_v40, %v6721_v44  ;;  %v1152_v1 = vmul.f32 %v1150_v31, %v6693_v37  ;;  %v1158_v40 = vmul.f32 %v1156_v36, %v6695_v5  ;;  %v1164_v31 = vmul.f32 %v1162_v9, %v6697_v10 }
 0x3ec   :  { %1408 = vperm.xlu1 %5613, %v6742_v0  }
 0x3ed   :  { %v1153_v41 = vadd.f32 %v1152_v1, %v1147_v46  ;;  %v9031_v1 = vmov 61   ;;  %v1227_v46 = vpop.permute.xlu0 %1226 }
 0x3ef   :  { %v1197_v33 = vpop.permute.xlu1 %1196  ;;  %v1159_v12 = vadd.f32 %v1158_v40, %v1153_v41  ;;  %v9032_v41 = vmov 62  }
 0x3f0   :  { %5614 = vset.pattern.permute.xlu1 %v9027_v53  ;;  %v1188_v53 = vadd.f32 %v1187_v16, %v1182_v50  ;;  %v1199_v28 = vmul.f32 %v1197_v33, %v6693_v37 }
 0x3f1   :  { %1414 = vperm.xlu1 %5614, %v6742_v0   ;;  %v1165_v36 = vadd.f32 %v1164_v31, %v1159_v12 }
 0x3f2   :  { %v1194_v27 = vadd.f32 %v1193_v32, %v1188_v53  ;;  %v1211_v53 = vmul.f32 %v1209_v13, %v6697_v10 }
 0x3f3   :  { %v1171_v23 = vadd.f32 %v1170_v61, %v1165_v36 }
 0x3f4   :  { %v1203_v58 = vpop.permute.xlu1 %1202  ;;  %v1200_v16 = vadd.f32 %v1199_v28, %v1194_v27  ;;  %v1229_v27 = vmul.f32 %v1227_v46, %v9028_v29 }
 0x3f5   :  { %5616 = vset.pattern.permute.xlu1 %v9029_v8  ;;  %v1205_v8 = vmul.f32 %v1203_v58, %v6695_v5  ;;  %v1176_v58 = vmul.f32 %v1174_v25, %v6701_v56  ;;  %v1244_v25 = vpop.permute.xlu0 %1243 }
 0x3f6   :  { %1425 = vperm.xlu1 %5616, %v6742_v0  }
 0x3f7   :  { %v1206_v32 = vadd.f32 %v1205_v8, %v1200_v16  ;;  %v1177_v28 = vadd.f32 %v1176_v58, %v1171_v23  ;;  %v9033_v16 = vmov 0  }
 0x3f9   :  { %v1215_v39 = vpop.permute.xlu1 %1214  ;;  %v1212_v9 = vadd.f32 %v1211_v53, %v1206_v32  ;;  %v1246_v32 = vmul.f32 %v1244_v25, %v6693_v37  ;;  %v1262_v23 = vpop.permute.xlu0 %1261 }
 0x3fa   :  { %5617 = vset.pattern.permute.xlu1 %v9030_v43  ;;  %v1217_v40 = vmul.f32 %v1215_v39, %v6699_v7 }
 0x3fb   :  { %1431 = vperm.xlu1 %5617, %v6742_v0  }
 0x3fc   :  { %v1218_v31 = vadd.f32 %v1217_v40, %v1212_v9  ;;  %v1264_v9 = vmul.f32 %v1262_v23, %v6699_v7 }
 0x3fe   :  { %v1221_v50 = vpop.permute.xlu1 %1220 }
 0x3ff   :  { %5619 = vset.pattern.permute.xlu1 %v9031_v1  ;;  %v1223_v8 = vmul.f32 %v1221_v50, %v6701_v56 }
 0x400   :  { %1443 = vperm.xlu1 %5619, %v6742_v0  }
 0x401   :  { %v1224_v39 = vadd.f32 %v1223_v8, %v1218_v31  ;;  %v1279_v31 = vpop.permute.xlu0 %1278 }
 0x402   :  { %v1281_v25 = vmul.f32 %v1279_v31, %v6721_v44 }
 0x403   :  { %v1232_v33 = vpop.permute.xlu1 %1231 }
 0x404   :  { %5620 = vset.pattern.permute.xlu1 %v9032_v41  ;;  %v1234_v18 = vmul.f32 %v1232_v33, %v6721_v44 }
 0x405   :  { %1449 = vperm.xlu1 %5620, %v6742_v0  }
 0x406   :  { %v1235_v13 = vadd.f32 %v1234_v18, %v1229_v27 }
 0x408   :  { %v1238_v12 = vpop.permute.xlu1 %1237 }
 0x409   :  { %v1240_v61 = vmul.f32 %v1238_v12, %v6691_v11  ;;  %1461 = vrot.lane.b32.xlu1 %v1177_v28, %s6046_s11 }
 0x40a   :  { %5622 = vset.pattern.permute.xlu1 %v9033_v16 }
 0x40b   :  { %v1241_v36 = vadd.f32 %v1240_v61, %v1235_v13 }
 0x40d   :  { %1465 = vrot.lane.b32.xlu1 %v1224_v39, %s6048_s13  ;;  %v1250_v0 = vpop.permute.xlu1 %1249  ;;  %v1247_v53 = vadd.f32 %v1246_v32, %v1241_v36 }
 0x40e   :  { %v1252_v50 = vmul.f32 %v1250_v0, %v6695_v5 }
 0x410   :  { %v1253_v46 = vadd.f32 %v1252_v50, %v1247_v53  ;;  %v1297_v50 = vpop.permute.xlu0 %1296 }
 0x412   :  { %v1256_v33 = vpop.permute.xlu1 %1255 }
 0x413   :  { %v1258_v58 = vmul.f32 %v1256_v33, %v6697_v10  ;;  %v1299_v33 = vmul.f32 %v1297_v50, %v6695_v5 }
 0x415   :  { %v1259_v40 = vadd.f32 %v1258_v58, %v1253_v46 }
 0x417   :  { %v1265_v18 = vadd.f32 %v1264_v9, %v1259_v40  ;;  %v1268_v27 = vpop.permute.xlu1 %1267  ;;  %v1315_v40 = vpop.permute.xlu0 %1314 }
 0x418   :  { %v1270_v28 = vmul.f32 %v1268_v27, %v6701_v56 }
 0x41a   :  { %v1271_v8 = vadd.f32 %v1270_v28, %v1265_v18 }
 0x41c   :  { %1469 = vrot.lane.b32.xlu0 %v1271_v8, %s6045_s10  ;;  %v1274_v12 = vpop.permute.xlu1 %1273  ;;  %v1317_v8 = vmul.f32 %v1315_v40, %v6701_v56 }
 0x41d   :  { %v1276_v13 = vmul.f32 %v1274_v12, %v9028_v29 }
 0x41f   :  { %v1282_v36 = vadd.f32 %v1281_v25, %v1276_v13 }
 0x421   :  { %v1285_v61 = vpop.permute.xlu1 %1284 }
 0x422   :  { %v1287_v39 = vmul.f32 %v1285_v61, %v6691_v11 }
 0x424   :  { %v1288_v0 = vadd.f32 %v1287_v39, %v1282_v36  ;;  %v1332_v36 = vpop.permute.xlu0 %1331 }
 0x426   :  { %v1291_v32 = vpop.permute.xlu1 %1290 }
 0x427   :  { %v1293_v53 = vmul.f32 %v1291_v32, %v6693_v37 }
 0x429   :  { %v1294_v23 = vadd.f32 %v1293_v53, %v1288_v0  ;;  %v1334_v0 = vmul.f32 %v1332_v36, %v6691_v11 }
 0x42b   :  { %v1303_v46 = vpop.permute.xlu1 %1302  ;;  %v1300_v58 = vadd.f32 %v1299_v33, %v1294_v23 }
 0x42c   :  { %v1305_v9 = vmul.f32 %v1303_v46, %v6697_v10 }
 0x42e   :  { %v1306_v27 = vadd.f32 %v1305_v9, %v1300_v58  ;;  %v1350_v9 = vpop.permute.xlu0 %1349 }
 0x430   :  { %v1309_v18 = vpop.permute.xlu1 %1308 }
 0x431   :  { %v1311_v28 = vmul.f32 %v1309_v18, %v6699_v7  ;;  %v1352_v18 = vmul.f32 %v1350_v9, %v6697_v10 }
 0x433   :  { %v1312_v12 = vadd.f32 %v1311_v28, %v1306_v27 }
 0x435   :  { %v1318_v31 = vadd.f32 %v1317_v8, %v1312_v12  ;;  %v1321_v13 = vpop.permute.xlu1 %1320 }
 0x436   :  { %v1323_v25 = vmul.f32 %v1321_v13, %v9028_v29 }
 0x437   :  { %1473 = vrot.lane.b32.xlu1 %v1318_v31, %s6050_s15 }
 0x43a   :  { %v1326_v61 = vpop.permute.xlu1 %1325 }
 0x43b   :  { %v1328_v39 = vmul.f32 %v1326_v61, %v6721_v44 }
 0x43d   :  { %v1329_v32 = vadd.f32 %v1328_v39, %v1323_v25  ;;  %v1368_v39 = vpop.permute.xlu0 %1367 }
 0x43f   :  { %v1338_v53 = vpop.permute.xlu1 %1337  ;;  %v1335_v50 = vadd.f32 %v1334_v0, %v1329_v32  ;;  %v1370_v32 = vmul.f32 %v1368_v39, %v9028_v29 }
 0x440   :  { %v1340_v23 = vmul.f32 %v1338_v53, %v6693_v37 }
 0x442   :  { %v1341_v46 = vadd.f32 %v1340_v23, %v1335_v50  ;;  %v1385_v23 = vpop.permute.xlu0 %1384 }
 0x444   :  { %v1344_v33 = vpop.permute.xlu1 %1343 }
 0x445   :  { %v1346_v58 = vmul.f32 %v1344_v33, %v6695_v5 }
 0x447   :  { %v1347_v40 = vadd.f32 %v1346_v58, %v1341_v46  ;;  %v1387_v46 = vmul.f32 %v1385_v23, %v6693_v37 }
 0x449   :  { %v1356_v27 = vpop.permute.xlu1 %1355  ;;  %v1353_v28 = vadd.f32 %v1352_v18, %v1347_v40  ;;  %v1403_v18 = vpop.permute.xlu0 %1402 }
 0x44a   :  { %v1358_v8 = vmul.f32 %v1356_v27, %v6699_v7 }
 0x44c   :  { %v1359_v31 = vadd.f32 %v1358_v8, %v1353_v28 }
 0x44e   :  { %v1362_v12 = vpop.permute.xlu1 %1361 }
 0x44f   :  { %v1364_v13 = vmul.f32 %v1362_v12, %v6701_v56  ;;  %v1405_v12 = vmul.f32 %v1403_v18, %v6699_v7 }
 0x451   :  { %v1365_v61 = vadd.f32 %v1364_v13, %v1359_v31 }
 0x453   :  { %1477 = vrot.lane.b32.xlu0 %v1365_v61, %s6047_s12  ;;  %v1373_v25 = vpop.permute.xlu1 %1372 }
 0x454   :  { %v1375_v36 = vmul.f32 %v1373_v25, %v6721_v44 }
 0x456   :  { %v1376_v53 = vadd.f32 %v1375_v36, %v1370_v32  ;;  %v1420_v32 = vpop.permute.xlu0 %1419 }
 0x458   :  { %v1379_v0 = vpop.permute.xlu1 %1378 }
 0x459   :  { %v1381_v50 = vmul.f32 %v1379_v0, %v6691_v11 }
 0x45b   :  { %v1382_v33 = vadd.f32 %v1381_v50, %v1376_v53  ;;  %v1422_v50 = vmul.f32 %v1420_v32, %v6721_v44 }
 0x45d   :  { %v1391_v58 = vpop.permute.xlu1 %1390  ;;  %v1388_v9 = vadd.f32 %v1387_v46, %v1382_v33 }
 0x45e   :  { %v1393_v40 = vmul.f32 %v1391_v58, %v6695_v5 }
 0x460   :  { %v1394_v28 = vadd.f32 %v1393_v40, %v1388_v9  ;;  %v1438_v40 = vpop.permute.xlu0 %1437 }
 0x462   :  { %v1397_v27 = vpop.permute.xlu1 %1396 }
 0x463   :  { %v1399_v8 = vmul.f32 %v1397_v27, %v6697_v10  ;;  %v1440_v27 = vmul.f32 %v1438_v40, %v6695_v5 }
 0x465   :  { %v1400_v31 = vadd.f32 %v1399_v8, %v1394_v28 }
 0x467   :  { %v1406_v13 = vadd.f32 %v1405_v12, %v1400_v31  ;;  %v1409_v61 = vpop.permute.xlu1 %1408  ;;  %v1456_v31 = vpop.permute.xlu0 %1455 }
 0x468   :  { %v1411_v25 = vmul.f32 %v1409_v61, %v6701_v56 }
 0x46a   :  { %v1412_v39 = vadd.f32 %v1411_v25, %v1406_v13 }
 0x46c   :  { %1481 = vrot.lane.b32.xlu1 %v1412_v39, %s6051_s16  ;;  %v1415_v36 = vpop.permute.xlu1 %1414  ;;  %v1458_v39 = vmul.f32 %v1456_v31, %v6701_v56  ;;  %v9035_v31 = vmov 45  }
 0x46d   :  { %v1417_v0 = vmul.f32 %v1415_v36, %v9028_v29 }
 0x46f   :  { %v1423_v33 = vadd.f32 %v1422_v50, %v1417_v0  ;;  %v1075_v0 = vmul.f32 %v6721_v44, %v6871_v3  ;;  %v1084_v50 = vmul.f32 %v6691_v11, %v6839_v21 }
 0x471   :  { %v1426_v53 = vpop.permute.xlu1 %1425 }
 0x472   :  { %v1428_v23 = vmul.f32 %v1426_v53, %v6691_v11  ;;  %v1067_v53 = vmul.f32 %v9028_v29, %v6835_v60  ;;  %v1120_v29 = vmul.f32 %v6699_v7, %v6855_v59  ;;  %v1129_v11 = vmul.f32 %v6701_v56, %v6859_v55 }
 0x474   :  { %v1429_v58 = vadd.f32 %v1428_v23, %v1423_v33  ;;  %v1076_v23 = vadd.f32 %v1075_v0, %v1067_v53  ;;  %v1093_v33 = vmul.f32 %v6693_v37, %v6843_v26  ;;  %v9042_v0 = vmov 22  }
 0x475   :  { %v9043_v53 = vmov 57  }
 0x476   :  { %v1432_v46 = vpop.permute.xlu1 %1431 }
 0x477   :  { %v1434_v9 = vmul.f32 %v1432_v46, %v6693_v37  ;;  %v1085_v46 = vadd.f32 %v1084_v50, %v1076_v23  ;;  %v9044_v50 = vmov 23   ;;  %v9045_v23 = vmov 60  }
 0x479   :  { %v1435_v18 = vadd.f32 %v1434_v9, %v1429_v58  ;;  %v1102_v58 = vmul.f32 %v6695_v5, %v6847_v57  ;;  %v1094_v40 = vadd.f32 %v1093_v33, %v1085_v46  ;;  %v9046_v33 = vmov 25  }
 0x47a   :  { %v9047_v46 = vmov 63  }
 0x47b   :  { %v1444_v28 = vpop.permute.xlu1 %1443  ;;  %v1441_v8 = vadd.f32 %v1440_v27, %v1435_v18  ;;  %v1111_v18 = vmul.f32 %v6697_v10, %v6851_v38  ;;  %v1103_v44 = vadd.f32 %v1102_v58, %v1094_v40  ;;  %v9048_v58 = vmov 26  }
 0x47c   :  { %v1446_v12 = vmul.f32 %v1444_v28, %v6697_v10  ;;  %v9050_v40 = vmov 1  }
 0x47d   :  { %v1112_v60 = vadd.f32 %v1111_v18, %v1103_v44  ;;  %v9051_v18 = vmov 29   ;;  %v9052_v44 = vmov 31  }
 0x47e   :  { %v1447_v61 = vadd.f32 %v1446_v12, %v1441_v8  ;;  %v9034_v12 = vmov 16  }
 0x47f   :  { %v1121_v3 = vadd.f32 %v1120_v29, %v1112_v60  ;;  %v9053_v29 = vmov 32   ;;  %v9054_v60 = vmov 34  }
 0x480   :  { %v1450_v13 = vpop.permute.xlu1 %1449 }
 0x481   :  { %v1452_v25 = vmul.f32 %v1450_v13, %v6699_v7  ;;  %v1130_v26 = vadd.f32 %v1129_v11, %v1121_v3  ;;  %v9036_v13 = vmov 17  }
 0x483   :  { %v1453_v36 = vadd.f32 %v1452_v25, %v1447_v61  ;;  %v9037_v61 = vmov 48   ;;  %v9038_v25 = vmov 19  }
 0x484   :  { %v1462_v9 = vpop.permute.xlu1 %1461 }
 0x485   :  { %v1459_v32 = vadd.f32 %v1458_v39, %v1453_v36  ;;  %v1488_v5 = vsel %vm1046_vm4, %v1130_v26, %v1462_v9  ;;  %v9039_v39 = vmov 51   ;;  %v9040_v36 = vmov 20  }
 0x486   :  { %v9049_v9 = vmov 28  }
 0x487   :  { %1485 = vrot.lane.b32.xlu0 %v1459_v32, %s6049_s14  ;;  %v9041_v32 = vmov 54  }
 0x488   :  { %v1466_v21 = vpop.permute.xlu1 %1465 }
 0x489   :  { %v1489_v57 = vsel %vm1048_vm5, %v1488_v5, %v1466_v21  ;;  %v9055_v21 = vmov 35  }
 0x48e   :  { %v1470_v37 = vpop.permute.xlu0 %1469 }
 0x48f   :  { %v1490_v10 = vsel %vm1050_vm6, %v1489_v57, %v1470_v37  ;;  %v9056_v37 = vmov 37   ;;  %v9058_v57 = vmov 40  }
 0x4a9   :  { %v1474_v27 = vpop.permute.xlu1 %1473 }
 0x4aa   :  { %v1491_v8 = vsel %vm27_vm0, %v1490_v10, %v1474_v27  ;;  %v9057_v27 = vmov 38   ;;  %v9059_v10 = vmov 41  }
 0x4c5   :  { %v1478_v28 = vpop.permute.xlu0 %1477 }
 0x4c6   :  { %v1492_v7 = vsel %vm1053_vm7, %v1491_v8, %v1478_v28  ;;  %v9060_v8 = vmov 43  }
 0x4de   :  { %v1482_v38 = vpop.permute.xlu1 %1481 }
 0x4df   :  { %v1493_v59 = vsel %vm1055_vm8, %v1492_v7, %v1482_v38 }
 0x4f9   :  { %v1486_v56 = vpop.permute.xlu0 %1485 }
 0x4fa   :  { %v6976_v55 = vsel %vm1057_vm9, %v1493_v59, %v1486_v56  ;;  %v9061_v59 = vmov 44  }
 0x4fb   :  { %1505 = vperm.xlu0 %5623, %v6976_v55   ;;  %1498 = vperm.xlu1 %5622, %v6976_v55   ;;  %1495 = vst.msk [vmem:[#allocation2 + $0x4] sm:$0x3] %vm616_vm3, %v6976_v55 }
 0x4ff   :  { %5631 = vset.pattern.permute.xlu0 %v8969_v42  ;;  %5624 = vset.pattern.permute.xlu1 %v8970_v49 }
 0x500   :  { %1573 = vperm.xlu0 %5631, %v6976_v55   ;;  %1514 = vperm.xlu1 %5624, %v6976_v55  }
 0x504   :  { %5634 = vset.pattern.permute.xlu0 %v8971_v62  ;;  %5625 = vset.pattern.permute.xlu1 %v8972_v6 }
 0x505   :  { %1591 = vperm.xlu0 %5634, %v6976_v55   ;;  %1523 = vperm.xlu1 %5625, %v6976_v55  }
 0x509   :  { %5637 = vset.pattern.permute.xlu0 %v8973_v15  ;;  %5626 = vset.pattern.permute.xlu1 %v8974_v22 }
 0x50a   :  { %1609 = vperm.xlu0 %5637, %v6976_v55   ;;  %1532 = vperm.xlu1 %5626, %v6976_v55  }
 0x50e   :  { %5640 = vset.pattern.permute.xlu0 %v8975_v24  ;;  %5627 = vset.pattern.permute.xlu1 %v8976_v30  ;;  %v9079_v24 = vld [vmem:[#allocation12_spill] sm:$0xff] }
 0x50f   :  { %1626 = vperm.xlu0 %5640, %v6976_v55   ;;  %1541 = vperm.xlu1 %5627, %v6976_v55  }
 0x513   :  { %5643 = vset.pattern.permute.xlu0 %v8977_v63  ;;  %5628 = vset.pattern.permute.xlu1 %v8978_v45 }
 0x514   :  { %1644 = vperm.xlu0 %5643, %v6976_v55   ;;  %1550 = vperm.xlu1 %5628, %v6976_v55  }
 0x518   :  { %5646 = vset.pattern.permute.xlu0 %v8979_v20  ;;  %5629 = vset.pattern.permute.xlu1 %v8980_v52 }
 0x519   :  { %1662 = vperm.xlu0 %5646, %v6976_v55   ;;  %1559 = vperm.xlu1 %5629, %v6976_v55  }
 0x51d   :  { %5649 = vset.pattern.permute.xlu0 %v8981_v47  ;;  %5630 = vset.pattern.permute.xlu1 %v8982_v54 }
 0x51e   :  { %1679 = vperm.xlu0 %5649, %v6976_v55   ;;  %1568 = vperm.xlu1 %5630, %v6976_v55  }
 0x522   :  { %5652 = vset.pattern.permute.xlu0 %v8983_v4  ;;  %5632 = vset.pattern.permute.xlu1 %v8984_v14  ;;  %v9072_v4 = vld [vmem:[#allocation29_spill] sm:$0xff] }
 0x523   :  { %1697 = vperm.xlu0 %5652, %v6976_v55   ;;  %1579 = vperm.xlu1 %5632, %v6976_v55  }
 0x527   :  { %5655 = vset.pattern.permute.xlu0 %v8985_v2  ;;  %5633 = vset.pattern.permute.xlu1 %v8986_v48 }
 0x528   :  { %1714 = vperm.xlu0 %5655, %v6976_v55   ;;  %1585 = vperm.xlu1 %5633, %v6976_v55  }
 0x52c   :  { %5658 = vset.pattern.permute.xlu0 %v8987_v35  ;;  %5635 = vset.pattern.permute.xlu1 %v8988_v19 }
 0x52d   :  { %1732 = vperm.xlu0 %5658, %v6976_v55   ;;  %1597 = vperm.xlu1 %5635, %v6976_v55  }
 0x531   :  { %5661 = vset.pattern.permute.xlu0 %v8989_v34  ;;  %5636 = vset.pattern.permute.xlu1 %v8990_v17 }
 0x532   :  { %1750 = vperm.xlu0 %5661, %v6976_v55   ;;  %1603 = vperm.xlu1 %5636, %v6976_v55  }
 0x536   :  { %5664 = vset.pattern.permute.xlu0 %v8991_v51  ;;  %5638 = vset.pattern.permute.xlu1 %v9034_v12 }
 0x537   :  { %1767 = vperm.xlu0 %5664, %v6976_v55   ;;  %1615 = vperm.xlu1 %5638, %v6976_v55  }
 0x53b   :  { %5667 = vset.pattern.permute.xlu0 %v9035_v31  ;;  %5639 = vset.pattern.permute.xlu1 %v9036_v13  ;;  %v9065_v31 = vmov 50  }
 0x53c   :  { %1785 = vperm.xlu0 %5667, %v6976_v55   ;;  %1620 = vperm.xlu1 %5639, %v6976_v55  }
 0x540   :  { %5670 = vset.pattern.permute.xlu0 %v9037_v61  ;;  %5641 = vset.pattern.permute.xlu1 %v9038_v25 }
 0x541   :  { %1803 = vperm.xlu0 %5670, %v6976_v55   ;;  %1632 = vperm.xlu1 %5641, %v6976_v55  }
 0x545   :  { %5673 = vset.pattern.permute.xlu0 %v9039_v39  ;;  %5642 = vset.pattern.permute.xlu1 %v9040_v36  ;;  %v9064_v39 = vmov 49  }
 0x546   :  { %1820 = vperm.xlu0 %5673, %v6976_v55   ;;  %1638 = vperm.xlu1 %5642, %v6976_v55  }
 0x54a   :  { %5676 = vset.pattern.permute.xlu0 %v9041_v32  ;;  %5644 = vset.pattern.permute.xlu1 %v9042_v0 }
 0x54b   :  { %1838 = vperm.xlu0 %5676, %v6976_v55   ;;  %1650 = vperm.xlu1 %5644, %v6976_v55  }
 0x54f   :  { %5679 = vset.pattern.permute.xlu0 %v9043_v53  ;;  %5645 = vset.pattern.permute.xlu1 %v9044_v50  ;;  %v9074_v50 = vmov 58  }
 0x550   :  { %1855 = vperm.xlu0 %5679, %v6976_v55   ;;  %1656 = vperm.xlu1 %5645, %v6976_v55  }
 0x554   :  { %5682 = vset.pattern.permute.xlu0 %v9045_v23  ;;  %5647 = vset.pattern.permute.xlu1 %v9046_v33  ;;  %v9063_v23 = vmov 47  }
 0x555   :  { %1873 = vperm.xlu0 %5682, %v6976_v55   ;;  %1667 = vperm.xlu1 %5647, %v6976_v55  }
 0x559   :  { %5685 = vset.pattern.permute.xlu0 %v9047_v46  ;;  %5648 = vset.pattern.permute.xlu1 %v9048_v58  ;;  %v9073_v58 = vld [vmem:[#allocation27_spill] sm:$0xff] }
 0x55a   :  { %1891 = vperm.xlu0 %5685, %v6976_v55   ;;  %1673 = vperm.xlu1 %5648, %v6976_v55  }
 0x55e   :  { %5650 = vset.pattern.permute.xlu1 %v9049_v9  ;;  %5687 = vset.pattern.permute.xlu0 %v9050_v40  ;;  %v9062_v40 = vmov 46  }
 0x55f   :  { %1685 = vperm.xlu1 %5650, %v6976_v55  }
 0x563   :  { %5651 = vset.pattern.permute.xlu1 %v9051_v18 }
 0x564   :  { %1691 = vperm.xlu1 %5651, %v6976_v55  }
 0x568   :  { %5653 = vset.pattern.permute.xlu1 %v9052_v44 }
 0x569   :  { %1703 = vperm.xlu1 %5653, %v6976_v55  }
 0x56d   :  { %5654 = vset.pattern.permute.xlu1 %v9053_v29  ;;  %v9071_v29 = vld [vmem:[#allocation32_spill] sm:$0xff] }
 0x56e   :  { %1709 = vperm.xlu1 %5654, %v6976_v55  }
 0x572   :  { %5656 = vset.pattern.permute.xlu1 %v9054_v60  ;;  %v9070_v60 = vld [vmem:[#allocation25_spill] sm:$0xff] }
 0x573   :  { %1720 = vperm.xlu1 %5656, %v6976_v55  }
 0x576   :  { %v7069_v11 = vpop.permute.xlu1 %1498 }
 0x577   :  { %5657 = vset.pattern.permute.xlu1 %v9055_v21  ;;  %v9069_v21 = vmov 56  }
 0x578   :  { %1726 = vperm.xlu1 %5657, %v6976_v55  }
 0x57b   :  { %v7073_v3 = vpop.permute.xlu1 %1514 }
 0x57c   :  { %5659 = vset.pattern.permute.xlu1 %v9056_v37  ;;  %v9068_v37 = vmov 55  }
 0x57d   :  { %1738 = vperm.xlu1 %5659, %v6976_v55  }
 0x580   :  { %v7077_v26 = vpop.permute.xlu1 %1523 }
 0x581   :  { %5660 = vset.pattern.permute.xlu1 %v9057_v27 }
 0x582   :  { %1744 = vperm.xlu1 %5660, %v6976_v55  }
 0x585   :  { %v7081_v5 = vpop.permute.xlu1 %1532 }
 0x586   :  { %5662 = vset.pattern.permute.xlu1 %v9058_v57  ;;  %v9067_v57 = vmov 53  }
 0x587   :  { %1756 = vperm.xlu1 %5662, %v6976_v55  }
 0x58a   :  { %v7085_v28 = vpop.permute.xlu1 %1541 }
 0x58b   :  { %5663 = vset.pattern.permute.xlu1 %v9059_v10 }
 0x58c   :  { %1761 = vperm.xlu1 %5663, %v6976_v55  }
 0x58f   :  { %v7089_v38 = vpop.permute.xlu1 %1550 }
 0x590   :  { %5665 = vset.pattern.permute.xlu1 %v9060_v8  ;;  %v9066_v8 = vmov 52  }
 0x591   :  { %1773 = vperm.xlu1 %5665, %v6976_v55  }
 0x594   :  { %v7093_v7 = vpop.permute.xlu1 %1559 }
 0x595   :  { %5666 = vset.pattern.permute.xlu1 %v9061_v59  ;;  %v7105_v59 = vpop.permute.xlu0 %1505 }
 0x596   :  { %1779 = vperm.xlu1 %5666, %v6976_v55  }
 0x599   :  { %v1569_v56 = vpop.permute.xlu1 %1568 }
 0x59a   :  { %5668 = vset.pattern.permute.xlu1 %v9062_v40 }
 0x59b   :  { %1791 = vperm.xlu1 %5668, %v6976_v55  }
 0x59e   :  { %v1580_v46 = vpop.permute.xlu1 %1579 }
 0x59f   :  { %5669 = vset.pattern.permute.xlu1 %v9063_v23  ;;  %v1574_v23 = vpop.permute.xlu0 %1573 }
 0x5a0   :  { %1797 = vperm.xlu1 %5669, %v6976_v55   ;;  %v1576_v44 = vmul.f32 %v1574_v23, %v9071_v29 }
 0x5a3   :  { %v1586_v32 = vpop.permute.xlu1 %1585  ;;  %v1592_v34 = vpop.permute.xlu0 %1591 }
 0x5a4   :  { %5671 = vset.pattern.permute.xlu1 %v9064_v39 }
 0x5a5   :  { %1808 = vperm.xlu1 %5671, %v6976_v55  }
 0x5a7   :  { %v1610_v35 = vpop.permute.xlu0 %1609 }
 0x5a8   :  { %v1598_v61 = vpop.permute.xlu1 %1597 }
 0x5a9   :  { %5672 = vset.pattern.permute.xlu1 %v9065_v31 }
 0x5aa   :  { %1814 = vperm.xlu1 %5672, %v6976_v55  }
 0x5ab   :  { %v1627_v0 = vpop.permute.xlu0 %1626 }
 0x5ac   :  { %v1629_v63 = vmul.f32 %v1627_v0, %v9072_v4 }
 0x5ad   :  { %v1604_v40 = vpop.permute.xlu1 %1603 }
 0x5ae   :  { %5674 = vset.pattern.permute.xlu1 %v9066_v8  ;;  %v1571_v8 = vmul.f32 %v1569_v56, %v9070_v60 }
 0x5af   :  { %1826 = vperm.xlu1 %5674, %v6976_v55  }
 0x5b0   :  { %v1577_v47 = vadd.f32 %v1576_v44, %v1571_v8  ;;  %v9076_v8 = vld [vmem:[#allocation28_spill] sm:$0xff] }
 0x5b2   :  { %v1616_v51 = vpop.permute.xlu1 %1615 }
 0x5b3   :  { %5675 = vset.pattern.permute.xlu1 %v9067_v57  ;;  %v1582_v57 = vmul.f32 %v1580_v46, %v9072_v4  ;;  %v1618_v20 = vmul.f32 %v1616_v51, %v9070_v60  ;;  %v9075_v46 = vld [vmem:[#allocation31_spill] sm:$0xff] }
 0x5b4   :  { %1832 = vperm.xlu1 %5675, %v6976_v55  }
 0x5b5   :  { %v1583_v56 = vadd.f32 %v1582_v57, %v1577_v47  ;;  %v1645_v47 = vpop.permute.xlu0 %1644 }
 0x5b7   :  { %v1621_v27 = vpop.permute.xlu1 %1620 }
 0x5b8   :  { %5677 = vset.pattern.permute.xlu1 %v9068_v37  ;;  %v1623_v18 = vmul.f32 %v1621_v27, %v9071_v29  ;;  %v1588_v37 = vmul.f32 %v1586_v32, %v9073_v58  ;;  %v1594_v27 = vmul.f32 %v1592_v34, %v9075_v46 }
 0x5b9   :  { %1844 = vperm.xlu1 %5677, %v6976_v55  }
 0x5ba   :  { %v1589_v23 = vadd.f32 %v1588_v37, %v1583_v56  ;;  %v1663_v56 = vpop.permute.xlu0 %1662 }
 0x5bc   :  { %v1633_v31 = vpop.permute.xlu1 %1632  ;;  %v1595_v51 = vadd.f32 %v1594_v27, %v1589_v23 }
 0x5bd   :  { %5678 = vset.pattern.permute.xlu1 %v9069_v21  ;;  %v1624_v21 = vadd.f32 %v1623_v18, %v1618_v20  ;;  %v1635_v32 = vmul.f32 %v1633_v31, %v9073_v58  ;;  %v9077_v18 = vld [vmem:[#allocation30_spill] sm:$0xff]  ;;  %v1647_v31 = vmul.f32 %v1645_v47, %v9076_v8 }
 0x5be   :  { %1850 = vperm.xlu1 %5678, %v6976_v55   ;;  %v1606_v0 = vmul.f32 %v1604_v40, %v9077_v18 }
 0x5bf   :  { %v1630_v44 = vadd.f32 %v1629_v63, %v1624_v21 }
 0x5c1   :  { %v1639_v9 = vpop.permute.xlu1 %1638  ;;  %v1636_v37 = vadd.f32 %v1635_v32, %v1630_v44  ;;  %v1665_v44 = vmul.f32 %v1663_v56, %v9070_v60 }
 0x5c2   :  { %5680 = vset.pattern.permute.xlu1 %v9074_v50  ;;  %v1600_v50 = vmul.f32 %v1598_v61, %v9076_v8  ;;  %v1641_v25 = vmul.f32 %v1639_v9, %v9075_v46  ;;  %v9078_v61 = vld [vmem:[#allocation24_spill] sm:$0xff] }
 0x5c3   :  { %1861 = vperm.xlu1 %5680, %v6976_v55   ;;  %v1612_v9 = vmul.f32 %v1610_v35, %v9078_v61  ;;  %v1680_v35 = vpop.permute.xlu0 %1679 }
 0x5c4   :  { %v1601_v34 = vadd.f32 %v1600_v50, %v1595_v51  ;;  %v1642_v63 = vadd.f32 %v1641_v25, %v1636_v37 }
 0x5c6   :  { %v1651_v36 = vpop.permute.xlu1 %1650  ;;  %v1607_v21 = vadd.f32 %v1606_v0, %v1601_v34  ;;  %v1648_v23 = vadd.f32 %v1647_v31, %v1642_v63  ;;  %v1682_v34 = vmul.f32 %v1680_v35, %v9073_v58 }
 0x5c7   :  { %5681 = vset.pattern.permute.xlu1 %v9030_v43  ;;  %v1653_v27 = vmul.f32 %v1651_v36, %v9077_v18  ;;  %v1698_v31 = vpop.permute.xlu0 %1697 }
 0x5c8   :  { %1867 = vperm.xlu1 %5681, %v6976_v55   ;;  %v1613_v50 = vadd.f32 %v1612_v9, %v1607_v21  ;;  %v1700_v9 = vmul.f32 %v1698_v31, %v9077_v18 }
 0x5c9   :  { %v1654_v51 = vadd.f32 %v1653_v27, %v1648_v23 }
 0x5cb   :  { %v1657_v20 = vpop.permute.xlu1 %1656 }
 0x5cc   :  { %5683 = vset.pattern.permute.xlu1 %v9031_v1  ;;  %v1659_v25 = vmul.f32 %v1657_v20, %v9078_v61 }
 0x5cd   :  { %1879 = vperm.xlu1 %5683, %v6976_v55  }
 0x5ce   :  { %v1660_v36 = vadd.f32 %v1659_v25, %v1654_v51 }
 0x5d0   :  { %v1668_v57 = vpop.permute.xlu1 %1667 }
 0x5d1   :  { %5684 = vset.pattern.permute.xlu1 %v9032_v41  ;;  %v1670_v40 = vmul.f32 %v1668_v57, %v9071_v29 }
 0x5d2   :  { %1885 = vperm.xlu1 %5684, %v6976_v55  }
 0x5d3   :  { %v1671_v47 = vadd.f32 %v1670_v40, %v1665_v44 }
 0x5d5   :  { %v1674_v32 = vpop.permute.xlu1 %1673 }
 0x5d6   :  { %v1676_v0 = vmul.f32 %v1674_v32, %v9072_v4  ;;  %1897 = vrot.lane.b32.xlu1 %v1613_v50, %s6046_s11  ;;  %v1715_v32 = vpop.permute.xlu0 %1714 }
 0x5d7   :  { %5686 = vset.pattern.permute.xlu1 %v9033_v16 }
 0x5d8   :  { %v1677_v37 = vadd.f32 %v1676_v0, %v1671_v47  ;;  %v1717_v0 = vmul.f32 %v1715_v32, %v9071_v29 }
 0x5da   :  { %1901 = vrot.lane.b32.xlu1 %v1660_v36, %s6048_s13  ;;  %v1686_v55 = vpop.permute.xlu1 %1685  ;;  %v1683_v63 = vadd.f32 %v1682_v34, %v1677_v37 }
 0x5db   :  { %v1688_v20 = vmul.f32 %v1686_v55, %v9075_v46 }
 0x5dd   :  { %v1689_v57 = vadd.f32 %v1688_v20, %v1683_v63  ;;  %v1733_v63 = vpop.permute.xlu0 %1732 }
 0x5de   :  { %v1735_v31 = vmul.f32 %v1733_v63, %v9075_v46 }
 0x5df   :  { %v1692_v21 = vpop.permute.xlu1 %1691 }
 0x5e0   :  { %v1694_v56 = vmul.f32 %v1692_v21, %v9076_v8 }
 0x5e2   :  { %v1695_v23 = vadd.f32 %v1694_v56, %v1689_v57 }
 0x5e4   :  { %v1701_v27 = vadd.f32 %v1700_v9, %v1695_v23  ;;  %v1704_v40 = vpop.permute.xlu1 %1703  ;;  %v1751_v9 = vpop.permute.xlu0 %1750 }
 0x5e5   :  { %v1706_v44 = vmul.f32 %v1704_v40, %v9078_v61 }
 0x5e7   :  { %v1707_v50 = vadd.f32 %v1706_v44, %v1701_v27  ;;  %v1753_v44 = vmul.f32 %v1751_v9, %v9078_v61 }
 0x5e9   :  { %1905 = vrot.lane.b32.xlu0 %v1707_v50, %s6045_s10  ;;  %v1710_v25 = vpop.permute.xlu1 %1709 }
 0x5ea   :  { %v1712_v51 = vmul.f32 %v1710_v25, %v9070_v60 }
 0x5ec   :  { %v1718_v36 = vadd.f32 %v1717_v0, %v1712_v51 }
 0x5ee   :  { %v1721_v47 = vpop.permute.xlu1 %1720 }
 0x5ef   :  { %v1723_v35 = vmul.f32 %v1721_v47, %v9072_v4 }
 0x5f1   :  { %v1724_v34 = vadd.f32 %v1723_v35, %v1718_v36  ;;  %v1768_v35 = vpop.permute.xlu0 %1767 }
 0x5f3   :  { %v1727_v37 = vpop.permute.xlu1 %1726 }
 0x5f4   :  { %v1729_v55 = vmul.f32 %v1727_v37, %v9073_v58  ;;  %v1770_v37 = vmul.f32 %v1768_v35, %v9072_v4 }
 0x5f6   :  { %v1730_v20 = vadd.f32 %v1729_v55, %v1724_v34 }
 0x5f8   :  { %v1739_v21 = vpop.permute.xlu1 %1738  ;;  %v1736_v57 = vadd.f32 %v1735_v31, %v1730_v20 }
 0x5f9   :  { %v1741_v56 = vmul.f32 %v1739_v21, %v9076_v8 }
 0x5fb   :  { %v1742_v27 = vadd.f32 %v1741_v56, %v1736_v57  ;;  %v1786_v57 = vpop.permute.xlu0 %1785 }
 0x5fc   :  { %v1788_v9 = vmul.f32 %v1786_v57, %v9076_v8 }
 0x5fd   :  { %v1745_v23 = vpop.permute.xlu1 %1744 }
 0x5fe   :  { %v1747_v40 = vmul.f32 %v1745_v23, %v9077_v18 }
 0x600   :  { %v1748_v50 = vadd.f32 %v1747_v40, %v1742_v27 }
 0x602   :  { %v1754_v25 = vadd.f32 %v1753_v44, %v1748_v50  ;;  %v1757_v32 = vpop.permute.xlu1 %1756 }
 0x603   :  { %v1759_v47 = vmul.f32 %v1757_v32, %v9070_v60 }
 0x604   :  { %1909 = vrot.lane.b32.xlu1 %v1754_v25, %s6050_s15 }
 0x607   :  { %v1762_v51 = vpop.permute.xlu1 %1761 }
 0x608   :  { %v1764_v0 = vmul.f32 %v1762_v51, %v9071_v29 }
 0x60a   :  { %v1765_v36 = vadd.f32 %v1764_v0, %v1759_v47  ;;  %v1804_v47 = vpop.permute.xlu0 %1803 }
 0x60b   :  { %v1806_v35 = vmul.f32 %v1804_v47, %v9070_v60 }
 0x60c   :  { %v1774_v34 = vpop.permute.xlu1 %1773  ;;  %v1771_v55 = vadd.f32 %v1770_v37, %v1765_v36 }
 0x60d   :  { %v1776_v63 = vmul.f32 %v1774_v34, %v9073_v58 }
 0x60f   :  { %v1777_v31 = vadd.f32 %v1776_v63, %v1771_v55  ;;  %v1821_v55 = vpop.permute.xlu0 %1820 }
 0x611   :  { %v1780_v20 = vpop.permute.xlu1 %1779 }
 0x612   :  { %v1782_v21 = vmul.f32 %v1780_v20, %v9075_v46  ;;  %v1823_v20 = vmul.f32 %v1821_v55, %v9073_v58 }
 0x614   :  { %v1783_v56 = vadd.f32 %v1782_v21, %v1777_v31 }
 0x616   :  { %v1792_v23 = vpop.permute.xlu1 %1791  ;;  %v1789_v27 = vadd.f32 %v1788_v9, %v1783_v56  ;;  %v3891_v56 = vld [vmem:[%s8673_s3 + $0x18] sm:$0xff]  ;;  %v3890_v9 = vld [vmem:[%s8673_s3 + $0x10] sm:$0xff] }
 0x617   :  { %v1794_v40 = vmul.f32 %v1792_v23, %v9077_v18  ;;  %v3889_v23 = vld [vmem:[%s8673_s3 + $0x8] sm:$0xff] }
 0x619   :  { %v1795_v50 = vadd.f32 %v1794_v40, %v1789_v27  ;;  %v7183_v27 = vand.u32 4294901760, %v3891_v56  ;;  %v7185_v40 = vand.u32 4294901760, %v3890_v9 }
 0x61b   :  { %v1798_v44 = vpop.permute.xlu1 %1797  ;;  %v4007_v47 = vsub.f32 %v3891_v56, %v7183_v27  ;;  %5233 = vmatprep.subr.mxu0 %v7183_v27 }
 0x61c   :  { %v1800_v25 = vmul.f32 %v1798_v44, %v9078_v61  ;;  %v7187_v44 = vand.u32 4294901760, %v3889_v23  ;;  %5234 = vmatpush3.msra.mxu0 %v7183_v27 }
 0x61d   :  { %v7201_v55 = vand.u32 4294901760, %v4007_v47  ;;  %5235 = vmatprep.subr.mxu0 %v7185_v40 }
 0x61e   :  { %v1801_v32 = vadd.f32 %v1800_v25, %v1795_v50  ;;  %v3888_v50 = vld [vmem:[%s8673_s3] sm:$0xff]  ;;  %5236 = vmatpush3.msra.mxu0 %v7185_v40 }
 0x61f   :  { %v7192_v25 = vand.u32 4294901760, %v3888_v50  ;;  %5237 = vmatprep.subr.mxu0 %v7187_v44 }
 0x620   :  { %1913 = vrot.lane.b32.xlu0 %v1801_v32, %s6047_s12  ;;  %v1809_v51 = vpop.permute.xlu1 %1808  ;;  %v1839_v32 = vpop.permute.xlu0 %1838  ;;  %5238 = vmatpush3.msra.mxu0 %v7187_v44 }
 0x621   :  { %v1811_v0 = vmul.f32 %v1809_v51, %v9071_v29  ;;  %5239 = vmatprep.subr.mxu0 %v7192_v25 }
 0x622   :  { %5240 = vmatpush3.msra.mxu0 %v7192_v25 }
 0x623   :  { %v1812_v37 = vadd.f32 %v1811_v0, %v1806_v35  ;;  %v4014_v0 = vsub.f32 %v3890_v9, %v7185_v40  ;;  %v4021_v35 = vsub.f32 %v3889_v23, %v7187_v44  ;;  %5255 = vmatprep.subr.mxu0 %v4007_v47  ;;  %5242 = vmatmul.mubr.f32.vlgmr.msra.gmra.mxu0 %v9079_v24  ;;  %v9080_v24 = vld [vmem:[#allocation7_spill] sm:$0xff] }
 0x624   :  { %5256 = vmatpush3.msra.mxu0 %v4007_v47 }
 0x625   :  { %v1815_v36 = vpop.permute.xlu1 %1814  ;;  %5257 = vmatprep.subr.mxu0 %v4014_v0 }
 0x626   :  { %v1817_v34 = vmul.f32 %v1815_v36, %v9072_v4  ;;  %5258 = vmatpush3.msra.mxu0 %v4014_v0 }
 0x627   :  { %5259 = vmatprep.subr.mxu0 %v4021_v35 }
 0x628   :  { %v1818_v63 = vadd.f32 %v1817_v34, %v1812_v37  ;;  %v4028_v34 = vsub.f32 %v3888_v50, %v7192_v25  ;;  %5260 = vmatpush3.msra.mxu0 %v4021_v35 }
 0x62a   :  { %v1827_v31 = vpop.permute.xlu1 %1826  ;;  %v1824_v21 = vadd.f32 %v1823_v20, %v1818_v63  ;;  %v7203_v63 = vand.u32 4294901760, %v4014_v0  ;;  %v7205_v20 = vand.u32 4294901760, %v4021_v35  ;;  %v7209_v9 = vand.u32 4294901760, %v4028_v34  ;;  %5261 = vmatprep.subr.mxu0 %v4028_v34 }
 0x62b   :  { %v1829_v57 = vmul.f32 %v1827_v31, %v9075_v46  ;;  %v1841_v31 = vmul.f32 %v1839_v32, %v9077_v18  ;;  %5262 = vmatpush3.msra.mxu0 %v4028_v34 }
 0x62c   :  { %v4023_v23 = vsub.f32 %v4021_v35, %v7205_v20  ;;  %5277 = vmatprep.subr.mxu0 %v7201_v55 }
 0x62d   :  { %v1830_v36 = vadd.f32 %v1829_v57, %v1824_v21  ;;  %v4009_v21 = vsub.f32 %v4007_v47, %v7201_v55  ;;  %v4016_v57 = vsub.f32 %v4014_v0, %v7203_v63 }
 0x62e   :  { %v4024_v43 = vand.u32 4294901760, %v4023_v23  ;;  %v9082_v23 = vld [vmem:[#allocation8_spill] sm:$0xff] }
 0x62f   :  { %v1833_v51 = vpop.permute.xlu1 %1832  ;;  %v4010_v32 = vand.u32 4294901760, %v4009_v21  ;;  %v1856_v21 = vpop.permute.xlu0 %1855  ;;  %5263 = vmatprep.mubr.f32.mxu0 %v9082_v23 }
 0x630   :  { %v1835_v37 = vmul.f32 %v1833_v51, %v9076_v8 }
 0x631   :  { %5244 = vmatprep.subr.mxu1 %v4010_v32 }
 0x632   :  { %v1836_v56 = vadd.f32 %v1835_v37, %v1830_v36  ;;  %v4017_v36 = vand.u32 4294901760, %v4016_v57  ;;  %v4030_v37 = vsub.f32 %v4028_v34, %v7209_v9  ;;  %5245 = vmatpush3.msra.mxu1 %v4010_v32  ;;  %v9084_v34 = vld [vmem:[#allocation11_spill] sm:$0xff] }
 0x633   :  { %v1874_v32 = vpop.permute.xlu0 %1873 }
 0x634   :  { %v1842_v50 = vadd.f32 %v1841_v31, %v1836_v56  ;;  %v1845_v51 = vpop.permute.xlu1 %1844  ;;  %5246 = vmatprep.subr.mxu1 %v4017_v36  ;;  %v4031_v56 = vand.u32 4294901760, %v4030_v37 }
 0x635   :  { %v1847_v41 = vmul.f32 %v1845_v51, %v9078_v61  ;;  %5247 = vmatpush3.msra.mxu1 %v4017_v36  ;;  %v9083_v36 = vld [vmem:[#allocation9_spill] sm:$0xff] }
 0x636   :  { %5248 = vmatprep.subr.mxu1 %v4024_v43  ;;  %5264 = vmatmul.mubr.f32.vlgmr.msra.gmra.mxu0 %v9083_v36 }
 0x637   :  { %v1848_v1 = vadd.f32 %v1847_v41, %v1842_v50  ;;  %5249 = vmatpush3.msra.mxu1 %v4024_v43  ;;  %v9081_v43 = vld [vmem:[#allocation10_spill] sm:$0xff]  ;;  %5278 = vmatpush3.msra.mxu0 %v7201_v55 }
 0x638   :  { %5250 = vmatprep.subr.mxu1 %v4031_v56  ;;  %5279 = vmatprep.subr.mxu0 %v7203_v63 }
 0x639   :  { %1917 = vrot.lane.b32.xlu1 %v1848_v1, %s6051_s16  ;;  %v1851_v31 = vpop.permute.xlu1 %1850  ;;  %5251 = vmatpush3.msra.mxu1 %v4031_v56  ;;  %v1858_v1 = vmul.f32 %v1856_v21, %v9071_v29  ;;  %v9085_v21 = vld [vmem:[#allocation6_spill] sm:$0xff] }
 0x63a   :  { %v1853_v41 = vmul.f32 %v1851_v31, %v9070_v60  ;;  %5266 = vmatprep.subr.mxu1 %v7183_v27  ;;  %5253 = vmatmul.mubr.f32.vlgmr.msra.gmra.mxu1 %v9080_v24  ;;  %v1876_v31 = vmul.f32 %v1874_v32, %v9075_v46 }
 0x63b   :  { %5267 = vmatpush3.msra.mxu1 %v7183_v27  ;;  %5274 = vmatprep.mubr.f32.mxu1 %v9081_v43 }
 0x63c   :  { %5268 = vmatprep.subr.mxu1 %v7185_v40  ;;  %v1859_v0 = vadd.f32 %v1858_v1, %v1853_v41  ;;  %5280 = vmatpush3.msra.mxu0 %v7203_v63 }
 0x63d   :  { %5269 = vmatpush3.msra.mxu1 %v7185_v40  ;;  %5281 = vmatprep.subr.mxu0 %v7205_v20 }
 0x63e   :  { %v1862_v57 = vpop.permute.xlu1 %1861  ;;  %5270 = vmatprep.subr.mxu1 %v7187_v44  ;;  %5282 = vmatpush3.msra.mxu0 %v7205_v20  ;;  %v1511_v20 = vmul.f32 %v9071_v29, %v7105_v59 }
 0x63f   :  { %v1864_v47 = vmul.f32 %v1862_v57, %v9072_v4  ;;  %5271 = vmatpush3.msra.mxu1 %v7187_v44  ;;  %5283 = vmatprep.subr.mxu0 %v7209_v9 }
 0x640   :  { %5272 = vmatprep.subr.mxu1 %v7192_v25  ;;  %5284 = vmatpush3.msra.mxu0 %v7209_v9  ;;  %v1520_v9 = vmul.f32 %v9072_v4, %v7073_v3  ;;  %v1565_v4 = vmul.f32 %v9078_v61, %v7093_v7 }
 0x641   :  { %v1865_v50 = vadd.f32 %v1864_v47, %v1859_v0  ;;  %5273 = vmatpush3.msra.mxu1 %v7192_v25  ;;  %5285 = vmatprep.mubr.f32.mxu0 %v9085_v21  ;;  %v1529_v0 = vmul.f32 %v9073_v58, %v7077_v26 }
 0x642   :  { %5288 = vmatprep.subr.mxu1 %v7183_v27  ;;  %5275 = vmatmul.mubr.f32.vlgmr.msra.gmra.mxu1 %v9084_v34 }
 0x643   :  { %v1868_v35 = vpop.permute.xlu1 %1867  ;;  %5289 = vmatpush3.msra.mxu1 %v7183_v27  ;;  %5296 = vmatprep.mubr.f32.mxu1 %v9085_v21  ;;  %v1892_v27 = vpop.permute.xlu0 %1891 }
 0x644   :  { %v1870_v51 = vmul.f32 %v1868_v35, %v9073_v58  ;;  %5290 = vmatprep.subr.mxu1 %v7185_v40  ;;  %5286 = vmatmul.mubr.f32.vlgmr.msra.gmra.mxu0 %v9080_v24 }
 0x645   :  { %5291 = vmatpush3.msra.mxu1 %v7185_v40  ;;  %v1894_v40 = vmul.f32 %v1892_v27, %v9078_v61 }
 0x646   :  { %v1871_v37 = vadd.f32 %v1870_v51, %v1865_v50  ;;  %5292 = vmatprep.subr.mxu1 %v7187_v44  ;;  %v1547_v51 = vmul.f32 %v9076_v8, %v7085_v28 }
 0x647   :  { %5293 = vmatpush3.msra.mxu1 %v7187_v44 }
 0x648   :  { %v1880_v56 = vpop.permute.xlu1 %1879  ;;  %v1877_v41 = vadd.f32 %v1876_v31, %v1871_v37  ;;  %5294 = vmatprep.subr.mxu1 %v7192_v25 }
 0x649   :  { %v1882_v57 = vmul.f32 %v1880_v56, %v9076_v8  ;;  %5295 = vmatpush3.msra.mxu1 %v7192_v25  ;;  %v1503_v25 = vmul.f32 %v9070_v60, %v7069_v11  ;;  %v1556_v60 = vmul.f32 %v9077_v18, %v7089_v38 }
 0x64a   :  { %5297 = vmatmul.mubr.f32.vlgmr.msra.gmra.mxu1 %v9080_v24  ;;  %v1538_v24 = vmul.f32 %v9075_v46, %v7081_v5 }
 0x64b   :  { %v1883_v1 = vadd.f32 %v1882_v57, %v1877_v41  ;;  %v1512_v43 = vadd.f32 %v1511_v20, %v1503_v25  ;;  %v9094_v20 = vmov 24   ;;  %v9095_v25 = vmov 26  }
 0x64d   :  { %v1886_v55 = vpop.permute.xlu1 %1885  ;;  %v1521_v35 = vadd.f32 %v1520_v9, %v1512_v43  ;;  %v9096_v9 = vmov 27   ;;  %v9097_v43 = vmov 28  }
 0x64e   :  { %v1888_v47 = vmul.f32 %v1886_v55, %v9077_v18  ;;  %v9088_v55 = vmov 18  }
 0x64f   :  { %v1530_v50 = vadd.f32 %v1529_v0, %v1521_v35  ;;  %v9098_v35 = vmov 29  }
 0x650   :  { %v1889_v44 = vadd.f32 %v1888_v47, %v1883_v1  ;;  %v9089_v1 = vmov 19   ;;  %v9090_v47 = vmov 20  }
 0x651   :  { %v1898_v23 = vpop.permute.xlu1 %1897  ;;  %v1539_v29 = vadd.f32 %v1538_v24, %v1530_v50 }
 0x652   :  { %v1895_v63 = vadd.f32 %v1894_v40, %v1889_v44  ;;  %v9091_v40 = vmov 21   ;;  %v9092_v44 = vmov 22  }
 0x653   :  { %v1548_v11 = vadd.f32 %v1547_v51, %v1539_v29  ;;  %v9100_v51 = vmov 30  }
 0x654   :  { %1921 = vrot.lane.b32.xlu0 %v1895_v63, %s6049_s14  ;;  %v9093_v63 = vmov 23  }
 0x655   :  { %v1902_v3 = vpop.permute.xlu1 %1901  ;;  %v1557_v59 = vadd.f32 %v1556_v60, %v1548_v11  ;;  %v9101_v11 = vmov 31  }
 0x657   :  { %v1566_v26 = vadd.f32 %v1565_v4, %v1557_v59  ;;  %v9102_v59 = vmov 32  }
 0x659   :  { %v1924_v5 = vsel %vm1046_vm4, %v1566_v26, %v1898_v23  ;;  %v9099_v23 = vld [vmem:[#allocation13_spill] sm:$0xff] }
 0x65a   :  { %v1925_v46 = vsel %vm1048_vm5, %v1924_v5, %v1902_v3 }
 0x65b   :  { %v1906_v58 = vpop.permute.xlu0 %1905 }
 0x65c   :  { %v1926_v28 = vsel %vm1050_vm6, %v1925_v46, %v1906_v58 }
 0x676   :  { %v1910_v32 = vpop.permute.xlu1 %1909 }
 0x677   :  { %v1927_v37 = vsel %vm27_vm0, %v1926_v28, %v1910_v32  ;;  %v9103_v32 = vmov 34  }
 0x692   :  { %v1914_v36 = vpop.permute.xlu0 %1913 }
 0x693   :  { %v1928_v38 = vsel %vm1053_vm7, %v1927_v37, %v1914_v36  ;;  %v9104_v36 = vmov 35   ;;  %v9105_v37 = vmov 36  }
 0x6ab   :  { %v1918_v8 = vpop.permute.xlu1 %1917 }
 0x6ac   :  { %v1929_v18 = vsel %vm1055_vm8, %v1928_v38, %v1918_v8 }
 0x6c6   :  { %v1922_v7 = vpop.permute.xlu0 %1921 }
 0x6c7   :  { %v7288_v61 = vsel %vm1057_vm9, %v1929_v18, %v1922_v7  ;;  %v9106_v18 = vmov 37  }
 0x6c8   :  { %1939 = vperm.xlu0 %5687, %v7288_v61   ;;  %1934 = vperm.xlu1 %5686, %v7288_v61   ;;  %1931 = vst.msk [vmem:[#allocation2 + $0x6] sm:$0x3] %vm616_vm3, %v7288_v61 }
 0x6cc   :  { %5695 = vset.pattern.permute.xlu0 %v8969_v42  ;;  %5688 = vset.pattern.permute.xlu1 %v8970_v49 }
 0x6cd   :  { %2014 = vperm.xlu0 %5695, %v7288_v61   ;;  %1949 = vperm.xlu1 %5688, %v7288_v61  }
 0x6cf   :  { %v3878_v34 = vld [vmem:[#allocation2] sm:$0xff] }
 0x6d0   :  { %v4422_v31 = vsel %vm4420_vm10, %v3878_v34, 0 }
 0x6d1   :  { %5703 = vset.pattern.permute.xlu0 %v9036_v13  ;;  %5689 = vset.pattern.permute.xlu1 %v8972_v6  ;;  %v7301_v56 = vand.u32 4294901760, %v4422_v31 }
 0x6d2   :  { %2089 = vperm.xlu0 %5703, %v7288_v61   ;;  %1959 = vperm.xlu1 %5689, %v7288_v61  }
 0x6d3   :  { %9086 = vst [vmem:[#allocation54_spill] sm:$0xff] %v7301_v56  ;;  %5334 = vmatprep.mubr.f32.mxu1 %v7301_v56  ;;  %v7307_v21 = vsub.f32 %v4422_v31, %v7301_v56  ;;  %v9107_v31 = vmov 38   ;;  %v9117_v56 = vmov 50  }
 0x6d5   :  { %9087 = vst [vmem:[#allocation23_spill] sm:$0xff] %v7307_v21  ;;  %v8865_v41 = vand.u32 4294901760, %v7307_v21 }
 0x6d6   :  { %5711 = vset.pattern.permute.xlu0 %v9046_v33  ;;  %5690 = vset.pattern.permute.xlu1 %v8974_v22 }
 0x6d7   :  { %2164 = vperm.xlu0 %5711, %v7288_v61   ;;  %1969 = vperm.xlu1 %5690, %v7288_v61   ;;  %v4503_v57 = vsub.f32 %v7307_v21, %v8865_v41 }
 0x6d9   :  { %v4504_v27 = vand.u32 4294901760, %v4503_v57 }
 0x6db   :  { %5719 = vset.pattern.permute.xlu0 %v8985_v2  ;;  %5691 = vset.pattern.permute.xlu1 %v8976_v30 }
 0x6dc   :  { %5315 = vmatprep.mubr.f32.mxu0 %v4504_v27  ;;  %2239 = vperm.xlu0 %5719, %v7288_v61  }
 0x6dd   :  { %1979 = vperm.xlu1 %5691, %v7288_v61  }
 0x6e0   :  { %5727 = vset.pattern.permute.xlu0 %v9059_v10  ;;  %v9122_v10 = vmov 55  }
 0x6e1   :  { %5692 = vset.pattern.permute.xlu1 %v8978_v45  ;;  %2314 = vperm.xlu0 %5727, %v7288_v61  }
 0x6e2   :  { %1989 = vperm.xlu1 %5692, %v7288_v61  }
 0x6e5   :  { %5735 = vset.pattern.permute.xlu0 %v9064_v39 }
 0x6e6   :  { %5693 = vset.pattern.permute.xlu1 %v8980_v52  ;;  %2389 = vperm.xlu0 %5735, %v7288_v61  }
 0x6e7   :  { %1999 = vperm.xlu1 %5693, %v7288_v61  }
 0x6ea   :  { %5743 = vset.pattern.permute.xlu0 %v9043_v53  ;;  %v9119_v53 = vmov 52  }
 0x6eb   :  { %5694 = vset.pattern.permute.xlu1 %v8982_v54  ;;  %2464 = vperm.xlu0 %5743, %v7288_v61  }
 0x6ec   :  { %2009 = vperm.xlu1 %5694, %v7288_v61  }
 0x6ef   :  { %5750 = vset.pattern.permute.xlu0 %v9033_v16  ;;  %v9118_v16 = vmov 51  }
 0x6f0   :  { %5696 = vset.pattern.permute.xlu1 %v8984_v14 }
 0x6f1   :  { %2024 = vperm.xlu1 %5696, %v7288_v61  }
 0x6f5   :  { %5697 = vset.pattern.permute.xlu1 %v8986_v48 }
 0x6f6   :  { %2034 = vperm.xlu1 %5697, %v7288_v61  }
 0x6fa   :  { %5698 = vset.pattern.permute.xlu1 %v8971_v62 }
 0x6fb   :  { %2044 = vperm.xlu1 %5698, %v7288_v61  }
 0x6ff   :  { %5699 = vset.pattern.permute.xlu1 %v8988_v19 }
 0x700   :  { %2054 = vperm.xlu1 %5699, %v7288_v61  }
 0x704   :  { %5700 = vset.pattern.permute.xlu1 %v8990_v17 }
 0x705   :  { %2064 = vperm.xlu1 %5700, %v7288_v61  }
 0x709   :  { %5701 = vset.pattern.permute.xlu1 %v8973_v15 }
 0x70a   :  { %2074 = vperm.xlu1 %5701, %v7288_v61  }
 0x70e   :  { %5702 = vset.pattern.permute.xlu1 %v9034_v12 }
 0x70f   :  { %2084 = vperm.xlu1 %5702, %v7288_v61  }
 0x713   :  { %5704 = vset.pattern.permute.xlu1 %v9088_v55 }
 0x714   :  { %2099 = vperm.xlu1 %5704, %v7288_v61  }
 0x718   :  { %5705 = vset.pattern.permute.xlu1 %v9089_v1 }
 0x719   :  { %2109 = vperm.xlu1 %5705, %v7288_v61  }
 0x71d   :  { %5706 = vset.pattern.permute.xlu1 %v9090_v47 }
 0x71e   :  { %2119 = vperm.xlu1 %5706, %v7288_v61  }
 0x722   :  { %5707 = vset.pattern.permute.xlu1 %v9091_v40 }
 0x723   :  { %2129 = vperm.xlu1 %5707, %v7288_v61  }
 0x727   :  { %5708 = vset.pattern.permute.xlu1 %v9092_v44 }
 0x728   :  { %2139 = vperm.xlu1 %5708, %v7288_v61  }
 0x72c   :  { %5709 = vset.pattern.permute.xlu1 %v9093_v63 }
 0x72d   :  { %2149 = vperm.xlu1 %5709, %v7288_v61  }
 0x731   :  { %5710 = vset.pattern.permute.xlu1 %v9094_v20 }
 0x732   :  { %2159 = vperm.xlu1 %5710, %v7288_v61  }
 0x736   :  { %5712 = vset.pattern.permute.xlu1 %v9095_v25 }
 0x737   :  { %2174 = vperm.xlu1 %5712, %v7288_v61  }
 0x73b   :  { %5713 = vset.pattern.permute.xlu1 %v9096_v9 }
 0x73c   :  { %2184 = vperm.xlu1 %5713, %v7288_v61  }
 0x740   :  { %5714 = vset.pattern.permute.xlu1 %v9097_v43  ;;  %v9130_v43 = vmov 1  }
 0x741   :  { %2194 = vperm.xlu1 %5714, %v7288_v61  }
 0x743   :  { %v7368_v0 = vpop.permute.xlu1 %1934 }
 0x745   :  { %5715 = vset.pattern.permute.xlu1 %v9098_v35 }
 0x746   :  { %2204 = vperm.xlu1 %5715, %v7288_v61  }
 0x748   :  { %v1950_v24 = vpop.permute.xlu1 %1949 }
 0x749   :  { %v1952_v50 = vmul.f32 %v1950_v24, %v9099_v23  ;;  %v9108_v24 = vmov 39  }
 0x74a   :  { %5716 = vset.pattern.permute.xlu1 %v9100_v51 }
 0x74b   :  { %2214 = vperm.xlu1 %5716, %v7288_v61   ;;  %1954 = vrot.lane.b32.xlu0 %v1952_v50, %s6028_s8 }
 0x74d   :  { %v1960_v29 = vpop.permute.xlu1 %1959 }
 0x74e   :  { %v1962_v60 = vmul.f32 %v1960_v29, %v9099_v23 }
 0x74f   :  { %5717 = vset.pattern.permute.xlu1 %v9101_v11 }
 0x750   :  { %2224 = vperm.xlu1 %5717, %v7288_v61   ;;  %1964 = vrot.lane.b32.xlu0 %v1962_v60, %s6019_s0  ;;  %v9109_v60 = vmov 40  }
 0x752   :  { %v1970_v4 = vpop.permute.xlu1 %1969 }
 0x753   :  { %v1972_v3 = vmul.f32 %v1970_v4, %v9099_v23 }
 0x754   :  { %5718 = vset.pattern.permute.xlu1 %v9102_v59 }
 0x755   :  { %2234 = vperm.xlu1 %5718, %v7288_v61   ;;  %1974 = vrot.lane.b32.xlu0 %v1972_v3, %s6020_s1 }
 0x758   :  { %v1980_v58 = vpop.permute.xlu1 %1979 }
 0x759   :  { %v1982_v26 = vmul.f32 %v1980_v58, %v9099_v23  ;;  %5720 = vset.pattern.permute.xlu1 %v9103_v32  ;;  %v9110_v58 = vmov 42  }
 0x75a   :  { %2249 = vperm.xlu1 %5720, %v7288_v61  }
 0x75b   :  { %1984 = vrot.lane.b32.xlu0 %v1982_v26, %s6022_s30 }
 0x75d   :  { %v1990_v5 = vpop.permute.xlu1 %1989 }
 0x75e   :  { %v1992_v46 = vmul.f32 %v1990_v5, %v9099_v23  ;;  %5721 = vset.pattern.permute.xlu1 %v9104_v36  ;;  %v9125_v36 = vmov 59  }
 0x75f   :  { %2259 = vperm.xlu1 %5721, %v7288_v61  }
 0x760   :  { %1994 = vrot.lane.b32.xlu0 %v1992_v46, %s6024_s6  ;;  %v9111_v46 = vmov 43  }
 0x762   :  { %v2000_v28 = vpop.permute.xlu1 %1999 }
 0x763   :  { %v2002_v8 = vmul.f32 %v2000_v28, %v9099_v23  ;;  %5722 = vset.pattern.permute.xlu1 %v9105_v37 }
 0x764   :  { %2269 = vperm.xlu1 %5722, %v7288_v61  }
 0x765   :  { %2004 = vrot.lane.b32.xlu0 %v2002_v8, %s6026_s7 }
 0x767   :  { %v7396_v38 = vpop.permute.xlu1 %2009 }
 0x768   :  { %5723 = vset.pattern.permute.xlu1 %v9106_v18 }
 0x769   :  { %2279 = vperm.xlu1 %5723, %v7288_v61  }
 0x76c   :  { %v2025_v7 = vpop.permute.xlu1 %2024 }
 0x76d   :  { %v2027_v34 = vmul.f32 %v2025_v7, %v9099_v23  ;;  %5724 = vset.pattern.permute.xlu1 %v9107_v31  ;;  %v9112_v7 = vmov 44   ;;  %v9123_v31 = vmov 56  }
 0x76e   :  { %2289 = vperm.xlu1 %5724, %v7288_v61  }
 0x76f   :  { %2029 = vrot.lane.b32.xlu0 %v2027_v34, %s6028_s8 }
 0x771   :  { %v2035_v57 = vpop.permute.xlu1 %2034 }
 0x772   :  { %v2037_v27 = vmul.f32 %v2035_v57, %v9099_v23  ;;  %5725 = vset.pattern.permute.xlu1 %v9108_v24  ;;  %v9113_v57 = vmov 45  }
 0x773   :  { %2299 = vperm.xlu1 %5725, %v7288_v61  }
 0x774   :  { %2039 = vrot.lane.b32.xlu0 %v2037_v27, %s6019_s0 }
 0x776   :  { %v2045_v50 = vpop.permute.xlu1 %2044 }
 0x777   :  { %v2047_v29 = vmul.f32 %v2045_v50, %v9099_v23  ;;  %5726 = vset.pattern.permute.xlu1 %v9109_v60 }
 0x778   :  { %2309 = vperm.xlu1 %5726, %v7288_v61  }
 0x779   :  { %2049 = vrot.lane.b32.xlu0 %v2047_v29, %s6020_s1  ;;  %v9114_v29 = vmov 46  }
 0x77b   :  { %v2055_v4 = vpop.permute.xlu1 %2054 }
 0x77c   :  { %v2057_v3 = vmul.f32 %v2055_v4, %v9099_v23  ;;  %5728 = vset.pattern.permute.xlu1 %v9110_v58 }
 0x77d   :  { %2324 = vperm.xlu1 %5728, %v7288_v61  }
 0x77e   :  { %2059 = vrot.lane.b32.xlu0 %v2057_v3, %s6022_s30  ;;  %v7432_v3 = vpop.permute.xlu0 %1939 }
 0x780   :  { %v2065_v26 = vpop.permute.xlu1 %2064 }
 0x781   :  { %v2067_v5 = vmul.f32 %v2065_v26, %v9099_v23  ;;  %5729 = vset.pattern.permute.xlu1 %v9111_v46 }
 0x782   :  { %2334 = vperm.xlu1 %5729, %v7288_v61   ;;  %v7440_v41 = vpop.permute.xlu0 %2014 }
 0x783   :  { %2069 = vrot.lane.b32.xlu0 %v2067_v5, %s6024_s6  ;;  %v9115_v5 = vmov 47  }
 0x785   :  { %v2075_v28 = vpop.permute.xlu1 %2074 }
 0x786   :  { %v2077_v8 = vmul.f32 %v2075_v28, %v9099_v23  ;;  %5730 = vset.pattern.permute.xlu1 %v9112_v7  ;;  %v7447_v21 = vpop.permute.xlu0 %2089 }
 0x787   :  { %2344 = vperm.xlu1 %5730, %v7288_v61  }
 0x788   :  { %2079 = vrot.lane.b32.xlu0 %v2077_v8, %s6026_s7 }
 0x78a   :  { %v7424_v34 = vpop.permute.xlu1 %2084 }
 0x78b   :  { %5731 = vset.pattern.permute.xlu1 %v9113_v57  ;;  %v2087_v17 = vmul.f32 %v7424_v34, %v9099_v23 }
 0x78c   :  { %2354 = vperm.xlu1 %5731, %v7288_v61  }
 0x78f   :  { %v2100_v27 = vpop.permute.xlu1 %2099 }
 0x790   :  { %v2102_v50 = vmul.f32 %v2100_v27, %v9099_v23  ;;  %5732 = vset.pattern.permute.xlu1 %v9114_v29  ;;  %v9116_v27 = vmov 48  }
 0x791   :  { %2364 = vperm.xlu1 %5732, %v7288_v61  }
 0x792   :  { %2104 = vrot.lane.b32.xlu0 %v2102_v50, %s6028_s8 }
 0x794   :  { %v2110_v4 = vpop.permute.xlu1 %2109 }
 0x795   :  { %v2112_v26 = vmul.f32 %v2110_v4, %v9099_v23  ;;  %5733 = vset.pattern.permute.xlu1 %v9115_v5  ;;  %v9129_v5 = vmov 63  }
 0x796   :  { %2374 = vperm.xlu1 %5733, %v7288_v61  }
 0x797   :  { %2114 = vrot.lane.b32.xlu0 %v2112_v26, %s6019_s0 }
 0x799   :  { %v2120_v28 = vpop.permute.xlu1 %2119 }
 0x79a   :  { %v2122_v8 = vmul.f32 %v2120_v28, %v9099_v23  ;;  %5734 = vset.pattern.permute.xlu1 %v9116_v27 }
 0x79b   :  { %2384 = vperm.xlu1 %5734, %v7288_v61  }
 0x79c   :  { %2124 = vrot.lane.b32.xlu0 %v2122_v8, %s6020_s1  ;;  %v7454_v8 = vpop.permute.xlu0 %2164 }
 0x79e   :  { %v2130_v50 = vpop.permute.xlu1 %2129 }
 0x79f   :  { %v2132_v4 = vmul.f32 %v2130_v50, %v9099_v23  ;;  %5736 = vset.pattern.permute.xlu1 %v9117_v56 }
 0x7a0   :  { %2399 = vperm.xlu1 %5736, %v7288_v61  }
 0x7a1   :  { %2134 = vrot.lane.b32.xlu0 %v2132_v4, %s6022_s30  ;;  %v7460_v4 = vpop.permute.xlu0 %2239 }
 0x7a3   :  { %v2140_v26 = vpop.permute.xlu1 %2139 }
 0x7a4   :  { %v2142_v28 = vmul.f32 %v2140_v26, %v9099_v23  ;;  %5737 = vset.pattern.permute.xlu1 %v9118_v16  ;;  %v9120_v16 = vmov 53  }
 0x7a5   :  { %2409 = vperm.xlu1 %5737, %v7288_v61   ;;  %v7466_v58 = vpop.permute.xlu0 %2314 }
 0x7a6   :  { %2144 = vrot.lane.b32.xlu0 %v2142_v28, %s6024_s6 }
 0x7a8   :  { %v2150_v50 = vpop.permute.xlu1 %2149 }
 0x7a9   :  { %v2152_v56 = vmul.f32 %v2150_v50, %v9099_v23  ;;  %5738 = vset.pattern.permute.xlu1 %v9119_v53  ;;  %v9121_v50 = vmov 54   ;;  %v7474_v60 = vpop.permute.xlu0 %2389 }
 0x7aa   :  { %2419 = vperm.xlu1 %5738, %v7288_v61  }
 0x7ab   :  { %2154 = vrot.lane.b32.xlu0 %v2152_v56, %s6026_s7 }
 0x7ad   :  { %v7462_v26 = vpop.permute.xlu1 %2159 }
 0x7ae   :  { %5739 = vset.pattern.permute.xlu1 %v9120_v16 }
 0x7af   :  { %2429 = vperm.xlu1 %5739, %v7288_v61  }
 0x7b2   :  { %v2175_v28 = vpop.permute.xlu1 %2174 }
 0x7b3   :  { %v2177_v39 = vmul.f32 %v2175_v28, %v9099_v23  ;;  %5740 = vset.pattern.permute.xlu1 %v9121_v50  ;;  %v7481_v50 = vpop.permute.xlu0 %2464 }
 0x7b4   :  { %2439 = vperm.xlu1 %5740, %v7288_v61  }
 0x7b5   :  { %2179 = vrot.lane.b32.xlu0 %v2177_v39, %s6028_s8 }
 0x7b7   :  { %v2185_v56 = vpop.permute.xlu1 %2184 }
 0x7b8   :  { %v2187_v53 = vmul.f32 %v2185_v56, %v9099_v23  ;;  %5741 = vset.pattern.permute.xlu1 %v9122_v10  ;;  %v9124_v10 = vmov 58  }
 0x7b9   :  { %2449 = vperm.xlu1 %5741, %v7288_v61  }
 0x7ba   :  { %2189 = vrot.lane.b32.xlu0 %v2187_v53, %s6019_s0 }
 0x7bc   :  { %v2195_v16 = vpop.permute.xlu1 %2194 }
 0x7bd   :  { %v2197_v28 = vmul.f32 %v2195_v16, %v9099_v23  ;;  %5742 = vset.pattern.permute.xlu1 %v9123_v31  ;;  %v7486_v18 = vpop.permute.xlu0 %1954 }
 0x7be   :  { %2459 = vperm.xlu1 %5742, %v7288_v61  }
 0x7bf   :  { %2199 = vrot.lane.b32.xlu0 %v2197_v28, %s6020_s1 }
 0x7c1   :  { %v2205_v39 = vpop.permute.xlu1 %2204 }
 0x7c2   :  { %v2207_v56 = vmul.f32 %v2205_v39, %v9099_v23  ;;  %5744 = vset.pattern.permute.xlu1 %v9124_v10  ;;  %v7493_v32 = vpop.permute.xlu0 %1964  ;;  %v9126_v10 = vmov 60  }
 0x7c3   :  { %2474 = vperm.xlu1 %5744, %v7288_v61  }
 0x7c4   :  { %2209 = vrot.lane.b32.xlu0 %v2207_v56, %s6022_s30 }
 0x7c6   :  { %v2215_v16 = vpop.permute.xlu1 %2214 }
 0x7c7   :  { %v2217_v53 = vmul.f32 %v2215_v16, %v9099_v23  ;;  %5745 = vset.pattern.permute.xlu1 %v9125_v36  ;;  %v7500_v56 = vpop.permute.xlu0 %1974  ;;  %v9127_v36 = vmov 61  }
 0x7c8   :  { %2484 = vperm.xlu1 %5745, %v7288_v61  }
 0x7c9   :  { %2219 = vrot.lane.b32.xlu0 %v2217_v53, %s6024_s6 }
 0x7cb   :  { %v2225_v28 = vpop.permute.xlu1 %2224 }
 0x7cc   :  { %v2227_v39 = vmul.f32 %v2225_v28, %v9099_v23  ;;  %5746 = vset.pattern.permute.xlu1 %v9126_v10  ;;  %v9128_v28 = vmov 62  }
 0x7cd   :  { %2494 = vperm.xlu1 %5746, %v7288_v61   ;;  %v7506_v59 = vpop.permute.xlu0 %1984 }
 0x7ce   :  { %2229 = vrot.lane.b32.xlu0 %v2227_v39, %s6026_s7 }
 0x7d0   :  { %v7502_v16 = vpop.permute.xlu1 %2234 }
 0x7d1   :  { %5747 = vset.pattern.permute.xlu1 %v9127_v36 }
 0x7d2   :  { %2504 = vperm.xlu1 %5747, %v7288_v61   ;;  %v7512_v10 = vpop.permute.xlu0 %1994 }
 0x7d5   :  { %v2250_v53 = vpop.permute.xlu1 %2249 }
 0x7d6   :  { %v2252_v11 = vmul.f32 %v2250_v53, %v9099_v23  ;;  %5748 = vset.pattern.permute.xlu1 %v9128_v28  ;;  %v1942_v53 = vmul.f32 %v7432_v3, %v9099_v23 }
 0x7d7   :  { %2514 = vperm.xlu1 %5748, %v7288_v61  }
 0x7d8   :  { %2254 = vrot.lane.b32.xlu0 %v2252_v11, %s6028_s8  ;;  %v7522_v11 = vpop.permute.xlu0 %2004 }
 0x7da   :  { %v2260_v39 = vpop.permute.xlu1 %2259 }
 0x7db   :  { %v2262_v35 = vmul.f32 %v2260_v39, %v9099_v23  ;;  %5749 = vset.pattern.permute.xlu1 %v9129_v5  ;;  %v2017_v39 = vmul.f32 %v7440_v41, %v9099_v23  ;;  %v2167_v41 = vmul.f32 %v7454_v8, %v9099_v23  ;;  %v2317_v8 = vmul.f32 %v7466_v58, %v9099_v23 }
 0x7dc   :  { %2524 = vperm.xlu1 %5749, %v7288_v61  }
 0x7dd   :  { %2264 = vrot.lane.b32.xlu0 %v2262_v35, %s6019_s0 }
 0x7df   :  { %v2270_v36 = vpop.permute.xlu1 %2269 }
 0x7e0   :  { %v2272_v28 = vmul.f32 %v2270_v36, %v9099_v23  ;;  %1944 = vrot.lane.b32.xlu1 %v1942_v53, %s6044_s9  ;;  %v2092_v36 = vmul.f32 %v7447_v21, %v9099_v23 }
 0x7e1   :  { %5751 = vset.pattern.permute.xlu1 %v9130_v43  ;;  %v7529_v35 = vpop.permute.xlu0 %2029 }
 0x7e2   :  { %2274 = vrot.lane.b32.xlu0 %v2272_v28, %s6020_s1 }
 0x7e4   :  { %2019 = vrot.lane.b32.xlu1 %v2017_v39, %s6044_s9  ;;  %v2280_v61 = vpop.permute.xlu1 %2279  ;;  %v2242_v39 = vmul.f32 %v7460_v4, %v9099_v23 }
 0x7e5   :  { %v2282_v3 = vmul.f32 %v2280_v61, %v9099_v23 }
 0x7e6   :  { %v7539_v43 = vpop.permute.xlu0 %2039 }
 0x7e7   :  { %2284 = vrot.lane.b32.xlu0 %v2282_v3, %s6022_s30 }
 0x7e8   :  { %2094 = vrot.lane.b32.xlu1 %v2092_v36, %s6044_s9 }
 0x7e9   :  { %v2290_v53 = vpop.permute.xlu1 %2289 }
 0x7ea   :  { %v2292_v28 = vmul.f32 %v2290_v53, %v9099_v23  ;;  %v2392_v53 = vmul.f32 %v7474_v60, %v9099_v23 }
 0x7eb   :  { %v7547_v3 = vpop.permute.xlu0 %2049 }
 0x7ec   :  { %2169 = vrot.lane.b32.xlu1 %v2167_v41, %s6044_s9  ;;  %2294 = vrot.lane.b32.xlu0 %v2292_v28, %s6024_s6 }
 0x7ee   :  { %v2300_v21 = vpop.permute.xlu1 %2299 }
 0x7ef   :  { %v2302_v61 = vmul.f32 %v2300_v21, %v9099_v23 }
 0x7f0   :  { %2244 = vrot.lane.b32.xlu1 %v2242_v39, %s6044_s9  ;;  %v7557_v4 = vpop.permute.xlu0 %2059  ;;  %v2467_v39 = vmul.f32 %v7481_v50, %v9099_v23 }
 0x7f1   :  { %2304 = vrot.lane.b32.xlu0 %v2302_v61, %s6026_s7 }
 0x7f3   :  { %v7552_v36 = vpop.permute.xlu1 %2309 }
 0x7f4   :  { %2319 = vrot.lane.b32.xlu1 %v2317_v8, %s6044_s9 }
 0x7f5   :  { %v7565_v58 = vpop.permute.xlu0 %2069 }
 0x7f8   :  { %2394 = vrot.lane.b32.xlu1 %v2392_v53, %s6044_s9  ;;  %v2325_v41 = vpop.permute.xlu1 %2324 }
 0x7f9   :  { %v2327_v28 = vmul.f32 %v2325_v41, %v9099_v23 }
 0x7fa   :  { %v7569_v8 = vpop.permute.xlu0 %2079 }
 0x7fb   :  { %2329 = vrot.lane.b32.xlu0 %v2327_v28, %s6028_s8 }
 0x7fc   :  { %2469 = vrot.lane.b32.xlu1 %v2467_v39, %s6044_s9 }
 0x7fd   :  { %v2335_v21 = vpop.permute.xlu1 %2334 }
 0x7fe   :  { %v2337_v61 = vmul.f32 %v2335_v21, %v9099_v23 }
 0x800   :  { %2339 = vrot.lane.b32.xlu0 %v2337_v61, %s6019_s0 }
 0x802   :  { %v2345_v60 = vpop.permute.xlu1 %2344 }
 0x803   :  { %v2347_v53 = vmul.f32 %v2345_v60, %v9099_v23 }
 0x804   :  { %v7573_v41 = vpop.permute.xlu0 %2104 }
 0x805   :  { %2349 = vrot.lane.b32.xlu0 %v2347_v53, %s6020_s1 }
 0x807   :  { %v2355_v50 = vpop.permute.xlu1 %2354 }
 0x808   :  { %v2357_v28 = vmul.f32 %v2355_v50, %v9099_v23 }
 0x809   :  { %v7577_v5 = vpop.permute.xlu0 %2114 }
 0x80a   :  { %2359 = vrot.lane.b32.xlu0 %v2357_v28, %s6022_s30 }
 0x80c   :  { %v2365_v39 = vpop.permute.xlu1 %2364 }
 0x80d   :  { %v2367_v21 = vmul.f32 %v2365_v39, %v9099_v23 }
 0x80e   :  { %v7582_v60 = vpop.permute.xlu0 %2124 }
 0x80f   :  { %2369 = vrot.lane.b32.xlu0 %v2367_v21, %s6024_s6 }
 0x811   :  { %v2375_v61 = vpop.permute.xlu1 %2374 }
 0x812   :  { %v2377_v29 = vmul.f32 %v2375_v61, %v9099_v23 }
 0x813   :  { %v7587_v25 = vpop.permute.xlu0 %2134 }
 0x814   :  { %2379 = vrot.lane.b32.xlu0 %v2377_v29, %s6026_s7 }
 0x816   :  { %v7585_v53 = vpop.permute.xlu1 %2384 }
 0x818   :  { %v7591_v57 = vpop.permute.xlu0 %2144 }
 0x81b   :  { %v2400_v50 = vpop.permute.xlu1 %2399 }
 0x81c   :  { %v2402_v28 = vmul.f32 %v2400_v50, %v9099_v23 }
 0x81d   :  { %v7595_v61 = vpop.permute.xlu0 %2154 }
 0x81e   :  { %2404 = vrot.lane.b32.xlu0 %v2402_v28, %s6028_s8 }
 0x820   :  { %v2410_v39 = vpop.permute.xlu1 %2409 }
 0x821   :  { %v2412_v21 = vmul.f32 %v2410_v39, %v9099_v23 }
 0x823   :  { %2414 = vrot.lane.b32.xlu0 %v2412_v21, %s6019_s0 }
 0x825   :  { %v2420_v33 = vpop.permute.xlu1 %2419 }
 0x826   :  { %v2422_v29 = vmul.f32 %v2420_v33, %v9099_v23 }
 0x827   :  { %v2180_v7 = vpop.permute.xlu0 %2179 }
 0x828   :  { %2424 = vrot.lane.b32.xlu0 %v2422_v29, %s6020_s1 }
 0x82a   :  { %v2430_v63 = vpop.permute.xlu1 %2429 }
 0x82b   :  { %v2432_v50 = vmul.f32 %v2430_v63, %v9099_v23 }
 0x82c   :  { %v2190_v28 = vpop.permute.xlu0 %2189 }
 0x82d   :  { %2434 = vrot.lane.b32.xlu0 %v2432_v50, %s6022_s30 }
 0x82f   :  { %v2440_v46 = vpop.permute.xlu1 %2439 }
 0x830   :  { %v2442_v44 = vmul.f32 %v2440_v46, %v9099_v23 }
 0x831   :  { %v2200_v21 = vpop.permute.xlu0 %2199 }
 0x832   :  { %2444 = vrot.lane.b32.xlu0 %v2442_v44, %s6024_s6 }
 0x834   :  { %v2450_v39 = vpop.permute.xlu1 %2449 }
 0x835   :  { %v2452_v31 = vmul.f32 %v2450_v39, %v9099_v23 }
 0x836   :  { %v2210_v29 = vpop.permute.xlu0 %2209 }
 0x837   :  { %2454 = vrot.lane.b32.xlu0 %v2452_v31, %s6026_s7 }
 0x839   :  { %v7605_v33 = vpop.permute.xlu1 %2459 }
 0x83b   :  { %v2220_v27 = vpop.permute.xlu0 %2219 }
 0x83e   :  { %v2475_v47 = vpop.permute.xlu1 %2474 }
 0x83f   :  { %v2477_v63 = vmul.f32 %v2475_v47, %v9099_v23 }
 0x840   :  { %v2230_v44 = vpop.permute.xlu0 %2229 }
 0x841   :  { %2479 = vrot.lane.b32.xlu0 %v2477_v63, %s6028_s8 }
 0x843   :  { %v2485_v50 = vpop.permute.xlu1 %2484 }
 0x844   :  { %v2487_v46 = vmul.f32 %v2485_v50, %v9099_v23 }
 0x846   :  { %2489 = vrot.lane.b32.xlu0 %v2487_v46, %s6019_s0 }
 0x848   :  { %v2495_v1 = vpop.permute.xlu1 %2494 }
 0x849   :  { %v2497_v39 = vmul.f32 %v2495_v1, %v9099_v23 }
 0x84a   :  { %v2255_v24 = vpop.permute.xlu0 %2254 }
 0x84b   :  { %2499 = vrot.lane.b32.xlu0 %v2497_v39, %s6020_s1 }
 0x84d   :  { %v2505_v31 = vpop.permute.xlu1 %2504 }
 0x84e   :  { %v2507_v13 = vmul.f32 %v2505_v31, %v9099_v23  ;;  %v2012_v31 = vmul.f32 %v7396_v38, %v9099_v23 }
 0x84f   :  { %v2265_v47 = vpop.permute.xlu0 %2264 }
 0x850   :  { %2509 = vrot.lane.b32.xlu0 %v2507_v13, %s6022_s30 }
 0x852   :  { %v2515_v37 = vpop.permute.xlu1 %2514 }
 0x853   :  { %v2517_v63 = vmul.f32 %v2515_v37, %v9099_v23 }
 0x854   :  { %v2275_v50 = vpop.permute.xlu0 %2274 }
 0x855   :  { %2519 = vrot.lane.b32.xlu0 %v2517_v63, %s6024_s6 }
 0x857   :  { %v2525_v46 = vpop.permute.xlu1 %2524 }
 0x858   :  { %v2527_v12 = vmul.f32 %v2525_v46, %v9099_v23 }
 0x859   :  { %v2285_v39 = vpop.permute.xlu0 %2284 }
 0x85a   :  { %2529 = vrot.lane.b32.xlu0 %v2527_v12, %s6026_s7  ;;  %v2162_v12 = vmul.f32 %v7462_v26, %v9099_v23 }
 0x85b   :  { %v7619_v1 = vpop.permute.xlu1 %1944 }
 0x85e   :  { %v2295_v63 = vpop.permute.xlu0 %2294 }
 0x85f   :  { %v2020_v2 = vpop.permute.xlu1 %2019 }
 0x860   :  { %v2022_v13 = vadd.f32 %v2020_v2, %v2012_v31 }
 0x862   :  { %v2032_v37 = vadd.f32 %v7529_v35, %v2022_v13  ;;  %v2237_v35 = vmul.f32 %v7502_v16, %v9099_v23 }
 0x863   :  { %v2095_v51 = vpop.permute.xlu1 %2094  ;;  %v2305_v20 = vpop.permute.xlu0 %2304 }
 0x864   :  { %v2042_v19 = vadd.f32 %v7539_v43, %v2032_v37  ;;  %v2097_v46 = vadd.f32 %v2095_v51, %v2087_v17 }
 0x866   :  { %v2052_v9 = vadd.f32 %v7547_v3, %v2042_v19  ;;  %v2107_v48 = vadd.f32 %v7573_v41, %v2097_v46 }
 0x867   :  { %v2170_v38 = vpop.permute.xlu1 %2169 }
 0x868   :  { %v2062_v2 = vadd.f32 %v7557_v4, %v2052_v9  ;;  %v2117_v31 = vadd.f32 %v7577_v5, %v2107_v48  ;;  %v2172_v34 = vadd.f32 %v2170_v38, %v2162_v12 }
 0x86a   :  { %v2127_v43 = vadd.f32 %v7582_v60, %v2117_v31  ;;  %v2182_v17 = vadd.f32 %v2180_v7, %v2172_v34  ;;  %v2072_v51 = vadd.f32 %v7565_v58, %v2062_v2 }
 0x86b   :  { %v2245_v26 = vpop.permute.xlu1 %2244 }
 0x86c   :  { %v2137_v19 = vadd.f32 %v7587_v25, %v2127_v43  ;;  %v2192_v3 = vadd.f32 %v2190_v28, %v2182_v17  ;;  %v2247_v41 = vadd.f32 %v2245_v26, %v2237_v35  ;;  %v2082_v13 = vadd.f32 %v7569_v8, %v2072_v51 }
 0x86d   :  { %v2330_v9 = vpop.permute.xlu0 %2329  ;;  %v2312_v8 = vmul.f32 %v7552_v36, %v9099_v23 }
 0x86e   :  { %v2202_v4 = vadd.f32 %v2200_v21, %v2192_v3  ;;  %v2257_v48 = vadd.f32 %v2255_v24, %v2247_v41  ;;  %2534 = vrot.lane.b32.xlu1 %v2082_v13, %s6046_s11  ;;  %v2147_v5 = vadd.f32 %v7591_v57, %v2137_v19 }
 0x86f   :  { %v2320_v46 = vpop.permute.xlu1 %2319 }
 0x870   :  { %v2212_v16 = vadd.f32 %v2210_v29, %v2202_v4  ;;  %v2267_v37 = vadd.f32 %v2265_v47, %v2257_v48  ;;  %v2157_v7 = vadd.f32 %v7595_v61, %v2147_v5  ;;  %v2322_v21 = vadd.f32 %v2320_v46, %v2312_v8 }
 0x872   :  { %v2277_v60 = vadd.f32 %v2275_v50, %v2267_v37  ;;  %v2340_v58 = vpop.permute.xlu0 %2339  ;;  %2538 = vrot.lane.b32.xlu0 %v2157_v7, %s6048_s13  ;;  %v2222_v25 = vadd.f32 %v2220_v27, %v2212_v16  ;;  %v2332_v61 = vadd.f32 %v2330_v9, %v2322_v21  ;;  %v2462_v7 = vmul.f32 %v7605_v33, %v9099_v23 }
 0x874   :  { %v2287_v28 = vadd.f32 %v2285_v39, %v2277_v60  ;;  %v2232_v12 = vadd.f32 %v2230_v44, %v2222_v25  ;;  %v2342_v50 = vadd.f32 %v2340_v58, %v2332_v61 }
 0x876   :  { %2542 = vrot.lane.b32.xlu1 %v2232_v12, %s6045_s10  ;;  %v2297_v24 = vadd.f32 %v2295_v63, %v2287_v28  ;;  %v2395_v63 = vpop.permute.xlu1 %2394 }
 0x877   :  { %v2350_v57 = vpop.permute.xlu0 %2349 }
 0x878   :  { %v2307_v29 = vadd.f32 %v2305_v20, %v2297_v24  ;;  %v2352_v38 = vadd.f32 %v2350_v57, %v2342_v50  ;;  %v2387_v20 = vmul.f32 %v7585_v53, %v9099_v23  ;;  %v1937_v57 = vmul.f32 %v7368_v0, %v9099_v23 }
 0x87a   :  { %2546 = vrot.lane.b32.xlu0 %v2307_v29, %s6050_s15  ;;  %v2397_v43 = vadd.f32 %v2395_v63, %v2387_v20  ;;  %v2470_v37 = vpop.permute.xlu1 %2469  ;;  %v1947_v29 = vadd.f32 %v7619_v1, %v1937_v57  ;;  %v9133_v63 = vmov 27   ;;  %v9134_v20 = vmov 13  }
 0x87b   :  { %v2472_v53 = vadd.f32 %v2470_v37, %v2462_v7  ;;  %v9148_v37 = vmov 23   ;;  %v9149_v7 = vmov 44   ;;  %v9160_v57 = vmov 32  }
 0x87c   :  { %v2360_v47 = vpop.permute.xlu0 %2359  ;;  %v1957_v61 = vadd.f32 %v7486_v18, %v1947_v29  ;;  %v9161_v29 = vmov 34  }
 0x87d   :  { %v2362_v27 = vadd.f32 %v2360_v47, %v2352_v38 }
 0x87e   :  { %v1967_v33 = vadd.f32 %v7493_v32, %v1957_v61  ;;  %v9162_v61 = vmov 35  }
 0x880   :  { %v1977_v47 = vadd.f32 %v7500_v56, %v1967_v33 }
 0x881   :  { %v2370_v2 = vpop.permute.xlu0 %2369 }
 0x882   :  { %v2372_v39 = vadd.f32 %v2370_v2, %v2362_v27  ;;  %v1987_v50 = vadd.f32 %v7506_v59, %v1977_v47  ;;  %v9163_v47 = vmov 37  }
 0x884   :  { %v1997_v2 = vadd.f32 %v7512_v10, %v1987_v50 }
 0x886   :  { %v2380_v31 = vpop.permute.xlu0 %2379 }
 0x887   :  { %v2382_v44 = vadd.f32 %v2380_v31, %v2372_v39  ;;  %v2007_v31 = vadd.f32 %v7522_v11, %v1997_v2  ;;  %v9131_v11 = vmov 24  }
 0x889   :  { %2550 = vrot.lane.b32.xlu1 %v2382_v44, %s6047_s12 }
 0x890   :  { %v2405_v36 = vpop.permute.xlu0 %2404 }
 0x891   :  { %v2407_v51 = vadd.f32 %v2405_v36, %v2397_v43  ;;  %v9135_v43 = vmov 30  }
 0x895   :  { %v2415_v34 = vpop.permute.xlu0 %2414 }
 0x896   :  { %v2417_v26 = vadd.f32 %v2415_v34, %v2407_v51  ;;  %v9137_v51 = vmov 33  }
 0x89a   :  { %v2425_v35 = vpop.permute.xlu0 %2424 }
 0x89b   :  { %v2427_v19 = vadd.f32 %v2425_v35, %v2417_v26  ;;  %v9132_v35 = vmov 11   ;;  %v9138_v26 = vmov 16  }
 0x89f   :  { %v2435_v17 = vpop.permute.xlu0 %2434 }
 0x8a0   :  { %v2437_v41 = vadd.f32 %v2435_v17, %v2427_v19  ;;  %v9136_v17 = vmov 14   ;;  %v9139_v19 = vmov 36  }
 0x8a4   :  { %v2445_v3 = vpop.permute.xlu0 %2444 }
 0x8a5   :  { %v2447_v13 = vadd.f32 %v2445_v3, %v2437_v41  ;;  %v9140_v3 = vmov 17   ;;  %v9141_v41 = vmov 39  }
 0x8a9   :  { %v2455_v9 = vpop.permute.xlu0 %2454 }
 0x8aa   :  { %v2457_v4 = vadd.f32 %v2455_v9, %v2447_v13  ;;  %v9142_v13 = vmov 19   ;;  %v9143_v9 = vmov 48  }
 0x8ac   :  { %2554 = vrot.lane.b32.xlu0 %v2457_v4, %s6051_s16  ;;  %v9144_v4 = vmov 20  }
 0x8b3   :  { %v2480_v48 = vpop.permute.xlu0 %2479 }
 0x8b4   :  { %v2482_v58 = vadd.f32 %v2480_v48, %v2472_v53  ;;  %v9145_v48 = vmov 56   ;;  %v9150_v53 = vmov 25  }
 0x8b8   :  { %v2490_v5 = vpop.permute.xlu0 %2489 }
 0x8b9   :  { %v2492_v25 = vadd.f32 %v2490_v5, %v2482_v58  ;;  %v9146_v5 = vmov 22   ;;  %v9152_v58 = vmov 26  }
 0x8bd   :  { %v2500_v16 = vpop.permute.xlu0 %2499 }
 0x8be   :  { %v2502_v28 = vadd.f32 %v2500_v16, %v2492_v25  ;;  %v9147_v16 = vmov 43   ;;  %v9153_v25 = vmov 46  }
 0x8c2   :  { %v2510_v60 = vpop.permute.xlu0 %2509 }
 0x8c3   :  { %v2512_v12 = vadd.f32 %v2510_v60, %v2502_v28  ;;  %v9151_v60 = vmov 45   ;;  %v9154_v28 = vmov 28  }
 0x8c7   :  { %v2520_v46 = vpop.permute.xlu0 %2519 }
 0x8c8   :  { %v2522_v8 = vadd.f32 %v2520_v46, %v2512_v12  ;;  %v9155_v46 = vmov 47   ;;  %v9156_v12 = vmov 29  }
 0x8cc   :  { %v2530_v24 = vpop.permute.xlu0 %2529 }
 0x8cd   :  { %v2532_v21 = vadd.f32 %v2530_v24, %v2522_v8  ;;  %v9157_v8 = vmov 63   ;;  %v9158_v24 = vmov 31  }
 0x8cf   :  { %2558 = vrot.lane.b32.xlu1 %v2532_v21, %s6049_s14  ;;  %v9159_v21 = vmov 1  }
 0x8e0   :  { %v2535_v38 = vpop.permute.xlu1 %2534 }
 0x8e1   :  { %v2561_v0 = vsel %vm1046_vm4, %v2007_v31, %v2535_v38  ;;  %v9164_v38 = vmov 38   ;;  %v9166_v31 = vmov 41  }
 0x8e4   :  { %v2539_v27 = vpop.permute.xlu0 %2538 }
 0x8e5   :  { %v2562_v23 = vsel %vm1048_vm5, %v2561_v0, %v2539_v27  ;;  %v9165_v27 = vmov 40   ;;  %v9167_v0 = vmov 49  }
 0x8e8   :  { %v2543_v39 = vpop.permute.xlu1 %2542 }
 0x8e9   :  { %v2563_v18 = vsel %vm1050_vm6, %v2562_v23, %v2543_v39 }
 0x8ec   :  { %v2547_v44 = vpop.permute.xlu0 %2546 }
 0x8ed   :  { %v2564_v56 = vsel %vm27_vm0, %v2563_v18, %v2547_v44 }
 0x8fb   :  { %v2551_v1 = vpop.permute.xlu1 %2550 }
 0x8fc   :  { %v2565_v59 = vsel %vm1053_vm7, %v2564_v56, %v2551_v1  ;;  %v9168_v1 = vmov 42  }
 0x91e   :  { %v2555_v32 = vpop.permute.xlu0 %2554 }
 0x91f   :  { %v2566_v36 = vsel %vm1055_vm8, %v2565_v59, %v2555_v32  ;;  %v9169_v32 = vmov 57   ;;  %v9170_v59 = vmov 50  }
 0x941   :  { %v2559_v10 = vpop.permute.xlu1 %2558 }
 0x942   :  { %v7670_v34 = vsel %vm1057_vm9, %v2566_v36, %v2559_v10  ;;  %v9171_v10 = vmov 58  }
 0x943   :  { %2568 = vst.msk [vmem:[#allocation2 + $0x8] sm:$0x3] %vm616_vm3, %v7670_v34  ;;  %2579 = vperm.xlu1 %5751, %v7670_v34   ;;  %2571 = vperm.xlu0 %5750, %v7670_v34  }
 0x947   :  { %5753 = vset.pattern.permute.xlu1 %v8972_v6  ;;  %5752 = vset.pattern.permute.xlu0 %v8970_v49 }
 0x948   :  { %2597 = vperm.xlu1 %5753, %v7670_v34   ;;  %2588 = vperm.xlu0 %5752, %v7670_v34  }
 0x94c   :  { %5754 = vset.pattern.permute.xlu1 %v8974_v22  ;;  %5759 = vset.pattern.permute.xlu0 %v8969_v42 }
 0x94d   :  { %2606 = vperm.xlu1 %5754, %v7670_v34   ;;  %2647 = vperm.xlu0 %5759, %v7670_v34  }
 0x951   :  { %5755 = vset.pattern.permute.xlu1 %v8976_v30  ;;  %5762 = vset.pattern.permute.xlu0 %v8971_v62  ;;  %v9172_v30 = vmov 51  }
 0x952   :  { %2615 = vperm.xlu1 %5755, %v7670_v34   ;;  %2665 = vperm.xlu0 %5762, %v7670_v34  }
 0x956   :  { %5756 = vset.pattern.permute.xlu1 %v8978_v45  ;;  %5765 = vset.pattern.permute.xlu0 %v8973_v15 }
 0x957   :  { %2624 = vperm.xlu1 %5756, %v7670_v34   ;;  %2683 = vperm.xlu0 %5765, %v7670_v34  }
 0x95b   :  { %5757 = vset.pattern.permute.xlu1 %v8980_v52  ;;  %5768 = vset.pattern.permute.xlu0 %v9088_v55  ;;  %v9178_v52 = vld [vmem:[#allocation38_spill] sm:$0xff] }
 0x95c   :  { %2633 = vperm.xlu1 %5757, %v7670_v34   ;;  %2700 = vperm.xlu0 %5768, %v7670_v34  }
 0x960   :  { %5758 = vset.pattern.permute.xlu1 %v8982_v54  ;;  %5771 = vset.pattern.permute.xlu0 %v9091_v40  ;;  %v9175_v40 = vmov 60  }
 0x961   :  { %2642 = vperm.xlu1 %5758, %v7670_v34   ;;  %2718 = vperm.xlu0 %5771, %v7670_v34  }
 0x965   :  { %5760 = vset.pattern.permute.xlu1 %v8984_v14  ;;  %5774 = vset.pattern.permute.xlu0 %v9131_v11 }
 0x966   :  { %2653 = vperm.xlu1 %5760, %v7670_v34   ;;  %2736 = vperm.xlu0 %5774, %v7670_v34  }
 0x96a   :  { %5761 = vset.pattern.permute.xlu1 %v9132_v35  ;;  %5777 = vset.pattern.permute.xlu0 %v9133_v63 }
 0x96b   :  { %2659 = vperm.xlu1 %5761, %v7670_v34   ;;  %2753 = vperm.xlu0 %5777, %v7670_v34  }
 0x96f   :  { %5763 = vset.pattern.permute.xlu1 %v9134_v20  ;;  %5780 = vset.pattern.permute.xlu0 %v9135_v43  ;;  %v9177_v20 = vld [vmem:[#allocation14_spill] sm:$0xff] }
 0x970   :  { %2671 = vperm.xlu1 %5763, %v7670_v34   ;;  %2771 = vperm.xlu0 %5780, %v7670_v34  }
 0x974   :  { %5764 = vset.pattern.permute.xlu1 %v9136_v17  ;;  %5783 = vset.pattern.permute.xlu0 %v9137_v51 }
 0x975   :  { %2677 = vperm.xlu1 %5764, %v7670_v34   ;;  %2788 = vperm.xlu0 %5783, %v7670_v34  }
 0x979   :  { %5766 = vset.pattern.permute.xlu1 %v9138_v26  ;;  %5786 = vset.pattern.permute.xlu0 %v9139_v19 }
 0x97a   :  { %2689 = vperm.xlu1 %5766, %v7670_v34   ;;  %2806 = vperm.xlu0 %5786, %v7670_v34  }
 0x97e   :  { %5767 = vset.pattern.permute.xlu1 %v9140_v3  ;;  %5789 = vset.pattern.permute.xlu0 %v9141_v41 }
 0x97f   :  { %2694 = vperm.xlu1 %5767, %v7670_v34   ;;  %2824 = vperm.xlu0 %5789, %v7670_v34  }
 0x983   :  { %5769 = vset.pattern.permute.xlu1 %v9142_v13  ;;  %5792 = vset.pattern.permute.xlu0 %v9143_v9 }
 0x984   :  { %2706 = vperm.xlu1 %5769, %v7670_v34   ;;  %2877 = vperm.xlu0 %5792, %v7670_v34  }
 0x988   :  { %5770 = vset.pattern.permute.xlu1 %v9144_v4  ;;  %5795 = vset.pattern.permute.xlu0 %v9145_v48 }
 0x989   :  { %2712 = vperm.xlu1 %5770, %v7670_v34   ;;  %2924 = vperm.xlu0 %5795, %v7670_v34  }
 0x98d   :  { %5772 = vset.pattern.permute.xlu1 %v9146_v5  ;;  %5798 = vset.pattern.permute.xlu0 %v9147_v16 }
 0x98e   :  { %2724 = vperm.xlu1 %5772, %v7670_v34   ;;  %2847 = vperm.xlu0 %5798, %v7670_v34  }
 0x992   :  { %5773 = vset.pattern.permute.xlu1 %v9148_v37  ;;  %5801 = vset.pattern.permute.xlu0 %v9149_v7  ;;  %v9173_v37 = vmov 59  }
 0x993   :  { %2730 = vperm.xlu1 %5773, %v7670_v34   ;;  %2853 = vperm.xlu0 %5801, %v7670_v34  }
 0x997   :  { %5775 = vset.pattern.permute.xlu1 %v9150_v53  ;;  %5804 = vset.pattern.permute.xlu0 %v9151_v60 }
 0x998   :  { %2741 = vperm.xlu1 %5775, %v7670_v34   ;;  %2859 = vperm.xlu0 %5804, %v7670_v34  }
 0x99c   :  { %5776 = vset.pattern.permute.xlu1 %v9152_v58  ;;  %5807 = vset.pattern.permute.xlu0 %v9153_v25 }
 0x99d   :  { %2747 = vperm.xlu1 %5776, %v7670_v34   ;;  %2865 = vperm.xlu0 %5807, %v7670_v34  }
 0x9a1   :  { %5778 = vset.pattern.permute.xlu1 %v9154_v28  ;;  %5810 = vset.pattern.permute.xlu0 %v9155_v46  ;;  %v9176_v28 = vmov 53  }
 0x9a2   :  { %2759 = vperm.xlu1 %5778, %v7670_v34   ;;  %2871 = vperm.xlu0 %5810, %v7670_v34  }
 0x9a6   :  { %5779 = vset.pattern.permute.xlu1 %v9156_v12  ;;  %5813 = vset.pattern.permute.xlu0 %v9157_v8  ;;  %v9179_v8 = vld [vmem:[#allocation39_spill] sm:$0xff] }
 0x9a7   :  { %2765 = vperm.xlu1 %5779, %v7670_v34   ;;  %2965 = vperm.xlu0 %5813, %v7670_v34  }
 0x9ab   :  { %5781 = vset.pattern.permute.xlu1 %v9158_v24  ;;  %5815 = vset.pattern.permute.xlu0 %v9159_v21 }
 0x9ac   :  { %2777 = vperm.xlu1 %5781, %v7670_v34  }
 0x9b0   :  { %5782 = vset.pattern.permute.xlu1 %v9160_v57 }
 0x9b1   :  { %2783 = vperm.xlu1 %5782, %v7670_v34  }
 0x9b5   :  { %5784 = vset.pattern.permute.xlu1 %v9161_v29 }
 0x9b6   :  { %2794 = vperm.xlu1 %5784, %v7670_v34  }
 0x9ba   :  { %5785 = vset.pattern.permute.xlu1 %v9162_v61 }
 0x9bb   :  { %2800 = vperm.xlu1 %5785, %v7670_v34  }
 0x9be   :  { %v7765_v33 = vpop.permute.xlu1 %2579  ;;  %v7794_v21 = vpop.permute.xlu0 %2571 }
 0x9bf   :  { %5787 = vset.pattern.permute.xlu1 %v9163_v47  ;;  %v9174_v47 = vmov 52  }
 0x9c0   :  { %2812 = vperm.xlu1 %5787, %v7670_v34  }
 0x9c3   :  { %v7769_v50 = vpop.permute.xlu1 %2597  ;;  %v7799_v46 = vpop.permute.xlu0 %2588 }
 0x9c4   :  { %5788 = vset.pattern.permute.xlu1 %v9164_v38  ;;  %v9181_v38 = vmov 61  }
 0x9c5   :  { %2818 = vperm.xlu1 %5788, %v7670_v34  }
 0x9c8   :  { %v7773_v2 = vpop.permute.xlu1 %2606  ;;  %v2648_v60 = vpop.permute.xlu0 %2647 }
 0x9c9   :  { %5790 = vset.pattern.permute.xlu1 %v9165_v27  ;;  %v2650_v61 = vmul.f32 %v2648_v60, %v9178_v52 }
 0x9ca   :  { %2830 = vperm.xlu1 %5790, %v7670_v34  }
 0x9cd   :  { %v7777_v39 = vpop.permute.xlu1 %2615  ;;  %v2666_v7 = vpop.permute.xlu0 %2665 }
 0x9ce   :  { %5791 = vset.pattern.permute.xlu1 %v9166_v31 }
 0x9cf   :  { %2835 = vperm.xlu1 %5791, %v7670_v34  }
 0x9d2   :  { %v7781_v44 = vpop.permute.xlu1 %2624 }
 0x9d3   :  { %5793 = vset.pattern.permute.xlu1 %v9167_v0 }
 0x9d4   :  { %2882 = vperm.xlu1 %5793, %v7670_v34  }
 0x9d7   :  { %v7785_v23 = vpop.permute.xlu1 %2633 }
 0x9d8   :  { %5794 = vset.pattern.permute.xlu1 %v9168_v1  ;;  %v9180_v1 = vld [vmem:[#allocation33_spill] sm:$0xff] }
 0x9d9   :  { %2841 = vperm.xlu1 %5794, %v7670_v34  }
 0x9dc   :  { %v2643_v18 = vpop.permute.xlu1 %2642 }
 0x9dd   :  { %5796 = vset.pattern.permute.xlu1 %v9169_v32 }
 0x9de   :  { %2929 = vperm.xlu1 %5796, %v7670_v34  }
 0x9e1   :  { %v2654_v56 = vpop.permute.xlu1 %2653 }
 0x9e2   :  { %5797 = vset.pattern.permute.xlu1 %v9170_v59 }
 0x9e3   :  { %2888 = vperm.xlu1 %5797, %v7670_v34  }
 0x9e6   :  { %v2660_v36 = vpop.permute.xlu1 %2659 }
 0x9e7   :  { %5799 = vset.pattern.permute.xlu1 %v9171_v10  ;;  %v2684_v10 = vpop.permute.xlu0 %2683  ;;  %v2662_v25 = vmul.f32 %v2660_v36, %v9180_v1  ;;  %v9184_v36 = vld [vmem:[#allocation35_spill] sm:$0xff] }
 0x9e8   :  { %2935 = vperm.xlu1 %5799, %v7670_v34  }
 0x9eb   :  { %v2672_v45 = vpop.permute.xlu1 %2671  ;;  %v2701_v0 = vpop.permute.xlu0 %2700 }
 0x9ec   :  { %5800 = vset.pattern.permute.xlu1 %v9172_v30 }
 0x9ed   :  { %2894 = vperm.xlu1 %5800, %v7670_v34  }
 0x9f0   :  { %v2678_v24 = vpop.permute.xlu1 %2677 }
 0x9f1   :  { %5802 = vset.pattern.permute.xlu1 %v9173_v37  ;;  %v2645_v37 = vmul.f32 %v2643_v18, %v9177_v20 }
 0x9f2   :  { %2941 = vperm.xlu1 %5802, %v7670_v34  }
 0x9f3   :  { %v2651_v41 = vadd.f32 %v2650_v61, %v2645_v37 }
 0x9f5   :  { %v2690_v43 = vpop.permute.xlu1 %2689 }
 0x9f6   :  { %5803 = vset.pattern.permute.xlu1 %v9174_v47  ;;  %v2656_v47 = vmul.f32 %v2654_v56, %v9179_v8  ;;  %v2692_v62 = vmul.f32 %v2690_v43, %v9177_v20  ;;  %v9182_v56 = vmov 54  }
 0x9f7   :  { %2900 = vperm.xlu1 %5803, %v7670_v34  }
 0x9f8   :  { %v2657_v18 = vadd.f32 %v2656_v47, %v2651_v41  ;;  %v2719_v41 = vpop.permute.xlu0 %2718 }
 0x9fa   :  { %v2695_v17 = vpop.permute.xlu1 %2694  ;;  %v2663_v60 = vadd.f32 %v2662_v25, %v2657_v18 }
 0x9fb   :  { %5805 = vset.pattern.permute.xlu1 %v9175_v40  ;;  %v2697_v4 = vmul.f32 %v2695_v17, %v9178_v52  ;;  %v2703_v40 = vmul.f32 %v2701_v0, %v9179_v8  ;;  %v9183_v17 = vld [vmem:[#allocation34_spill] sm:$0xff]  ;;  %v9186_v0 = vmov 62  }
 0x9fc   :  { %2947 = vperm.xlu1 %5805, %v7670_v34   ;;  %v2668_v15 = vmul.f32 %v2666_v7, %v9183_v17 }
 0x9fe   :  { %v2669_v43 = vadd.f32 %v2668_v15, %v2663_v60  ;;  %v2737_v15 = vpop.permute.xlu0 %2736  ;;  %v9187_v60 = vmov 55  }
 0x9ff   :  { %v2707_v30 = vpop.permute.xlu1 %2706 }
 0xa00   :  { %5806 = vset.pattern.permute.xlu1 %v9176_v28  ;;  %v2698_v28 = vadd.f32 %v2697_v4, %v2692_v62  ;;  %v2709_v61 = vmul.f32 %v2707_v30, %v9180_v1  ;;  %v9185_v4 = vld [vmem:[#allocation36_spill] sm:$0xff]  ;;  %v2721_v30 = vmul.f32 %v2719_v41, %v9184_v36 }
 0xa01   :  { %2906 = vperm.xlu1 %5806, %v7670_v34   ;;  %v2680_v47 = vmul.f32 %v2678_v24, %v9185_v4 }
 0xa02   :  { %v2704_v37 = vadd.f32 %v2703_v40, %v2698_v28 }
 0xa04   :  { %v2713_v48 = vpop.permute.xlu1 %2712  ;;  %v2710_v25 = vadd.f32 %v2709_v61, %v2704_v37  ;;  %v2739_v37 = vmul.f32 %v2737_v15, %v9177_v20 }
 0xa05   :  { %5808 = vset.pattern.permute.xlu1 %v9181_v38  ;;  %v2674_v38 = vmul.f32 %v2672_v45, %v9184_v36  ;;  %v2715_v13 = vmul.f32 %v2713_v48, %v9183_v17  ;;  %v9188_v45 = vld [vmem:[#allocation37_spill] sm:$0xff] }
 0xa06   :  { %2953 = vperm.xlu1 %5808, %v7670_v34   ;;  %v2686_v48 = vmul.f32 %v2684_v10, %v9188_v45  ;;  %v2754_v10 = vpop.permute.xlu0 %2753 }
 0xa07   :  { %v2675_v7 = vadd.f32 %v2674_v38, %v2669_v43  ;;  %v2716_v40 = vadd.f32 %v2715_v13, %v2710_v25  ;;  %v9189_v25 = vmov 0  }
 0xa09   :  { %v2725_v29 = vpop.permute.xlu1 %2724  ;;  %v2681_v28 = vadd.f32 %v2680_v47, %v2675_v7 }
 0xa0a   :  { %5809 = vset.pattern.permute.xlu1 %v9182_v56  ;;  %v2722_v56 = vadd.f32 %v2721_v30, %v2716_v40  ;;  %v2727_v5 = vmul.f32 %v2725_v29, %v9185_v4  ;;  %v2756_v40 = vmul.f32 %v2754_v10, %v9180_v1 }
 0xa0b   :  { %2912 = vperm.xlu1 %5809, %v7670_v34   ;;  %v2687_v38 = vadd.f32 %v2686_v48, %v2681_v28  ;;  %v2772_v28 = vpop.permute.xlu0 %2771 }
 0xa0c   :  { %v2728_v43 = vadd.f32 %v2727_v5, %v2722_v56  ;;  %v2774_v15 = vmul.f32 %v2772_v28, %v9185_v4 }
 0xa0e   :  { %v2731_v62 = vpop.permute.xlu1 %2730 }
 0xa0f   :  { %5811 = vset.pattern.permute.xlu1 %v9186_v0  ;;  %v2733_v13 = vmul.f32 %v2731_v62, %v9188_v45 }
 0xa10   :  { %2959 = vperm.xlu1 %5811, %v7670_v34  }
 0xa11   :  { %v2734_v29 = vadd.f32 %v2733_v13, %v2728_v43 }
 0xa13   :  { %v2742_v18 = vpop.permute.xlu1 %2741 }
 0xa14   :  { %5812 = vset.pattern.permute.xlu1 %v9187_v60  ;;  %v2744_v24 = vmul.f32 %v2742_v18, %v9178_v52 }
 0xa15   :  { %2918 = vperm.xlu1 %5812, %v7670_v34  }
 0xa16   :  { %v2745_v41 = vadd.f32 %v2744_v24, %v2739_v37  ;;  %v2789_v24 = vpop.permute.xlu0 %2788 }
 0xa18   :  { %v2748_v61 = vpop.permute.xlu1 %2747 }
 0xa19   :  { %v2750_v47 = vmul.f32 %v2748_v61, %v9179_v8  ;;  %2971 = vrot.lane.b32.xlu1 %v2687_v38, %s6046_s11 }
 0xa1a   :  { %5814 = vset.pattern.permute.xlu1 %v9189_v25  ;;  %v2807_v43 = vpop.permute.xlu0 %2806 }
 0xa1b   :  { %v2751_v7 = vadd.f32 %v2750_v47, %v2745_v41 }
 0xa1d   :  { %v2760_v34 = vpop.permute.xlu1 %2759  ;;  %2975 = vrot.lane.b32.xlu1 %v2734_v29, %s6048_s13  ;;  %v2757_v30 = vadd.f32 %v2756_v40, %v2751_v7  ;;  %v2791_v7 = vmul.f32 %v2789_v24, %v9178_v52 }
 0xa1e   :  { %v2762_v62 = vmul.f32 %v2760_v34, %v9183_v17  ;;  %v2825_v29 = vpop.permute.xlu0 %2824 }
 0xa20   :  { %v2763_v56 = vadd.f32 %v2762_v62, %v2757_v30 }
 0xa22   :  { %v2766_v5 = vpop.permute.xlu1 %2765 }
 0xa23   :  { %v2768_v18 = vmul.f32 %v2766_v5, %v9184_v36  ;;  %v2878_v5 = vpop.permute.xlu0 %2877 }
 0xa25   :  { %v2769_v48 = vadd.f32 %v2768_v18, %v2763_v56  ;;  %v2809_v18 = vmul.f32 %v2807_v43, %v9183_v17 }
 0xa27   :  { %v2778_v37 = vpop.permute.xlu1 %2777  ;;  %v2775_v38 = vadd.f32 %v2774_v15, %v2769_v48 }
 0xa28   :  { %v2780_v13 = vmul.f32 %v2778_v37, %v9188_v45 }
 0xa2a   :  { %v2781_v61 = vadd.f32 %v2780_v13, %v2775_v38  ;;  %v2925_v38 = vpop.permute.xlu0 %2924 }
 0xa2c   :  { %v2784_v41 = vpop.permute.xlu1 %2783  ;;  %2979 = vrot.lane.b32.xlu0 %v2781_v61, %s6045_s10 }
 0xa2d   :  { %v2786_v47 = vmul.f32 %v2784_v41, %v9177_v20  ;;  %v2827_v41 = vmul.f32 %v2825_v29, %v9188_v45 }
 0xa2f   :  { %v2792_v34 = vadd.f32 %v2791_v7, %v2786_v47 }
 0xa31   :  { %v2795_v10 = vpop.permute.xlu1 %2794 }
 0xa32   :  { %v2797_v40 = vmul.f32 %v2795_v10, %v9179_v8  ;;  %v2848_v10 = vpop.permute.xlu0 %2847 }
 0xa33   :  { %v2850_v29 = vmul.f32 %v2848_v10, %v9180_v1 }
 0xa34   :  { %v2798_v62 = vadd.f32 %v2797_v40, %v2792_v34 }
 0xa36   :  { %v2801_v30 = vpop.permute.xlu1 %2800  ;;  %v2854_v34 = vpop.permute.xlu0 %2853 }
 0xa37   :  { %v2803_v28 = vmul.f32 %v2801_v30, %v9180_v1 }
 0xa39   :  { %v2804_v56 = vadd.f32 %v2803_v28, %v2798_v62 }
 0xa3a   :  { %v2860_v62 = vpop.permute.xlu0 %2859 }
 0xa3b   :  { %v2813_v15 = vpop.permute.xlu1 %2812  ;;  %v2810_v48 = vadd.f32 %v2809_v18, %v2804_v56 }
 0xa3c   :  { %v2815_v37 = vmul.f32 %v2813_v15, %v9184_v36 }
 0xa3e   :  { %v2816_v61 = vadd.f32 %v2815_v37, %v2810_v48  ;;  %v2866_v37 = vpop.permute.xlu0 %2865 }
 0xa40   :  { %v2819_v13 = vpop.permute.xlu1 %2818 }
 0xa41   :  { %v2821_v24 = vmul.f32 %v2819_v13, %v9185_v4 }
 0xa42   :  { %v2872_v25 = vpop.permute.xlu0 %2871 }
 0xa43   :  { %v2822_v47 = vadd.f32 %v2821_v24, %v2816_v61  ;;  %v2856_v61 = vmul.f32 %v2854_v34, %v9183_v17 }
 0xa45   :  { %v2828_v7 = vadd.f32 %v2827_v41, %v2822_v47  ;;  %v2831_v40 = vpop.permute.xlu1 %2830  ;;  %v2862_v47 = vmul.f32 %v2860_v62, %v9184_v36 }
 0xa46   :  { %v2833_v56 = vmul.f32 %v2831_v40, %v9177_v20 }
 0xa47   :  { %2983 = vrot.lane.b32.xlu1 %v2828_v7, %s6050_s15 }
 0xa4a   :  { %v2836_v30 = vpop.permute.xlu1 %2835 }
 0xa4b   :  { %v2838_v28 = vmul.f32 %v2836_v30, %v9178_v52  ;;  %v2868_v30 = vmul.f32 %v2866_v37, %v9185_v4 }
 0xa4d   :  { %v2839_v15 = vadd.f32 %v2838_v28, %v2833_v56  ;;  %v2874_v28 = vmul.f32 %v2872_v25, %v9188_v45 }
 0xa4f   :  { %v2883_v43 = vpop.permute.xlu1 %2882 }
 0xa54   :  { %v2842_v18 = vpop.permute.xlu1 %2841 }
 0xa55   :  { %v2844_v48 = vmul.f32 %v2842_v18, %v9179_v8 }
 0xa57   :  { %v2845_v13 = vadd.f32 %v2844_v48, %v2839_v15 }
 0xa59   :  { %v2851_v24 = vadd.f32 %v2850_v29, %v2845_v13  ;;  %v2930_v41 = vpop.permute.xlu1 %2929 }
 0xa5a   :  { %v2932_v62 = vmul.f32 %v2930_v41, %v9178_v52 }
 0xa5b   :  { %v2857_v7 = vadd.f32 %v2856_v61, %v2851_v24  ;;  %v2927_v61 = vmul.f32 %v2925_v38, %v9177_v20  ;;  %v2885_v24 = vmul.f32 %v2883_v43, %v9178_v52 }
 0xa5d   :  { %v2863_v60 = vadd.f32 %v2862_v47, %v2857_v7  ;;  %v2933_v25 = vadd.f32 %v2932_v62, %v2927_v61  ;;  %v2880_v47 = vmul.f32 %v2878_v5, %v9177_v20  ;;  %v2966_v61 = vpop.permute.xlu0 %2965 }
 0xa5e   :  { %v2889_v40 = vpop.permute.xlu1 %2888 }
 0xa5f   :  { %v2869_v56 = vadd.f32 %v2868_v30, %v2863_v60  ;;  %v2891_v7 = vmul.f32 %v2889_v40, %v9179_v8 }
 0xa61   :  { %v2875_v18 = vadd.f32 %v2874_v28, %v2869_v56 }
 0xa63   :  { %v2936_v0 = vpop.permute.xlu1 %2935  ;;  %2987 = vrot.lane.b32.xlu0 %v2875_v18, %s6047_s12  ;;  %v2886_v18 = vadd.f32 %v2885_v24, %v2880_v47 }
 0xa64   :  { %v2938_v37 = vmul.f32 %v2936_v0, %v9179_v8 }
 0xa65   :  { %v2892_v0 = vadd.f32 %v2891_v7, %v2886_v18  ;;  %v2603_v18 = vmul.f32 %v9180_v1, %v7769_v50 }
 0xa66   :  { %v2939_v30 = vadd.f32 %v2938_v37, %v2933_v25 }
 0xa68   :  { %v2895_v10 = vpop.permute.xlu1 %2894 }
 0xa69   :  { %v2897_v41 = vmul.f32 %v2895_v10, %v9180_v1  ;;  %v2968_v10 = vmul.f32 %v2966_v61, %v9188_v45 }
 0xa6d   :  { %v2942_v15 = vpop.permute.xlu1 %2941 }
 0xa6e   :  { %v2944_v60 = vmul.f32 %v2942_v15, %v9180_v1  ;;  %v2898_v15 = vadd.f32 %v2897_v41, %v2892_v0  ;;  %v2621_v0 = vmul.f32 %v9184_v36, %v7777_v39 }
 0xa70   :  { %v2945_v27 = vadd.f32 %v2944_v60, %v2939_v30  ;;  %v2594_v30 = vmul.f32 %v9179_v8, %v7799_v46  ;;  %v2639_v46 = vmul.f32 %v9188_v45, %v7785_v23 }
 0xa72   :  { %v2901_v34 = vpop.permute.xlu1 %2900 }
 0xa73   :  { %v2903_v43 = vmul.f32 %v2901_v34, %v9183_v17 }
 0xa77   :  { %v2948_v48 = vpop.permute.xlu1 %2947 }
 0xa78   :  { %v2950_v28 = vmul.f32 %v2948_v48, %v9183_v17  ;;  %v2904_v48 = vadd.f32 %v2903_v43, %v2898_v15 }
 0xa7a   :  { %v2951_v62 = vadd.f32 %v2950_v28, %v2945_v27 }
 0xa7c   :  { %v2907_v29 = vpop.permute.xlu1 %2906 }
 0xa7d   :  { %v2909_v5 = vmul.f32 %v2907_v29, %v9184_v36  ;;  %v2577_v29 = vmul.f32 %v9177_v20, %v7794_v21  ;;  %v2630_v20 = vmul.f32 %v9185_v4, %v7781_v44 }
 0xa7f   :  { %v2910_v60 = vadd.f32 %v2909_v5, %v2904_v48  ;;  %v9190_v5 = vmov 29   ;;  %v9193_v48 = vmov 19  }
 0xa81   :  { %v2954_v13 = vpop.permute.xlu1 %2953 }
 0xa82   :  { %v2956_v38 = vmul.f32 %v2954_v13, %v9184_v36 }
 0xa84   :  { %v2957_v40 = vadd.f32 %v2956_v38, %v2951_v62  ;;  %v2612_v38 = vmul.f32 %v9183_v17, %v7773_v2 }
 0xa86   :  { %v2913_v56 = vpop.permute.xlu1 %2912 }
 0xa87   :  { %v2915_v24 = vmul.f32 %v2913_v56, %v9185_v4 }
 0xa89   :  { %v2916_v7 = vadd.f32 %v2915_v24, %v2910_v60  ;;  %v9194_v24 = vmov 15   ;;  %v9197_v60 = vmov 49  }
 0xa8b   :  { %v2960_v12 = vpop.permute.xlu1 %2959 }
 0xa8c   :  { %v2962_v37 = vmul.f32 %v2960_v12, %v9185_v4  ;;  %v2585_v12 = vmul.f32 %v9178_v52, %v7765_v33 }
 0xa8e   :  { %v2963_v25 = vadd.f32 %v2962_v37, %v2957_v40  ;;  %v2586_v28 = vadd.f32 %v2585_v12, %v2577_v29  ;;  %v9191_v40 = vmov 40   ;;  %v9192_v37 = vmov 22  }
 0xa8f   :  { %v9203_v12 = vmov 56   ;;  %v9204_v29 = vmov 62  }
 0xa90   :  { %v2969_v13 = vadd.f32 %v2968_v10, %v2963_v25  ;;  %v2919_v47 = vpop.permute.xlu1 %2918  ;;  %v2595_v56 = vadd.f32 %v2594_v30, %v2586_v28  ;;  %v9195_v10 = vmov 34   ;;  %v9196_v25 = vmov 60  }
 0xa91   :  { %v2921_v27 = vmul.f32 %v2919_v47, %v9188_v45  ;;  %v9199_v47 = vmov 12   ;;  %v9205_v30 = vmov 20   ;;  %v9206_v28 = vmov 63  }
 0xa92   :  { %2995 = vrot.lane.b32.xlu0 %v2969_v13, %s6049_s14  ;;  %v2604_v41 = vadd.f32 %v2603_v18, %v2595_v56  ;;  %v9198_v13 = vmov 38   ;;  %v9207_v56 = vmov 35   ;;  %v9208_v18 = vmov 7  }
 0xa93   :  { %v2922_v34 = vadd.f32 %v2921_v27, %v2916_v7  ;;  %v9200_v7 = vmov 46   ;;  %v9201_v27 = vmov 42  }
 0xa94   :  { %v2972_v43 = vpop.permute.xlu1 %2971  ;;  %v2613_v52 = vadd.f32 %v2612_v38, %v2604_v41  ;;  %v9209_v41 = vmov 13   ;;  %v9210_v38 = vmov 28  }
 0xa95   :  { %2991 = vrot.lane.b32.xlu1 %v2922_v34, %s6051_s16  ;;  %v9202_v34 = vmov 39  }
 0xa96   :  { %v2622_v21 = vadd.f32 %v2621_v0, %v2613_v52  ;;  %v9211_v0 = vmov 58  }
 0xa98   :  { %v2631_v8 = vadd.f32 %v2630_v20, %v2622_v21  ;;  %v2976_v33 = vpop.permute.xlu1 %2975  ;;  %v9213_v20 = vmov 51  }
 0xa9a   :  { %v2640_v50 = vadd.f32 %v2639_v46, %v2631_v8  ;;  %v9214_v46 = vmov 14   ;;  %v9215_v8 = vmov 44  }
 0xa9c   :  { %v2998_v1 = vsel %vm1046_vm4, %v2640_v50, %v2972_v43  ;;  %v9212_v43 = vmov 21  }
 0xa9d   :  { %v2999_v2 = vsel %vm1048_vm5, %v2998_v1, %v2976_v33 }
 0xa9e   :  { %v2980_v62 = vpop.permute.xlu0 %2979 }
 0xa9f   :  { %v3000_v39 = vsel %vm1050_vm6, %v2999_v2, %v2980_v62  ;;  %v9216_v62 = vmov 59  }
 0xab9   :  { %v2984_v61 = vpop.permute.xlu1 %2983 }
 0xaba   :  { %v3001_v36 = vsel %vm27_vm0, %v3000_v39, %v2984_v61  ;;  %v9217_v61 = vmov 37  }
 0xad5   :  { %v2988_v17 = vpop.permute.xlu0 %2987 }
 0xad6   :  { %v3002_v44 = vsel %vm1053_vm7, %v3001_v36, %v2988_v17  ;;  %v9218_v17 = vmov 52  }
 0xb04   :  { %v2996_v15 = vpop.permute.xlu0 %2995 }
 0xb07   :  { %v2992_v4 = vpop.permute.xlu1 %2991 }
 0xb08   :  { %v3003_v23 = vsel %vm1055_vm8, %v3002_v44, %v2992_v4  ;;  %v9219_v44 = vmov 30  }
 0xb09   :  { %v7904_v45 = vsel %vm1057_vm9, %v3003_v23, %v2996_v15  ;;  %v9220_v23 = vmov 45  }
 0xb0a   :  { %3005 = vst.msk [vmem:[#allocation2 + $0xa] sm:$0x3] %vm616_vm3, %v7904_v45  ;;  %3015 = vperm.xlu0 %5815, %v7904_v45   ;;  %3008 = vperm.xlu1 %5814, %v7904_v45  }
 0xb0e   :  { %5820 = vset.pattern.permute.xlu0 %v8969_v42  ;;  %5816 = vset.pattern.permute.xlu1 %v8970_v49  ;;  %v9225_v49 = vmov 54  }
 0xb0f   :  { %3083 = vperm.xlu0 %5820, %v7904_v45   ;;  %3024 = vperm.xlu1 %5816, %v7904_v45  }
 0xb13   :  { %5823 = vset.pattern.permute.xlu0 %v8984_v14  ;;  %5817 = vset.pattern.permute.xlu1 %v8972_v6  ;;  %v9221_v6 = vmov 23  }
 0xb14   :  { %3089 = vperm.xlu0 %5823, %v7904_v45   ;;  %3033 = vperm.xlu1 %5817, %v7904_v45  }
 0xb18   :  { %5826 = vset.pattern.permute.xlu0 %v9088_v55  ;;  %5818 = vset.pattern.permute.xlu1 %v8974_v22 }
 0xb19   :  { %3136 = vperm.xlu0 %5826, %v7904_v45   ;;  %3042 = vperm.xlu1 %5818, %v7904_v45  }
 0xb1d   :  { %5829 = vset.pattern.permute.xlu0 %v9132_v35  ;;  %5819 = vset.pattern.permute.xlu1 %v8982_v54 }
 0xb1e   :  { %3095 = vperm.xlu0 %5829, %v7904_v45   ;;  %3078 = vperm.xlu1 %5819, %v7904_v45  }
 0xb22   :  { %5832 = vset.pattern.permute.xlu0 %v9166_v31  ;;  %5821 = vset.pattern.permute.xlu1 %v9138_v26 }
 0xb23   :  { %3271 = vperm.xlu0 %5832, %v7904_v45   ;;  %3125 = vperm.xlu1 %5821, %v7904_v45  }
 0xb27   :  { %5835 = vset.pattern.permute.xlu0 %v9143_v9  ;;  %5822 = vset.pattern.permute.xlu1 %v9140_v3  ;;  %v9234_v9 = vld [vmem:[#allocation45_spill] sm:$0xff] }
 0xb28   :  { %3313 = vperm.xlu0 %5835, %v7904_v45   ;;  %3130 = vperm.xlu1 %5822, %v7904_v45  }
 0xb2c   :  { %5838 = vset.pattern.permute.xlu0 %v9133_v63  ;;  %5824 = vset.pattern.permute.xlu1 %v9131_v11 }
 0xb2d   :  { %3189 = vperm.xlu0 %5838, %v7904_v45   ;;  %3172 = vperm.xlu1 %5824, %v7904_v45  }
 0xb31   :  { %5841 = vset.pattern.permute.xlu0 %v9169_v32  ;;  %5825 = vset.pattern.permute.xlu1 %v9150_v53 }
 0xb32   :  { %3365 = vperm.xlu0 %5841, %v7904_v45   ;;  %3177 = vperm.xlu1 %5825, %v7904_v45  }
 0xb36   :  { %5844 = vset.pattern.permute.xlu0 %v9170_v59  ;;  %5827 = vset.pattern.permute.xlu1 %v9160_v57  ;;  %v9229_v59 = vld [vmem:[#allocation41_spill] sm:$0xff] }
 0xb37   :  { %3324 = vperm.xlu0 %5844, %v7904_v45   ;;  %3219 = vperm.xlu1 %5827, %v7904_v45  }
 0xb3b   :  { %5847 = vset.pattern.permute.xlu0 %v9147_v16  ;;  %5828 = vset.pattern.permute.xlu1 %v9137_v51  ;;  %v9237_v51 = vld [vmem:[#allocation46_spill] sm:$0xff] }
 0xb3c   :  { %3283 = vperm.xlu0 %5847, %v7904_v45   ;;  %3224 = vperm.xlu1 %5828, %v7904_v45  }
 0xb40   :  { %5850 = vset.pattern.permute.xlu0 %v9139_v19  ;;  %5830 = vset.pattern.permute.xlu1 %v9152_v58 }
 0xb41   :  { %3242 = vperm.xlu0 %5850, %v7904_v45   ;;  %3183 = vperm.xlu1 %5830, %v7904_v45  }
 0xb45   :  { %5853 = vset.pattern.permute.xlu0 %v9190_v5  ;;  %5831 = vset.pattern.permute.xlu1 %v9191_v40 }
 0xb46   :  { %3201 = vperm.xlu0 %5853, %v7904_v45   ;;  %3266 = vperm.xlu1 %5831, %v7904_v45  }
 0xb4a   :  { %5856 = vset.pattern.permute.xlu0 %v9192_v37  ;;  %5833 = vset.pattern.permute.xlu1 %v9193_v48 }
 0xb4b   :  { %3160 = vperm.xlu0 %5856, %v7904_v45   ;;  %3142 = vperm.xlu1 %5833, %v7904_v45  }
 0xb4f   :  { %5859 = vset.pattern.permute.xlu0 %v9194_v24  ;;  %5834 = vset.pattern.permute.xlu1 %v9195_v10 }
 0xb50   :  { %3119 = vperm.xlu0 %5859, %v7904_v45   ;;  %3230 = vperm.xlu1 %5834, %v7904_v45  }
 0xb54   :  { %5862 = vset.pattern.permute.xlu0 %v9196_v25  ;;  %5836 = vset.pattern.permute.xlu1 %v9197_v60 }
 0xb55   :  { %3383 = vperm.xlu0 %5862, %v7904_v45   ;;  %3318 = vperm.xlu1 %5836, %v7904_v45  }
 0xb59   :  { %5864 = vset.pattern.permute.xlu0 %v9198_v13  ;;  %5837 = vset.pattern.permute.xlu1 %v9199_v47 }
 0xb5a   :  { %3254 = vperm.xlu0 %5864, %v7904_v45   ;;  %3101 = vperm.xlu1 %5837, %v7904_v45  }
 0xb5e   :  { %5867 = vset.pattern.permute.xlu0 %v9200_v7  ;;  %5839 = vset.pattern.permute.xlu1 %v9201_v27 }
 0xb5f   :  { %3301 = vperm.xlu0 %5867, %v7904_v45   ;;  %3277 = vperm.xlu1 %5839, %v7904_v45  }
 0xb63   :  { %5869 = vset.pattern.permute.xlu0 %v9202_v34  ;;  %5840 = vset.pattern.permute.xlu1 %v9203_v12 }
 0xb64   :  { %3260 = vperm.xlu0 %5869, %v7904_v45   ;;  %3360 = vperm.xlu1 %5840, %v7904_v45  }
 0xb68   :  { %5872 = vset.pattern.permute.xlu0 %v9204_v29  ;;  %5842 = vset.pattern.permute.xlu1 %v9205_v30 }
 0xb69   :  { %3395 = vperm.xlu0 %5872, %v7904_v45   ;;  %3148 = vperm.xlu1 %5842, %v7904_v45  }
 0xb6d   :  { %5874 = vset.pattern.permute.xlu0 %v9206_v28  ;;  %5843 = vset.pattern.permute.xlu1 %v9207_v56  ;;  %v9226_v28 = vmov 47   ;;  %v9230_v56 = vmov 5  }
 0xb6e   :  { %3401 = vperm.xlu0 %5874, %v7904_v45   ;;  %3236 = vperm.xlu1 %5843, %v7904_v45  }
 0xb72   :  { %5877 = vset.pattern.permute.xlu0 %v9208_v18  ;;  %5845 = vset.pattern.permute.xlu1 %v9209_v41  ;;  %v9235_v41 = vld [vmem:[#allocation43_spill] sm:$0xff] }
 0xb73   :  { %3069 = vperm.xlu0 %5877, %v7904_v45   ;;  %3107 = vperm.xlu1 %5845, %v7904_v45  }
 0xb77   :  { %5846 = vset.pattern.permute.xlu1 %v9210_v38  ;;  %5879 = vset.pattern.permute.xlu0 %v8969_v42  ;;  %v9228_v38 = vld [vmem:[#allocation16_spill] sm:$0xff] }
 0xb78   :  { %3195 = vperm.xlu1 %5846, %v7904_v45  }
 0xb7c   :  { %5848 = vset.pattern.permute.xlu1 %v9211_v0 }
 0xb7d   :  { %3371 = vperm.xlu1 %5848, %v7904_v45  }
 0xb81   :  { %5849 = vset.pattern.permute.xlu1 %v9212_v43 }
 0xb82   :  { %3154 = vperm.xlu1 %5849, %v7904_v45  }
 0xb85   :  { %v8001_v52 = vpop.permute.xlu1 %3008  ;;  %v8019_v1 = vpop.permute.xlu0 %3015 }
 0xb86   :  { %5851 = vset.pattern.permute.xlu1 %v9213_v20 }
 0xb87   :  { %3330 = vperm.xlu1 %5851, %v7904_v45  }
 0xb8a   :  { %v8005_v21 = vpop.permute.xlu1 %3024  ;;  %v8026_v39 = vpop.permute.xlu0 %3083 }
 0xb8b   :  { %5852 = vset.pattern.permute.xlu1 %v9214_v46  ;;  %v9224_v46 = vmov 61  }
 0xb8c   :  { %3113 = vperm.xlu1 %5852, %v7904_v45  }
 0xb8f   :  { %v8009_v42 = vpop.permute.xlu1 %3033  ;;  %v8033_v4 = vpop.permute.xlu0 %3089 }
 0xb90   :  { %5854 = vset.pattern.permute.xlu1 %v9215_v8 }
 0xb91   :  { %3289 = vperm.xlu1 %5854, %v7904_v45  }
 0xb94   :  { %v8013_v33 = vpop.permute.xlu1 %3042  ;;  %v8039_v18 = vpop.permute.xlu0 %3136 }
 0xb95   :  { %5855 = vset.pattern.permute.xlu1 %v9216_v62  ;;  %v9223_v62 = vmov 31  }
 0xb96   :  { %3377 = vperm.xlu1 %5855, %v7904_v45  }
 0xb99   :  { %v8017_v50 = vpop.permute.xlu1 %3078  ;;  %v3096_v25 = vpop.permute.xlu0 %3095 }
 0xb9a   :  { %5857 = vset.pattern.permute.xlu1 %v9217_v61  ;;  %v9232_v61 = vmov 6  }
 0xb9b   :  { %3248 = vperm.xlu1 %5857, %v7904_v45  }
 0xb9e   :  { %v8023_v2 = vpop.permute.xlu1 %3125 }
 0xb9f   :  { %5858 = vset.pattern.permute.xlu1 %v9218_v17  ;;  %v9222_v17 = vmov 53  }
 0xba0   :  { %3336 = vperm.xlu1 %5858, %v7904_v45  }
 0xba3   :  { %v8029_v36 = vpop.permute.xlu1 %3130 }
 0xba4   :  { %5860 = vset.pattern.permute.xlu1 %v9219_v44 }
 0xba5   :  { %3207 = vperm.xlu1 %5860, %v7904_v45  }
 0xba8   :  { %v8035_v15 = vpop.permute.xlu1 %3172 }
 0xba9   :  { %5861 = vset.pattern.permute.xlu1 %v9220_v23  ;;  %v3272_v23 = vpop.permute.xlu0 %3271 }
 0xbaa   :  { %3295 = vperm.xlu1 %5861, %v7904_v45  }
 0xbad   :  { %v8041_v22 = vpop.permute.xlu1 %3177 }
 0xbae   :  { %5863 = vset.pattern.permute.xlu1 %v9221_v6  ;;  %v3314_v6 = vpop.permute.xlu0 %3313 }
 0xbaf   :  { %3166 = vperm.xlu1 %5863, %v7904_v45   ;;  %v3316_v34 = vmul.f32 %v3314_v6, %v9228_v38  ;;  %v3274_v6 = vmul.f32 %v3272_v23, %v9229_v59 }
 0xbb2   :  { %v8045_v24 = vpop.permute.xlu1 %3219 }
 0xbb3   :  { %5865 = vset.pattern.permute.xlu1 %v9222_v17  ;;  %v8059_v17 = vpop.permute.xlu0 %3189 }
 0xbb4   :  { %3342 = vperm.xlu1 %5865, %v7904_v45  }
 0xbb7   :  { %v8049_v37 = vpop.permute.xlu1 %3224 }
 0xbb8   :  { %5866 = vset.pattern.permute.xlu1 %v9223_v62  ;;  %v8065_v62 = vpop.permute.xlu0 %3365 }
 0xbb9   :  { %3213 = vperm.xlu1 %5866, %v7904_v45  }
 0xbbc   :  { %v8053_v8 = vpop.permute.xlu1 %3183  ;;  %v3325_v29 = vpop.permute.xlu0 %3324 }
 0xbbd   :  { %5868 = vset.pattern.permute.xlu1 %v9224_v46  ;;  %v9227_v46 = vmov 55  }
 0xbbe   :  { %3389 = vperm.xlu1 %5868, %v7904_v45  }
 0xbc0   :  { %v3284_v63 = vpop.permute.xlu0 %3283 }
 0xbc1   :  { %v3267_v20 = vpop.permute.xlu1 %3266 }
 0xbc2   :  { %5870 = vset.pattern.permute.xlu1 %v9225_v49 }
 0xbc3   :  { %3348 = vperm.xlu1 %5870, %v7904_v45  }
 0xbc4   :  { %v3243_v23 = vpop.permute.xlu0 %3242 }
 0xbc6   :  { %v8061_v43 = vpop.permute.xlu1 %3142 }
 0xbc7   :  { %5871 = vset.pattern.permute.xlu1 %v9226_v28  ;;  %v9231_v28 = vld [vmem:[#allocation40_spill] sm:$0xff] }
 0xbc8   :  { %3307 = vperm.xlu1 %5871, %v7904_v45   ;;  %v3327_v13 = vmul.f32 %v3325_v29, %v9231_v28  ;;  %v9233_v29 = vld [vmem:[#allocation42_spill] sm:$0xff] }
 0xbc9   :  { %v3098_v19 = vmul.f32 %v3096_v25, %v9233_v29 }
 0xbcb   :  { %v8067_v16 = vpop.permute.xlu1 %3230 }
 0xbcc   :  { %5873 = vset.pattern.permute.xlu1 %v9227_v46  ;;  %v3269_v46 = vmul.f32 %v3267_v20, %v9228_v38 }
 0xbcd   :  { %3354 = vperm.xlu1 %5873, %v7904_v45  }
 0xbce   :  { %v3275_v5 = vadd.f32 %v3274_v6, %v3269_v46  ;;  %v3081_v46 = vmul.f32 %v8017_v50, %v9228_v38 }
 0xbd0   :  { %v3319_v49 = vpop.permute.xlu1 %3318 }
 0xbd1   :  { %v3321_v7 = vmul.f32 %v3319_v49, %v9229_v59  ;;  %5875 = vset.pattern.permute.xlu1 %v9230_v56 }
 0xbd2   :  { %3051 = vperm.xlu1 %5875, %v7904_v45  }
 0xbd3   :  { %v3322_v32 = vadd.f32 %v3321_v7, %v3316_v34  ;;  %v3286_v7 = vmul.f32 %v3284_v63, %v9233_v29  ;;  %v8097_v63 = vpop.permute.xlu0 %3201 }
 0xbd5   :  { %v3102_v44 = vpop.permute.xlu1 %3101  ;;  %v8076_v27 = vadd.f32 %v3327_v13, %v3322_v32 }
 0xbd6   :  { %5876 = vset.pattern.permute.xlu1 %v9232_v61  ;;  %v3104_v0 = vmul.f32 %v3102_v44, %v9234_v9 }
 0xbd7   :  { %3060 = vperm.xlu1 %5876, %v7904_v45  }
 0xbda   :  { %v3278_v49 = vpop.permute.xlu1 %3277 }
 0xbdb   :  { %v3280_v56 = vmul.f32 %v3278_v49, %v9231_v28  ;;  %5878 = vset.pattern.permute.xlu1 %v8982_v54  ;;  %v3086_v54 = vmul.f32 %v8026_v39, %v9229_v59  ;;  %v3092_v49 = vmul.f32 %v8033_v4, %v9231_v28 }
 0xbdd   :  { %v3281_v34 = vadd.f32 %v3280_v56, %v3275_v5  ;;  %v3087_v5 = vadd.f32 %v3086_v54, %v3081_v46  ;;  %v9236_v46 = vld [vmem:[#allocation44_spill] sm:$0xff] }
 0xbdf   :  { %v8085_v32 = vpop.permute.xlu1 %3360  ;;  %v8087_v13 = vadd.f32 %v3286_v7, %v3281_v34  ;;  %v3093_v7 = vadd.f32 %v3092_v49, %v3087_v5  ;;  %v3161_v34 = vpop.permute.xlu0 %3160 }
 0xbe1   :  { %v3099_v50 = vadd.f32 %v3098_v19, %v3093_v7  ;;  %v3133_v19 = vmul.f32 %v8029_v36, %v9229_v59  ;;  %v3139_v36 = vmul.f32 %v8039_v18, %v9231_v28  ;;  %v3175_v18 = vmul.f32 %v8035_v15, %v9228_v38 }
 0xbe2   :  { %v3192_v15 = vmul.f32 %v8059_v17, %v9233_v29  ;;  %v3204_v17 = vmul.f32 %v8097_v63, %v9235_v41 }
 0xbe3   :  { %v3105_v30 = vadd.f32 %v3104_v0, %v3099_v50  ;;  %v3120_v39 = vpop.permute.xlu0 %3119  ;;  %v3233_v0 = vmul.f32 %v8067_v16, %v9231_v28  ;;  %v3145_v50 = vmul.f32 %v8061_v43, %v9233_v29  ;;  %v3245_v43 = vmul.f32 %v3243_v23, %v9234_v9 }
 0xbe4   :  { %v3149_v61 = vpop.permute.xlu1 %3148  ;;  %v3122_v47 = vmul.f32 %v3120_v39, %v9237_v51 }
 0xbe9   :  { %v3237_v20 = vpop.permute.xlu1 %3236 }
 0xbee   :  { %v3108_v60 = vpop.permute.xlu1 %3107 }
 0xbef   :  { %v3110_v40 = vmul.f32 %v3108_v60, %v9235_v41  ;;  %v8115_v60 = vpop.permute.xlu0 %3383 }
 0xbf1   :  { %v3111_v12 = vadd.f32 %v3110_v40, %v3105_v30  ;;  %v3128_v40 = vmul.f32 %v8023_v2, %v9228_v38  ;;  %v3222_v30 = vmul.f32 %v8045_v24, %v9228_v38  ;;  %v3239_v2 = vmul.f32 %v3237_v20, %v9233_v29 }
 0xbf2   :  { %v3180_v24 = vmul.f32 %v8041_v22, %v9229_v59  ;;  %v3186_v20 = vmul.f32 %v8053_v8, %v9231_v28 }
 0xbf3   :  { %v8089_v45 = vpop.permute.xlu1 %3195  ;;  %v3255_v39 = vpop.permute.xlu0 %3254 }
 0xbf4   :  { %v3257_v23 = vmul.f32 %v3255_v39, %v9236_v46  ;;  %v3198_v8 = vmul.f32 %v8089_v45, %v9234_v9 }
 0xbf8   :  { %v8093_v6 = vpop.permute.xlu1 %3371 }
 0xbfd   :  { %v3155_v56 = vpop.permute.xlu1 %3154 }
 0xc02   :  { %v8103_v48 = vpop.permute.xlu1 %3330 }
 0xc07   :  { %v3114_v58 = vpop.permute.xlu1 %3113 }
 0xc08   :  { %v3116_v54 = vmul.f32 %v3114_v58, %v9236_v46  ;;  %v3227_v58 = vmul.f32 %v8049_v37, %v9229_v59 }
 0xc0a   :  { %v3117_v4 = vadd.f32 %v3116_v54, %v3111_v12  ;;  %v3228_v7 = vadd.f32 %v3227_v58, %v3222_v30 }
 0xc0c   :  { %v3123_v5 = vadd.f32 %v3122_v47, %v3117_v4  ;;  %v8108_v49 = vpop.permute.xlu1 %3289  ;;  %v3134_v47 = vadd.f32 %v3133_v19, %v3128_v40  ;;  %v3234_v4 = vadd.f32 %v3233_v0, %v3228_v7  ;;  %v3157_v40 = vmul.f32 %v3155_v56, %v9235_v41 }
 0xc0d   :  { %v3181_v0 = vadd.f32 %v3180_v24, %v3175_v18 }
 0xc0e   :  { %3407 = vrot.lane.b32.xlu1 %v3123_v5, %s6046_s11  ;;  %v3140_v54 = vadd.f32 %v3139_v36, %v3134_v47  ;;  %v3151_v5 = vmul.f32 %v3149_v61, %v9234_v9  ;;  %v3240_v16 = vadd.f32 %v3239_v2, %v3234_v4  ;;  %v3302_v61 = vpop.permute.xlu0 %3301 }
 0xc0f   :  { %v3187_v7 = vadd.f32 %v3186_v20, %v3181_v0  ;;  %v3368_v0 = vmul.f32 %v8065_v62, %v9229_v59  ;;  %v3386_v62 = vmul.f32 %v8115_v60, %v9234_v9 }
 0xc10   :  { %v3146_v19 = vadd.f32 %v3145_v50, %v3140_v54  ;;  %v3246_v22 = vadd.f32 %v3245_v43, %v3240_v16  ;;  %v3163_v50 = vmul.f32 %v3161_v34, %v9236_v46  ;;  %v3363_v43 = vmul.f32 %v8085_v32, %v9228_v38 }
 0xc11   :  { %v8111_v25 = vpop.permute.xlu1 %3377  ;;  %v3292_v32 = vmul.f32 %v8108_v49, %v9234_v9 }
 0xc12   :  { %v3152_v58 = vadd.f32 %v3151_v5, %v3146_v19  ;;  %v3261_v4 = vpop.permute.xlu0 %3260  ;;  %v3193_v5 = vadd.f32 %v3192_v15, %v3187_v7 }
 0xc13   :  { %v3263_v16 = vmul.f32 %v3261_v4, %v9237_v51  ;;  %v3304_v4 = vmul.f32 %v3302_v61, %v9236_v46 }
 0xc14   :  { %v3158_v36 = vadd.f32 %v3157_v40, %v3152_v58  ;;  %v3199_v34 = vadd.f32 %v3198_v8, %v3193_v5 }
 0xc16   :  { %v3249_v44 = vpop.permute.xlu1 %3248  ;;  %v3164_v54 = vadd.f32 %v3163_v50, %v3158_v36  ;;  %v3205_v45 = vadd.f32 %v3204_v17, %v3199_v34  ;;  %v3374_v36 = vmul.f32 %v8093_v6, %v9231_v28  ;;  %v3293_v6 = vadd.f32 %v3292_v32, %v8087_v13  ;;  %v3396_v8 = vpop.permute.xlu0 %3395 }
 0xc17   :  { %v3251_v47 = vmul.f32 %v3249_v44, %v9235_v41 }
 0xc19   :  { %v3252_v56 = vadd.f32 %v3251_v47, %v3246_v22  ;;  %v3369_v22 = vadd.f32 %v3368_v0, %v3363_v43 }
 0xc1a   :  { %v3402_v34 = vpop.permute.xlu0 %3401 }
 0xc1b   :  { %v8121_v12 = vpop.permute.xlu1 %3336  ;;  %v3258_v24 = vadd.f32 %v3257_v23, %v3252_v56  ;;  %v3375_v50 = vadd.f32 %v3374_v36, %v3369_v22  ;;  %v3404_v61 = vmul.f32 %v3402_v34, %v9237_v51  ;;  %v3030_v36 = vmul.f32 %v9231_v28, %v8005_v21 }
 0xc1c   :  { %v3339_v49 = vmul.f32 %v8121_v12, %v9234_v9  ;;  %v3039_v22 = vmul.f32 %v9233_v29, %v8009_v42  ;;  %v9258_v34 = vmov 46  }
 0xc1d   :  { %v3264_v18 = vadd.f32 %v3263_v16, %v3258_v24  ;;  %v3398_v24 = vmul.f32 %v3396_v8, %v9236_v46 }
 0xc20   :  { %v3208_v37 = vpop.permute.xlu1 %3207 }
 0xc21   :  { %v3210_v39 = vmul.f32 %v3208_v37, %v9236_v46  ;;  %v3380_v37 = vmul.f32 %v8111_v25, %v9233_v29  ;;  %v3333_v25 = vmul.f32 %v8103_v48, %v9233_v29 }
 0xc23   :  { %v3211_v58 = vadd.f32 %v3210_v39, %v3205_v45  ;;  %v3381_v56 = vadd.f32 %v3380_v37, %v3375_v50  ;;  %v3334_v5 = vadd.f32 %v3333_v25, %v8076_v27 }
 0xc25   :  { %v3296_v30 = vpop.permute.xlu1 %3295  ;;  %v3340_v48 = vadd.f32 %v3339_v49, %v3334_v5  ;;  %v9249_v49 = vmov 49   ;;  %v9252_v5 = vmov 37  }
 0xc26   :  { %v3298_v15 = vmul.f32 %v3296_v30, %v9235_v41 }
 0xc2a   :  { %v3167_v2 = vpop.permute.xlu1 %3166 }
 0xc2b   :  { %v3169_v44 = vmul.f32 %v3167_v2, %v9237_v51 }
 0xc2d   :  { %v3170_v19 = vadd.f32 %v3169_v44, %v3164_v54  ;;  %v3299_v54 = vadd.f32 %v3298_v15, %v3293_v6  ;;  %v3387_v44 = vadd.f32 %v3386_v62, %v3381_v56  ;;  %v3070_v15 = vpop.permute.xlu0 %3069 }
 0xc2e   :  { %v3075_v28 = vmul.f32 %v9237_v51, %v3070_v15  ;;  %v9278_v15 = vmov 60  }
 0xc2f   :  { %3411 = vrot.lane.b32.xlu1 %v3170_v19, %s6048_s13  ;;  %v3343_v40 = vpop.permute.xlu1 %3342  ;;  %v3305_v19 = vadd.f32 %v3304_v4, %v3299_v54  ;;  %v9250_v4 = vmov 29  }
 0xc30   :  { %v3345_v60 = vmul.f32 %v3343_v40, %v9235_v41 }
 0xc32   :  { %v3346_v12 = vadd.f32 %v3345_v60, %v3340_v48  ;;  %v9253_v60 = vmov 42   ;;  %v9259_v48 = vmov 50  }
 0xc33   :  { %3419 = vrot.lane.b32.xlu1 %v3264_v18, %s6050_s15 }
 0xc34   :  { %v3214_v20 = vpop.permute.xlu1 %3213 }
 0xc35   :  { %v3216_v47 = vmul.f32 %v3214_v20, %v9237_v51 }
 0xc37   :  { %v3217_v63 = vadd.f32 %v3216_v47, %v3211_v58  ;;  %v3021_v58 = vmul.f32 %v9229_v59, %v8019_v1  ;;  %v3013_v47 = vmul.f32 %v9228_v38, %v8001_v52 }
 0xc39   :  { %3415 = vrot.lane.b32.xlu0 %v3217_v63, %s6045_s10  ;;  %v3390_v7 = vpop.permute.xlu1 %3389  ;;  %v3022_v63 = vadd.f32 %v3021_v58, %v3013_v47  ;;  %v9270_v58 = vmov 44   ;;  %v9271_v47 = vmov 59  }
 0xc3a   :  { %v3392_v2 = vmul.f32 %v3390_v7, %v9235_v41  ;;  %v3048_v7 = vmul.f32 %v9234_v9, %v8013_v33 }
 0xc3b   :  { %v3031_v37 = vadd.f32 %v3030_v36, %v3022_v63  ;;  %v9273_v63 = vmov 52  }
 0xc3c   :  { %v3393_v30 = vadd.f32 %v3392_v2, %v3387_v44  ;;  %v9248_v44 = vmov 36  }
 0xc3d   :  { %v3040_v32 = vadd.f32 %v3039_v22, %v3031_v37  ;;  %v9274_v37 = vmov 15  }
 0xc3e   :  { %v3349_v23 = vpop.permute.xlu1 %3348  ;;  %v3399_v39 = vadd.f32 %v3398_v24, %v3393_v30  ;;  %v9251_v30 = vmov 27   ;;  %v9255_v24 = vmov 57  }
 0xc3f   :  { %v3351_v17 = vmul.f32 %v3349_v23, %v9236_v46  ;;  %v3049_v59 = vadd.f32 %v3048_v7, %v3040_v32 }
 0xc40   :  { %v3405_v43 = vadd.f32 %v3404_v61, %v3399_v39  ;;  %v9261_v39 = vmov 28   ;;  %v9264_v61 = vmov 63  }
 0xc41   :  { %v3352_v45 = vadd.f32 %v3351_v17, %v3346_v12  ;;  %v9260_v17 = vmov 39   ;;  %v9263_v12 = vmov 43  }
 0xc43   :  { %v3308_v13 = vpop.permute.xlu1 %3307 }
 0xc44   :  { %v3310_v16 = vmul.f32 %v3308_v13, %v9237_v51  ;;  %v9254_v13 = vmov 30  }
 0xc46   :  { %v3311_v18 = vadd.f32 %v3310_v16, %v3305_v19  ;;  %v9256_v19 = vmov 38   ;;  %v9257_v16 = vmov 35  }
 0xc48   :  { %3423 = vrot.lane.b32.xlu0 %v3311_v18, %s6047_s12  ;;  %v3355_v27 = vpop.permute.xlu1 %3354  ;;  %v9262_v18 = vmov 62  }
 0xc49   :  { %v3357_v40 = vmul.f32 %v3355_v27, %v9237_v51  ;;  %v9265_v27 = vmov 21  }
 0xc4b   :  { %v3358_v20 = vadd.f32 %v3357_v40, %v3352_v45  ;;  %v9266_v45 = vmov 2   ;;  %v9267_v40 = vmov 51  }
 0xc4c   :  { %3431 = vrot.lane.b32.xlu0 %v3405_v43, %s6049_s14  ;;  %v9268_v43 = vmov 5  }
 0xc4d   :  { %3427 = vrot.lane.b32.xlu1 %v3358_v20, %s6051_s16  ;;  %v3052_v0 = vpop.permute.xlu1 %3051  ;;  %v9269_v20 = vmov 14  }
 0xc4e   :  { %v3057_v56 = vmul.f32 %v9235_v41, %v3052_v0  ;;  %v9272_v0 = vmov 22  }
 0xc50   :  { %v3058_v38 = vadd.f32 %v3057_v56, %v3049_v59  ;;  %v9276_v56 = vld [vmem:[#allocation48_spill] sm:$0xff] }
 0xc52   :  { %v3061_v50 = vpop.permute.xlu1 %3060 }
 0xc53   :  { %v3066_v1 = vmul.f32 %v9236_v46, %v3061_v50  ;;  %v9275_v50 = vld [vmem:[#allocation20_spill] sm:$0xff] }
 0xc55   :  { %v3067_v62 = vadd.f32 %v3066_v1, %v3058_v38  ;;  %v9277_v1 = vmov 45  }
 0xc57   :  { %v3076_v42 = vadd.f32 %v3075_v28, %v3067_v62 }
 0xc80   :  { %v3408_v52 = vpop.permute.xlu1 %3407 }
 0xc81   :  { %v3434_v29 = vsel %vm1046_vm4, %v3076_v42, %v3408_v52 }
 0xca1   :  { %v3412_v21 = vpop.permute.xlu1 %3411 }
 0xca2   :  { %v3435_v9 = vsel %vm1048_vm5, %v3434_v29, %v3412_v21 }
 0xca5   :  { %v3420_v2 = vpop.permute.xlu1 %3419 }
 0xcab   :  { %v3416_v6 = vpop.permute.xlu0 %3415 }
 0xcac   :  { %v3436_v41 = vsel %vm1050_vm6, %v3435_v9, %v3416_v6  ;;  %v9279_v6 = vmov 23   ;;  %v9280_v9 = vmov 53  }
 0xcad   :  { %v3437_v23 = vsel %vm27_vm0, %v3436_v41, %v3420_v2 }
 0xcba   :  { %v3424_v33 = vpop.permute.xlu0 %3423 }
 0xcbb   :  { %v3438_v46 = vsel %vm1053_vm7, %v3437_v23, %v3424_v33 }
 0xcbe   :  { %v3432_v25 = vpop.permute.xlu0 %3431 }
 0xcbf   :  { %v3428_v8 = vpop.permute.xlu1 %3427 }
 0xcc0   :  { %v3439_v54 = vsel %vm1055_vm8, %v3438_v46, %v3428_v8  ;;  %v9281_v46 = vmov 31  }
 0xcc1   :  { %v8207_v51 = vsel %vm1057_vm9, %v3439_v54, %v3432_v25 }
 0xcc2   :  { %3441 = vst.msk [vmem:[#allocation2 + $0xc] sm:$0x3] %vm616_vm3, %v8207_v51  ;;  %3519 = vperm.xlu0 %5879, %v8207_v51   ;;  %3514 = vperm.xlu1 %5878, %v8207_v51  }
 0xcc6   :  { %5882 = vset.pattern.permute.xlu0 %v8984_v14  ;;  %5880 = vset.pattern.permute.xlu1 %v9138_v26  ;;  %v9238_v14 = vmov 12   ;;  %v9242_v26 = vmov 20  }
 0xcc7   :  { %3525 = vperm.xlu0 %5882, %v8207_v51   ;;  %3561 = vperm.xlu1 %5880, %v8207_v51  }
 0xccb   :  { %5885 = vset.pattern.permute.xlu0 %v9088_v55  ;;  %5881 = vset.pattern.permute.xlu1 %v9140_v3  ;;  %v9239_v55 = vmov 33   ;;  %v9243_v3 = vmov 40  }
 0xccc   :  { %3572 = vperm.xlu0 %5885, %v8207_v51   ;;  %3566 = vperm.xlu1 %5881, %v8207_v51  }
 0xcd0   :  { %5888 = vset.pattern.permute.xlu0 %v9132_v35  ;;  %5883 = vset.pattern.permute.xlu1 %v9131_v11  ;;  %v9240_v11 = vmov 56   ;;  %v9241_v35 = vmov 26  }
 0xcd1   :  { %3531 = vperm.xlu0 %5888, %v8207_v51   ;;  %3608 = vperm.xlu1 %5883, %v8207_v51  }
 0xcd5   :  { %5891 = vset.pattern.permute.xlu0 %v9166_v31  ;;  %5884 = vset.pattern.permute.xlu1 %v9150_v53  ;;  %v9244_v53 = vmov 13   ;;  %v9246_v31 = vmov 58  }
 0xcd6   :  { %3707 = vperm.xlu0 %5891, %v8207_v51   ;;  %3613 = vperm.xlu1 %5884, %v8207_v51  }
 0xcda   :  { %5893 = vset.pattern.permute.xlu0 %v9195_v10  ;;  %5886 = vset.pattern.permute.xlu1 %v9160_v57  ;;  %v9245_v57 = vmov 19   ;;  %v9247_v10 = vmov 48  }
 0xcdb   :  { %3666 = vperm.xlu0 %5893, %v8207_v51   ;;  %3655 = vperm.xlu1 %5886, %v8207_v51  }
 0xcdf   :  { %5896 = vset.pattern.permute.xlu0 %v9238_v14  ;;  %5887 = vset.pattern.permute.xlu1 %v9239_v55  ;;  %v9282_v14 = vld [vmem:[#allocation49_spill] sm:$0xff] }
 0xce0   :  { %3537 = vperm.xlu0 %5896, %v8207_v51   ;;  %3660 = vperm.xlu1 %5887, %v8207_v51  }
 0xce4   :  { %5899 = vset.pattern.permute.xlu0 %v9240_v11  ;;  %5889 = vset.pattern.permute.xlu1 %v9241_v35  ;;  %v9283_v11 = vmov 61  }
 0xce5   :  { %3796 = vperm.xlu0 %5899, %v8207_v51   ;;  %3619 = vperm.xlu1 %5889, %v8207_v51  }
 0xce9   :  { %5901 = vset.pattern.permute.xlu0 %v9242_v26  ;;  %5890 = vset.pattern.permute.xlu1 %v9243_v3 }
 0xcea   :  { %3584 = vperm.xlu0 %5901, %v8207_v51   ;;  %3702 = vperm.xlu1 %5890, %v8207_v51  }
 0xcee   :  { %5904 = vset.pattern.permute.xlu0 %v9244_v53  ;;  %5892 = vset.pattern.permute.xlu1 %v9245_v57  ;;  %v9284_v53 = vmov 54  }
 0xcef   :  { %3543 = vperm.xlu0 %5904, %v8207_v51   ;;  %3578 = vperm.xlu1 %5892, %v8207_v51  }
 0xcf3   :  { %5907 = vset.pattern.permute.xlu0 %v9246_v31  ;;  %5894 = vset.pattern.permute.xlu1 %v9247_v10 }
 0xcf4   :  { %3807 = vperm.xlu0 %5907, %v8207_v51   ;;  %3749 = vperm.xlu1 %5894, %v8207_v51  }
 0xcf8   :  { %5909 = vset.pattern.permute.xlu0 %v9248_v44  ;;  %5895 = vset.pattern.permute.xlu1 %v9249_v49  ;;  %v9285_v44 = vld [vmem:[#allocation51_spill] sm:$0xff] }
 0xcf9   :  { %3678 = vperm.xlu0 %5909, %v8207_v51   ;;  %3754 = vperm.xlu1 %5895, %v8207_v51  }
 0xcfd   :  { %5912 = vset.pattern.permute.xlu0 %v9250_v4  ;;  %5897 = vset.pattern.permute.xlu1 %v9251_v30  ;;  %v9286_v4 = vmov 47  }
 0xcfe   :  { %3637 = vperm.xlu0 %5912, %v8207_v51   ;;  %3625 = vperm.xlu1 %5897, %v8207_v51  }
 0xd02   :  { %5916 = vset.pattern.permute.xlu0 %v9252_v5  ;;  %5898 = vset.pattern.permute.xlu1 %v9253_v60  ;;  %v9287_v60 = vmov 55  }
 0xd03   :  { %3684 = vperm.xlu0 %5916, %v8207_v51   ;;  %3713 = vperm.xlu1 %5898, %v8207_v51  }
 0xd07   :  { %5919 = vset.pattern.permute.xlu0 %v9254_v13  ;;  %5900 = vset.pattern.permute.xlu1 %v9255_v24 }
 0xd08   :  { %3643 = vperm.xlu0 %5919, %v8207_v51   ;;  %3801 = vperm.xlu1 %5900, %v8207_v51  }
 0xd0c   :  { %5923 = vset.pattern.permute.xlu0 %v9256_v19  ;;  %5902 = vset.pattern.permute.xlu1 %v9257_v16 }
 0xd0d   :  { %3690 = vperm.xlu0 %5923, %v8207_v51   ;;  %3672 = vperm.xlu1 %5902, %v8207_v51  }
 0xd11   :  { %5926 = vset.pattern.permute.xlu0 %v9258_v34  ;;  %5903 = vset.pattern.permute.xlu1 %v9259_v48  ;;  %v9288_v34 = vmov 0  }
 0xd12   :  { %3737 = vperm.xlu0 %5926, %v8207_v51   ;;  %3760 = vperm.xlu1 %5903, %v8207_v51  }
 0xd16   :  { %5928 = vset.pattern.permute.xlu0 %v9260_v17  ;;  %5905 = vset.pattern.permute.xlu1 %v9261_v39 }
 0xd17   :  { %3696 = vperm.xlu0 %5928, %v8207_v51   ;;  %3631 = vperm.xlu1 %5905, %v8207_v51  }
 0xd1b   :  { %5931 = vset.pattern.permute.xlu0 %v9262_v18  ;;  %5906 = vset.pattern.permute.xlu1 %v9263_v12  ;;  %v9289_v12 = vmov 1  }
 0xd1c   :  { %3831 = vperm.xlu0 %5931, %v8207_v51   ;;  %3719 = vperm.xlu1 %5906, %v8207_v51  }
 0xd20   :  { %5933 = vset.pattern.permute.xlu0 %v9264_v61  ;;  %5908 = vset.pattern.permute.xlu1 %v9265_v27 }
 0xd21   :  { %3837 = vperm.xlu0 %5933, %v8207_v51   ;;  %3590 = vperm.xlu1 %5908, %v8207_v51  }
 0xd25   :  { %5936 = vset.pattern.permute.xlu0 %v9266_v45  ;;  %5910 = vset.pattern.permute.xlu1 %v9267_v40 }
 0xd26   :  { %3460 = vperm.xlu0 %5936, %v8207_v51   ;;  %3766 = vperm.xlu1 %5910, %v8207_v51  }
 0xd2a   :  { %5939 = vset.pattern.permute.xlu0 %v9268_v43  ;;  %5911 = vset.pattern.permute.xlu1 %v9269_v20 }
 0xd2b   :  { %3487 = vperm.xlu0 %5939, %v8207_v51   ;;  %3549 = vperm.xlu1 %5911, %v8207_v51  }
 0xd2f   :  { %5913 = vset.pattern.permute.xlu1 %v9270_v58  ;;  %5942 = vset.pattern.permute.xlu0 %v9264_v61  ;;  %v9290_v58 = vmov 3  }
 0xd30   :  { %3725 = vperm.xlu1 %5913, %v8207_v51  }
 0xd34   :  { %5914 = vset.pattern.permute.xlu1 %v9271_v47 }
 0xd35   :  { %3813 = vperm.xlu1 %5914, %v8207_v51  }
 0xd39   :  { %5915 = vset.pattern.permute.xlu1 %v9272_v0 }
 0xd3a   :  { %3596 = vperm.xlu1 %5915, %v8207_v51  }
 0xd3d   :  { %v8304_v36 = vpop.permute.xlu1 %3514  ;;  %v8322_v33 = vpop.permute.xlu0 %3519 }
 0xd3e   :  { %5917 = vset.pattern.permute.xlu1 %v9273_v63  ;;  %v9291_v63 = vmov 4  }
 0xd3f   :  { %3772 = vperm.xlu1 %5917, %v8207_v51  }
 0xd42   :  { %v3562_v22 = vpop.permute.xlu1 %3561  ;;  %v8330_v25 = vpop.permute.xlu0 %3525 }
 0xd43   :  { %5918 = vset.pattern.permute.xlu1 %v9274_v37  ;;  %v3564_v32 = vmul.f32 %v3562_v22, %v9275_v50 }
 0xd44   :  { %3555 = vperm.xlu1 %5918, %v8207_v51  }
 0xd47   :  { %v3567_v7 = vpop.permute.xlu1 %3566  ;;  %v3573_v3 = vpop.permute.xlu0 %3572 }
 0xd48   :  { %v3569_v59 = vmul.f32 %v3567_v7, %v9276_v56  ;;  %5920 = vset.pattern.permute.xlu1 %v9277_v1  ;;  %v3575_v57 = vmul.f32 %v3573_v3, %v9282_v14  ;;  %v9292_v7 = vmov 6  }
 0xd49   :  { %3731 = vperm.xlu1 %5920, %v8207_v51  }
 0xd4a   :  { %v3570_v38 = vadd.f32 %v3569_v59, %v3564_v32 }
 0xd4c   :  { %v3609_v52 = vpop.permute.xlu1 %3608  ;;  %v3576_v10 = vadd.f32 %v3575_v57, %v3570_v38  ;;  %v3532_v13 = vpop.permute.xlu0 %3531  ;;  %v9293_v38 = vmov 7  }
 0xd4d   :  { %5921 = vset.pattern.permute.xlu1 %v9278_v15  ;;  %v3611_v28 = vmul.f32 %v3609_v52, %v9275_v50  ;;  %v3534_v57 = vmul.f32 %v3532_v13, %v9285_v44 }
 0xd4e   :  { %3819 = vperm.xlu1 %5921, %v8207_v51  }
 0xd51   :  { %v3614_v62 = vpop.permute.xlu1 %3613  ;;  %v3708_v39 = vpop.permute.xlu0 %3707 }
 0xd52   :  { %v3616_v21 = vmul.f32 %v3614_v62, %v9276_v56  ;;  %5922 = vset.pattern.permute.xlu1 %v9279_v6  ;;  %v3710_v45 = vmul.f32 %v3708_v39, %v9276_v56  ;;  %v9297_v39 = vld [vmem:[#allocation53_spill] sm:$0xff] }
 0xd53   :  { %3602 = vperm.xlu1 %5922, %v8207_v51  }
 0xd54   :  { %v3617_v42 = vadd.f32 %v3616_v21, %v3611_v28 }
 0xd56   :  { %v3656_v29 = vpop.permute.xlu1 %3655  ;;  %v3667_v22 = vpop.permute.xlu0 %3666 }
 0xd57   :  { %5924 = vset.pattern.permute.xlu1 %v9280_v9  ;;  %v3658_v41 = vmul.f32 %v3656_v29, %v9275_v50 }
 0xd58   :  { %3778 = vperm.xlu1 %5924, %v8207_v51  }
 0xd5b   :  { %v3661_v2 = vpop.permute.xlu1 %3660  ;;  %v3538_v32 = vpop.permute.xlu0 %3537 }
 0xd5c   :  { %v3663_v23 = vmul.f32 %v3661_v2, %v9276_v56  ;;  %5925 = vset.pattern.permute.xlu1 %v9281_v46 }
 0xd5d   :  { %3649 = vperm.xlu1 %5925, %v8207_v51  }
 0xd5e   :  { %v8328_v8 = vadd.f32 %v3663_v23, %v3658_v41 }
 0xd60   :  { %v3620_v54 = vpop.permute.xlu1 %3619  ;;  %v8370_v15 = vpop.permute.xlu0 %3796 }
 0xd61   :  { %v3622_v55 = vmul.f32 %v3620_v54, %v9282_v14  ;;  %5927 = vset.pattern.permute.xlu1 %v9283_v11  ;;  %v3522_v11 = vmul.f32 %v8322_v33, %v9276_v56 }
 0xd62   :  { %3825 = vperm.xlu1 %5927, %v8207_v51  }
 0xd63   :  { %v3623_v35 = vadd.f32 %v3622_v55, %v3617_v42 }
 0xd65   :  { %v3703_v26 = vpop.permute.xlu1 %3702  ;;  %v3585_v21 = vpop.permute.xlu0 %3584 }
 0xd66   :  { %5929 = vset.pattern.permute.xlu1 %v9284_v53  ;;  %v3705_v61 = vmul.f32 %v3703_v26, %v9275_v50  ;;  %v3528_v26 = vmul.f32 %v8330_v25, %v9282_v14 }
 0xd67   :  { %3784 = vperm.xlu1 %5929, %v8207_v51  }
 0xd68   :  { %v3711_v43 = vadd.f32 %v3710_v45, %v3705_v61  ;;  %v3669_v61 = vmul.f32 %v3667_v22, %v9282_v14 }
 0xd6a   :  { %v3579_v31 = vpop.permute.xlu1 %3578  ;;  %v3544_v9 = vpop.permute.xlu0 %3543 }
 0xd6b   :  { %v3581_v49 = vmul.f32 %v3579_v31, %v9285_v44  ;;  %5930 = vset.pattern.permute.xlu1 %v9286_v4 }
 0xd6c   :  { %3743 = vperm.xlu1 %5930, %v8207_v51  }
 0xd6d   :  { %v8341_v30 = vadd.f32 %v3581_v49, %v3576_v10  ;;  %v9294_v49 = vld [vmem:[#allocation47_spill] sm:$0xff] }
 0xd6e   :  { %v3540_v4 = vmul.f32 %v3538_v32, %v9294_v49 }
 0xd6f   :  { %v3750_v5 = vpop.permute.xlu1 %3749  ;;  %v8377_v41 = vpop.permute.xlu0 %3807 }
 0xd70   :  { %5932 = vset.pattern.permute.xlu1 %v9287_v60  ;;  %v3752_v19 = vmul.f32 %v3750_v5, %v9275_v50  ;;  %v9295_v60 = vld [vmem:[#allocation50_spill] sm:$0xff] }
 0xd71   :  { %3790 = vperm.xlu1 %5932, %v8207_v51  }
 0xd74   :  { %v3755_v24 = vpop.permute.xlu1 %3754  ;;  %v3679_v46 = vpop.permute.xlu0 %3678 }
 0xd75   :  { %v3757_v16 = vmul.f32 %v3755_v24, %v9276_v56  ;;  %5934 = vset.pattern.permute.xlu1 %v9288_v34  ;;  %v3546_v24 = vmul.f32 %v3544_v9, %v9295_v60  ;;  %v9296_v34 = vld [vmem:[#allocation52_spill] sm:$0xff] }
 0xd76   :  { %3444 = vperm.xlu1 %5934, %v8207_v51  }
 0xd77   :  { %v3758_v48 = vadd.f32 %v3757_v16, %v3752_v19 }
 0xd79   :  { %v3626_v17 = vpop.permute.xlu1 %3625  ;;  %v3638_v54 = vpop.permute.xlu0 %3637 }
 0xd7a   :  { %v3628_v18 = vmul.f32 %v3626_v17, %v9285_v44  ;;  %5935 = vset.pattern.permute.xlu1 %v9289_v12 }
 0xd7b   :  { %3451 = vperm.xlu1 %5935, %v8207_v51  }
 0xd7c   :  { %v8353_v27 = vadd.f32 %v3628_v18, %v3623_v35  ;;  %v3517_v35 = vmul.f32 %v8304_v36, %v9275_v50 }
 0xd7e   :  { %v3714_v40 = vpop.permute.xlu1 %3713  ;;  %v3523_v53 = vadd.f32 %v3522_v11, %v3517_v35  ;;  %v3685_v31 = vpop.permute.xlu0 %3684  ;;  %v3640_v35 = vmul.f32 %v3638_v54, %v9295_v60 }
 0xd7f   :  { %v3716_v20 = vmul.f32 %v3714_v40, %v9282_v14  ;;  %5937 = vset.pattern.permute.xlu1 %v9290_v58 }
 0xd80   :  { %3469 = vperm.xlu1 %5937, %v8207_v51   ;;  %v3529_v10 = vadd.f32 %v3528_v26, %v3523_v53 }
 0xd81   :  { %v3717_v47 = vadd.f32 %v3716_v20, %v3711_v43  ;;  %v3670_v43 = vadd.f32 %v3669_v61, %v8328_v8 }
 0xd82   :  { %v3535_v5 = vadd.f32 %v3534_v57, %v3529_v10 }
 0xd83   :  { %v8359_v0 = vpop.permute.xlu1 %3801  ;;  %v3644_v16 = vpop.permute.xlu0 %3643 }
 0xd84   :  { %5938 = vset.pattern.permute.xlu1 %v9291_v63  ;;  %v3541_v33 = vadd.f32 %v3540_v4, %v3535_v5  ;;  %v3681_v63 = vmul.f32 %v3679_v46, %v9294_v49  ;;  %v3646_v57 = vmul.f32 %v3644_v16, %v9296_v34  ;;  %v3887_v5 = vld [vmem:[%s8672_s2 + $0x38] sm:$0xff] }
 0xd85   :  { %3478 = vperm.xlu1 %5938, %v8207_v51  }
 0xd88   :  { %v3673_v37 = vpop.permute.xlu1 %3672  ;;  %v3691_v12 = vpop.permute.xlu0 %3690 }
 0xd89   :  { %5940 = vset.pattern.permute.xlu1 %v9292_v7  ;;  %v3675_v45 = vmul.f32 %v3673_v37, %v9285_v44  ;;  %v3687_v37 = vmul.f32 %v3685_v31, %v9295_v60  ;;  %v3693_v46 = vmul.f32 %v3691_v12, %v9296_v34  ;;  %v3804_v31 = vmul.f32 %v8359_v0, %v9276_v56  ;;  %v3886_v0 = vld [vmem:[%s8672_s2 + $0x30] sm:$0xff]  ;;  %v3885_v12 = vld [vmem:[%s8672_s2 + $0x28] sm:$0xff] }
 0xd8a   :  { %3496 = vperm.xlu1 %5940, %v8207_v51   ;;  %v8453_v61 = vand.u32 4294901760, %v3885_v12 }
 0xd8b   :  { %v3676_v20 = vadd.f32 %v3675_v45, %v3670_v43 }
 0xd8d   :  { %v3761_v59 = vpop.permute.xlu1 %3760  ;;  %v3738_v58 = vpop.permute.xlu0 %3737 }
 0xd8e   :  { %v3763_v1 = vmul.f32 %v3761_v59, %v9282_v14  ;;  %5941 = vset.pattern.permute.xlu1 %v9293_v38  ;;  %v3682_v59 = vadd.f32 %v3681_v63, %v3676_v20  ;;  %v3884_v20 = vld [vmem:[%s8672_s2 + $0x20] sm:$0xff] }
 0xd8f   :  { %3505 = vperm.xlu1 %5941, %v8207_v51  }
 0xd90   :  { %v8368_v52 = vadd.f32 %v3763_v1, %v3758_v48  ;;  %v3547_v48 = vadd.f32 %v3546_v24, %v3541_v33  ;;  %v3688_v9 = vadd.f32 %v3687_v37, %v3682_v59  ;;  %v8425_v24 = vand.u32 4294901760, %v3887_v5 }
 0xd92   :  { %v3632_v62 = vpop.permute.xlu1 %3631  ;;  %v3697_v8 = vpop.permute.xlu0 %3696  ;;  %v3694_v26 = vadd.f32 %v3693_v46, %v3688_v9  ;;  %5299 = vmatprep.subr.mxu0 %v8425_v24 }
 0xd93   :  { %v3634_v38 = vmul.f32 %v3632_v62, %v9294_v49  ;;  %5300 = vmatpush3.msra.mxu0 %v8425_v24 }
 0xd95   :  { %v3635_v11 = vadd.f32 %v3634_v38, %v8353_v27  ;;  %v3799_v27 = vmul.f32 %v8370_v15, %v9275_v50  ;;  %v3810_v15 = vmul.f32 %v8377_v41, %v9282_v14 }
 0xd97   :  { %v3720_v28 = vpop.permute.xlu1 %3719  ;;  %v3641_v53 = vadd.f32 %v3640_v35, %v3635_v11  ;;  %v3805_v33 = vadd.f32 %v3804_v31, %v3799_v27 }
 0xd98   :  { %v3722_v6 = vmul.f32 %v3720_v28, %v9285_v44 }
 0xd99   :  { %v3647_v4 = vadd.f32 %v3646_v57, %v3641_v53  ;;  %v3811_v45 = vadd.f32 %v3810_v15, %v3805_v33  ;;  %v3881_v53 = vld [vmem:[%s8672_s2 + $0x8] sm:$0xff] }
 0xd9a   :  { %v8373_v42 = vadd.f32 %v3722_v6, %v3717_v47  ;;  %v3587_v47 = vmul.f32 %v3585_v21, %v9294_v49  ;;  %v8518_v27 = vand.u32 4294901760, %v3881_v53 }
 0xd9c   :  { %v3591_v29 = vpop.permute.xlu1 %3590  ;;  %v3588_v1 = vadd.f32 %v3587_v47, %v8341_v30 }
 0xd9d   :  { %v3593_v7 = vmul.f32 %v3591_v29, %v9295_v60  ;;  %v3699_v29 = vmul.f32 %v3697_v8, %v9297_v39 }
 0xd9f   :  { %v3594_v28 = vadd.f32 %v3593_v7, %v3588_v1  ;;  %v8477_v1 = vand.u32 4294901760, %v3884_v20 }
 0xda1   :  { %v8375_v2 = vpop.permute.xlu1 %3766  ;;  %v8491_v9 = vsub.f32 %v3884_v20, %v8477_v1 }
 0xda6   :  { %v3550_v23 = vpop.permute.xlu1 %3549 }
 0xda7   :  { %v3552_v36 = vmul.f32 %v3550_v23, %v9296_v34 }
 0xda9   :  { %v3553_v25 = vadd.f32 %v3552_v36, %v3547_v48  ;;  %v8431_v36 = vsub.f32 %v3887_v5, %v8425_v24  ;;  %v8433_v48 = vand.u32 4294901760, %v3886_v0 }
 0xdab   :  { %v8379_v51 = vpop.permute.xlu1 %3725  ;;  %v8451_v41 = vsub.f32 %v3886_v0, %v8433_v48  ;;  %5301 = vmatprep.subr.mxu0 %v8433_v48 }
 0xdac   :  { %5302 = vmatpush3.msra.mxu0 %v8433_v48 }
 0xdad   :  { %v8468_v7 = vand.u32 4294901760, %v8451_v41  ;;  %5303 = vmatprep.subr.mxu0 %v8453_v61 }
 0xdae   :  { %5304 = vmatpush3.msra.mxu0 %v8453_v61 }
 0xdaf   :  { %5305 = vmatprep.subr.mxu0 %v8477_v1 }
 0xdb0   :  { %v8381_v55 = vpop.permute.xlu1 %3813  ;;  %5306 = vmatpush3.msra.mxu0 %v8477_v1 }
 0xdb5   :  { %v3597_v3 = vpop.permute.xlu1 %3596 }
 0xdb6   :  { %v3599_v22 = vmul.f32 %v3597_v3, %v9296_v34  ;;  %v3700_v3 = vadd.f32 %v3699_v29, %v3694_v26  ;;  %v8506_v26 = vand.u32 4294901760, %v8491_v9 }
 0xdb8   :  { %v3600_v23 = vadd.f32 %v3599_v22, %v3594_v28  ;;  %v3832_v22 = vpop.permute.xlu0 %3831  ;;  %v4561_v33 = vsub.f32 %v8491_v9, %v8506_v26 }
 0xdba   :  { %v8392_v19 = vpop.permute.xlu1 %3772 }
 0xdbb   :  { %v3775_v59 = vmul.f32 %v8392_v19, %v9294_v49 }
 0xdbf   :  { %v3556_v17 = vpop.permute.xlu1 %3555 }
 0xdc0   :  { %v3558_v18 = vmul.f32 %v3556_v17, %v9297_v39  ;;  %v3728_v17 = vmul.f32 %v8379_v51, %v9294_v49  ;;  %v3740_v51 = vmul.f32 %v3738_v58, %v9296_v34  ;;  %v8471_v58 = vsub.f32 %v3885_v12, %v8453_v61 }
 0xdc2   :  { %v3559_v13 = vadd.f32 %v3558_v18, %v3553_v25  ;;  %v3816_v25 = vmul.f32 %v8381_v55, %v9285_v44  ;;  %v3769_v55 = vmul.f32 %v8375_v2, %v9285_v44  ;;  %v3729_v2 = vadd.f32 %v3728_v17, %v8373_v42 }
 0xdc3   :  { %v4547_v42 = vsub.f32 %v8451_v41, %v8468_v7  ;;  %v8487_v8 = vand.u32 4294901760, %v8471_v58 }
 0xdc4   :  { %3843 = vrot.lane.b32.xlu0 %v3559_v13, %s6046_s11  ;;  %v3732_v40 = vpop.permute.xlu1 %3731  ;;  %v8448_v13 = vand.u32 4294901760, %v8431_v36  ;;  %v3770_v19 = vadd.f32 %v3769_v55, %v8368_v52  ;;  %v3834_v52 = vmul.f32 %v3832_v22, %v9296_v34  ;;  %v4562_v55 = vand.u32 4294901760, %v4561_v33 }
 0xdc5   :  { %v3734_v43 = vmul.f32 %v3732_v40, %v9295_v60  ;;  %v3817_v40 = vadd.f32 %v3816_v25, %v3811_v45  ;;  %v4548_v29 = vand.u32 4294901760, %v4547_v42  ;;  %v4554_v11 = vsub.f32 %v8471_v58, %v8487_v8 }
 0xdc6   :  { %v4540_v63 = vsub.f32 %v8431_v36, %v8448_v13  ;;  %v3776_v35 = vadd.f32 %v3775_v59, %v3770_v19 }
 0xdc7   :  { %v4555_v31 = vand.u32 4294901760, %v4554_v11 }
 0xdc8   :  { %v4541_v28 = vand.u32 4294901760, %v4540_v63 }
 0xdc9   :  { %v3820_v32 = vpop.permute.xlu1 %3819 }
 0xdca   :  { %v3822_v47 = vmul.f32 %v3820_v32, %v9294_v49  ;;  %v3883_v32 = vld [vmem:[%s8672_s2 + $0x18] sm:$0xff]  ;;  %5318 = vmatprep.subr.mxu1 %v4541_v28 }
 0xdcb   :  { %5319 = vmatpush3.msra.mxu1 %v4541_v28 }
 0xdcc   :  { %v3823_v46 = vadd.f32 %v3822_v47, %v3817_v40  ;;  %5320 = vmatprep.subr.mxu1 %v4548_v29 }
 0xdcd   :  { %5321 = vmatpush3.msra.mxu1 %v4548_v29 }
 0xdce   :  { %v3603_v6 = vpop.permute.xlu1 %3602  ;;  %5322 = vmatprep.subr.mxu1 %v4555_v31 }
 0xdcf   :  { %v3605_v21 = vmul.f32 %v3603_v6, %v9297_v39  ;;  %v3735_v6 = vadd.f32 %v3734_v43, %v3729_v2  ;;  %5323 = vmatpush3.msra.mxu1 %v4555_v31 }
 0xdd0   :  { %5324 = vmatprep.subr.mxu1 %v4562_v55 }
 0xdd1   :  { %v3606_v30 = vadd.f32 %v3605_v21, %v3600_v23  ;;  %v8493_v23 = vand.u32 4294901760, %v3883_v32  ;;  %v3882_v21 = vld [vmem:[%s8672_s2 + $0x10] sm:$0xff]  ;;  %v3741_v15 = vadd.f32 %v3740_v51, %v3735_v6  ;;  %5325 = vmatpush3.msra.mxu1 %v4562_v55 }
 0xdd3   :  { %3847 = vrot.lane.b32.xlu1 %v3606_v30, %s6048_s13  ;;  %v8413_v62 = vpop.permute.xlu1 %3778  ;;  %v8501_v30 = vand.u32 4294901760, %v3882_v21  ;;  %5307 = vmatprep.subr.mxu0 %v8493_v23 }
 0xdd4   :  { %5308 = vmatpush3.msra.mxu0 %v8493_v23 }
 0xdd5   :  { %5309 = vmatprep.subr.mxu0 %v8501_v30 }
 0xdd6   :  { %5310 = vmatpush3.msra.mxu0 %v8501_v30 }
 0xdd7   :  { %3855 = vrot.lane.b32.xlu1 %v3700_v3, %s6050_s15  ;;  %v8509_v3 = vsub.f32 %v3883_v32, %v8493_v23  ;;  %5311 = vmatprep.subr.mxu0 %v8518_v27 }
 0xdd8   :  { %v3650_v10 = vpop.permute.xlu1 %3649  ;;  %5312 = vmatpush3.msra.mxu0 %v8518_v27 }
 0xdd9   :  { %v3652_v54 = vmul.f32 %v3650_v10, %v9297_v39  ;;  %v8516_v10 = vsub.f32 %v3882_v21, %v8501_v30 }
 0xddb   :  { %v3653_v16 = vadd.f32 %v3652_v54, %v3647_v4  ;;  %v3880_v4 = vld [vmem:[%s8672_s2] sm:$0xff]  ;;  %v3781_v54 = vmul.f32 %v8413_v62, %v9295_v60  ;;  %v8536_v25 = vand.u32 4294901760, %v8516_v10  ;;  %v8539_v62 = vsub.f32 %v3881_v53, %v8518_v27 }
 0xddc   :  { %v8531_v0 = vand.u32 4294901760, %v3880_v4 }
 0xddd   :  { %3851 = vrot.lane.b32.xlu0 %v3653_v16, %s6045_s10  ;;  %v3826_v18 = vpop.permute.xlu1 %3825  ;;  %v8529_v16 = vand.u32 4294901760, %v8509_v3  ;;  %v4575_v47 = vsub.f32 %v8516_v10, %v8536_v25  ;;  %v8552_v63 = vand.u32 4294901760, %v8539_v62  ;;  %v3782_v2 = vadd.f32 %v3781_v54, %v3776_v35 }
 0xdde   :  { %v3828_v37 = vmul.f32 %v3826_v18, %v9295_v60  ;;  %v3838_v18 = vpop.permute.xlu0 %3837  ;;  %v8546_v51 = vsub.f32 %v3880_v4, %v8531_v0  ;;  %5313 = vmatprep.subr.mxu0 %v8531_v0 }
 0xddf   :  { %v4568_v45 = vsub.f32 %v8509_v3, %v8529_v16  ;;  %v3840_v32 = vmul.f32 %v3838_v18, %v9297_v39  ;;  %5314 = vmatpush3.msra.mxu0 %v8531_v0 }
 0xde0   :  { %v3829_v57 = vadd.f32 %v3828_v37, %v3823_v46  ;;  %v8556_v59 = vand.u32 4294901760, %v8546_v51  ;;  %v4576_v37 = vand.u32 4294901760, %v4575_v47  ;;  %5337 = vmatprep.subr.mxu0 %v8431_v36 }
 0xde1   :  { %v4569_v40 = vand.u32 4294901760, %v4568_v45 }
 0xde2   :  { %v3785_v38 = vpop.permute.xlu1 %3784  ;;  %v3835_v43 = vadd.f32 %v3834_v52, %v3829_v57  ;;  %v4589_v19 = vsub.f32 %v8546_v51, %v8556_v59  ;;  %v3461_v31 = vpop.permute.xlu0 %3460 }
 0xde3   :  { %v3787_v12 = vmul.f32 %v3785_v38, %v9296_v34  ;;  %v4582_v38 = vsub.f32 %v8539_v62, %v8552_v63  ;;  %5326 = vmatprep.subr.mxu1 %v4569_v40 }
 0xde4   :  { %v3841_v6 = vadd.f32 %v3840_v32, %v3835_v43  ;;  %5327 = vmatpush3.msra.mxu1 %v4569_v40  ;;  %v4590_v29 = vand.u32 4294901760, %v4589_v19 }
 0xde5   :  { %v3788_v28 = vadd.f32 %v3787_v12, %v3782_v2  ;;  %v4583_v21 = vand.u32 4294901760, %v4582_v38  ;;  %5328 = vmatprep.subr.mxu1 %v4576_v37 }
 0xde6   :  { %5329 = vmatpush3.msra.mxu1 %v4576_v37  ;;  %v3488_v55 = vpop.permute.xlu0 %3487 }
 0xde7   :  { %v3744_v5 = vpop.permute.xlu1 %3743  ;;  %5330 = vmatprep.subr.mxu1 %v4583_v21  ;;  %v3493_v43 = vmul.f32 %v9295_v60, %v3488_v55 }
 0xde8   :  { %v3746_v17 = vmul.f32 %v3744_v5, %v9297_v39  ;;  %5331 = vmatpush3.msra.mxu1 %v4583_v21  ;;  %v3466_v5 = vmul.f32 %v9282_v14, %v3461_v31 }
 0xde9   :  { %5332 = vmatprep.subr.mxu1 %v4590_v29 }
 0xdea   :  { %v3747_v20 = vadd.f32 %v3746_v17, %v3741_v15  ;;  %5333 = vmatpush3.msra.mxu1 %v4590_v29 }
 0xdeb   :  { %5356 = vmatprep.subr.mxu1 %v8425_v24 }
 0xdec   :  { %3859 = vrot.lane.b32.xlu0 %v3747_v20, %s6047_s12  ;;  %v3791_v22 = vpop.permute.xlu1 %3790 }
 0xded   :  { %v3793_v42 = vmul.f32 %v3791_v22, %v9297_v39 }
 0xdef   :  { %v3794_v46 = vadd.f32 %v3793_v42, %v3788_v28 }
 0xdf0   :  { %3867 = vrot.lane.b32.xlu0 %v3841_v6, %s6049_s14  ;;  %s6052_s14 = smov [#allocation3]  }
 0xdf1   :  { %3863 = vrot.lane.b32.xlu1 %v3794_v46, %s6051_s16  ;;  %v3445_v11 = vpop.permute.xlu1 %3444  ;;  %s5023_s16 = sshll.u32 %s6052_s14, 4  ;;  %s5024_s16 = int_to_ptr.vmem [resolvable:$true] %s5023_s16 }
 0xdf2   :  { %v3449_v57 = vmul.f32 %v9275_v50, %v3445_v11  ;;  %s5951_s17 = scalar_lea.vmem %s5024_s16, 256  ;;  %p5956_p1 = scmp.lt.s32.totalorder %s5024_s16, %s5024_s16 }
 0xdf3   :  { %p5952_p0 = scmp.ne.s32.totalorder %s5024_s16, %s5951_s17  ;;  %p5957_p2 = scmp.lt.s32.totalorder %s5951_s17, %s5951_s17 }
 0xdf5   :  { %p5958_p3 = por %p5957_p2, %p5956_p1 }
 0xdf6   :  { %v3452_v52 = vpop.permute.xlu1 %3451 }
 0xdf7   :  { %v3457_v53 = vmul.f32 %v9276_v56, %v3452_v52  ;;  %v9298_v52 = vld [vmem:[#allocation23_spill] sm:$0xff]  ;;  %p5959_p4 = pnand %p5958_p3, %p5952_p0 }
 0xdf9   :  { %v3458_v4 = vadd.f32 %v3457_v53, %v3449_v57 }
 0xdfb   :  { %v3470_v35 = vpop.permute.xlu1 %3469  ;;  %v3467_v33 = vadd.f32 %v3466_v5, %v3458_v4 }
 0xdfc   :  { %v3475_v15 = vmul.f32 %v9285_v44, %v3470_v35  ;;  %v9299_v35 = vand.u32 4294901760, %v9298_v52 }
 0xdfe   :  { %v3476_v12 = vadd.f32 %v3475_v15, %v3467_v33 }
 0xe00   :  { %v3479_v54 = vpop.permute.xlu1 %3478 }
 0xe01   :  { %v3484_v17 = vmul.f32 %v9294_v49, %v3479_v54 }
 0xe03   :  { %v3485_v45 = vadd.f32 %v3484_v17, %v3476_v12 }
 0xe05   :  { %v3497_v18 = vpop.permute.xlu1 %3496  ;;  %v3494_v56 = vadd.f32 %v3493_v43, %v3485_v45 }
 0xe06   :  { %v3502_v50 = vmul.f32 %v9296_v34, %v3497_v18 }
 0xe08   :  { %v3503_v40 = vadd.f32 %v3502_v50, %v3494_v56 }
 0xe0a   :  { %v3506_v20 = vpop.permute.xlu1 %3505 }
 0xe0b   :  { %v3511_v2 = vmul.f32 %v9297_v39, %v3506_v20 }
 0xe0d   :  { %v3512_v22 = vadd.f32 %v3511_v2, %v3503_v40 }
 0xe36   :  { %v3844_v47 = vpop.permute.xlu0 %3843 }
 0xe37   :  { %v3870_v44 = vsel %vm1046_vm4, %v3512_v22, %v3844_v47 }
 0xe45   :  { %v3848_v14 = vpop.permute.xlu1 %3847 }
 0xe46   :  { %v3871_v49 = vsel %vm1048_vm5, %v3870_v44, %v3848_v14 }
 0xe49   :  { %v3856_v38 = vpop.permute.xlu1 %3855 }
 0xe4f   :  { %v3852_v32 = vpop.permute.xlu0 %3851 }
 0xe50   :  { %v3872_v28 = vsel %vm1050_vm6, %v3871_v49, %v3852_v32  ;;  %v5034_v32 = vld [vmem:[%s8674_s4] ss:$0 sm:$0xff] }
 0xe51   :  { %v3873_v60 = vsel %vm27_vm0, %v3872_v28, %v3856_v38 }
 0xe5e   :  { %v3860_v37 = vpop.permute.xlu0 %3859 }
 0xe5f   :  { %v3874_v42 = vsel %vm1053_vm7, %v3873_v60, %v3860_v37 }
 0xe62   :  { %v3868_v19 = vpop.permute.xlu0 %3867 }
 0xe63   :  { %v3864_v34 = vpop.permute.xlu1 %3863 }
 0xe64   :  { %v3875_v39 = vsel %vm1055_vm8, %v3874_v42, %v3864_v34 }
 0xe65   :  { %v3876_v6 = vsel %vm1057_vm9, %v3875_v39, %v3868_v19 }
 0xe66   :  { %3877 = vst.msk [vmem:[#allocation2 + $0xe] sm:$0x3] %vm616_vm3, %v3876_v6 }
 0xe6d   :  { %v3879_v21 = vld [vmem:[#allocation2 + $0x8] sm:$0xff] }
 0xe6e   :  { %v4425_v46 = vsel %vm4420_vm10, %v3879_v21, 0 }
 0xe6f   :  { %v8588_v29 = vand.u32 4294901760, %v4425_v46 }
 0xe71   :  { %v4511_v11 = vsub.f32 %v4425_v46, %v8588_v29  ;;  %5335 = vmatmul.mubr.f32.vlgmr.msra.gmra.mxu1 %v8588_v29 }
 0xe72   :  { %5357 = vmatpush3.msra.mxu1 %v8425_v24  ;;  %5372 = vmatprep.mubr.f32.mxu1 %v9299_v35 }
 0xe73   :  { %5358 = vmatprep.subr.mxu1 %v8433_v48  ;;  %v4512_v53 = vand.u32 4294901760, %v4511_v11 }
 0xe74   :  { %5359 = vmatpush3.msra.mxu1 %v8433_v48 }
 0xe75   :  { %5360 = vmatprep.subr.mxu1 %v8453_v61  ;;  %v4513_v57 = vsub.f32 %v4511_v11, %v4512_v53 }
 0xe76   :  { %5361 = vmatpush3.msra.mxu1 %v8453_v61 }
 0xe77   :  { %5362 = vmatprep.subr.mxu1 %v8477_v1  ;;  %v4514_v31 = vand.u32 4294901760, %v4513_v57 }
 0xe78   :  { %5363 = vmatpush3.msra.mxu1 %v8477_v1 }
 0xe79   :  { %5364 = vmatprep.subr.mxu1 %v8493_v23  ;;  %5316 = vmatmul.mubr.f32.vlgmr.msra.gmra.mxu0 %v4514_v31 }
 0xe7a   :  { %5338 = vmatpush3.msra.mxu0 %v8431_v36  ;;  %5365 = vmatpush3.msra.mxu1 %v8493_v23  ;;  %v9300_v36 = vld [vmem:[#allocation54_spill] sm:$0xff] }
 0xe7b   :  { %5339 = vmatprep.subr.mxu0 %v8451_v41  ;;  %5353 = vmatprep.mubr.f32.mxu0 %v9298_v52 }
 0xe7c   :  { %5366 = vmatprep.subr.mxu1 %v8501_v30  ;;  %5340 = vmatpush3.msra.mxu0 %v8451_v41 }
 0xe7d   :  { %5367 = vmatpush3.msra.mxu1 %v8501_v30  ;;  %5341 = vmatprep.subr.mxu0 %v8471_v58 }
 0xe7e   :  { %5368 = vmatprep.subr.mxu1 %v8518_v27  ;;  %5342 = vmatpush3.msra.mxu0 %v8471_v58 }
 0xe7f   :  { %5369 = vmatpush3.msra.mxu1 %v8518_v27  ;;  %5343 = vmatprep.subr.mxu0 %v8491_v9 }
 0xe80   :  { %5370 = vmatprep.subr.mxu1 %v8531_v0  ;;  %5344 = vmatpush3.msra.mxu0 %v8491_v9 }
 0xe81   :  { %5371 = vmatpush3.msra.mxu1 %v8531_v0  ;;  %5345 = vmatprep.subr.mxu0 %v8509_v3 }
 0xe82   :  { %5373 = vmatmul.mubr.f32.vlgmr.msra.gmra.mxu1 %v4512_v53  ;;  %5394 = vmatprep.subr.mxu1 %v8425_v24 }
 0xe83   :  { %5346 = vmatpush3.msra.mxu0 %v8509_v3  ;;  %5395 = vmatpush3.msra.mxu1 %v8425_v24  ;;  %v5243_v24 = vpop.f32.mrf.mxu0 }
 0xe84   :  { %5410 = vmatprep.mubr.f32.mxu1 %v9300_v36  ;;  %5347 = vmatprep.subr.mxu0 %v8516_v10 }
 0xe85   :  { %5396 = vmatprep.subr.mxu1 %v8433_v48  ;;  %5348 = vmatpush3.msra.mxu0 %v8516_v10 }
 0xe86   :  { %5397 = vmatpush3.msra.mxu1 %v8433_v48  ;;  %5349 = vmatprep.subr.mxu0 %v8539_v62  ;;  %v3967_v48 = vpop.f32.mrf.mxu0 }
 0xe87   :  { %5398 = vmatprep.subr.mxu1 %v8453_v61  ;;  %5350 = vmatpush3.msra.mxu0 %v8539_v62 }
 0xe88   :  { %5399 = vmatpush3.msra.mxu1 %v8453_v61  ;;  %5351 = vmatprep.subr.mxu0 %v8546_v51  ;;  %v5265_v61 = vpop.f32.mrf.mxu0 }
 0xe89   :  { %5400 = vmatprep.subr.mxu1 %v8477_v1  ;;  %5352 = vmatpush3.msra.mxu0 %v8546_v51 }
 0xe8a   :  { %5401 = vmatpush3.msra.mxu1 %v8477_v1  ;;  %5354 = vmatmul.mubr.f32.vlgmr.msra.gmra.mxu0 %v4511_v11  ;;  %v4154_v1 = vpop.f32.mrf.mxu0 }
 0xe8b   :  { %5375 = vmatprep.subr.mxu0 %v8448_v13  ;;  %5402 = vmatprep.subr.mxu1 %v8493_v23 }
 0xe8c   :  { %5376 = vmatpush3.msra.mxu0 %v8448_v13  ;;  %5391 = vmatprep.mubr.f32.mxu0 %v9300_v36  ;;  %v5254_v13 = vpop.f32.mrf.mxu1 }
 0xe8d   :  { %5403 = vmatpush3.msra.mxu1 %v8493_v23  ;;  %5377 = vmatprep.subr.mxu0 %v8468_v7 }
 0xe8e   :  { %5404 = vmatprep.subr.mxu1 %v8501_v30  ;;  %5378 = vmatpush3.msra.mxu0 %v8468_v7  ;;  %v4068_v41 = vpop.f32.mrf.mxu1  ;;  %v4075_v7 = vadd.f32 %v5254_v13, %v5243_v24 }
 0xe8f   :  { %5405 = vmatpush3.msra.mxu1 %v8501_v30  ;;  %5379 = vmatprep.subr.mxu0 %v8487_v8  ;;  %v4069_v58 = vadd.f32 %v4068_v41, %v3967_v48 }
 0xe90   :  { %5406 = vmatprep.subr.mxu1 %v8518_v27  ;;  %5380 = vmatpush3.msra.mxu0 %v8487_v8  ;;  %v5276_v8 = vpop.f32.mrf.mxu1  ;;  %v4162_v9 = vadd.f32 %v5265_v61, %v4075_v7 }
 0xe91   :  { %5407 = vmatpush3.msra.mxu1 %v8518_v27  ;;  %5381 = vmatprep.subr.mxu0 %v8506_v26  ;;  %v4155_v23 = vadd.f32 %v4154_v1, %v4069_v58 }
 0xe92   :  { %5408 = vmatprep.subr.mxu1 %v8531_v0  ;;  %5382 = vmatpush3.msra.mxu0 %v8506_v26  ;;  %v4238_v30 = vpop.f32.mrf.mxu1  ;;  %v5287_v26 = vpop.f32.mrf.mxu0  ;;  %v4247_v3 = vadd.f32 %v5276_v8, %v4162_v9 }
 0xe93   :  { %5409 = vmatpush3.msra.mxu1 %v8531_v0  ;;  %5383 = vmatprep.subr.mxu0 %v8529_v16  ;;  %v4239_v10 = vadd.f32 %v4238_v30, %v4155_v23 }
 0xe94   :  { %5411 = vmatmul.mubr.f32.vlgmr.msra.gmra.mxu1 %v8588_v29  ;;  %5384 = vmatpush3.msra.mxu0 %v8529_v16  ;;  %v4329_v27 = vpop.f32.mrf.mxu0  ;;  %v5298_v16 = vpop.f32.mrf.mxu1  ;;  %v4336_v0 = vadd.f32 %v5287_v26, %v4247_v3 }
 0xe95   :  { %5385 = vmatprep.subr.mxu0 %v8536_v25  ;;  %v4330_v62 = vadd.f32 %v4329_v27, %v4239_v10 }
 0xe96   :  { %5386 = vmatpush3.msra.mxu0 %v8536_v25  ;;  %v4410_v51 = vpop.f32.mrf.mxu1 }
 0xe97   :  { %5387 = vmatprep.subr.mxu0 %v8552_v63  ;;  %v4411_v54 = vadd.f32 %v4410_v51, %v4330_v62 }
 0xe98   :  { %5388 = vmatpush3.msra.mxu0 %v8552_v63  ;;  %v4417_v63 = vadd.f32 %v5298_v16, %v4336_v0 }
 0xe99   :  { %5389 = vmatprep.subr.mxu0 %v8556_v59 }
 0xe9a   :  { %5390 = vmatpush3.msra.mxu0 %v8556_v59 }
 0xe9b   :  { %5392 = vmatmul.mubr.f32.vlgmr.msra.gmra.mxu0 %v8588_v29 }
 0xf31   :  { %v5336_v59 = vpop.f32.mrf.mxu1 }
 0xf33   :  { %v4627_v17 = vpop.f32.mrf.mxu1 }
 0xf39   :  { %v5317_v25 = vpop.f32.mrf.mxu0 }
 0xf3a   :  { %v4517_v5 = vadd.f32 %v5317_v25, %v4417_v63 }
 0xf3b   :  { %v4506_v4 = vpop.f32.mrf.mxu0 }
 0xf3c   :  { %v4507_v15 = vadd.f32 %v4506_v4, %v4411_v54  ;;  %v4634_v18 = vadd.f32 %v5336_v59, %v4517_v5 }
 0xf3e   :  { %v4628_v43 = vadd.f32 %v4627_v17, %v4507_v15 }
 0xf42   :  { %v5374_v12 = vpop.f32.mrf.mxu1 }
 0xf44   :  { %v4809_v56 = vpop.f32.mrf.mxu1 }
 0xf4a   :  { %v5355_v33 = vpop.f32.mrf.mxu0 }
 0xf4b   :  { %v4729_v45 = vadd.f32 %v5355_v33, %v4634_v18 }
 0xf4c   :  { %v4721_v55 = vpop.f32.mrf.mxu0 }
 0xf4d   :  { %v4722_v20 = vadd.f32 %v4721_v55, %v4628_v43  ;;  %v4818_v50 = vadd.f32 %v5374_v12, %v4729_v45 }
 0xf4f   :  { %v4810_v14 = vadd.f32 %v4809_v56, %v4722_v20 }
 0xf54   :  { %v5412_v47 = vpop.f32.mrf.mxu1 }
 0xf56   :  { %v4997_v37 = vpop.f32.mrf.mxu1 }
 0xf5b   :  { %v5393_v2 = vpop.f32.mrf.mxu0 }
 0xf5c   :  { %v4919_v40 = vadd.f32 %v5393_v2, %v4818_v50 }
 0xf5d   :  { %v4912_v22 = vpop.f32.mrf.mxu0 }
 0xf5e   :  { %v5004_v44 = vadd.f32 %v5412_v47, %v4919_v40  ;;  %v4913_v49 = vadd.f32 %v4912_v22, %v4810_v14 }
 0xf60   :  { %v5015_v38 = vadd.f32 %v5034_v32, %v5004_v44  ;;  %v4998_v28 = vadd.f32 %v4997_v37, %v4913_v49 }
 0xf62   :  { %5017 = vst.msk [vmem:[#allocation3 + $0x8] sm:$0xff] %vm27_vm0, %v5015_v38  ;;  %v5014_v60 = vadd.f32 %v5034_v32, %v4998_v28 }
 0xf64   :  { %5016 = vst.msk [vmem:[#allocation3] sm:$0xff] %vm27_vm0, %v5014_v60 }
 0xf65   :  { %5962 = shalt.err (!%p5959_p4)
}
 0xf66   :  { %s6053_s4 = smov 128  }
 0xf67   :  { %5029 = dma.vmem_to_hbm [thread:$0]  %s5024_s16, 256, %s8675_s5, [#allocation4], %s6053_s4, %s6053_s4, %s6046_s11  }
 0xf68   :  { %5971 = dma.done.wait [#allocation4], 256  }
 0xf69   :  { %5972 = vsyncadd [#allocation4], 4294967040 }
 0xf6a   :  { %5033 = vsyncpa [#allocation4], 1 }

</bundles_post_ra>
